<compile_context>
chip_gen: v6e
topology: v6e:2x2x1
jax: 0.10.0
libtpu: 0.0.40
codegen_flags: <defaults>
</compile_context>

<pallas_src>
import math
from functools import partial

import numpy as np
import jax
import jax.numpy as jnp
from jax import lax
from jax.experimental import pallas as pl
from jax.experimental.pallas import tpu as pltpu

# ------------- hyperparameters (scaled-down, consistent with the module) -----
ALPHABET_SIZE = 100          # len(string.printable)
NUM_TOKENS = 20              # synthetic token vocabulary
E = 32                       # d_model ("e")
NHEAD = 8
HEAD_DIM = E // NHEAD
CHANNELS = 16                # conv channels
FFN = 64                     # transformer feed-forward width
N_ENC_LAYERS = 2             # layers // 2
N_DEC_LAYERS = 2             # layers - layers // 2
SPEC_LEN = 36                # per-spec character length
LN_EPS = 1e-5
ATTN_NEG = -1e9

VMEM = pltpu.MemorySpace.VMEM


# ============================ slab packing ====================================

def _round8(n):
    return ((n + 7) // 8) * 8


def _pack_slab(entries):
    """Pack named 2-D f32 arrays into one [R,128] slab (blocks 8-row aligned)."""
    layout, blocks, row = {}, [], 0
    for name, arr in entries:
        arr = np.asarray(arr, np.float32)
        assert arr.ndim == 2 and arr.shape[1] <= 128, (name, arr.shape)
        r, c = arr.shape
        rp = _round8(r)
        buf = np.zeros((rp, 128), np.float32)
        buf[:r, :c] = arr
        layout[name] = (row, r, c)
        blocks.append(buf)
        row += rp
    return np.concatenate(blocks, axis=0), layout


def _param_specs():
    def sa(p):
        return [(p + "wqkv", (E, 3 * E)), (p + "bqkv", (1, 3 * E)),
                (p + "wo", (E, E)), (p + "bo", (1, E))]

    def ffn(p):
        return [(p + "w1", (E, FFN)), (p + "b1", (1, FFN)),
                (p + "w2", (FFN, E)), (p + "b2", (1, E))]

    def ln(p):
        return [(p + "_g", (1, E)), (p + "_b", (1, E))]

    specs = [("masks_w", (7, CHANNELS)), ("masks_b", (1, CHANNELS))]
    for b in ("block1", "block2"):
        # 3 convs x 3 taps (prev, center, next), each [C_in, C_out], row-stacked.
        specs += [(b + "_w", (9 * CHANNELS, CHANNELS)), (b + "_b", (3, CHANNELS))]
    specs += [("spec_proj_w", (SPEC_LEN * CHANNELS, E)), ("spec_proj_b", (1, E))]
    for i in range(N_ENC_LAYERS):
        p = "enc%d_" % i
        specs += sa(p + "sa_") + ln(p + "ln1") + ffn(p + "ffn_") + ln(p + "ln2")
    specs += ln("enc_ln")
    for i in range(N_DEC_LAYERS):
        p = "dec%d_" % i
        specs += sa(p + "sa_") + ln(p + "ln1")
        specs += [(p + "ca_wq", (E, E)), (p + "ca_bq", (1, E)),
                  (p + "ca_wkv", (E, 2 * E)), (p + "ca_bkv", (1, 2 * E)),
                  (p + "ca_wo", (E, E)), (p + "ca_bo", (1, E))]
        specs += ln(p + "ln2") + ffn(p + "ffn_") + ln(p + "ln3")
    specs += ln("dec_ln")
    specs += [("out_w", (E, NUM_TOKENS)), ("out_b", (1, NUM_TOKENS))]
    return specs


def init_params(key):
    specs = _param_specs()
    keys = jax.random.split(key, len(specs) + 2)
    params = {}
    for (name, shape), k in zip(specs, keys[:len(specs)]):
        last = name.split("_")[-1]
        if last == "g":                              # LayerNorm gain
            params[name] = jnp.ones(shape, jnp.float32)
        elif last.startswith("b"):                   # biases
            params[name] = jnp.zeros(shape, jnp.float32)
        else:                                        # weights
            params[name] = (jax.random.normal(k, shape, jnp.float32)
                            / np.sqrt(shape[0]))
    params["alphabet_emb"] = jax.random.normal(
        keys[-2], (ALPHABET_SIZE, CHANNELS), jnp.float32)
    params["button_emb"] = jax.random.normal(
        keys[-1], (NUM_TOKENS + 1, E), jnp.float32)
    return params


def pack_params(params):
    """Pack all transformer/conv/head params into one [R,128] slab (host, once)."""
    entries = [(name, np.asarray(params[name], np.float32))
               for name, _ in _param_specs()]
    slab, layout = _pack_slab(entries)
    return jnp.asarray(slab), layout


# ================= trace-time constants from jagged lengths ===================

def _sinusoidal_pe(t_max, e):
    pos = np.arange(t_max)[:, None].astype(np.float64)
    div = np.exp(np.arange(0, e, 2).astype(np.float64) * (-math.log(10000.0) / e))
    pe = np.zeros((t_max, e), np.float64)
    pe[:, 0::2] = np.sin(pos * div)
    pe[:, 1::2] = np.cos(pos * div)
    return pe


def _build_const_slab(spec_lengths, button_lengths, n_spec, n_btn, t_btn, t_spec):
    B = len(spec_lengths)
    T = t_btn + t_spec
    BT = B * T

    psel = np.zeros((BT, n_btn + n_spec), np.float32)   # jagged -> padded selection
    peseq = np.zeros((BT, E), np.float32)               # additive PE (button slots)
    valid = np.zeros((BT,), np.float32)
    batch_of = np.zeros((BT,), np.int64)
    pe = _sinusoidal_pe(t_btn, E)
    btn_off = [0] + list(np.cumsum(button_lengths))
    spec_off = [0] + list(np.cumsum(spec_lengths))
    for b in range(B):
        for t in range(T):
            r = b * T + t
            batch_of[r] = b
            if t < t_btn:
                peseq[r] = pe[t]                 # PE on every button slot (incl. padded)
                if t < button_lengths[b]:
                    psel[r, btn_off[b] + t] = 1.0
                    valid[r] = 1.0
            elif t - t_btn < spec_lengths[b]:
                psel[r, n_btn + spec_off[b] + (t - t_btn)] = 1.0
                valid[r] = 1.0
    same = batch_of[:, None] == batch_of[None, :]
    # encoder/decoder self-attn: block cross-batch + padded keys (key_padding_mask)
    self_bias = np.where(same & (valid[None, :] > 0.5), 0.0, ATTN_NEG).astype(np.float32)
    # cross-attn: torch passes no memory_key_padding_mask -> only block cross-batch
    cross_bias = np.where(same, 0.0, ATTN_NEG).astype(np.float32)

    entries = [("psel", psel), ("peseq", peseq),
               ("self_bias", self_bias), ("cross_bias", cross_bias)]
    return _pack_slab(entries)


# ================================ kernel ======================================

def _make_kernel(p_layout, c_layout, *, n_spec, B, T, NL):
    S = n_spec
    scale = 1.0 / math.sqrt(HEAD_DIM)

    def kernel(pslab, cslab, char_ref, masks_ref, btn_ref, hmask_ref, out_ref):
        # ---- lazy slab accessors (load at point of use; static 2-D ref slices) --
        def P(name, row_off=0, rows=None, cols=None):
            r0, r, c = p_layout[name]
            rows = r if rows is None else rows
            cols = c if cols is None else cols
            return pslab[r0 + row_off:r0 + row_off + rows, 0:cols]

        def Cst(name):
            r0, r, c = c_layout[name]
            return cslab[r0:r0 + r, 0:c]

        def layernorm(x, g, b):
            mu = jnp.mean(x, axis=-1, keepdims=True)
            xc = x - mu
            var = jnp.mean(xc * xc, axis=-1, keepdims=True)
            return xc * lax.rsqrt(var + LN_EPS) * g + b

        # Multi-head attention with a [H,1,E] 0/1 head mask: per-head scores via one
        # batched dot_general (Q masked per head), head merge via masked sum.
        def mha(q, k, v, bias, wo, bo):
            hmask = hmask_ref[...]                                   # [H, 1, E]
            q3 = q[None, :, :] * hmask                               # [H, Tq, E]
            k3 = jnp.broadcast_to(k[None, :, :], (NHEAD,) + k.shape)
            v3 = jnp.broadcast_to(v[None, :, :], (NHEAD,) + v.shape)
            s = lax.dot_general(q3, k3, (((2,), (2,)), ((0,), (0,))),
                                preferred_element_type=jnp.float32)  # [H, Tq, Tk]
            s = s * scale + bias                                     # bias [Tq, Tk]
            m = jnp.max(s, axis=-1, keepdims=True)
            p = jnp.exp(s - m)
            p = p / jnp.sum(p, axis=-1, keepdims=True)               # exact softmax
            o3 = lax.dot_general(p, v3, (((2,), (1,)), ((0,), (0,))),
                                 preferred_element_type=jnp.float32)  # [H, Tq, E]
            o = jnp.sum(o3 * hmask, axis=0)                           # head merge
            return jnp.dot(o, wo, preferred_element_type=jnp.float32) + bo

        def self_attn(x, bias, pfx):
            qkv = (jnp.dot(x, P(pfx + "wqkv"), preferred_element_type=jnp.float32)
                   + P(pfx + "bqkv"))
            return mha(qkv[:, :E], qkv[:, E:2 * E], qkv[:, 2 * E:],
                       bias, P(pfx + "wo"), P(pfx + "bo"))

        def cross_attn(x, mem, bias, pfx):
            q = (jnp.dot(x, P(pfx + "wq"), preferred_element_type=jnp.float32)
                 + P(pfx + "bq"))
            kv = (jnp.dot(mem, P(pfx + "wkv"), preferred_element_type=jnp.float32)
                  + P(pfx + "bkv"))
            return mha(q, kv[:, :E], kv[:, E:], bias, P(pfx + "wo"), P(pfx + "bo"))

        def ffn(x, pfx):
            hdn = jnp.maximum(
                jnp.dot(x, P(pfx + "w1"), preferred_element_type=jnp.float32)
                + P(pfx + "b1"), 0.0)
            return (jnp.dot(hdn, P(pfx + "w2"), preferred_element_type=jnp.float32)
                    + P(pfx + "b2"))

        # ---- spec character features; rows are POSITION-MAJOR: i = l*S + s -------
        h = (char_ref[...]
             + jnp.dot(masks_ref[...], P("masks_w"),
                       preferred_element_type=jnp.float32)
             + P("masks_b"))                                          # [NL, C]

        zrow = jnp.zeros((S, CHANNELS), jnp.float32)

        def conv_block(x, wname, bname):
            # Conv1d(C,C,k=3,pad=1) x3 + ReLU, residual. Neighbour taps = rows +-S
            # (same spec), zero padding folded in via slice+concat (no matmuls).
            h = x
            for i in range(3):
                hp = jnp.concatenate([zrow, h[:NL - S, :]], axis=0)   # x[l-1]
                hn = jnp.concatenate([h[S:, :], zrow], axis=0)        # x[l+1]
                h = jnp.maximum(
                    jnp.dot(hp, P(wname, (3 * i + 0) * CHANNELS, CHANNELS, CHANNELS),
                            preferred_element_type=jnp.float32)
                    + jnp.dot(h, P(wname, (3 * i + 1) * CHANNELS, CHANNELS, CHANNELS),
                              preferred_element_type=jnp.float32)
                    + jnp.dot(hn, P(wname, (3 * i + 2) * CHANNELS, CHANNELS, CHANNELS),
                              preferred_element_type=jnp.float32)
                    + P(bname, i, 1, CHANNELS), 0.0)
            return x + h

        h = conv_block(h, "block1_w", "block1_b")
        h = conv_block(h, "block2_w", "block2_b")

        # ---- spec projection Linear(36*C -> E): position block l is the contiguous
        # rows [l*S, (l+1)*S); accumulate 36 tiny [S,C]x[C,E] matmuls. -------------
        acc = jnp.zeros((S, E), jnp.float32)
        for l in range(SPEC_LEN):
            acc = acc + jnp.dot(h[l * S:(l + 1) * S, :],
                                P("spec_proj_w", l * CHANNELS, CHANNELS, E),
                                preferred_element_type=jnp.float32)
        spec_vec = acc + P("spec_proj_b")                             # [S, E]

        # ---- assemble the padded [B*T, E] sequence (buttons+PE, then specs) ------
        src = jnp.concatenate([btn_ref[...], spec_vec], axis=0)       # [n_btn+S, E]
        seq = (jnp.dot(Cst("psel"), src, preferred_element_type=jnp.float32)
               + Cst("peseq"))                                        # [BT, E]

        # ---- transformer (post-norm + final norms), flattened over (batch, time);
        # cross-batch attention is blocked by the additive bias masks. -------------
        self_bias = Cst("self_bias")
        cross_bias = Cst("cross_bias")

        mem = seq
        for i in range(N_ENC_LAYERS):
            pfx = "enc%d_" % i
            mem = layernorm(mem + self_attn(mem, self_bias, pfx + "sa_"),
                            P(pfx + "ln1_g"), P(pfx + "ln1_b"))
            mem = layernorm(mem + ffn(mem, pfx + "ffn_"),
                            P(pfx + "ln2_g"), P(pfx + "ln2_b"))
        mem = layernorm(mem, P("enc_ln_g"), P("enc_ln_b"))

        out = seq
        for i in range(N_DEC_LAYERS):
            pfx = "dec%d_" % i
            out = layernorm(out + self_attn(out, self_bias, pfx + "sa_"),
                            P(pfx + "ln1_g"), P(pfx + "ln1_b"))
            out = layernorm(out + cross_attn(out, mem, cross_bias, pfx + "ca_"),
                            P(pfx + "ln2_g"), P(pfx + "ln2_b"))
            out = layernorm(out + ffn(out, pfx + "ffn_"),
                            P(pfx + "ln3_g"), P(pfx + "ln3_b"))
        out = layernorm(out, P("dec_ln_g"), P("dec_ln_b"))

        # ---- per-state max over its contiguous T slots (all slots, like torch
        # `output.max(0)`), output layer, log_softmax. -----------------------------
        xm = jnp.concatenate(
            [jnp.max(out[b * T:(b + 1) * T, :], axis=0, keepdims=True)
             for b in range(B)], axis=0)                              # [B, E]
        logits = (jnp.dot(xm, P("out_w"), preferred_element_type=jnp.float32)
                  + P("out_b"))
        z = logits - jnp.max(logits, axis=-1, keepdims=True)
        out_ref[...] = z - jnp.log(jnp.sum(jnp.exp(z), axis=-1, keepdims=True))

    return kernel


# ============================== forward wrapper ================================

def robustfill_policy_forward(param_slab, alphabet_emb, button_emb,
                              all_characters, all_masks, all_buttons,
                              *, param_layout, spec_lengths, button_lengths):
    spec_lengths = tuple(int(x) for x in spec_lengths)
    button_lengths = tuple(int(x) for x in button_lengths)
    n_spec = int(all_characters.shape[0])
    n_btn = int(all_buttons.shape[0])
    t_btn = max(button_lengths)
    t_spec = max(spec_lengths)
    B = len(spec_lengths)
    T = t_btn + t_spec
    NL = n_spec * SPEC_LEN

    # Embedding gathers stay in XLA (tiny tables; no efficient in-kernel gather).
    char_emb = alphabet_emb[all_characters].sum(axis=-2)                  # [Ns,36,C]
    btn_emb = button_emb[all_buttons].sum(axis=-2).astype(jnp.float32)    # [n_btn,E]

    # Re-order spec rows to position-major (row l*n_spec + s): conv neighbours are
    # then +-n_spec rows and every spec-projection block is a contiguous row slice.
    char_pm = (jnp.transpose(char_emb, (1, 0, 2))
               .reshape(NL, CHANNELS).astype(jnp.float32))
    masks_pm = (jnp.transpose(all_masks.astype(jnp.float32), (1, 0, 2))
                .reshape(NL, 7))

    const_np, c_layout = _build_const_slab(spec_lengths, button_lengths,
                                           n_spec, n_btn, t_btn, t_spec)
    const_slab = jnp.asarray(const_np)

    hmask = np.zeros((NHEAD, 1, E), np.float32)
    for hh in range(NHEAD):
        hmask[hh, 0, hh * HEAD_DIM:(hh + 1) * HEAD_DIM] = 1.0
    hmask = jnp.asarray(hmask)

    kernel = _make_kernel(param_layout, c_layout, n_spec=n_spec, B=B, T=T, NL=NL)

    return pl.pallas_call(
        kernel,
        out_shape=jax.ShapeDtypeStruct((B, NUM_TOKENS), jnp.float32),
        in_specs=[pl.BlockSpec(memory_space=VMEM)] * 6,
        out_specs=pl.BlockSpec(memory_space=VMEM),
    )(param_slab, const_slab, char_pm, masks_pm, btn_emb, hmask)


# =================================== demo =====================================

if __name__ == "__main__":
    key = jax.random.PRNGKey(0)
    kp, k1, k2, k3 = jax.random.split(key, 4)
    params = init_params(kp)
    param_slab, p_layout = pack_params(params)        # packed once, on the host

    # two "states": spec_lengths = io pairs per state, button_lengths = past buttons
    spec_lengths = (2, 1)
    button_lengths = (3, 2)
    n_spec = sum(spec_lengths)
    n_btn = sum(button_lengths)

    all_characters = jax.random.randint(k1, (n_spec, SPEC_LEN, 4), 0, ALPHABET_SIZE,
                                        dtype=jnp.int32)
    all_masks = jax.random.bernoulli(k2, 0.5, (n_spec, SPEC_LEN, 7)).astype(jnp.float32)
    all_buttons = jax.random.randint(k3, (n_btn, 1), 0, NUM_TOKENS + 1, dtype=jnp.int32)

    fwd = jax.jit(partial(robustfill_policy_forward,
                          param_layout=p_layout,
                          spec_lengths=spec_lengths,
                          button_lengths=button_lengths))
    log_probs = jax.block_until_ready(
        fwd(param_slab, params["alphabet_emb"], params["button_emb"],
            all_characters, all_masks, all_buttons))

    assert log_probs.shape == (len(spec_lengths), NUM_TOKENS)
    assert bool(jnp.all(jnp.isfinite(log_probs)))
    print("KERNEL_OK")
</pallas_src>

<mosaic_0001>
module attributes {stable_mosaic.version = 11 : i64} {
  func.func @kernel(%arg0: memref<2144x128xf32, #tpu.memory_space<vmem>>, %arg1: memref<64x128xf32, #tpu.memory_space<vmem>>, %arg2: memref<108x16xf32, #tpu.memory_space<vmem>>, %arg3: memref<108x7xf32, #tpu.memory_space<vmem>>, %arg4: memref<5x32xf32, #tpu.memory_space<vmem>>, %arg5: memref<8x1x32xf32, #tpu.memory_space<vmem>>, %arg6: memref<2x20xf32, #tpu.memory_space<vmem>>) attributes {dimension_semantics = [], scalar_prefetch = 0 : i64, scratch_operands = 0 : i64, tpu.core_type = #tpu.core_type<tc>} {
    %c0 = arith.constant 0 : index
    %c0_0 = arith.constant 0 : index
    %0 = vector.load %arg2[%c0, %c0_0] : memref<108x16xf32, #tpu.memory_space<vmem>>, vector<108x16xf32>
    %c0_1 = arith.constant 0 : index
    %c0_2 = arith.constant 0 : index
    %1 = vector.load %arg3[%c0_1, %c0_2] : memref<108x7xf32, #tpu.memory_space<vmem>>, vector<108x7xf32>
    %c0_3 = arith.constant 0 : index
    %c0_4 = arith.constant 0 : index
    %2 = vector.load %arg0[%c0_3, %c0_4] : memref<2144x128xf32, #tpu.memory_space<vmem>>, vector<7x16xf32>
    %cst = arith.constant dense<0.000000e+00> : vector<108x16xf32>
    %3 = tpu.matmul %1, %2, %cst {dimension_numbers = #tpu.dot_dimension_numbers<[1], [0], [0], [1], [0, 0, 1, 1], [], []>} : vector<108x7xf32>, vector<7x16xf32>, vector<108x16xf32> -> vector<108x16xf32>
    %4 = arith.addf %0, %3 : vector<108x16xf32>
    %c8 = arith.constant 8 : index
    %c0_5 = arith.constant 0 : index
    %5 = vector.load %arg0[%c8, %c0_5] : memref<2144x128xf32, #tpu.memory_space<vmem>>, vector<1x16xf32>
    %6 = vector.broadcast %5 : vector<1x16xf32> to vector<108x16xf32>
    %7 = arith.addf %4, %6 : vector<108x16xf32>
    %cst_6 = arith.constant 0.000000e+00 : f32
    %8 = vector.broadcast %cst_6 : f32 to vector<3x16xf32>
    %9 = vector.extract_strided_slice %7 {offsets = [0, 0], sizes = [105, 16], strides = [1, 1]} : vector<108x16xf32> to vector<105x16xf32>
    %10 = tpu.concatenate %8, %9 in 0 : vector<3x16xf32>, vector<105x16xf32> -> vector<108x16xf32>
    %11 = vector.extract_strided_slice %7 {offsets = [3, 0], sizes = [105, 16], strides = [1, 1]} : vector<108x16xf32> to vector<105x16xf32>
    %12 = tpu.concatenate %11, %8 in 0 : vector<105x16xf32>, vector<3x16xf32> -> vector<108x16xf32>
    %c16 = arith.constant 16 : index
    %c0_7 = arith.constant 0 : index
    %13 = vector.load %arg0[%c16, %c0_7] : memref<2144x128xf32, #tpu.memory_space<vmem>>, vector<16x16xf32>
    %cst_8 = arith.constant dense<0.000000e+00> : vector<108x16xf32>
    %14 = tpu.matmul %10, %13, %cst_8 {dimension_numbers = #tpu.dot_dimension_numbers<[1], [0], [0], [1], [0, 0, 1, 1], [], []>} : vector<108x16xf32>, vector<16x16xf32>, vector<108x16xf32> -> vector<108x16xf32>
    %c32 = arith.constant 32 : index
    %c0_9 = arith.constant 0 : index
    %15 = vector.load %arg0[%c32, %c0_9] : memref<2144x128xf32, #tpu.memory_space<vmem>>, vector<16x16xf32>
    %cst_10 = arith.constant dense<0.000000e+00> : vector<108x16xf32>
    %16 = tpu.matmul %7, %15, %cst_10 {dimension_numbers = #tpu.dot_dimension_numbers<[1], [0], [0], [1], [0, 0, 1, 1], [], []>} : vector<108x16xf32>, vector<16x16xf32>, vector<108x16xf32> -> vector<108x16xf32>
    %17 = arith.addf %14, %16 : vector<108x16xf32>
    %c48 = arith.constant 48 : index
    %c0_11 = arith.constant 0 : index
    %18 = vector.load %arg0[%c48, %c0_11] : memref<2144x128xf32, #tpu.memory_space<vmem>>, vector<16x16xf32>
    %cst_12 = arith.constant dense<0.000000e+00> : vector<108x16xf32>
    %19 = tpu.matmul %12, %18, %cst_12 {dimension_numbers = #tpu.dot_dimension_numbers<[1], [0], [0], [1], [0, 0, 1, 1], [], []>} : vector<108x16xf32>, vector<16x16xf32>, vector<108x16xf32> -> vector<108x16xf32>
    %20 = arith.addf %17, %19 : vector<108x16xf32>
    %c160 = arith.constant 160 : index
    %c0_13 = arith.constant 0 : index
    %21 = vector.load %arg0[%c160, %c0_13] : memref<2144x128xf32, #tpu.memory_space<vmem>>, vector<1x16xf32>
    %22 = vector.broadcast %21 : vector<1x16xf32> to vector<108x16xf32>
    %23 = arith.addf %20, %22 : vector<108x16xf32>
    %cst_14 = arith.constant 0.000000e+00 : f32
    %24 = vector.broadcast %cst_14 : f32 to vector<108x16xf32>
    %25 = arith.maximumf %23, %24 : vector<108x16xf32>
    %26 = vector.extract_strided_slice %25 {offsets = [0, 0], sizes = [105, 16], strides = [1, 1]} : vector<108x16xf32> to vector<105x16xf32>
    %27 = tpu.concatenate %8, %26 in 0 : vector<3x16xf32>, vector<105x16xf32> -> vector<108x16xf32>
    %28 = vector.extract_strided_slice %25 {offsets = [3, 0], sizes = [105, 16], strides = [1, 1]} : vector<108x16xf32> to vector<105x16xf32>
    %29 = tpu.concatenate %28, %8 in 0 : vector<105x16xf32>, vector<3x16xf32> -> vector<108x16xf32>
    %c64 = arith.constant 64 : index
    %c0_15 = arith.constant 0 : index
    %30 = vector.load %arg0[%c64, %c0_15] : memref<2144x128xf32, #tpu.memory_space<vmem>>, vector<16x16xf32>
    %cst_16 = arith.constant dense<0.000000e+00> : vector<108x16xf32>
    %31 = tpu.matmul %27, %30, %cst_16 {dimension_numbers = #tpu.dot_dimension_numbers<[1], [0], [0], [1], [0, 0, 1, 1], [], []>} : vector<108x16xf32>, vector<16x16xf32>, vector<108x16xf32> -> vector<108x16xf32>
    %c80 = arith.constant 80 : index
    %c0_17 = arith.constant 0 : index
    %32 = vector.load %arg0[%c80, %c0_17] : memref<2144x128xf32, #tpu.memory_space<vmem>>, vector<16x16xf32>
    %cst_18 = arith.constant dense<0.000000e+00> : vector<108x16xf32>
    %33 = tpu.matmul %25, %32, %cst_18 {dimension_numbers = #tpu.dot_dimension_numbers<[1], [0], [0], [1], [0, 0, 1, 1], [], []>} : vector<108x16xf32>, vector<16x16xf32>, vector<108x16xf32> -> vector<108x16xf32>
    %34 = arith.addf %31, %33 : vector<108x16xf32>
    %c96 = arith.constant 96 : index
    %c0_19 = arith.constant 0 : index
    %35 = vector.load %arg0[%c96, %c0_19] : memref<2144x128xf32, #tpu.memory_space<vmem>>, vector<16x16xf32>
    %cst_20 = arith.constant dense<0.000000e+00> : vector<108x16xf32>
    %36 = tpu.matmul %29, %35, %cst_20 {dimension_numbers = #tpu.dot_dimension_numbers<[1], [0], [0], [1], [0, 0, 1, 1], [], []>} : vector<108x16xf32>, vector<16x16xf32>, vector<108x16xf32> -> vector<108x16xf32>
    %37 = arith.addf %34, %36 : vector<108x16xf32>
    %c161 = arith.constant 161 : index
    %c0_21 = arith.constant 0 : index
    %38 = vector.load %arg0[%c161, %c0_21] : memref<2144x128xf32, #tpu.memory_space<vmem>>, vector<1x16xf32>
    %39 = vector.broadcast %38 : vector<1x16xf32> to vector<108x16xf32>
    %40 = arith.addf %37, %39 : vector<108x16xf32>
    %cst_22 = arith.constant 0.000000e+00 : f32
    %41 = vector.broadcast %cst_22 : f32 to vector<108x16xf32>
    %42 = arith.maximumf %40, %41 : vector<108x16xf32>
    %43 = vector.extract_strided_slice %42 {offsets = [0, 0], sizes = [105, 16], strides = [1, 1]} : vector<108x16xf32> to vector<105x16xf32>
    %44 = tpu.concatenate %8, %43 in 0 : vector<3x16xf32>, vector<105x16xf32> -> vector<108x16xf32>
    %45 = vector.extract_strided_slice %42 {offsets = [3, 0], sizes = [105, 16], strides = [1, 1]} : vector<108x16xf32> to vector<105x16xf32>
    %46 = tpu.concatenate %45, %8 in 0 : vector<105x16xf32>, vector<3x16xf32> -> vector<108x16xf32>
    %c112 = arith.constant 112 : index
    %c0_23 = arith.constant 0 : index
    %47 = vector.load %arg0[%c112, %c0_23] : memref<2144x128xf32, #tpu.memory_space<vmem>>, vector<16x16xf32>
    %cst_24 = arith.constant dense<0.000000e+00> : vector<108x16xf32>
    %48 = tpu.matmul %44, %47, %cst_24 {dimension_numbers = #tpu.dot_dimension_numbers<[1], [0], [0], [1], [0, 0, 1, 1], [], []>} : vector<108x16xf32>, vector<16x16xf32>, vector<108x16xf32> -> vector<108x16xf32>
    %c128 = arith.constant 128 : index
    %c0_25 = arith.constant 0 : index
    %49 = vector.load %arg0[%c128, %c0_25] : memref<2144x128xf32, #tpu.memory_space<vmem>>, vector<16x16xf32>
    %cst_26 = arith.constant dense<0.000000e+00> : vector<108x16xf32>
    %50 = tpu.matmul %42, %49, %cst_26 {dimension_numbers = #tpu.dot_dimension_numbers<[1], [0], [0], [1], [0, 0, 1, 1], [], []>} : vector<108x16xf32>, vector<16x16xf32>, vector<108x16xf32> -> vector<108x16xf32>
    %51 = arith.addf %48, %50 : vector<108x16xf32>
    %c144 = arith.constant 144 : index
    %c0_27 = arith.constant 0 : index
    %52 = vector.load %arg0[%c144, %c0_27] : memref<2144x128xf32, #tpu.memory_space<vmem>>, vector<16x16xf32>
    %cst_28 = arith.constant dense<0.000000e+00> : vector<108x16xf32>
    %53 = tpu.matmul %46, %52, %cst_28 {dimension_numbers = #tpu.dot_dimension_numbers<[1], [0], [0], [1], [0, 0, 1, 1], [], []>} : vector<108x16xf32>, vector<16x16xf32>, vector<108x16xf32> -> vector<108x16xf32>
    %54 = arith.addf %51, %53 : vector<108x16xf32>
    %c162 = arith.constant 162 : index
    %c0_29 = arith.constant 0 : index
    %55 = vector.load %arg0[%c162, %c0_29] : memref<2144x128xf32, #tpu.memory_space<vmem>>, vector<1x16xf32>
    %56 = vector.broadcast %55 : vector<1x16xf32> to vector<108x16xf32>
    %57 = arith.addf %54, %56 : vector<108x16xf32>
    %cst_30 = arith.constant 0.000000e+00 : f32
    %58 = vector.broadcast %cst_30 : f32 to vector<108x16xf32>
    %59 = arith.maximumf %57, %58 : vector<108x16xf32>
    %60 = arith.addf %7, %59 : vector<108x16xf32>
    %61 = vector.extract_strided_slice %60 {offsets = [0, 0], sizes = [105, 16], strides = [1, 1]} : vector<108x16xf32> to vector<105x16xf32>
    %62 = tpu.concatenate %8, %61 in 0 : vector<3x16xf32>, vector<105x16xf32> -> vector<108x16xf32>
    %63 = vector.extract_strided_slice %60 {offsets = [3, 0], sizes = [105, 16], strides = [1, 1]} : vector<108x16xf32> to vector<105x16xf32>
    %64 = tpu.concatenate %63, %8 in 0 : vector<105x16xf32>, vector<3x16xf32> -> vector<108x16xf32>
    %c168 = arith.constant 168 : index
    %c0_31 = arith.constant 0 : index
    %65 = vector.load %arg0[%c168, %c0_31] : memref<2144x128xf32, #tpu.memory_space<vmem>>, vector<16x16xf32>
    %cst_32 = arith.constant dense<0.000000e+00> : vector<108x16xf32>
    %66 = tpu.matmul %62, %65, %cst_32 {dimension_numbers = #tpu.dot_dimension_numbers<[1], [0], [0], [1], [0, 0, 1, 1], [], []>} : vector<108x16xf32>, vector<16x16xf32>, vector<108x16xf32> -> vector<108x16xf32>
    %c184 = arith.constant 184 : index
    %c0_33 = arith.constant 0 : index
    %67 = vector.load %arg0[%c184, %c0_33] : memref<2144x128xf32, #tpu.memory_space<vmem>>, vector<16x16xf32>
    %cst_34 = arith.constant dense<0.000000e+00> : vector<108x16xf32>
    %68 = tpu.matmul %60, %67, %cst_34 {dimension_numbers = #tpu.dot_dimension_numbers<[1], [0], [0], [1], [0, 0, 1, 1], [], []>} : vector<108x16xf32>, vector<16x16xf32>, vector<108x16xf32> -> vector<108x16xf32>
    %69 = arith.addf %66, %68 : vector<108x16xf32>
    %c200 = arith.constant 200 : index
    %c0_35 = arith.constant 0 : index
    %70 = vector.load %arg0[%c200, %c0_35] : memref<2144x128xf32, #tpu.memory_space<vmem>>, vector<16x16xf32>
    %cst_36 = arith.constant dense<0.000000e+00> : vector<108x16xf32>
    %71 = tpu.matmul %64, %70, %cst_36 {dimension_numbers = #tpu.dot_dimension_numbers<[1], [0], [0], [1], [0, 0, 1, 1], [], []>} : vector<108x16xf32>, vector<16x16xf32>, vector<108x16xf32> -> vector<108x16xf32>
    %72 = arith.addf %69, %71 : vector<108x16xf32>
    %c312 = arith.constant 312 : index
    %c0_37 = arith.constant 0 : index
    %73 = vector.load %arg0[%c312, %c0_37] : memref<2144x128xf32, #tpu.memory_space<vmem>>, vector<1x16xf32>
    %74 = vector.broadcast %73 : vector<1x16xf32> to vector<108x16xf32>
    %75 = arith.addf %72, %74 : vector<108x16xf32>
    %cst_38 = arith.constant 0.000000e+00 : f32
    %76 = vector.broadcast %cst_38 : f32 to vector<108x16xf32>
    %77 = arith.maximumf %75, %76 : vector<108x16xf32>
    %78 = vector.extract_strided_slice %77 {offsets = [0, 0], sizes = [105, 16], strides = [1, 1]} : vector<108x16xf32> to vector<105x16xf32>
    %79 = tpu.concatenate %8, %78 in 0 : vector<3x16xf32>, vector<105x16xf32> -> vector<108x16xf32>
    %80 = vector.extract_strided_slice %77 {offsets = [3, 0], sizes = [105, 16], strides = [1, 1]} : vector<108x16xf32> to vector<105x16xf32>
    %81 = tpu.concatenate %80, %8 in 0 : vector<105x16xf32>, vector<3x16xf32> -> vector<108x16xf32>
    %c216 = arith.constant 216 : index
    %c0_39 = arith.constant 0 : index
    %82 = vector.load %arg0[%c216, %c0_39] : memref<2144x128xf32, #tpu.memory_space<vmem>>, vector<16x16xf32>
    %cst_40 = arith.constant dense<0.000000e+00> : vector<108x16xf32>
    %83 = tpu.matmul %79, %82, %cst_40 {dimension_numbers = #tpu.dot_dimension_numbers<[1], [0], [0], [1], [0, 0, 1, 1], [], []>} : vector<108x16xf32>, vector<16x16xf32>, vector<108x16xf32> -> vector<108x16xf32>
    %c232 = arith.constant 232 : index
    %c0_41 = arith.constant 0 : index
    %84 = vector.load %arg0[%c232, %c0_41] : memref<2144x128xf32, #tpu.memory_space<vmem>>, vector<16x16xf32>
    %cst_42 = arith.constant dense<0.000000e+00> : vector<108x16xf32>
    %85 = tpu.matmul %77, %84, %cst_42 {dimension_numbers = #tpu.dot_dimension_numbers<[1], [0], [0], [1], [0, 0, 1, 1], [], []>} : vector<108x16xf32>, vector<16x16xf32>, vector<108x16xf32> -> vector<108x16xf32>
    %86 = arith.addf %83, %85 : vector<108x16xf32>
    %c248 = arith.constant 248 : index
    %c0_43 = arith.constant 0 : index
    %87 = vector.load %arg0[%c248, %c0_43] : memref<2144x128xf32, #tpu.memory_space<vmem>>, vector<16x16xf32>
    %cst_44 = arith.constant dense<0.000000e+00> : vector<108x16xf32>
    %88 = tpu.matmul %81, %87, %cst_44 {dimension_numbers = #tpu.dot_dimension_numbers<[1], [0], [0], [1], [0, 0, 1, 1], [], []>} : vector<108x16xf32>, vector<16x16xf32>, vector<108x16xf32> -> vector<108x16xf32>
    %89 = arith.addf %86, %88 : vector<108x16xf32>
    %c313 = arith.constant 313 : index
    %c0_45 = arith.constant 0 : index
    %90 = vector.load %arg0[%c313, %c0_45] : memref<2144x128xf32, #tpu.memory_space<vmem>>, vector<1x16xf32>
    %91 = vector.broadcast %90 : vector<1x16xf32> to vector<108x16xf32>
    %92 = arith.addf %89, %91 : vector<108x16xf32>
    %cst_46 = arith.constant 0.000000e+00 : f32
    %93 = vector.broadcast %cst_46 : f32 to vector<108x16xf32>
    %94 = arith.maximumf %92, %93 : vector<108x16xf32>
    %95 = vector.extract_strided_slice %94 {offsets = [0, 0], sizes = [105, 16], strides = [1, 1]} : vector<108x16xf32> to vector<105x16xf32>
    %96 = tpu.concatenate %8, %95 in 0 : vector<3x16xf32>, vector<105x16xf32> -> vector<108x16xf32>
    %97 = vector.extract_strided_slice %94 {offsets = [3, 0], sizes = [105, 16], strides = [1, 1]} : vector<108x16xf32> to vector<105x16xf32>
    %98 = tpu.concatenate %97, %8 in 0 : vector<105x16xf32>, vector<3x16xf32> -> vector<108x16xf32>
    %c264 = arith.constant 264 : index
    %c0_47 = arith.constant 0 : index
    %99 = vector.load %arg0[%c264, %c0_47] : memref<2144x128xf32, #tpu.memory_space<vmem>>, vector<16x16xf32>
    %cst_48 = arith.constant dense<0.000000e+00> : vector<108x16xf32>
    %100 = tpu.matmul %96, %99, %cst_48 {dimension_numbers = #tpu.dot_dimension_numbers<[1], [0], [0], [1], [0, 0, 1, 1], [], []>} : vector<108x16xf32>, vector<16x16xf32>, vector<108x16xf32> -> vector<108x16xf32>
    %c280 = arith.constant 280 : index
    %c0_49 = arith.constant 0 : index
    %101 = vector.load %arg0[%c280, %c0_49] : memref<2144x128xf32, #tpu.memory_space<vmem>>, vector<16x16xf32>
    %cst_50 = arith.constant dense<0.000000e+00> : vector<108x16xf32>
    %102 = tpu.matmul %94, %101, %cst_50 {dimension_numbers = #tpu.dot_dimension_numbers<[1], [0], [0], [1], [0, 0, 1, 1], [], []>} : vector<108x16xf32>, vector<16x16xf32>, vector<108x16xf32> -> vector<108x16xf32>
    %103 = arith.addf %100, %102 : vector<108x16xf32>
    %c296 = arith.constant 296 : index
    %c0_51 = arith.constant 0 : index
    %104 = vector.load %arg0[%c296, %c0_51] : memref<2144x128xf32, #tpu.memory_space<vmem>>, vector<16x16xf32>
    %cst_52 = arith.constant dense<0.000000e+00> : vector<108x16xf32>
    %105 = tpu.matmul %98, %104, %cst_52 {dimension_numbers = #tpu.dot_dimension_numbers<[1], [0], [0], [1], [0, 0, 1, 1], [], []>} : vector<108x16xf32>, vector<16x16xf32>, vector<108x16xf32> -> vector<108x16xf32>
    %106 = arith.addf %103, %105 : vector<108x16xf32>
    %c314 = arith.constant 314 : index
    %c0_53 = arith.constant 0 : index
    %107 = vector.load %arg0[%c314, %c0_53] : memref<2144x128xf32, #tpu.memory_space<vmem>>, vector<1x16xf32>
    %108 = vector.broadcast %107 : vector<1x16xf32> to vector<108x16xf32>
    %109 = arith.addf %106, %108 : vector<108x16xf32>
    %cst_54 = arith.constant 0.000000e+00 : f32
    %110 = vector.broadcast %cst_54 : f32 to vector<108x16xf32>
    %111 = arith.maximumf %109, %110 : vector<108x16xf32>
    %112 = arith.addf %60, %111 : vector<108x16xf32>
    %cst_55 = arith.constant 0.000000e+00 : f32
    %113 = vector.broadcast %cst_55 : f32 to vector<3x32xf32>
    %114 = vector.extract_strided_slice %112 {offsets = [0, 0], sizes = [3, 16], strides = [1, 1]} : vector<108x16xf32> to vector<3x16xf32>
    %c320 = arith.constant 320 : index
    %c0_56 = arith.constant 0 : index
    %115 = vector.load %arg0[%c320, %c0_56] : memref<2144x128xf32, #tpu.memory_space<vmem>>, vector<16x32xf32>
    %cst_57 = arith.constant dense<0.000000e+00> : vector<3x32xf32>
    %116 = tpu.matmul %114, %115, %cst_57 {dimension_numbers = #tpu.dot_dimension_numbers<[1], [0], [0], [1], [0, 0, 1, 1], [], []>} : vector<3x16xf32>, vector<16x32xf32>, vector<3x32xf32> -> vector<3x32xf32>
    %117 = arith.addf %113, %116 : vector<3x32xf32>
    %118 = vector.extract_strided_slice %112 {offsets = [3, 0], sizes = [3, 16], strides = [1, 1]} : vector<108x16xf32> to vector<3x16xf32>
    %c336 = arith.constant 336 : index
    %c0_58 = arith.constant 0 : index
    %119 = vector.load %arg0[%c336, %c0_58] : memref<2144x128xf32, #tpu.memory_space<vmem>>, vector<16x32xf32>
    %cst_59 = arith.constant dense<0.000000e+00> : vector<3x32xf32>
    %120 = tpu.matmul %118, %119, %cst_59 {dimension_numbers = #tpu.dot_dimension_numbers<[1], [0], [0], [1], [0, 0, 1, 1], [], []>} : vector<3x16xf32>, vector<16x32xf32>, vector<3x32xf32> -> vector<3x32xf32>
    %121 = arith.addf %117, %120 : vector<3x32xf32>
    %122 = vector.extract_strided_slice %112 {offsets = [6, 0], sizes = [3, 16], strides = [1, 1]} : vector<108x16xf32> to vector<3x16xf32>
    %c352 = arith.constant 352 : index
    %c0_60 = arith.constant 0 : index
    %123 = vector.load %arg0[%c352, %c0_60] : memref<2144x128xf32, #tpu.memory_space<vmem>>, vector<16x32xf32>
    %cst_61 = arith.constant dense<0.000000e+00> : vector<3x32xf32>
    %124 = tpu.matmul %122, %123, %cst_61 {dimension_numbers = #tpu.dot_dimension_numbers<[1], [0], [0], [1], [0, 0, 1, 1], [], []>} : vector<3x16xf32>, vector<16x32xf32>, vector<3x32xf32> -> vector<3x32xf32>
    %125 = arith.addf %121, %124 : vector<3x32xf32>
    %126 = vector.extract_strided_slice %112 {offsets = [9, 0], sizes = [3, 16], strides = [1, 1]} : vector<108x16xf32> to vector<3x16xf32>
    %c368 = arith.constant 368 : index
    %c0_62 = arith.constant 0 : index
    %127 = vector.load %arg0[%c368, %c0_62] : memref<2144x128xf32, #tpu.memory_space<vmem>>, vector<16x32xf32>
    %cst_63 = arith.constant dense<0.000000e+00> : vector<3x32xf32>
    %128 = tpu.matmul %126, %127, %cst_63 {dimension_numbers = #tpu.dot_dimension_numbers<[1], [0], [0], [1], [0, 0, 1, 1], [], []>} : vector<3x16xf32>, vector<16x32xf32>, vector<3x32xf32> -> vector<3x32xf32>
    %129 = arith.addf %125, %128 : vector<3x32xf32>
    %130 = vector.extract_strided_slice %112 {offsets = [12, 0], sizes = [3, 16], strides = [1, 1]} : vector<108x16xf32> to vector<3x16xf32>
    %c384 = arith.constant 384 : index
    %c0_64 = arith.constant 0 : index
    %131 = vector.load %arg0[%c384, %c0_64] : memref<2144x128xf32, #tpu.memory_space<vmem>>, vector<16x32xf32>
    %cst_65 = arith.constant dense<0.000000e+00> : vector<3x32xf32>
    %132 = tpu.matmul %130, %131, %cst_65 {dimension_numbers = #tpu.dot_dimension_numbers<[1], [0], [0], [1], [0, 0, 1, 1], [], []>} : vector<3x16xf32>, vector<16x32xf32>, vector<3x32xf32> -> vector<3x32xf32>
    %133 = arith.addf %129, %132 : vector<3x32xf32>
    %134 = vector.extract_strided_slice %112 {offsets = [15, 0], sizes = [3, 16], strides = [1, 1]} : vector<108x16xf32> to vector<3x16xf32>
    %c400 = arith.constant 400 : index
    %c0_66 = arith.constant 0 : index
    %135 = vector.load %arg0[%c400, %c0_66] : memref<2144x128xf32, #tpu.memory_space<vmem>>, vector<16x32xf32>
    %cst_67 = arith.constant dense<0.000000e+00> : vector<3x32xf32>
    %136 = tpu.matmul %134, %135, %cst_67 {dimension_numbers = #tpu.dot_dimension_numbers<[1], [0], [0], [1], [0, 0, 1, 1], [], []>} : vector<3x16xf32>, vector<16x32xf32>, vector<3x32xf32> -> vector<3x32xf32>
    %137 = arith.addf %133, %136 : vector<3x32xf32>
    %138 = vector.extract_strided_slice %112 {offsets = [18, 0], sizes = [3, 16], strides = [1, 1]} : vector<108x16xf32> to vector<3x16xf32>
    %c416 = arith.constant 416 : index
    %c0_68 = arith.constant 0 : index
    %139 = vector.load %arg0[%c416, %c0_68] : memref<2144x128xf32, #tpu.memory_space<vmem>>, vector<16x32xf32>
    %cst_69 = arith.constant dense<0.000000e+00> : vector<3x32xf32>
    %140 = tpu.matmul %138, %139, %cst_69 {dimension_numbers = #tpu.dot_dimension_numbers<[1], [0], [0], [1], [0, 0, 1, 1], [], []>} : vector<3x16xf32>, vector<16x32xf32>, vector<3x32xf32> -> vector<3x32xf32>
    %141 = arith.addf %137, %140 : vector<3x32xf32>
    %142 = vector.extract_strided_slice %112 {offsets = [21, 0], sizes = [3, 16], strides = [1, 1]} : vector<108x16xf32> to vector<3x16xf32>
    %c432 = arith.constant 432 : index
    %c0_70 = arith.constant 0 : index
    %143 = vector.load %arg0[%c432, %c0_70] : memref<2144x128xf32, #tpu.memory_space<vmem>>, vector<16x32xf32>
    %cst_71 = arith.constant dense<0.000000e+00> : vector<3x32xf32>
    %144 = tpu.matmul %142, %143, %cst_71 {dimension_numbers = #tpu.dot_dimension_numbers<[1], [0], [0], [1], [0, 0, 1, 1], [], []>} : vector<3x16xf32>, vector<16x32xf32>, vector<3x32xf32> -> vector<3x32xf32>
    %145 = arith.addf %141, %144 : vector<3x32xf32>
    %146 = vector.extract_strided_slice %112 {offsets = [24, 0], sizes = [3, 16], strides = [1, 1]} : vector<108x16xf32> to vector<3x16xf32>
    %c448 = arith.constant 448 : index
    %c0_72 = arith.constant 0 : index
    %147 = vector.load %arg0[%c448, %c0_72] : memref<2144x128xf32, #tpu.memory_space<vmem>>, vector<16x32xf32>
    %cst_73 = arith.constant dense<0.000000e+00> : vector<3x32xf32>
    %148 = tpu.matmul %146, %147, %cst_73 {dimension_numbers = #tpu.dot_dimension_numbers<[1], [0], [0], [1], [0, 0, 1, 1], [], []>} : vector<3x16xf32>, vector<16x32xf32>, vector<3x32xf32> -> vector<3x32xf32>
    %149 = arith.addf %145, %148 : vector<3x32xf32>
    %150 = vector.extract_strided_slice %112 {offsets = [27, 0], sizes = [3, 16], strides = [1, 1]} : vector<108x16xf32> to vector<3x16xf32>
    %c464 = arith.constant 464 : index
    %c0_74 = arith.constant 0 : index
    %151 = vector.load %arg0[%c464, %c0_74] : memref<2144x128xf32, #tpu.memory_space<vmem>>, vector<16x32xf32>
    %cst_75 = arith.constant dense<0.000000e+00> : vector<3x32xf32>
    %152 = tpu.matmul %150, %151, %cst_75 {dimension_numbers = #tpu.dot_dimension_numbers<[1], [0], [0], [1], [0, 0, 1, 1], [], []>} : vector<3x16xf32>, vector<16x32xf32>, vector<3x32xf32> -> vector<3x32xf32>
    %153 = arith.addf %149, %152 : vector<3x32xf32>
    %154 = vector.extract_strided_slice %112 {offsets = [30, 0], sizes = [3, 16], strides = [1, 1]} : vector<108x16xf32> to vector<3x16xf32>
    %c480 = arith.constant 480 : index
    %c0_76 = arith.constant 0 : index
    %155 = vector.load %arg0[%c480, %c0_76] : memref<2144x128xf32, #tpu.memory_space<vmem>>, vector<16x32xf32>
    %cst_77 = arith.constant dense<0.000000e+00> : vector<3x32xf32>
    %156 = tpu.matmul %154, %155, %cst_77 {dimension_numbers = #tpu.dot_dimension_numbers<[1], [0], [0], [1], [0, 0, 1, 1], [], []>} : vector<3x16xf32>, vector<16x32xf32>, vector<3x32xf32> -> vector<3x32xf32>
    %157 = arith.addf %153, %156 : vector<3x32xf32>
    %158 = vector.extract_strided_slice %112 {offsets = [33, 0], sizes = [3, 16], strides = [1, 1]} : vector<108x16xf32> to vector<3x16xf32>
    %c496 = arith.constant 496 : index
    %c0_78 = arith.constant 0 : index
    %159 = vector.load %arg0[%c496, %c0_78] : memref<2144x128xf32, #tpu.memory_space<vmem>>, vector<16x32xf32>
    %cst_79 = arith.constant dense<0.000000e+00> : vector<3x32xf32>
    %160 = tpu.matmul %158, %159, %cst_79 {dimension_numbers = #tpu.dot_dimension_numbers<[1], [0], [0], [1], [0, 0, 1, 1], [], []>} : vector<3x16xf32>, vector<16x32xf32>, vector<3x32xf32> -> vector<3x32xf32>
    %161 = arith.addf %157, %160 : vector<3x32xf32>
    %162 = vector.extract_strided_slice %112 {offsets = [36, 0], sizes = [3, 16], strides = [1, 1]} : vector<108x16xf32> to vector<3x16xf32>
    %c512 = arith.constant 512 : index
    %c0_80 = arith.constant 0 : index
    %163 = vector.load %arg0[%c512, %c0_80] : memref<2144x128xf32, #tpu.memory_space<vmem>>, vector<16x32xf32>
    %cst_81 = arith.constant dense<0.000000e+00> : vector<3x32xf32>
    %164 = tpu.matmul %162, %163, %cst_81 {dimension_numbers = #tpu.dot_dimension_numbers<[1], [0], [0], [1], [0, 0, 1, 1], [], []>} : vector<3x16xf32>, vector<16x32xf32>, vector<3x32xf32> -> vector<3x32xf32>
    %165 = arith.addf %161, %164 : vector<3x32xf32>
    %166 = vector.extract_strided_slice %112 {offsets = [39, 0], sizes = [3, 16], strides = [1, 1]} : vector<108x16xf32> to vector<3x16xf32>
    %c528 = arith.constant 528 : index
    %c0_82 = arith.constant 0 : index
    %167 = vector.load %arg0[%c528, %c0_82] : memref<2144x128xf32, #tpu.memory_space<vmem>>, vector<16x32xf32>
    %cst_83 = arith.constant dense<0.000000e+00> : vector<3x32xf32>
    %168 = tpu.matmul %166, %167, %cst_83 {dimension_numbers = #tpu.dot_dimension_numbers<[1], [0], [0], [1], [0, 0, 1, 1], [], []>} : vector<3x16xf32>, vector<16x32xf32>, vector<3x32xf32> -> vector<3x32xf32>
    %169 = arith.addf %165, %168 : vector<3x32xf32>
    %170 = vector.extract_strided_slice %112 {offsets = [42, 0], sizes = [3, 16], strides = [1, 1]} : vector<108x16xf32> to vector<3x16xf32>
    %c544 = arith.constant 544 : index
    %c0_84 = arith.constant 0 : index
    %171 = vector.load %arg0[%c544, %c0_84] : memref<2144x128xf32, #tpu.memory_space<vmem>>, vector<16x32xf32>
    %cst_85 = arith.constant dense<0.000000e+00> : vector<3x32xf32>
    %172 = tpu.matmul %170, %171, %cst_85 {dimension_numbers = #tpu.dot_dimension_numbers<[1], [0], [0], [1], [0, 0, 1, 1], [], []>} : vector<3x16xf32>, vector<16x32xf32>, vector<3x32xf32> -> vector<3x32xf32>
    %173 = arith.addf %169, %172 : vector<3x32xf32>
    %174 = vector.extract_strided_slice %112 {offsets = [45, 0], sizes = [3, 16], strides = [1, 1]} : vector<108x16xf32> to vector<3x16xf32>
    %c560 = arith.constant 560 : index
    %c0_86 = arith.constant 0 : index
    %175 = vector.load %arg0[%c560, %c0_86] : memref<2144x128xf32, #tpu.memory_space<vmem>>, vector<16x32xf32>
    %cst_87 = arith.constant dense<0.000000e+00> : vector<3x32xf32>
    %176 = tpu.matmul %174, %175, %cst_87 {dimension_numbers = #tpu.dot_dimension_numbers<[1], [0], [0], [1], [0, 0, 1, 1], [], []>} : vector<3x16xf32>, vector<16x32xf32>, vector<3x32xf32> -> vector<3x32xf32>
    %177 = arith.addf %173, %176 : vector<3x32xf32>
    %178 = vector.extract_strided_slice %112 {offsets = [48, 0], sizes = [3, 16], strides = [1, 1]} : vector<108x16xf32> to vector<3x16xf32>
    %c576 = arith.constant 576 : index
    %c0_88 = arith.constant 0 : index
    %179 = vector.load %arg0[%c576, %c0_88] : memref<2144x128xf32, #tpu.memory_space<vmem>>, vector<16x32xf32>
    %cst_89 = arith.constant dense<0.000000e+00> : vector<3x32xf32>
    %180 = tpu.matmul %178, %179, %cst_89 {dimension_numbers = #tpu.dot_dimension_numbers<[1], [0], [0], [1], [0, 0, 1, 1], [], []>} : vector<3x16xf32>, vector<16x32xf32>, vector<3x32xf32> -> vector<3x32xf32>
    %181 = arith.addf %177, %180 : vector<3x32xf32>
    %182 = vector.extract_strided_slice %112 {offsets = [51, 0], sizes = [3, 16], strides = [1, 1]} : vector<108x16xf32> to vector<3x16xf32>
    %c592 = arith.constant 592 : index
    %c0_90 = arith.constant 0 : index
    %183 = vector.load %arg0[%c592, %c0_90] : memref<2144x128xf32, #tpu.memory_space<vmem>>, vector<16x32xf32>
    %cst_91 = arith.constant dense<0.000000e+00> : vector<3x32xf32>
    %184 = tpu.matmul %182, %183, %cst_91 {dimension_numbers = #tpu.dot_dimension_numbers<[1], [0], [0], [1], [0, 0, 1, 1], [], []>} : vector<3x16xf32>, vector<16x32xf32>, vector<3x32xf32> -> vector<3x32xf32>
    %185 = arith.addf %181, %184 : vector<3x32xf32>
    %186 = vector.extract_strided_slice %112 {offsets = [54, 0], sizes = [3, 16], strides = [1, 1]} : vector<108x16xf32> to vector<3x16xf32>
    %c608 = arith.constant 608 : index
    %c0_92 = arith.constant 0 : index
    %187 = vector.load %arg0[%c608, %c0_92] : memref<2144x128xf32, #tpu.memory_space<vmem>>, vector<16x32xf32>
    %cst_93 = arith.constant dense<0.000000e+00> : vector<3x32xf32>
    %188 = tpu.matmul %186, %187, %cst_93 {dimension_numbers = #tpu.dot_dimension_numbers<[1], [0], [0], [1], [0, 0, 1, 1], [], []>} : vector<3x16xf32>, vector<16x32xf32>, vector<3x32xf32> -> vector<3x32xf32>
    %189 = arith.addf %185, %188 : vector<3x32xf32>
    %190 = vector.extract_strided_slice %112 {offsets = [57, 0], sizes = [3, 16], strides = [1, 1]} : vector<108x16xf32> to vector<3x16xf32>
    %c624 = arith.constant 624 : index
    %c0_94 = arith.constant 0 : index
    %191 = vector.load %arg0[%c624, %c0_94] : memref<2144x128xf32, #tpu.memory_space<vmem>>, vector<16x32xf32>
    %cst_95 = arith.constant dense<0.000000e+00> : vector<3x32xf32>
    %192 = tpu.matmul %190, %191, %cst_95 {dimension_numbers = #tpu.dot_dimension_numbers<[1], [0], [0], [1], [0, 0, 1, 1], [], []>} : vector<3x16xf32>, vector<16x32xf32>, vector<3x32xf32> -> vector<3x32xf32>
    %193 = arith.addf %189, %192 : vector<3x32xf32>
    %194 = vector.extract_strided_slice %112 {offsets = [60, 0], sizes = [3, 16], strides = [1, 1]} : vector<108x16xf32> to vector<3x16xf32>
    %c640 = arith.constant 640 : index
    %c0_96 = arith.constant 0 : index
    %195 = vector.load %arg0[%c640, %c0_96] : memref<2144x128xf32, #tpu.memory_space<vmem>>, vector<16x32xf32>
    %cst_97 = arith.constant dense<0.000000e+00> : vector<3x32xf32>
    %196 = tpu.matmul %194, %195, %cst_97 {dimension_numbers = #tpu.dot_dimension_numbers<[1], [0], [0], [1], [0, 0, 1, 1], [], []>} : vector<3x16xf32>, vector<16x32xf32>, vector<3x32xf32> -> vector<3x32xf32>
    %197 = arith.addf %193, %196 : vector<3x32xf32>
    %198 = vector.extract_strided_slice %112 {offsets = [63, 0], sizes = [3, 16], strides = [1, 1]} : vector<108x16xf32> to vector<3x16xf32>
    %c656 = arith.constant 656 : index
    %c0_98 = arith.constant 0 : index
    %199 = vector.load %arg0[%c656, %c0_98] : memref<2144x128xf32, #tpu.memory_space<vmem>>, vector<16x32xf32>
    %cst_99 = arith.constant dense<0.000000e+00> : vector<3x32xf32>
    %200 = tpu.matmul %198, %199, %cst_99 {dimension_numbers = #tpu.dot_dimension_numbers<[1], [0], [0], [1], [0, 0, 1, 1], [], []>} : vector<3x16xf32>, vector<16x32xf32>, vector<3x32xf32> -> vector<3x32xf32>
    %201 = arith.addf %197, %200 : vector<3x32xf32>
    %202 = vector.extract_strided_slice %112 {offsets = [66, 0], sizes = [3, 16], strides = [1, 1]} : vector<108x16xf32> to vector<3x16xf32>
    %c672 = arith.constant 672 : index
    %c0_100 = arith.constant 0 : index
    %203 = vector.load %arg0[%c672, %c0_100] : memref<2144x128xf32, #tpu.memory_space<vmem>>, vector<16x32xf32>
    %cst_101 = arith.constant dense<0.000000e+00> : vector<3x32xf32>
    %204 = tpu.matmul %202, %203, %cst_101 {dimension_numbers = #tpu.dot_dimension_numbers<[1], [0], [0], [1], [0, 0, 1, 1], [], []>} : vector<3x16xf32>, vector<16x32xf32>, vector<3x32xf32> -> vector<3x32xf32>
    %205 = arith.addf %201, %204 : vector<3x32xf32>
    %206 = vector.extract_strided_slice %112 {offsets = [69, 0], sizes = [3, 16], strides = [1, 1]} : vector<108x16xf32> to vector<3x16xf32>
    %c688 = arith.constant 688 : index
    %c0_102 = arith.constant 0 : index
    %207 = vector.load %arg0[%c688, %c0_102] : memref<2144x128xf32, #tpu.memory_space<vmem>>, vector<16x32xf32>
    %cst_103 = arith.constant dense<0.000000e+00> : vector<3x32xf32>
    %208 = tpu.matmul %206, %207, %cst_103 {dimension_numbers = #tpu.dot_dimension_numbers<[1], [0], [0], [1], [0, 0, 1, 1], [], []>} : vector<3x16xf32>, vector<16x32xf32>, vector<3x32xf32> -> vector<3x32xf32>
    %209 = arith.addf %205, %208 : vector<3x32xf32>
    %210 = vector.extract_strided_slice %112 {offsets = [72, 0], sizes = [3, 16], strides = [1, 1]} : vector<108x16xf32> to vector<3x16xf32>
    %c704 = arith.constant 704 : index
    %c0_104 = arith.constant 0 : index
    %211 = vector.load %arg0[%c704, %c0_104] : memref<2144x128xf32, #tpu.memory_space<vmem>>, vector<16x32xf32>
    %cst_105 = arith.constant dense<0.000000e+00> : vector<3x32xf32>
    %212 = tpu.matmul %210, %211, %cst_105 {dimension_numbers = #tpu.dot_dimension_numbers<[1], [0], [0], [1], [0, 0, 1, 1], [], []>} : vector<3x16xf32>, vector<16x32xf32>, vector<3x32xf32> -> vector<3x32xf32>
    %213 = arith.addf %209, %212 : vector<3x32xf32>
    %214 = vector.extract_strided_slice %112 {offsets = [75, 0], sizes = [3, 16], strides = [1, 1]} : vector<108x16xf32> to vector<3x16xf32>
    %c720 = arith.constant 720 : index
    %c0_106 = arith.constant 0 : index
    %215 = vector.load %arg0[%c720, %c0_106] : memref<2144x128xf32, #tpu.memory_space<vmem>>, vector<16x32xf32>
    %cst_107 = arith.constant dense<0.000000e+00> : vector<3x32xf32>
    %216 = tpu.matmul %214, %215, %cst_107 {dimension_numbers = #tpu.dot_dimension_numbers<[1], [0], [0], [1], [0, 0, 1, 1], [], []>} : vector<3x16xf32>, vector<16x32xf32>, vector<3x32xf32> -> vector<3x32xf32>
    %217 = arith.addf %213, %216 : vector<3x32xf32>
    %218 = vector.extract_strided_slice %112 {offsets = [78, 0], sizes = [3, 16], strides = [1, 1]} : vector<108x16xf32> to vector<3x16xf32>
    %c736 = arith.constant 736 : index
    %c0_108 = arith.constant 0 : index
    %219 = vector.load %arg0[%c736, %c0_108] : memref<2144x128xf32, #tpu.memory_space<vmem>>, vector<16x32xf32>
    %cst_109 = arith.constant dense<0.000000e+00> : vector<3x32xf32>
    %220 = tpu.matmul %218, %219, %cst_109 {dimension_numbers = #tpu.dot_dimension_numbers<[1], [0], [0], [1], [0, 0, 1, 1], [], []>} : vector<3x16xf32>, vector<16x32xf32>, vector<3x32xf32> -> vector<3x32xf32>
    %221 = arith.addf %217, %220 : vector<3x32xf32>
    %222 = vector.extract_strided_slice %112 {offsets = [81, 0], sizes = [3, 16], strides = [1, 1]} : vector<108x16xf32> to vector<3x16xf32>
    %c752 = arith.constant 752 : index
    %c0_110 = arith.constant 0 : index
    %223 = vector.load %arg0[%c752, %c0_110] : memref<2144x128xf32, #tpu.memory_space<vmem>>, vector<16x32xf32>
    %cst_111 = arith.constant dense<0.000000e+00> : vector<3x32xf32>
    %224 = tpu.matmul %222, %223, %cst_111 {dimension_numbers = #tpu.dot_dimension_numbers<[1], [0], [0], [1], [0, 0, 1, 1], [], []>} : vector<3x16xf32>, vector<16x32xf32>, vector<3x32xf32> -> vector<3x32xf32>
    %225 = arith.addf %221, %224 : vector<3x32xf32>
    %226 = vector.extract_strided_slice %112 {offsets = [84, 0], sizes = [3, 16], strides = [1, 1]} : vector<108x16xf32> to vector<3x16xf32>
    %c768 = arith.constant 768 : index
    %c0_112 = arith.constant 0 : index
    %227 = vector.load %arg0[%c768, %c0_112] : memref<2144x128xf32, #tpu.memory_space<vmem>>, vector<16x32xf32>
    %cst_113 = arith.constant dense<0.000000e+00> : vector<3x32xf32>
    %228 = tpu.matmul %226, %227, %cst_113 {dimension_numbers = #tpu.dot_dimension_numbers<[1], [0], [0], [1], [0, 0, 1, 1], [], []>} : vector<3x16xf32>, vector<16x32xf32>, vector<3x32xf32> -> vector<3x32xf32>
    %229 = arith.addf %225, %228 : vector<3x32xf32>
    %230 = vector.extract_strided_slice %112 {offsets = [87, 0], sizes = [3, 16], strides = [1, 1]} : vector<108x16xf32> to vector<3x16xf32>
    %c784 = arith.constant 784 : index
    %c0_114 = arith.constant 0 : index
    %231 = vector.load %arg0[%c784, %c0_114] : memref<2144x128xf32, #tpu.memory_space<vmem>>, vector<16x32xf32>
    %cst_115 = arith.constant dense<0.000000e+00> : vector<3x32xf32>
    %232 = tpu.matmul %230, %231, %cst_115 {dimension_numbers = #tpu.dot_dimension_numbers<[1], [0], [0], [1], [0, 0, 1, 1], [], []>} : vector<3x16xf32>, vector<16x32xf32>, vector<3x32xf32> -> vector<3x32xf32>
    %233 = arith.addf %229, %232 : vector<3x32xf32>
    %234 = vector.extract_strided_slice %112 {offsets = [90, 0], sizes = [3, 16], strides = [1, 1]} : vector<108x16xf32> to vector<3x16xf32>
    %c800 = arith.constant 800 : index
    %c0_116 = arith.constant 0 : index
    %235 = vector.load %arg0[%c800, %c0_116] : memref<2144x128xf32, #tpu.memory_space<vmem>>, vector<16x32xf32>
    %cst_117 = arith.constant dense<0.000000e+00> : vector<3x32xf32>
    %236 = tpu.matmul %234, %235, %cst_117 {dimension_numbers = #tpu.dot_dimension_numbers<[1], [0], [0], [1], [0, 0, 1, 1], [], []>} : vector<3x16xf32>, vector<16x32xf32>, vector<3x32xf32> -> vector<3x32xf32>
    %237 = arith.addf %233, %236 : vector<3x32xf32>
    %238 = vector.extract_strided_slice %112 {offsets = [93, 0], sizes = [3, 16], strides = [1, 1]} : vector<108x16xf32> to vector<3x16xf32>
    %c816 = arith.constant 816 : index
    %c0_118 = arith.constant 0 : index
    %239 = vector.load %arg0[%c816, %c0_118] : memref<2144x128xf32, #tpu.memory_space<vmem>>, vector<16x32xf32>
    %cst_119 = arith.constant dense<0.000000e+00> : vector<3x32xf32>
    %240 = tpu.matmul %238, %239, %cst_119 {dimension_numbers = #tpu.dot_dimension_numbers<[1], [0], [0], [1], [0, 0, 1, 1], [], []>} : vector<3x16xf32>, vector<16x32xf32>, vector<3x32xf32> -> vector<3x32xf32>
    %241 = arith.addf %237, %240 : vector<3x32xf32>
    %242 = vector.extract_strided_slice %112 {offsets = [96, 0], sizes = [3, 16], strides = [1, 1]} : vector<108x16xf32> to vector<3x16xf32>
    %c832 = arith.constant 832 : index
    %c0_120 = arith.constant 0 : index
    %243 = vector.load %arg0[%c832, %c0_120] : memref<2144x128xf32, #tpu.memory_space<vmem>>, vector<16x32xf32>
    %cst_121 = arith.constant dense<0.000000e+00> : vector<3x32xf32>
    %244 = tpu.matmul %242, %243, %cst_121 {dimension_numbers = #tpu.dot_dimension_numbers<[1], [0], [0], [1], [0, 0, 1, 1], [], []>} : vector<3x16xf32>, vector<16x32xf32>, vector<3x32xf32> -> vector<3x32xf32>
    %245 = arith.addf %241, %244 : vector<3x32xf32>
    %246 = vector.extract_strided_slice %112 {offsets = [99, 0], sizes = [3, 16], strides = [1, 1]} : vector<108x16xf32> to vector<3x16xf32>
    %c848 = arith.constant 848 : index
    %c0_122 = arith.constant 0 : index
    %247 = vector.load %arg0[%c848, %c0_122] : memref<2144x128xf32, #tpu.memory_space<vmem>>, vector<16x32xf32>
    %cst_123 = arith.constant dense<0.000000e+00> : vector<3x32xf32>
    %248 = tpu.matmul %246, %247, %cst_123 {dimension_numbers = #tpu.dot_dimension_numbers<[1], [0], [0], [1], [0, 0, 1, 1], [], []>} : vector<3x16xf32>, vector<16x32xf32>, vector<3x32xf32> -> vector<3x32xf32>
    %249 = arith.addf %245, %248 : vector<3x32xf32>
    %250 = vector.extract_strided_slice %112 {offsets = [102, 0], sizes = [3, 16], strides = [1, 1]} : vector<108x16xf32> to vector<3x16xf32>
    %c864 = arith.constant 864 : index
    %c0_124 = arith.constant 0 : index
    %251 = vector.load %arg0[%c864, %c0_124] : memref<2144x128xf32, #tpu.memory_space<vmem>>, vector<16x32xf32>
    %cst_125 = arith.constant dense<0.000000e+00> : vector<3x32xf32>
    %252 = tpu.matmul %250, %251, %cst_125 {dimension_numbers = #tpu.dot_dimension_numbers<[1], [0], [0], [1], [0, 0, 1, 1], [], []>} : vector<3x16xf32>, vector<16x32xf32>, vector<3x32xf32> -> vector<3x32xf32>
    %253 = arith.addf %249, %252 : vector<3x32xf32>
    %254 = vector.extract_strided_slice %112 {offsets = [105, 0], sizes = [3, 16], strides = [1, 1]} : vector<108x16xf32> to vector<3x16xf32>
    %c880 = arith.constant 880 : index
    %c0_126 = arith.constant 0 : index
    %255 = vector.load %arg0[%c880, %c0_126] : memref<2144x128xf32, #tpu.memory_space<vmem>>, vector<16x32xf32>
    %cst_127 = arith.constant dense<0.000000e+00> : vector<3x32xf32>
    %256 = tpu.matmul %254, %255, %cst_127 {dimension_numbers = #tpu.dot_dimension_numbers<[1], [0], [0], [1], [0, 0, 1, 1], [], []>} : vector<3x16xf32>, vector<16x32xf32>, vector<3x32xf32> -> vector<3x32xf32>
    %257 = arith.addf %253, %256 : vector<3x32xf32>
    %c896 = arith.constant 896 : index
    %c0_128 = arith.constant 0 : index
    %258 = vector.load %arg0[%c896, %c0_128] : memref<2144x128xf32, #tpu.memory_space<vmem>>, vector<1x32xf32>
    %259 = vector.broadcast %258 : vector<1x32xf32> to vector<3x32xf32>
    %260 = arith.addf %257, %259 : vector<3x32xf32>
    %c0_129 = arith.constant 0 : index
    %c0_130 = arith.constant 0 : index
    %261 = vector.load %arg4[%c0_129, %c0_130] : memref<5x32xf32, #tpu.memory_space<vmem>>, vector<5x32xf32>
    %262 = tpu.concatenate %261, %260 in 0 : vector<5x32xf32>, vector<3x32xf32> -> vector<8x32xf32>
    %c0_131 = arith.constant 0 : index
    %c0_132 = arith.constant 0 : index
    %263 = vector.load %arg1[%c0_131, %c0_132] : memref<64x128xf32, #tpu.memory_space<vmem>>, vector<10x8xf32>
    %cst_133 = arith.constant dense<0.000000e+00> : vector<10x32xf32>
    %264 = tpu.matmul %263, %262, %cst_133 {dimension_numbers = #tpu.dot_dimension_numbers<[1], [0], [0], [1], [0, 0, 1, 1], [], []>} : vector<10x8xf32>, vector<8x32xf32>, vector<10x32xf32> -> vector<10x32xf32>
    %c16_134 = arith.constant 16 : index
    %c0_135 = arith.constant 0 : index
    %265 = vector.load %arg1[%c16_134, %c0_135] : memref<64x128xf32, #tpu.memory_space<vmem>>, vector<10x32xf32>
    %266 = arith.addf %264, %265 : vector<10x32xf32>
    %c32_136 = arith.constant 32 : index
    %c0_137 = arith.constant 0 : index
    %267 = vector.load %arg1[%c32_136, %c0_137] : memref<64x128xf32, #tpu.memory_space<vmem>>, vector<10x10xf32>
    %c48_138 = arith.constant 48 : index
    %c0_139 = arith.constant 0 : index
    %268 = vector.load %arg1[%c48_138, %c0_139] : memref<64x128xf32, #tpu.memory_space<vmem>>, vector<10x10xf32>
    %c904 = arith.constant 904 : index
    %c0_140 = arith.constant 0 : index
    %269 = vector.load %arg0[%c904, %c0_140] : memref<2144x128xf32, #tpu.memory_space<vmem>>, vector<32x96xf32>
    %cst_141 = arith.constant dense<0.000000e+00> : vector<10x96xf32>
    %270 = tpu.matmul %266, %269, %cst_141 {dimension_numbers = #tpu.dot_dimension_numbers<[1], [0], [0], [1], [0, 0, 1, 1], [], []>} : vector<10x32xf32>, vector<32x96xf32>, vector<10x96xf32> -> vector<10x96xf32>
    %c936 = arith.constant 936 : index
    %c0_142 = arith.constant 0 : index
    %271 = vector.load %arg0[%c936, %c0_142] : memref<2144x128xf32, #tpu.memory_space<vmem>>, vector<1x96xf32>
    %272 = vector.broadcast %271 : vector<1x96xf32> to vector<10x96xf32>
    %273 = arith.addf %270, %272 : vector<10x96xf32>
    %274 = vector.extract_strided_slice %273 {offsets = [0, 0], sizes = [10, 32], strides = [1, 1]} : vector<10x96xf32> to vector<10x32xf32>
    %275 = vector.extract_strided_slice %273 {offsets = [0, 32], sizes = [10, 32], strides = [1, 1]} : vector<10x96xf32> to vector<10x32xf32>
    %276 = vector.extract_strided_slice %273 {offsets = [0, 64], sizes = [10, 32], strides = [1, 1]} : vector<10x96xf32> to vector<10x32xf32>
    %c944 = arith.constant 944 : index
    %c0_143 = arith.constant 0 : index
    %277 = vector.load %arg0[%c944, %c0_143] : memref<2144x128xf32, #tpu.memory_space<vmem>>, vector<32x32xf32>
    %c976 = arith.constant 976 : index
    %c0_144 = arith.constant 0 : index
    %278 = vector.load %arg0[%c976, %c0_144] : memref<2144x128xf32, #tpu.memory_space<vmem>>, vector<1x32xf32>
    %c0_145 = arith.constant 0 : index
    %c0_146 = arith.constant 0 : index
    %c0_147 = arith.constant 0 : index
    %279 = vector.load %arg5[%c0_145, %c0_146, %c0_147] : memref<8x1x32xf32, #tpu.memory_space<vmem>>, vector<8x1x32xf32>
    %280 = vector.shape_cast %274 : vector<10x32xf32> to vector<1x10x32xf32>
    %281 = vector.broadcast %280 : vector<1x10x32xf32> to vector<8x10x32xf32>
    %282 = vector.broadcast %279 : vector<8x1x32xf32> to vector<8x10x32xf32>
    %283 = arith.mulf %281, %282 : vector<8x10x32xf32>
    %284 = vector.shape_cast %275 : vector<10x32xf32> to vector<1x10x32xf32>
    %285 = vector.shape_cast %284 : vector<1x10x32xf32> to vector<1x10x32xf32>
    %286 = vector.broadcast %285 : vector<1x10x32xf32> to vector<8x10x32xf32>
    %287 = vector.shape_cast %276 : vector<10x32xf32> to vector<1x10x32xf32>
    %288 = vector.shape_cast %287 : vector<1x10x32xf32> to vector<1x10x32xf32>
    %289 = vector.broadcast %288 : vector<1x10x32xf32> to vector<8x10x32xf32>
    %cst_148 = arith.constant dense<0.000000e+00> : vector<8x10x10xf32>
    %290 = tpu.matmul %283, %286, %cst_148 {dimension_numbers = #tpu.dot_dimension_numbers<[2], [2], [1], [1], [0, 0, 0, 1, 1, 1], [0], [0]>} : vector<8x10x32xf32>, vector<8x10x32xf32>, vector<8x10x10xf32> -> vector<8x10x10xf32>
    %cst_149 = arith.constant 5.000000e-01 : f32
    %291 = vector.broadcast %cst_149 : f32 to vector<8x10x10xf32>
    %292 = arith.mulf %290, %291 : vector<8x10x10xf32>
    %293 = vector.shape_cast %267 : vector<10x10xf32> to vector<1x10x10xf32>
    %294 = vector.broadcast %293 : vector<1x10x10xf32> to vector<8x10x10xf32>
    %295 = arith.addf %292, %294 : vector<8x10x10xf32>
    %cst_150 = arith.constant dense<0xFF800000> : vector<8x10xf32>
    %296 = vector.multi_reduction <maximumf>, %295, %cst_150 [2] : vector<8x10x10xf32> to vector<8x10xf32>
    %297 = vector.shape_cast %296 : vector<8x10xf32> to vector<8x10x1xf32>
    %298 = vector.broadcast %297 : vector<8x10x1xf32> to vector<8x10x10xf32>
    %299 = arith.subf %295, %298 : vector<8x10x10xf32>
    %300 = math.exp %299 : vector<8x10x10xf32>
    %cst_151 = arith.constant dense<0.000000e+00> : vector<8x10xf32>
    %301 = vector.multi_reduction <add>, %300, %cst_151 [2] : vector<8x10x10xf32> to vector<8x10xf32>
    %302 = vector.shape_cast %301 : vector<8x10xf32> to vector<8x10x1xf32>
    %303 = vector.broadcast %302 : vector<8x10x1xf32> to vector<8x10x10xf32>
    %304 = arith.divf %300, %303 : vector<8x10x10xf32>
    %cst_152 = arith.constant dense<0.000000e+00> : vector<8x10x32xf32>
    %305 = tpu.matmul %304, %289, %cst_152 {dimension_numbers = #tpu.dot_dimension_numbers<[2], [1], [1], [2], [0, 0, 0, 1, 1, 2], [0], [0]>} : vector<8x10x10xf32>, vector<8x10x32xf32>, vector<8x10x32xf32> -> vector<8x10x32xf32>
    %306 = vector.broadcast %279 : vector<8x1x32xf32> to vector<8x10x32xf32>
    %307 = arith.mulf %305, %306 : vector<8x10x32xf32>
    %cst_153 = arith.constant dense<0.000000e+00> : vector<10x32xf32>
    %308 = vector.multi_reduction <add>, %307, %cst_153 [0] : vector<8x10x32xf32> to vector<10x32xf32>
    %cst_154 = arith.constant dense<0.000000e+00> : vector<10x32xf32>
    %309 = tpu.matmul %308, %277, %cst_154 {dimension_numbers = #tpu.dot_dimension_numbers<[1], [0], [0], [1], [0, 0, 1, 1], [], []>} : vector<10x32xf32>, vector<32x32xf32>, vector<10x32xf32> -> vector<10x32xf32>
    %310 = vector.broadcast %278 : vector<1x32xf32> to vector<10x32xf32>
    %311 = arith.addf %309, %310 : vector<10x32xf32>
    %312 = arith.addf %266, %311 : vector<10x32xf32>
    %c984 = arith.constant 984 : index
    %c0_155 = arith.constant 0 : index
    %313 = vector.load %arg0[%c984, %c0_155] : memref<2144x128xf32, #tpu.memory_space<vmem>>, vector<1x32xf32>
    %c992 = arith.constant 992 : index
    %c0_156 = arith.constant 0 : index
    %314 = vector.load %arg0[%c992, %c0_156] : memref<2144x128xf32, #tpu.memory_space<vmem>>, vector<1x32xf32>
    %cst_157 = arith.constant dense<0.000000e+00> : vector<10xf32>
    %315 = vector.multi_reduction <add>, %312, %cst_157 [1] : vector<10x32xf32> to vector<10xf32>
    %316 = vector.shape_cast %315 : vector<10xf32> to vector<10x1xf32>
    %cst_158 = arith.constant 3.200000e+01 : f32
    %317 = vector.broadcast %cst_158 : f32 to vector<10x1xf32>
    %318 = arith.divf %316, %317 : vector<10x1xf32>
    %319 = vector.broadcast %318 : vector<10x1xf32> to vector<10x32xf32>
    %320 = arith.subf %312, %319 : vector<10x32xf32>
    %321 = arith.mulf %320, %320 : vector<10x32xf32>
    %cst_159 = arith.constant dense<0.000000e+00> : vector<10xf32>
    %322 = vector.multi_reduction <add>, %321, %cst_159 [1] : vector<10x32xf32> to vector<10xf32>
    %323 = vector.shape_cast %322 : vector<10xf32> to vector<10x1xf32>
    %cst_160 = arith.constant 3.200000e+01 : f32
    %324 = vector.broadcast %cst_160 : f32 to vector<10x1xf32>
    %325 = arith.divf %323, %324 : vector<10x1xf32>
    %cst_161 = arith.constant 9.99999974E-6 : f32
    %326 = vector.broadcast %cst_161 : f32 to vector<10x1xf32>
    %327 = arith.addf %325, %326 : vector<10x1xf32>
    %328 = math.rsqrt %327 : vector<10x1xf32>
    %329 = vector.broadcast %328 : vector<10x1xf32> to vector<10x32xf32>
    %330 = arith.mulf %320, %329 : vector<10x32xf32>
    %331 = vector.broadcast %313 : vector<1x32xf32> to vector<10x32xf32>
    %332 = arith.mulf %330, %331 : vector<10x32xf32>
    %333 = vector.broadcast %314 : vector<1x32xf32> to vector<10x32xf32>
    %334 = arith.addf %332, %333 : vector<10x32xf32>
    %c1000 = arith.constant 1000 : index
    %c0_162 = arith.constant 0 : index
    %335 = vector.load %arg0[%c1000, %c0_162] : memref<2144x128xf32, #tpu.memory_space<vmem>>, vector<32x64xf32>
    %cst_163 = arith.constant dense<0.000000e+00> : vector<10x64xf32>
    %336 = tpu.matmul %334, %335, %cst_163 {dimension_numbers = #tpu.dot_dimension_numbers<[1], [0], [0], [1], [0, 0, 1, 1], [], []>} : vector<10x32xf32>, vector<32x64xf32>, vector<10x64xf32> -> vector<10x64xf32>
    %c1032 = arith.constant 1032 : index
    %c0_164 = arith.constant 0 : index
    %337 = vector.load %arg0[%c1032, %c0_164] : memref<2144x128xf32, #tpu.memory_space<vmem>>, vector<1x64xf32>
    %338 = vector.broadcast %337 : vector<1x64xf32> to vector<10x64xf32>
    %339 = arith.addf %336, %338 : vector<10x64xf32>
    %cst_165 = arith.constant 0.000000e+00 : f32
    %340 = vector.broadcast %cst_165 : f32 to vector<10x64xf32>
    %341 = arith.maximumf %339, %340 : vector<10x64xf32>
    %c1040 = arith.constant 1040 : index
    %c0_166 = arith.constant 0 : index
    %342 = vector.load %arg0[%c1040, %c0_166] : memref<2144x128xf32, #tpu.memory_space<vmem>>, vector<64x32xf32>
    %cst_167 = arith.constant dense<0.000000e+00> : vector<10x32xf32>
    %343 = tpu.matmul %341, %342, %cst_167 {dimension_numbers = #tpu.dot_dimension_numbers<[1], [0], [0], [1], [0, 0, 1, 1], [], []>} : vector<10x64xf32>, vector<64x32xf32>, vector<10x32xf32> -> vector<10x32xf32>
    %c1104 = arith.constant 1104 : index
    %c0_168 = arith.constant 0 : index
    %344 = vector.load %arg0[%c1104, %c0_168] : memref<2144x128xf32, #tpu.memory_space<vmem>>, vector<1x32xf32>
    %345 = vector.broadcast %344 : vector<1x32xf32> to vector<10x32xf32>
    %346 = arith.addf %343, %345 : vector<10x32xf32>
    %347 = arith.addf %334, %346 : vector<10x32xf32>
    %c1112 = arith.constant 1112 : index
    %c0_169 = arith.constant 0 : index
    %348 = vector.load %arg0[%c1112, %c0_169] : memref<2144x128xf32, #tpu.memory_space<vmem>>, vector<1x32xf32>
    %c1120 = arith.constant 1120 : index
    %c0_170 = arith.constant 0 : index
    %349 = vector.load %arg0[%c1120, %c0_170] : memref<2144x128xf32, #tpu.memory_space<vmem>>, vector<1x32xf32>
    %cst_171 = arith.constant dense<0.000000e+00> : vector<10xf32>
    %350 = vector.multi_reduction <add>, %347, %cst_171 [1] : vector<10x32xf32> to vector<10xf32>
    %351 = vector.shape_cast %350 : vector<10xf32> to vector<10x1xf32>
    %cst_172 = arith.constant 3.200000e+01 : f32
    %352 = vector.broadcast %cst_172 : f32 to vector<10x1xf32>
    %353 = arith.divf %351, %352 : vector<10x1xf32>
    %354 = vector.broadcast %353 : vector<10x1xf32> to vector<10x32xf32>
    %355 = arith.subf %347, %354 : vector<10x32xf32>
    %356 = arith.mulf %355, %355 : vector<10x32xf32>
    %cst_173 = arith.constant dense<0.000000e+00> : vector<10xf32>
    %357 = vector.multi_reduction <add>, %356, %cst_173 [1] : vector<10x32xf32> to vector<10xf32>
    %358 = vector.shape_cast %357 : vector<10xf32> to vector<10x1xf32>
    %cst_174 = arith.constant 3.200000e+01 : f32
    %359 = vector.broadcast %cst_174 : f32 to vector<10x1xf32>
    %360 = arith.divf %358, %359 : vector<10x1xf32>
    %cst_175 = arith.constant 9.99999974E-6 : f32
    %361 = vector.broadcast %cst_175 : f32 to vector<10x1xf32>
    %362 = arith.addf %360, %361 : vector<10x1xf32>
    %363 = math.rsqrt %362 : vector<10x1xf32>
    %364 = vector.broadcast %363 : vector<10x1xf32> to vector<10x32xf32>
    %365 = arith.mulf %355, %364 : vector<10x32xf32>
    %366 = vector.broadcast %348 : vector<1x32xf32> to vector<10x32xf32>
    %367 = arith.mulf %365, %366 : vector<10x32xf32>
    %368 = vector.broadcast %349 : vector<1x32xf32> to vector<10x32xf32>
    %369 = arith.addf %367, %368 : vector<10x32xf32>
    %c1128 = arith.constant 1128 : index
    %c0_176 = arith.constant 0 : index
    %370 = vector.load %arg0[%c1128, %c0_176] : memref<2144x128xf32, #tpu.memory_space<vmem>>, vector<32x96xf32>
    %cst_177 = arith.constant dense<0.000000e+00> : vector<10x96xf32>
    %371 = tpu.matmul %369, %370, %cst_177 {dimension_numbers = #tpu.dot_dimension_numbers<[1], [0], [0], [1], [0, 0, 1, 1], [], []>} : vector<10x32xf32>, vector<32x96xf32>, vector<10x96xf32> -> vector<10x96xf32>
    %c1160 = arith.constant 1160 : index
    %c0_178 = arith.constant 0 : index
    %372 = vector.load %arg0[%c1160, %c0_178] : memref<2144x128xf32, #tpu.memory_space<vmem>>, vector<1x96xf32>
    %373 = vector.broadcast %372 : vector<1x96xf32> to vector<10x96xf32>
    %374 = arith.addf %371, %373 : vector<10x96xf32>
    %375 = vector.extract_strided_slice %374 {offsets = [0, 0], sizes = [10, 32], strides = [1, 1]} : vector<10x96xf32> to vector<10x32xf32>
    %376 = vector.extract_strided_slice %374 {offsets = [0, 32], sizes = [10, 32], strides = [1, 1]} : vector<10x96xf32> to vector<10x32xf32>
    %377 = vector.extract_strided_slice %374 {offsets = [0, 64], sizes = [10, 32], strides = [1, 1]} : vector<10x96xf32> to vector<10x32xf32>
    %c1168 = arith.constant 1168 : index
    %c0_179 = arith.constant 0 : index
    %378 = vector.load %arg0[%c1168, %c0_179] : memref<2144x128xf32, #tpu.memory_space<vmem>>, vector<32x32xf32>
    %c1200 = arith.constant 1200 : index
    %c0_180 = arith.constant 0 : index
    %379 = vector.load %arg0[%c1200, %c0_180] : memref<2144x128xf32, #tpu.memory_space<vmem>>, vector<1x32xf32>
    %c0_181 = arith.constant 0 : index
    %c0_182 = arith.constant 0 : index
    %c0_183 = arith.constant 0 : index
    %380 = vector.load %arg5[%c0_181, %c0_182, %c0_183] : memref<8x1x32xf32, #tpu.memory_space<vmem>>, vector<8x1x32xf32>
    %381 = vector.shape_cast %375 : vector<10x32xf32> to vector<1x10x32xf32>
    %382 = vector.broadcast %381 : vector<1x10x32xf32> to vector<8x10x32xf32>
    %383 = vector.broadcast %380 : vector<8x1x32xf32> to vector<8x10x32xf32>
    %384 = arith.mulf %382, %383 : vector<8x10x32xf32>
    %385 = vector.shape_cast %376 : vector<10x32xf32> to vector<1x10x32xf32>
    %386 = vector.shape_cast %385 : vector<1x10x32xf32> to vector<1x10x32xf32>
    %387 = vector.broadcast %386 : vector<1x10x32xf32> to vector<8x10x32xf32>
    %388 = vector.shape_cast %377 : vector<10x32xf32> to vector<1x10x32xf32>
    %389 = vector.shape_cast %388 : vector<1x10x32xf32> to vector<1x10x32xf32>
    %390 = vector.broadcast %389 : vector<1x10x32xf32> to vector<8x10x32xf32>
    %cst_184 = arith.constant dense<0.000000e+00> : vector<8x10x10xf32>
    %391 = tpu.matmul %384, %387, %cst_184 {dimension_numbers = #tpu.dot_dimension_numbers<[2], [2], [1], [1], [0, 0, 0, 1, 1, 1], [0], [0]>} : vector<8x10x32xf32>, vector<8x10x32xf32>, vector<8x10x10xf32> -> vector<8x10x10xf32>
    %cst_185 = arith.constant 5.000000e-01 : f32
    %392 = vector.broadcast %cst_185 : f32 to vector<8x10x10xf32>
    %393 = arith.mulf %391, %392 : vector<8x10x10xf32>
    %394 = vector.shape_cast %267 : vector<10x10xf32> to vector<1x10x10xf32>
    %395 = vector.broadcast %394 : vector<1x10x10xf32> to vector<8x10x10xf32>
    %396 = arith.addf %393, %395 : vector<8x10x10xf32>
    %cst_186 = arith.constant dense<0xFF800000> : vector<8x10xf32>
    %397 = vector.multi_reduction <maximumf>, %396, %cst_186 [2] : vector<8x10x10xf32> to vector<8x10xf32>
    %398 = vector.shape_cast %397 : vector<8x10xf32> to vector<8x10x1xf32>
    %399 = vector.broadcast %398 : vector<8x10x1xf32> to vector<8x10x10xf32>
    %400 = arith.subf %396, %399 : vector<8x10x10xf32>
    %401 = math.exp %400 : vector<8x10x10xf32>
    %cst_187 = arith.constant dense<0.000000e+00> : vector<8x10xf32>
    %402 = vector.multi_reduction <add>, %401, %cst_187 [2] : vector<8x10x10xf32> to vector<8x10xf32>
    %403 = vector.shape_cast %402 : vector<8x10xf32> to vector<8x10x1xf32>
    %404 = vector.broadcast %403 : vector<8x10x1xf32> to vector<8x10x10xf32>
    %405 = arith.divf %401, %404 : vector<8x10x10xf32>
    %cst_188 = arith.constant dense<0.000000e+00> : vector<8x10x32xf32>
    %406 = tpu.matmul %405, %390, %cst_188 {dimension_numbers = #tpu.dot_dimension_numbers<[2], [1], [1], [2], [0, 0, 0, 1, 1, 2], [0], [0]>} : vector<8x10x10xf32>, vector<8x10x32xf32>, vector<8x10x32xf32> -> vector<8x10x32xf32>
    %407 = vector.broadcast %380 : vector<8x1x32xf32> to vector<8x10x32xf32>
    %408 = arith.mulf %406, %407 : vector<8x10x32xf32>
    %cst_189 = arith.constant dense<0.000000e+00> : vector<10x32xf32>
    %409 = vector.multi_reduction <add>, %408, %cst_189 [0] : vector<8x10x32xf32> to vector<10x32xf32>
    %cst_190 = arith.constant dense<0.000000e+00> : vector<10x32xf32>
    %410 = tpu.matmul %409, %378, %cst_190 {dimension_numbers = #tpu.dot_dimension_numbers<[1], [0], [0], [1], [0, 0, 1, 1], [], []>} : vector<10x32xf32>, vector<32x32xf32>, vector<10x32xf32> -> vector<10x32xf32>
    %411 = vector.broadcast %379 : vector<1x32xf32> to vector<10x32xf32>
    %412 = arith.addf %410, %411 : vector<10x32xf32>
    %413 = arith.addf %369, %412 : vector<10x32xf32>
    %c1208 = arith.constant 1208 : index
    %c0_191 = arith.constant 0 : index
    %414 = vector.load %arg0[%c1208, %c0_191] : memref<2144x128xf32, #tpu.memory_space<vmem>>, vector<1x32xf32>
    %c1216 = arith.constant 1216 : index
    %c0_192 = arith.constant 0 : index
    %415 = vector.load %arg0[%c1216, %c0_192] : memref<2144x128xf32, #tpu.memory_space<vmem>>, vector<1x32xf32>
    %cst_193 = arith.constant dense<0.000000e+00> : vector<10xf32>
    %416 = vector.multi_reduction <add>, %413, %cst_193 [1] : vector<10x32xf32> to vector<10xf32>
    %417 = vector.shape_cast %416 : vector<10xf32> to vector<10x1xf32>
    %cst_194 = arith.constant 3.200000e+01 : f32
    %418 = vector.broadcast %cst_194 : f32 to vector<10x1xf32>
    %419 = arith.divf %417, %418 : vector<10x1xf32>
    %420 = vector.broadcast %419 : vector<10x1xf32> to vector<10x32xf32>
    %421 = arith.subf %413, %420 : vector<10x32xf32>
    %422 = arith.mulf %421, %421 : vector<10x32xf32>
    %cst_195 = arith.constant dense<0.000000e+00> : vector<10xf32>
    %423 = vector.multi_reduction <add>, %422, %cst_195 [1] : vector<10x32xf32> to vector<10xf32>
    %424 = vector.shape_cast %423 : vector<10xf32> to vector<10x1xf32>
    %cst_196 = arith.constant 3.200000e+01 : f32
    %425 = vector.broadcast %cst_196 : f32 to vector<10x1xf32>
    %426 = arith.divf %424, %425 : vector<10x1xf32>
    %cst_197 = arith.constant 9.99999974E-6 : f32
    %427 = vector.broadcast %cst_197 : f32 to vector<10x1xf32>
    %428 = arith.addf %426, %427 : vector<10x1xf32>
    %429 = math.rsqrt %428 : vector<10x1xf32>
    %430 = vector.broadcast %429 : vector<10x1xf32> to vector<10x32xf32>
    %431 = arith.mulf %421, %430 : vector<10x32xf32>
    %432 = vector.broadcast %414 : vector<1x32xf32> to vector<10x32xf32>
    %433 = arith.mulf %431, %432 : vector<10x32xf32>
    %434 = vector.broadcast %415 : vector<1x32xf32> to vector<10x32xf32>
    %435 = arith.addf %433, %434 : vector<10x32xf32>
    %c1224 = arith.constant 1224 : index
    %c0_198 = arith.constant 0 : index
    %436 = vector.load %arg0[%c1224, %c0_198] : memref<2144x128xf32, #tpu.memory_space<vmem>>, vector<32x64xf32>
    %cst_199 = arith.constant dense<0.000000e+00> : vector<10x64xf32>
    %437 = tpu.matmul %435, %436, %cst_199 {dimension_numbers = #tpu.dot_dimension_numbers<[1], [0], [0], [1], [0, 0, 1, 1], [], []>} : vector<10x32xf32>, vector<32x64xf32>, vector<10x64xf32> -> vector<10x64xf32>
    %c1256 = arith.constant 1256 : index
    %c0_200 = arith.constant 0 : index
    %438 = vector.load %arg0[%c1256, %c0_200] : memref<2144x128xf32, #tpu.memory_space<vmem>>, vector<1x64xf32>
    %439 = vector.broadcast %438 : vector<1x64xf32> to vector<10x64xf32>
    %440 = arith.addf %437, %439 : vector<10x64xf32>
    %cst_201 = arith.constant 0.000000e+00 : f32
    %441 = vector.broadcast %cst_201 : f32 to vector<10x64xf32>
    %442 = arith.maximumf %440, %441 : vector<10x64xf32>
    %c1264 = arith.constant 1264 : index
    %c0_202 = arith.constant 0 : index
    %443 = vector.load %arg0[%c1264, %c0_202] : memref<2144x128xf32, #tpu.memory_space<vmem>>, vector<64x32xf32>
    %cst_203 = arith.constant dense<0.000000e+00> : vector<10x32xf32>
    %444 = tpu.matmul %442, %443, %cst_203 {dimension_numbers = #tpu.dot_dimension_numbers<[1], [0], [0], [1], [0, 0, 1, 1], [], []>} : vector<10x64xf32>, vector<64x32xf32>, vector<10x32xf32> -> vector<10x32xf32>
    %c1328 = arith.constant 1328 : index
    %c0_204 = arith.constant 0 : index
    %445 = vector.load %arg0[%c1328, %c0_204] : memref<2144x128xf32, #tpu.memory_space<vmem>>, vector<1x32xf32>
    %446 = vector.broadcast %445 : vector<1x32xf32> to vector<10x32xf32>
    %447 = arith.addf %444, %446 : vector<10x32xf32>
    %448 = arith.addf %435, %447 : vector<10x32xf32>
    %c1336 = arith.constant 1336 : index
    %c0_205 = arith.constant 0 : index
    %449 = vector.load %arg0[%c1336, %c0_205] : memref<2144x128xf32, #tpu.memory_space<vmem>>, vector<1x32xf32>
    %c1344 = arith.constant 1344 : index
    %c0_206 = arith.constant 0 : index
    %450 = vector.load %arg0[%c1344, %c0_206] : memref<2144x128xf32, #tpu.memory_space<vmem>>, vector<1x32xf32>
    %cst_207 = arith.constant dense<0.000000e+00> : vector<10xf32>
    %451 = vector.multi_reduction <add>, %448, %cst_207 [1] : vector<10x32xf32> to vector<10xf32>
    %452 = vector.shape_cast %451 : vector<10xf32> to vector<10x1xf32>
    %cst_208 = arith.constant 3.200000e+01 : f32
    %453 = vector.broadcast %cst_208 : f32 to vector<10x1xf32>
    %454 = arith.divf %452, %453 : vector<10x1xf32>
    %455 = vector.broadcast %454 : vector<10x1xf32> to vector<10x32xf32>
    %456 = arith.subf %448, %455 : vector<10x32xf32>
    %457 = arith.mulf %456, %456 : vector<10x32xf32>
    %cst_209 = arith.constant dense<0.000000e+00> : vector<10xf32>
    %458 = vector.multi_reduction <add>, %457, %cst_209 [1] : vector<10x32xf32> to vector<10xf32>
    %459 = vector.shape_cast %458 : vector<10xf32> to vector<10x1xf32>
    %cst_210 = arith.constant 3.200000e+01 : f32
    %460 = vector.broadcast %cst_210 : f32 to vector<10x1xf32>
    %461 = arith.divf %459, %460 : vector<10x1xf32>
    %cst_211 = arith.constant 9.99999974E-6 : f32
    %462 = vector.broadcast %cst_211 : f32 to vector<10x1xf32>
    %463 = arith.addf %461, %462 : vector<10x1xf32>
    %464 = math.rsqrt %463 : vector<10x1xf32>
    %465 = vector.broadcast %464 : vector<10x1xf32> to vector<10x32xf32>
    %466 = arith.mulf %456, %465 : vector<10x32xf32>
    %467 = vector.broadcast %449 : vector<1x32xf32> to vector<10x32xf32>
    %468 = arith.mulf %466, %467 : vector<10x32xf32>
    %469 = vector.broadcast %450 : vector<1x32xf32> to vector<10x32xf32>
    %470 = arith.addf %468, %469 : vector<10x32xf32>
    %c1352 = arith.constant 1352 : index
    %c0_212 = arith.constant 0 : index
    %471 = vector.load %arg0[%c1352, %c0_212] : memref<2144x128xf32, #tpu.memory_space<vmem>>, vector<1x32xf32>
    %c1360 = arith.constant 1360 : index
    %c0_213 = arith.constant 0 : index
    %472 = vector.load %arg0[%c1360, %c0_213] : memref<2144x128xf32, #tpu.memory_space<vmem>>, vector<1x32xf32>
    %cst_214 = arith.constant dense<0.000000e+00> : vector<10xf32>
    %473 = vector.multi_reduction <add>, %470, %cst_214 [1] : vector<10x32xf32> to vector<10xf32>
    %474 = vector.shape_cast %473 : vector<10xf32> to vector<10x1xf32>
    %cst_215 = arith.constant 3.200000e+01 : f32
    %475 = vector.broadcast %cst_215 : f32 to vector<10x1xf32>
    %476 = arith.divf %474, %475 : vector<10x1xf32>
    %477 = vector.broadcast %476 : vector<10x1xf32> to vector<10x32xf32>
    %478 = arith.subf %470, %477 : vector<10x32xf32>
    %479 = arith.mulf %478, %478 : vector<10x32xf32>
    %cst_216 = arith.constant dense<0.000000e+00> : vector<10xf32>
    %480 = vector.multi_reduction <add>, %479, %cst_216 [1] : vector<10x32xf32> to vector<10xf32>
    %481 = vector.shape_cast %480 : vector<10xf32> to vector<10x1xf32>
    %cst_217 = arith.constant 3.200000e+01 : f32
    %482 = vector.broadcast %cst_217 : f32 to vector<10x1xf32>
    %483 = arith.divf %481, %482 : vector<10x1xf32>
    %cst_218 = arith.constant 9.99999974E-6 : f32
    %484 = vector.broadcast %cst_218 : f32 to vector<10x1xf32>
    %485 = arith.addf %483, %484 : vector<10x1xf32>
    %486 = math.rsqrt %485 : vector<10x1xf32>
    %487 = vector.broadcast %486 : vector<10x1xf32> to vector<10x32xf32>
    %488 = arith.mulf %478, %487 : vector<10x32xf32>
    %489 = vector.broadcast %471 : vector<1x32xf32> to vector<10x32xf32>
    %490 = arith.mulf %488, %489 : vector<10x32xf32>
    %491 = vector.broadcast %472 : vector<1x32xf32> to vector<10x32xf32>
    %492 = arith.addf %490, %491 : vector<10x32xf32>
    %c1368 = arith.constant 1368 : index
    %c0_219 = arith.constant 0 : index
    %493 = vector.load %arg0[%c1368, %c0_219] : memref<2144x128xf32, #tpu.memory_space<vmem>>, vector<32x96xf32>
    %cst_220 = arith.constant dense<0.000000e+00> : vector<10x96xf32>
    %494 = tpu.matmul %266, %493, %cst_220 {dimension_numbers = #tpu.dot_dimension_numbers<[1], [0], [0], [1], [0, 0, 1, 1], [], []>} : vector<10x32xf32>, vector<32x96xf32>, vector<10x96xf32> -> vector<10x96xf32>
    %c1400 = arith.constant 1400 : index
    %c0_221 = arith.constant 0 : index
    %495 = vector.load %arg0[%c1400, %c0_221] : memref<2144x128xf32, #tpu.memory_space<vmem>>, vector<1x96xf32>
    %496 = vector.broadcast %495 : vector<1x96xf32> to vector<10x96xf32>
    %497 = arith.addf %494, %496 : vector<10x96xf32>
    %498 = vector.extract_strided_slice %497 {offsets = [0, 0], sizes = [10, 32], strides = [1, 1]} : vector<10x96xf32> to vector<10x32xf32>
    %499 = vector.extract_strided_slice %497 {offsets = [0, 32], sizes = [10, 32], strides = [1, 1]} : vector<10x96xf32> to vector<10x32xf32>
    %500 = vector.extract_strided_slice %497 {offsets = [0, 64], sizes = [10, 32], strides = [1, 1]} : vector<10x96xf32> to vector<10x32xf32>
    %c1408 = arith.constant 1408 : index
    %c0_222 = arith.constant 0 : index
    %501 = vector.load %arg0[%c1408, %c0_222] : memref<2144x128xf32, #tpu.memory_space<vmem>>, vector<32x32xf32>
    %c1440 = arith.constant 1440 : index
    %c0_223 = arith.constant 0 : index
    %502 = vector.load %arg0[%c1440, %c0_223] : memref<2144x128xf32, #tpu.memory_space<vmem>>, vector<1x32xf32>
    %c0_224 = arith.constant 0 : index
    %c0_225 = arith.constant 0 : index
    %c0_226 = arith.constant 0 : index
    %503 = vector.load %arg5[%c0_224, %c0_225, %c0_226] : memref<8x1x32xf32, #tpu.memory_space<vmem>>, vector<8x1x32xf32>
    %504 = vector.shape_cast %498 : vector<10x32xf32> to vector<1x10x32xf32>
    %505 = vector.broadcast %504 : vector<1x10x32xf32> to vector<8x10x32xf32>
    %506 = vector.broadcast %503 : vector<8x1x32xf32> to vector<8x10x32xf32>
    %507 = arith.mulf %505, %506 : vector<8x10x32xf32>
    %508 = vector.shape_cast %499 : vector<10x32xf32> to vector<1x10x32xf32>
    %509 = vector.shape_cast %508 : vector<1x10x32xf32> to vector<1x10x32xf32>
    %510 = vector.broadcast %509 : vector<1x10x32xf32> to vector<8x10x32xf32>
    %511 = vector.shape_cast %500 : vector<10x32xf32> to vector<1x10x32xf32>
    %512 = vector.shape_cast %511 : vector<1x10x32xf32> to vector<1x10x32xf32>
    %513 = vector.broadcast %512 : vector<1x10x32xf32> to vector<8x10x32xf32>
    %cst_227 = arith.constant dense<0.000000e+00> : vector<8x10x10xf32>
    %514 = tpu.matmul %507, %510, %cst_227 {dimension_numbers = #tpu.dot_dimension_numbers<[2], [2], [1], [1], [0, 0, 0, 1, 1, 1], [0], [0]>} : vector<8x10x32xf32>, vector<8x10x32xf32>, vector<8x10x10xf32> -> vector<8x10x10xf32>
    %cst_228 = arith.constant 5.000000e-01 : f32
    %515 = vector.broadcast %cst_228 : f32 to vector<8x10x10xf32>
    %516 = arith.mulf %514, %515 : vector<8x10x10xf32>
    %517 = vector.shape_cast %267 : vector<10x10xf32> to vector<1x10x10xf32>
    %518 = vector.broadcast %517 : vector<1x10x10xf32> to vector<8x10x10xf32>
    %519 = arith.addf %516, %518 : vector<8x10x10xf32>
    %cst_229 = arith.constant dense<0xFF800000> : vector<8x10xf32>
    %520 = vector.multi_reduction <maximumf>, %519, %cst_229 [2] : vector<8x10x10xf32> to vector<8x10xf32>
    %521 = vector.shape_cast %520 : vector<8x10xf32> to vector<8x10x1xf32>
    %522 = vector.broadcast %521 : vector<8x10x1xf32> to vector<8x10x10xf32>
    %523 = arith.subf %519, %522 : vector<8x10x10xf32>
    %524 = math.exp %523 : vector<8x10x10xf32>
    %cst_230 = arith.constant dense<0.000000e+00> : vector<8x10xf32>
    %525 = vector.multi_reduction <add>, %524, %cst_230 [2] : vector<8x10x10xf32> to vector<8x10xf32>
    %526 = vector.shape_cast %525 : vector<8x10xf32> to vector<8x10x1xf32>
    %527 = vector.broadcast %526 : vector<8x10x1xf32> to vector<8x10x10xf32>
    %528 = arith.divf %524, %527 : vector<8x10x10xf32>
    %cst_231 = arith.constant dense<0.000000e+00> : vector<8x10x32xf32>
    %529 = tpu.matmul %528, %513, %cst_231 {dimension_numbers = #tpu.dot_dimension_numbers<[2], [1], [1], [2], [0, 0, 0, 1, 1, 2], [0], [0]>} : vector<8x10x10xf32>, vector<8x10x32xf32>, vector<8x10x32xf32> -> vector<8x10x32xf32>
    %530 = vector.broadcast %503 : vector<8x1x32xf32> to vector<8x10x32xf32>
    %531 = arith.mulf %529, %530 : vector<8x10x32xf32>
    %cst_232 = arith.constant dense<0.000000e+00> : vector<10x32xf32>
    %532 = vector.multi_reduction <add>, %531, %cst_232 [0] : vector<8x10x32xf32> to vector<10x32xf32>
    %cst_233 = arith.constant dense<0.000000e+00> : vector<10x32xf32>
    %533 = tpu.matmul %532, %501, %cst_233 {dimension_numbers = #tpu.dot_dimension_numbers<[1], [0], [0], [1], [0, 0, 1, 1], [], []>} : vector<10x32xf32>, vector<32x32xf32>, vector<10x32xf32> -> vector<10x32xf32>
    %534 = vector.broadcast %502 : vector<1x32xf32> to vector<10x32xf32>
    %535 = arith.addf %533, %534 : vector<10x32xf32>
    %536 = arith.addf %266, %535 : vector<10x32xf32>
    %c1448 = arith.constant 1448 : index
    %c0_234 = arith.constant 0 : index
    %537 = vector.load %arg0[%c1448, %c0_234] : memref<2144x128xf32, #tpu.memory_space<vmem>>, vector<1x32xf32>
    %c1456 = arith.constant 1456 : index
    %c0_235 = arith.constant 0 : index
    %538 = vector.load %arg0[%c1456, %c0_235] : memref<2144x128xf32, #tpu.memory_space<vmem>>, vector<1x32xf32>
    %cst_236 = arith.constant dense<0.000000e+00> : vector<10xf32>
    %539 = vector.multi_reduction <add>, %536, %cst_236 [1] : vector<10x32xf32> to vector<10xf32>
    %540 = vector.shape_cast %539 : vector<10xf32> to vector<10x1xf32>
    %cst_237 = arith.constant 3.200000e+01 : f32
    %541 = vector.broadcast %cst_237 : f32 to vector<10x1xf32>
    %542 = arith.divf %540, %541 : vector<10x1xf32>
    %543 = vector.broadcast %542 : vector<10x1xf32> to vector<10x32xf32>
    %544 = arith.subf %536, %543 : vector<10x32xf32>
    %545 = arith.mulf %544, %544 : vector<10x32xf32>
    %cst_238 = arith.constant dense<0.000000e+00> : vector<10xf32>
    %546 = vector.multi_reduction <add>, %545, %cst_238 [1] : vector<10x32xf32> to vector<10xf32>
    %547 = vector.shape_cast %546 : vector<10xf32> to vector<10x1xf32>
    %cst_239 = arith.constant 3.200000e+01 : f32
    %548 = vector.broadcast %cst_239 : f32 to vector<10x1xf32>
    %549 = arith.divf %547, %548 : vector<10x1xf32>
    %cst_240 = arith.constant 9.99999974E-6 : f32
    %550 = vector.broadcast %cst_240 : f32 to vector<10x1xf32>
    %551 = arith.addf %549, %550 : vector<10x1xf32>
    %552 = math.rsqrt %551 : vector<10x1xf32>
    %553 = vector.broadcast %552 : vector<10x1xf32> to vector<10x32xf32>
    %554 = arith.mulf %544, %553 : vector<10x32xf32>
    %555 = vector.broadcast %537 : vector<1x32xf32> to vector<10x32xf32>
    %556 = arith.mulf %554, %555 : vector<10x32xf32>
    %557 = vector.broadcast %538 : vector<1x32xf32> to vector<10x32xf32>
    %558 = arith.addf %556, %557 : vector<10x32xf32>
    %c1464 = arith.constant 1464 : index
    %c0_241 = arith.constant 0 : index
    %559 = vector.load %arg0[%c1464, %c0_241] : memref<2144x128xf32, #tpu.memory_space<vmem>>, vector<32x32xf32>
    %cst_242 = arith.constant dense<0.000000e+00> : vector<10x32xf32>
    %560 = tpu.matmul %558, %559, %cst_242 {dimension_numbers = #tpu.dot_dimension_numbers<[1], [0], [0], [1], [0, 0, 1, 1], [], []>} : vector<10x32xf32>, vector<32x32xf32>, vector<10x32xf32> -> vector<10x32xf32>
    %c1496 = arith.constant 1496 : index
    %c0_243 = arith.constant 0 : index
    %561 = vector.load %arg0[%c1496, %c0_243] : memref<2144x128xf32, #tpu.memory_space<vmem>>, vector<1x32xf32>
    %562 = vector.broadcast %561 : vector<1x32xf32> to vector<10x32xf32>
    %563 = arith.addf %560, %562 : vector<10x32xf32>
    %c1504 = arith.constant 1504 : index
    %c0_244 = arith.constant 0 : index
    %564 = vector.load %arg0[%c1504, %c0_244] : memref<2144x128xf32, #tpu.memory_space<vmem>>, vector<32x64xf32>
    %cst_245 = arith.constant dense<0.000000e+00> : vector<10x64xf32>
    %565 = tpu.matmul %492, %564, %cst_245 {dimension_numbers = #tpu.dot_dimension_numbers<[1], [0], [0], [1], [0, 0, 1, 1], [], []>} : vector<10x32xf32>, vector<32x64xf32>, vector<10x64xf32> -> vector<10x64xf32>
    %c1536 = arith.constant 1536 : index
    %c0_246 = arith.constant 0 : index
    %566 = vector.load %arg0[%c1536, %c0_246] : memref<2144x128xf32, #tpu.memory_space<vmem>>, vector<1x64xf32>
    %567 = vector.broadcast %566 : vector<1x64xf32> to vector<10x64xf32>
    %568 = arith.addf %565, %567 : vector<10x64xf32>
    %569 = vector.extract_strided_slice %568 {offsets = [0, 0], sizes = [10, 32], strides = [1, 1]} : vector<10x64xf32> to vector<10x32xf32>
    %570 = vector.extract_strided_slice %568 {offsets = [0, 32], sizes = [10, 32], strides = [1, 1]} : vector<10x64xf32> to vector<10x32xf32>
    %c1544 = arith.constant 1544 : index
    %c0_247 = arith.constant 0 : index
    %571 = vector.load %arg0[%c1544, %c0_247] : memref<2144x128xf32, #tpu.memory_space<vmem>>, vector<32x32xf32>
    %c1576 = arith.constant 1576 : index
    %c0_248 = arith.constant 0 : index
    %572 = vector.load %arg0[%c1576, %c0_248] : memref<2144x128xf32, #tpu.memory_space<vmem>>, vector<1x32xf32>
    %c0_249 = arith.constant 0 : index
    %c0_250 = arith.constant 0 : index
    %c0_251 = arith.constant 0 : index
    %573 = vector.load %arg5[%c0_249, %c0_250, %c0_251] : memref<8x1x32xf32, #tpu.memory_space<vmem>>, vector<8x1x32xf32>
    %574 = vector.shape_cast %563 : vector<10x32xf32> to vector<1x10x32xf32>
    %575 = vector.broadcast %574 : vector<1x10x32xf32> to vector<8x10x32xf32>
    %576 = vector.broadcast %573 : vector<8x1x32xf32> to vector<8x10x32xf32>
    %577 = arith.mulf %575, %576 : vector<8x10x32xf32>
    %578 = vector.shape_cast %569 : vector<10x32xf32> to vector<1x10x32xf32>
    %579 = vector.shape_cast %578 : vector<1x10x32xf32> to vector<1x10x32xf32>
    %580 = vector.broadcast %579 : vector<1x10x32xf32> to vector<8x10x32xf32>
    %581 = vector.shape_cast %570 : vector<10x32xf32> to vector<1x10x32xf32>
    %582 = vector.shape_cast %581 : vector<1x10x32xf32> to vector<1x10x32xf32>
    %583 = vector.broadcast %582 : vector<1x10x32xf32> to vector<8x10x32xf32>
    %cst_252 = arith.constant dense<0.000000e+00> : vector<8x10x10xf32>
    %584 = tpu.matmul %577, %580, %cst_252 {dimension_numbers = #tpu.dot_dimension_numbers<[2], [2], [1], [1], [0, 0, 0, 1, 1, 1], [0], [0]>} : vector<8x10x32xf32>, vector<8x10x32xf32>, vector<8x10x10xf32> -> vector<8x10x10xf32>
    %cst_253 = arith.constant 5.000000e-01 : f32
    %585 = vector.broadcast %cst_253 : f32 to vector<8x10x10xf32>
    %586 = arith.mulf %584, %585 : vector<8x10x10xf32>
    %587 = vector.shape_cast %268 : vector<10x10xf32> to vector<1x10x10xf32>
    %588 = vector.broadcast %587 : vector<1x10x10xf32> to vector<8x10x10xf32>
    %589 = arith.addf %586, %588 : vector<8x10x10xf32>
    %cst_254 = arith.constant dense<0xFF800000> : vector<8x10xf32>
    %590 = vector.multi_reduction <maximumf>, %589, %cst_254 [2] : vector<8x10x10xf32> to vector<8x10xf32>
    %591 = vector.shape_cast %590 : vector<8x10xf32> to vector<8x10x1xf32>
    %592 = vector.broadcast %591 : vector<8x10x1xf32> to vector<8x10x10xf32>
    %593 = arith.subf %589, %592 : vector<8x10x10xf32>
    %594 = math.exp %593 : vector<8x10x10xf32>
    %cst_255 = arith.constant dense<0.000000e+00> : vector<8x10xf32>
    %595 = vector.multi_reduction <add>, %594, %cst_255 [2] : vector<8x10x10xf32> to vector<8x10xf32>
    %596 = vector.shape_cast %595 : vector<8x10xf32> to vector<8x10x1xf32>
    %597 = vector.broadcast %596 : vector<8x10x1xf32> to vector<8x10x10xf32>
    %598 = arith.divf %594, %597 : vector<8x10x10xf32>
    %cst_256 = arith.constant dense<0.000000e+00> : vector<8x10x32xf32>
    %599 = tpu.matmul %598, %583, %cst_256 {dimension_numbers = #tpu.dot_dimension_numbers<[2], [1], [1], [2], [0, 0, 0, 1, 1, 2], [0], [0]>} : vector<8x10x10xf32>, vector<8x10x32xf32>, vector<8x10x32xf32> -> vector<8x10x32xf32>
    %600 = vector.broadcast %573 : vector<8x1x32xf32> to vector<8x10x32xf32>
    %601 = arith.mulf %599, %600 : vector<8x10x32xf32>
    %cst_257 = arith.constant dense<0.000000e+00> : vector<10x32xf32>
    %602 = vector.multi_reduction <add>, %601, %cst_257 [0] : vector<8x10x32xf32> to vector<10x32xf32>
    %cst_258 = arith.constant dense<0.000000e+00> : vector<10x32xf32>
    %603 = tpu.matmul %602, %571, %cst_258 {dimension_numbers = #tpu.dot_dimension_numbers<[1], [0], [0], [1], [0, 0, 1, 1], [], []>} : vector<10x32xf32>, vector<32x32xf32>, vector<10x32xf32> -> vector<10x32xf32>
    %604 = vector.broadcast %572 : vector<1x32xf32> to vector<10x32xf32>
    %605 = arith.addf %603, %604 : vector<10x32xf32>
    %606 = arith.addf %558, %605 : vector<10x32xf32>
    %c1584 = arith.constant 1584 : index
    %c0_259 = arith.constant 0 : index
    %607 = vector.load %arg0[%c1584, %c0_259] : memref<2144x128xf32, #tpu.memory_space<vmem>>, vector<1x32xf32>
    %c1592 = arith.constant 1592 : index
    %c0_260 = arith.constant 0 : index
    %608 = vector.load %arg0[%c1592, %c0_260] : memref<2144x128xf32, #tpu.memory_space<vmem>>, vector<1x32xf32>
    %cst_261 = arith.constant dense<0.000000e+00> : vector<10xf32>
    %609 = vector.multi_reduction <add>, %606, %cst_261 [1] : vector<10x32xf32> to vector<10xf32>
    %610 = vector.shape_cast %609 : vector<10xf32> to vector<10x1xf32>
    %cst_262 = arith.constant 3.200000e+01 : f32
    %611 = vector.broadcast %cst_262 : f32 to vector<10x1xf32>
    %612 = arith.divf %610, %611 : vector<10x1xf32>
    %613 = vector.broadcast %612 : vector<10x1xf32> to vector<10x32xf32>
    %614 = arith.subf %606, %613 : vector<10x32xf32>
    %615 = arith.mulf %614, %614 : vector<10x32xf32>
    %cst_263 = arith.constant dense<0.000000e+00> : vector<10xf32>
    %616 = vector.multi_reduction <add>, %615, %cst_263 [1] : vector<10x32xf32> to vector<10xf32>
    %617 = vector.shape_cast %616 : vector<10xf32> to vector<10x1xf32>
    %cst_264 = arith.constant 3.200000e+01 : f32
    %618 = vector.broadcast %cst_264 : f32 to vector<10x1xf32>
    %619 = arith.divf %617, %618 : vector<10x1xf32>
    %cst_265 = arith.constant 9.99999974E-6 : f32
    %620 = vector.broadcast %cst_265 : f32 to vector<10x1xf32>
    %621 = arith.addf %619, %620 : vector<10x1xf32>
    %622 = math.rsqrt %621 : vector<10x1xf32>
    %623 = vector.broadcast %622 : vector<10x1xf32> to vector<10x32xf32>
    %624 = arith.mulf %614, %623 : vector<10x32xf32>
    %625 = vector.broadcast %607 : vector<1x32xf32> to vector<10x32xf32>
    %626 = arith.mulf %624, %625 : vector<10x32xf32>
    %627 = vector.broadcast %608 : vector<1x32xf32> to vector<10x32xf32>
    %628 = arith.addf %626, %627 : vector<10x32xf32>
    %c1600 = arith.constant 1600 : index
    %c0_266 = arith.constant 0 : index
    %629 = vector.load %arg0[%c1600, %c0_266] : memref<2144x128xf32, #tpu.memory_space<vmem>>, vector<32x64xf32>
    %cst_267 = arith.constant dense<0.000000e+00> : vector<10x64xf32>
    %630 = tpu.matmul %628, %629, %cst_267 {dimension_numbers = #tpu.dot_dimension_numbers<[1], [0], [0], [1], [0, 0, 1, 1], [], []>} : vector<10x32xf32>, vector<32x64xf32>, vector<10x64xf32> -> vector<10x64xf32>
    %c1632 = arith.constant 1632 : index
    %c0_268 = arith.constant 0 : index
    %631 = vector.load %arg0[%c1632, %c0_268] : memref<2144x128xf32, #tpu.memory_space<vmem>>, vector<1x64xf32>
    %632 = vector.broadcast %631 : vector<1x64xf32> to vector<10x64xf32>
    %633 = arith.addf %630, %632 : vector<10x64xf32>
    %cst_269 = arith.constant 0.000000e+00 : f32
    %634 = vector.broadcast %cst_269 : f32 to vector<10x64xf32>
    %635 = arith.maximumf %633, %634 : vector<10x64xf32>
    %c1640 = arith.constant 1640 : index
    %c0_270 = arith.constant 0 : index
    %636 = vector.load %arg0[%c1640, %c0_270] : memref<2144x128xf32, #tpu.memory_space<vmem>>, vector<64x32xf32>
    %cst_271 = arith.constant dense<0.000000e+00> : vector<10x32xf32>
    %637 = tpu.matmul %635, %636, %cst_271 {dimension_numbers = #tpu.dot_dimension_numbers<[1], [0], [0], [1], [0, 0, 1, 1], [], []>} : vector<10x64xf32>, vector<64x32xf32>, vector<10x32xf32> -> vector<10x32xf32>
    %c1704 = arith.constant 1704 : index
    %c0_272 = arith.constant 0 : index
    %638 = vector.load %arg0[%c1704, %c0_272] : memref<2144x128xf32, #tpu.memory_space<vmem>>, vector<1x32xf32>
    %639 = vector.broadcast %638 : vector<1x32xf32> to vector<10x32xf32>
    %640 = arith.addf %637, %639 : vector<10x32xf32>
    %641 = arith.addf %628, %640 : vector<10x32xf32>
    %c1712 = arith.constant 1712 : index
    %c0_273 = arith.constant 0 : index
    %642 = vector.load %arg0[%c1712, %c0_273] : memref<2144x128xf32, #tpu.memory_space<vmem>>, vector<1x32xf32>
    %c1720 = arith.constant 1720 : index
    %c0_274 = arith.constant 0 : index
    %643 = vector.load %arg0[%c1720, %c0_274] : memref<2144x128xf32, #tpu.memory_space<vmem>>, vector<1x32xf32>
    %cst_275 = arith.constant dense<0.000000e+00> : vector<10xf32>
    %644 = vector.multi_reduction <add>, %641, %cst_275 [1] : vector<10x32xf32> to vector<10xf32>
    %645 = vector.shape_cast %644 : vector<10xf32> to vector<10x1xf32>
    %cst_276 = arith.constant 3.200000e+01 : f32
    %646 = vector.broadcast %cst_276 : f32 to vector<10x1xf32>
    %647 = arith.divf %645, %646 : vector<10x1xf32>
    %648 = vector.broadcast %647 : vector<10x1xf32> to vector<10x32xf32>
    %649 = arith.subf %641, %648 : vector<10x32xf32>
    %650 = arith.mulf %649, %649 : vector<10x32xf32>
    %cst_277 = arith.constant dense<0.000000e+00> : vector<10xf32>
    %651 = vector.multi_reduction <add>, %650, %cst_277 [1] : vector<10x32xf32> to vector<10xf32>
    %652 = vector.shape_cast %651 : vector<10xf32> to vector<10x1xf32>
    %cst_278 = arith.constant 3.200000e+01 : f32
    %653 = vector.broadcast %cst_278 : f32 to vector<10x1xf32>
    %654 = arith.divf %652, %653 : vector<10x1xf32>
    %cst_279 = arith.constant 9.99999974E-6 : f32
    %655 = vector.broadcast %cst_279 : f32 to vector<10x1xf32>
    %656 = arith.addf %654, %655 : vector<10x1xf32>
    %657 = math.rsqrt %656 : vector<10x1xf32>
    %658 = vector.broadcast %657 : vector<10x1xf32> to vector<10x32xf32>
    %659 = arith.mulf %649, %658 : vector<10x32xf32>
    %660 = vector.broadcast %642 : vector<1x32xf32> to vector<10x32xf32>
    %661 = arith.mulf %659, %660 : vector<10x32xf32>
    %662 = vector.broadcast %643 : vector<1x32xf32> to vector<10x32xf32>
    %663 = arith.addf %661, %662 : vector<10x32xf32>
    %c1728 = arith.constant 1728 : index
    %c0_280 = arith.constant 0 : index
    %664 = vector.load %arg0[%c1728, %c0_280] : memref<2144x128xf32, #tpu.memory_space<vmem>>, vector<32x96xf32>
    %cst_281 = arith.constant dense<0.000000e+00> : vector<10x96xf32>
    %665 = tpu.matmul %663, %664, %cst_281 {dimension_numbers = #tpu.dot_dimension_numbers<[1], [0], [0], [1], [0, 0, 1, 1], [], []>} : vector<10x32xf32>, vector<32x96xf32>, vector<10x96xf32> -> vector<10x96xf32>
    %c1760 = arith.constant 1760 : index
    %c0_282 = arith.constant 0 : index
    %666 = vector.load %arg0[%c1760, %c0_282] : memref<2144x128xf32, #tpu.memory_space<vmem>>, vector<1x96xf32>
    %667 = vector.broadcast %666 : vector<1x96xf32> to vector<10x96xf32>
    %668 = arith.addf %665, %667 : vector<10x96xf32>
    %669 = vector.extract_strided_slice %668 {offsets = [0, 0], sizes = [10, 32], strides = [1, 1]} : vector<10x96xf32> to vector<10x32xf32>
    %670 = vector.extract_strided_slice %668 {offsets = [0, 32], sizes = [10, 32], strides = [1, 1]} : vector<10x96xf32> to vector<10x32xf32>
    %671 = vector.extract_strided_slice %668 {offsets = [0, 64], sizes = [10, 32], strides = [1, 1]} : vector<10x96xf32> to vector<10x32xf32>
    %c1768 = arith.constant 1768 : index
    %c0_283 = arith.constant 0 : index
    %672 = vector.load %arg0[%c1768, %c0_283] : memref<2144x128xf32, #tpu.memory_space<vmem>>, vector<32x32xf32>
    %c1800 = arith.constant 1800 : index
    %c0_284 = arith.constant 0 : index
    %673 = vector.load %arg0[%c1800, %c0_284] : memref<2144x128xf32, #tpu.memory_space<vmem>>, vector<1x32xf32>
    %c0_285 = arith.constant 0 : index
    %c0_286 = arith.constant 0 : index
    %c0_287 = arith.constant 0 : index
    %674 = vector.load %arg5[%c0_285, %c0_286, %c0_287] : memref<8x1x32xf32, #tpu.memory_space<vmem>>, vector<8x1x32xf32>
    %675 = vector.shape_cast %669 : vector<10x32xf32> to vector<1x10x32xf32>
    %676 = vector.broadcast %675 : vector<1x10x32xf32> to vector<8x10x32xf32>
    %677 = vector.broadcast %674 : vector<8x1x32xf32> to vector<8x10x32xf32>
    %678 = arith.mulf %676, %677 : vector<8x10x32xf32>
    %679 = vector.shape_cast %670 : vector<10x32xf32> to vector<1x10x32xf32>
    %680 = vector.shape_cast %679 : vector<1x10x32xf32> to vector<1x10x32xf32>
    %681 = vector.broadcast %680 : vector<1x10x32xf32> to vector<8x10x32xf32>
    %682 = vector.shape_cast %671 : vector<10x32xf32> to vector<1x10x32xf32>
    %683 = vector.shape_cast %682 : vector<1x10x32xf32> to vector<1x10x32xf32>
    %684 = vector.broadcast %683 : vector<1x10x32xf32> to vector<8x10x32xf32>
    %cst_288 = arith.constant dense<0.000000e+00> : vector<8x10x10xf32>
    %685 = tpu.matmul %678, %681, %cst_288 {dimension_numbers = #tpu.dot_dimension_numbers<[2], [2], [1], [1], [0, 0, 0, 1, 1, 1], [0], [0]>} : vector<8x10x32xf32>, vector<8x10x32xf32>, vector<8x10x10xf32> -> vector<8x10x10xf32>
    %cst_289 = arith.constant 5.000000e-01 : f32
    %686 = vector.broadcast %cst_289 : f32 to vector<8x10x10xf32>
    %687 = arith.mulf %685, %686 : vector<8x10x10xf32>
    %688 = vector.shape_cast %267 : vector<10x10xf32> to vector<1x10x10xf32>
    %689 = vector.broadcast %688 : vector<1x10x10xf32> to vector<8x10x10xf32>
    %690 = arith.addf %687, %689 : vector<8x10x10xf32>
    %cst_290 = arith.constant dense<0xFF800000> : vector<8x10xf32>
    %691 = vector.multi_reduction <maximumf>, %690, %cst_290 [2] : vector<8x10x10xf32> to vector<8x10xf32>
    %692 = vector.shape_cast %691 : vector<8x10xf32> to vector<8x10x1xf32>
    %693 = vector.broadcast %692 : vector<8x10x1xf32> to vector<8x10x10xf32>
    %694 = arith.subf %690, %693 : vector<8x10x10xf32>
    %695 = math.exp %694 : vector<8x10x10xf32>
    %cst_291 = arith.constant dense<0.000000e+00> : vector<8x10xf32>
    %696 = vector.multi_reduction <add>, %695, %cst_291 [2] : vector<8x10x10xf32> to vector<8x10xf32>
    %697 = vector.shape_cast %696 : vector<8x10xf32> to vector<8x10x1xf32>
    %698 = vector.broadcast %697 : vector<8x10x1xf32> to vector<8x10x10xf32>
    %699 = arith.divf %695, %698 : vector<8x10x10xf32>
    %cst_292 = arith.constant dense<0.000000e+00> : vector<8x10x32xf32>
    %700 = tpu.matmul %699, %684, %cst_292 {dimension_numbers = #tpu.dot_dimension_numbers<[2], [1], [1], [2], [0, 0, 0, 1, 1, 2], [0], [0]>} : vector<8x10x10xf32>, vector<8x10x32xf32>, vector<8x10x32xf32> -> vector<8x10x32xf32>
    %701 = vector.broadcast %674 : vector<8x1x32xf32> to vector<8x10x32xf32>
    %702 = arith.mulf %700, %701 : vector<8x10x32xf32>
    %cst_293 = arith.constant dense<0.000000e+00> : vector<10x32xf32>
    %703 = vector.multi_reduction <add>, %702, %cst_293 [0] : vector<8x10x32xf32> to vector<10x32xf32>
    %cst_294 = arith.constant dense<0.000000e+00> : vector<10x32xf32>
    %704 = tpu.matmul %703, %672, %cst_294 {dimension_numbers = #tpu.dot_dimension_numbers<[1], [0], [0], [1], [0, 0, 1, 1], [], []>} : vector<10x32xf32>, vector<32x32xf32>, vector<10x32xf32> -> vector<10x32xf32>
    %705 = vector.broadcast %673 : vector<1x32xf32> to vector<10x32xf32>
    %706 = arith.addf %704, %705 : vector<10x32xf32>
    %707 = arith.addf %663, %706 : vector<10x32xf32>
    %c1808 = arith.constant 1808 : index
    %c0_295 = arith.constant 0 : index
    %708 = vector.load %arg0[%c1808, %c0_295] : memref<2144x128xf32, #tpu.memory_space<vmem>>, vector<1x32xf32>
    %c1816 = arith.constant 1816 : index
    %c0_296 = arith.constant 0 : index
    %709 = vector.load %arg0[%c1816, %c0_296] : memref<2144x128xf32, #tpu.memory_space<vmem>>, vector<1x32xf32>
    %cst_297 = arith.constant dense<0.000000e+00> : vector<10xf32>
    %710 = vector.multi_reduction <add>, %707, %cst_297 [1] : vector<10x32xf32> to vector<10xf32>
    %711 = vector.shape_cast %710 : vector<10xf32> to vector<10x1xf32>
    %cst_298 = arith.constant 3.200000e+01 : f32
    %712 = vector.broadcast %cst_298 : f32 to vector<10x1xf32>
    %713 = arith.divf %711, %712 : vector<10x1xf32>
    %714 = vector.broadcast %713 : vector<10x1xf32> to vector<10x32xf32>
    %715 = arith.subf %707, %714 : vector<10x32xf32>
    %716 = arith.mulf %715, %715 : vector<10x32xf32>
    %cst_299 = arith.constant dense<0.000000e+00> : vector<10xf32>
    %717 = vector.multi_reduction <add>, %716, %cst_299 [1] : vector<10x32xf32> to vector<10xf32>
    %718 = vector.shape_cast %717 : vector<10xf32> to vector<10x1xf32>
    %cst_300 = arith.constant 3.200000e+01 : f32
    %719 = vector.broadcast %cst_300 : f32 to vector<10x1xf32>
    %720 = arith.divf %718, %719 : vector<10x1xf32>
    %cst_301 = arith.constant 9.99999974E-6 : f32
    %721 = vector.broadcast %cst_301 : f32 to vector<10x1xf32>
    %722 = arith.addf %720, %721 : vector<10x1xf32>
    %723 = math.rsqrt %722 : vector<10x1xf32>
    %724 = vector.broadcast %723 : vector<10x1xf32> to vector<10x32xf32>
    %725 = arith.mulf %715, %724 : vector<10x32xf32>
    %726 = vector.broadcast %708 : vector<1x32xf32> to vector<10x32xf32>
    %727 = arith.mulf %725, %726 : vector<10x32xf32>
    %728 = vector.broadcast %709 : vector<1x32xf32> to vector<10x32xf32>
    %729 = arith.addf %727, %728 : vector<10x32xf32>
    %c1824 = arith.constant 1824 : index
    %c0_302 = arith.constant 0 : index
    %730 = vector.load %arg0[%c1824, %c0_302] : memref<2144x128xf32, #tpu.memory_space<vmem>>, vector<32x32xf32>
    %cst_303 = arith.constant dense<0.000000e+00> : vector<10x32xf32>
    %731 = tpu.matmul %729, %730, %cst_303 {dimension_numbers = #tpu.dot_dimension_numbers<[1], [0], [0], [1], [0, 0, 1, 1], [], []>} : vector<10x32xf32>, vector<32x32xf32>, vector<10x32xf32> -> vector<10x32xf32>
    %c1856 = arith.constant 1856 : index
    %c0_304 = arith.constant 0 : index
    %732 = vector.load %arg0[%c1856, %c0_304] : memref<2144x128xf32, #tpu.memory_space<vmem>>, vector<1x32xf32>
    %733 = vector.broadcast %732 : vector<1x32xf32> to vector<10x32xf32>
    %734 = arith.addf %731, %733 : vector<10x32xf32>
    %c1864 = arith.constant 1864 : index
    %c0_305 = arith.constant 0 : index
    %735 = vector.load %arg0[%c1864, %c0_305] : memref<2144x128xf32, #tpu.memory_space<vmem>>, vector<32x64xf32>
    %cst_306 = arith.constant dense<0.000000e+00> : vector<10x64xf32>
    %736 = tpu.matmul %492, %735, %cst_306 {dimension_numbers = #tpu.dot_dimension_numbers<[1], [0], [0], [1], [0, 0, 1, 1], [], []>} : vector<10x32xf32>, vector<32x64xf32>, vector<10x64xf32> -> vector<10x64xf32>
    %c1896 = arith.constant 1896 : index
    %c0_307 = arith.constant 0 : index
    %737 = vector.load %arg0[%c1896, %c0_307] : memref<2144x128xf32, #tpu.memory_space<vmem>>, vector<1x64xf32>
    %738 = vector.broadcast %737 : vector<1x64xf32> to vector<10x64xf32>
    %739 = arith.addf %736, %738 : vector<10x64xf32>
    %740 = vector.extract_strided_slice %739 {offsets = [0, 0], sizes = [10, 32], strides = [1, 1]} : vector<10x64xf32> to vector<10x32xf32>
    %741 = vector.extract_strided_slice %739 {offsets = [0, 32], sizes = [10, 32], strides = [1, 1]} : vector<10x64xf32> to vector<10x32xf32>
    %c1904 = arith.constant 1904 : index
    %c0_308 = arith.constant 0 : index
    %742 = vector.load %arg0[%c1904, %c0_308] : memref<2144x128xf32, #tpu.memory_space<vmem>>, vector<32x32xf32>
    %c1936 = arith.constant 1936 : index
    %c0_309 = arith.constant 0 : index
    %743 = vector.load %arg0[%c1936, %c0_309] : memref<2144x128xf32, #tpu.memory_space<vmem>>, vector<1x32xf32>
    %c0_310 = arith.constant 0 : index
    %c0_311 = arith.constant 0 : index
    %c0_312 = arith.constant 0 : index
    %744 = vector.load %arg5[%c0_310, %c0_311, %c0_312] : memref<8x1x32xf32, #tpu.memory_space<vmem>>, vector<8x1x32xf32>
    %745 = vector.shape_cast %734 : vector<10x32xf32> to vector<1x10x32xf32>
    %746 = vector.broadcast %745 : vector<1x10x32xf32> to vector<8x10x32xf32>
    %747 = vector.broadcast %744 : vector<8x1x32xf32> to vector<8x10x32xf32>
    %748 = arith.mulf %746, %747 : vector<8x10x32xf32>
    %749 = vector.shape_cast %740 : vector<10x32xf32> to vector<1x10x32xf32>
    %750 = vector.shape_cast %749 : vector<1x10x32xf32> to vector<1x10x32xf32>
    %751 = vector.broadcast %750 : vector<1x10x32xf32> to vector<8x10x32xf32>
    %752 = vector.shape_cast %741 : vector<10x32xf32> to vector<1x10x32xf32>
    %753 = vector.shape_cast %752 : vector<1x10x32xf32> to vector<1x10x32xf32>
    %754 = vector.broadcast %753 : vector<1x10x32xf32> to vector<8x10x32xf32>
    %cst_313 = arith.constant dense<0.000000e+00> : vector<8x10x10xf32>
    %755 = tpu.matmul %748, %751, %cst_313 {dimension_numbers = #tpu.dot_dimension_numbers<[2], [2], [1], [1], [0, 0, 0, 1, 1, 1], [0], [0]>} : vector<8x10x32xf32>, vector<8x10x32xf32>, vector<8x10x10xf32> -> vector<8x10x10xf32>
    %cst_314 = arith.constant 5.000000e-01 : f32
    %756 = vector.broadcast %cst_314 : f32 to vector<8x10x10xf32>
    %757 = arith.mulf %755, %756 : vector<8x10x10xf32>
    %758 = vector.shape_cast %268 : vector<10x10xf32> to vector<1x10x10xf32>
    %759 = vector.broadcast %758 : vector<1x10x10xf32> to vector<8x10x10xf32>
    %760 = arith.addf %757, %759 : vector<8x10x10xf32>
    %cst_315 = arith.constant dense<0xFF800000> : vector<8x10xf32>
    %761 = vector.multi_reduction <maximumf>, %760, %cst_315 [2] : vector<8x10x10xf32> to vector<8x10xf32>
    %762 = vector.shape_cast %761 : vector<8x10xf32> to vector<8x10x1xf32>
    %763 = vector.broadcast %762 : vector<8x10x1xf32> to vector<8x10x10xf32>
    %764 = arith.subf %760, %763 : vector<8x10x10xf32>
    %765 = math.exp %764 : vector<8x10x10xf32>
    %cst_316 = arith.constant dense<0.000000e+00> : vector<8x10xf32>
    %766 = vector.multi_reduction <add>, %765, %cst_316 [2] : vector<8x10x10xf32> to vector<8x10xf32>
    %767 = vector.shape_cast %766 : vector<8x10xf32> to vector<8x10x1xf32>
    %768 = vector.broadcast %767 : vector<8x10x1xf32> to vector<8x10x10xf32>
    %769 = arith.divf %765, %768 : vector<8x10x10xf32>
    %cst_317 = arith.constant dense<0.000000e+00> : vector<8x10x32xf32>
    %770 = tpu.matmul %769, %754, %cst_317 {dimension_numbers = #tpu.dot_dimension_numbers<[2], [1], [1], [2], [0, 0, 0, 1, 1, 2], [0], [0]>} : vector<8x10x10xf32>, vector<8x10x32xf32>, vector<8x10x32xf32> -> vector<8x10x32xf32>
    %771 = vector.broadcast %744 : vector<8x1x32xf32> to vector<8x10x32xf32>
    %772 = arith.mulf %770, %771 : vector<8x10x32xf32>
    %cst_318 = arith.constant dense<0.000000e+00> : vector<10x32xf32>
    %773 = vector.multi_reduction <add>, %772, %cst_318 [0] : vector<8x10x32xf32> to vector<10x32xf32>
    %cst_319 = arith.constant dense<0.000000e+00> : vector<10x32xf32>
    %774 = tpu.matmul %773, %742, %cst_319 {dimension_numbers = #tpu.dot_dimension_numbers<[1], [0], [0], [1], [0, 0, 1, 1], [], []>} : vector<10x32xf32>, vector<32x32xf32>, vector<10x32xf32> -> vector<10x32xf32>
    %775 = vector.broadcast %743 : vector<1x32xf32> to vector<10x32xf32>
    %776 = arith.addf %774, %775 : vector<10x32xf32>
    %777 = arith.addf %729, %776 : vector<10x32xf32>
    %c1944 = arith.constant 1944 : index
    %c0_320 = arith.constant 0 : index
    %778 = vector.load %arg0[%c1944, %c0_320] : memref<2144x128xf32, #tpu.memory_space<vmem>>, vector<1x32xf32>
    %c1952 = arith.constant 1952 : index
    %c0_321 = arith.constant 0 : index
    %779 = vector.load %arg0[%c1952, %c0_321] : memref<2144x128xf32, #tpu.memory_space<vmem>>, vector<1x32xf32>
    %cst_322 = arith.constant dense<0.000000e+00> : vector<10xf32>
    %780 = vector.multi_reduction <add>, %777, %cst_322 [1] : vector<10x32xf32> to vector<10xf32>
    %781 = vector.shape_cast %780 : vector<10xf32> to vector<10x1xf32>
    %cst_323 = arith.constant 3.200000e+01 : f32
    %782 = vector.broadcast %cst_323 : f32 to vector<10x1xf32>
    %783 = arith.divf %781, %782 : vector<10x1xf32>
    %784 = vector.broadcast %783 : vector<10x1xf32> to vector<10x32xf32>
    %785 = arith.subf %777, %784 : vector<10x32xf32>
    %786 = arith.mulf %785, %785 : vector<10x32xf32>
    %cst_324 = arith.constant dense<0.000000e+00> : vector<10xf32>
    %787 = vector.multi_reduction <add>, %786, %cst_324 [1] : vector<10x32xf32> to vector<10xf32>
    %788 = vector.shape_cast %787 : vector<10xf32> to vector<10x1xf32>
    %cst_325 = arith.constant 3.200000e+01 : f32
    %789 = vector.broadcast %cst_325 : f32 to vector<10x1xf32>
    %790 = arith.divf %788, %789 : vector<10x1xf32>
    %cst_326 = arith.constant 9.99999974E-6 : f32
    %791 = vector.broadcast %cst_326 : f32 to vector<10x1xf32>
    %792 = arith.addf %790, %791 : vector<10x1xf32>
    %793 = math.rsqrt %792 : vector<10x1xf32>
    %794 = vector.broadcast %793 : vector<10x1xf32> to vector<10x32xf32>
    %795 = arith.mulf %785, %794 : vector<10x32xf32>
    %796 = vector.broadcast %778 : vector<1x32xf32> to vector<10x32xf32>
    %797 = arith.mulf %795, %796 : vector<10x32xf32>
    %798 = vector.broadcast %779 : vector<1x32xf32> to vector<10x32xf32>
    %799 = arith.addf %797, %798 : vector<10x32xf32>
    %c1960 = arith.constant 1960 : index
    %c0_327 = arith.constant 0 : index
    %800 = vector.load %arg0[%c1960, %c0_327] : memref<2144x128xf32, #tpu.memory_space<vmem>>, vector<32x64xf32>
    %cst_328 = arith.constant dense<0.000000e+00> : vector<10x64xf32>
    %801 = tpu.matmul %799, %800, %cst_328 {dimension_numbers = #tpu.dot_dimension_numbers<[1], [0], [0], [1], [0, 0, 1, 1], [], []>} : vector<10x32xf32>, vector<32x64xf32>, vector<10x64xf32> -> vector<10x64xf32>
    %c1992 = arith.constant 1992 : index
    %c0_329 = arith.constant 0 : index
    %802 = vector.load %arg0[%c1992, %c0_329] : memref<2144x128xf32, #tpu.memory_space<vmem>>, vector<1x64xf32>
    %803 = vector.broadcast %802 : vector<1x64xf32> to vector<10x64xf32>
    %804 = arith.addf %801, %803 : vector<10x64xf32>
    %cst_330 = arith.constant 0.000000e+00 : f32
    %805 = vector.broadcast %cst_330 : f32 to vector<10x64xf32>
    %806 = arith.maximumf %804, %805 : vector<10x64xf32>
    %c2000 = arith.constant 2000 : index
    %c0_331 = arith.constant 0 : index
    %807 = vector.load %arg0[%c2000, %c0_331] : memref<2144x128xf32, #tpu.memory_space<vmem>>, vector<64x32xf32>
    %cst_332 = arith.constant dense<0.000000e+00> : vector<10x32xf32>
    %808 = tpu.matmul %806, %807, %cst_332 {dimension_numbers = #tpu.dot_dimension_numbers<[1], [0], [0], [1], [0, 0, 1, 1], [], []>} : vector<10x64xf32>, vector<64x32xf32>, vector<10x32xf32> -> vector<10x32xf32>
    %c2064 = arith.constant 2064 : index
    %c0_333 = arith.constant 0 : index
    %809 = vector.load %arg0[%c2064, %c0_333] : memref<2144x128xf32, #tpu.memory_space<vmem>>, vector<1x32xf32>
    %810 = vector.broadcast %809 : vector<1x32xf32> to vector<10x32xf32>
    %811 = arith.addf %808, %810 : vector<10x32xf32>
    %812 = arith.addf %799, %811 : vector<10x32xf32>
    %c2072 = arith.constant 2072 : index
    %c0_334 = arith.constant 0 : index
    %813 = vector.load %arg0[%c2072, %c0_334] : memref<2144x128xf32, #tpu.memory_space<vmem>>, vector<1x32xf32>
    %c2080 = arith.constant 2080 : index
    %c0_335 = arith.constant 0 : index
    %814 = vector.load %arg0[%c2080, %c0_335] : memref<2144x128xf32, #tpu.memory_space<vmem>>, vector<1x32xf32>
    %cst_336 = arith.constant dense<0.000000e+00> : vector<10xf32>
    %815 = vector.multi_reduction <add>, %812, %cst_336 [1] : vector<10x32xf32> to vector<10xf32>
    %816 = vector.shape_cast %815 : vector<10xf32> to vector<10x1xf32>
    %cst_337 = arith.constant 3.200000e+01 : f32
    %817 = vector.broadcast %cst_337 : f32 to vector<10x1xf32>
    %818 = arith.divf %816, %817 : vector<10x1xf32>
    %819 = vector.broadcast %818 : vector<10x1xf32> to vector<10x32xf32>
    %820 = arith.subf %812, %819 : vector<10x32xf32>
    %821 = arith.mulf %820, %820 : vector<10x32xf32>
    %cst_338 = arith.constant dense<0.000000e+00> : vector<10xf32>
    %822 = vector.multi_reduction <add>, %821, %cst_338 [1] : vector<10x32xf32> to vector<10xf32>
    %823 = vector.shape_cast %822 : vector<10xf32> to vector<10x1xf32>
    %cst_339 = arith.constant 3.200000e+01 : f32
    %824 = vector.broadcast %cst_339 : f32 to vector<10x1xf32>
    %825 = arith.divf %823, %824 : vector<10x1xf32>
    %cst_340 = arith.constant 9.99999974E-6 : f32
    %826 = vector.broadcast %cst_340 : f32 to vector<10x1xf32>
    %827 = arith.addf %825, %826 : vector<10x1xf32>
    %828 = math.rsqrt %827 : vector<10x1xf32>
    %829 = vector.broadcast %828 : vector<10x1xf32> to vector<10x32xf32>
    %830 = arith.mulf %820, %829 : vector<10x32xf32>
    %831 = vector.broadcast %813 : vector<1x32xf32> to vector<10x32xf32>
    %832 = arith.mulf %830, %831 : vector<10x32xf32>
    %833 = vector.broadcast %814 : vector<1x32xf32> to vector<10x32xf32>
    %834 = arith.addf %832, %833 : vector<10x32xf32>
    %c2088 = arith.constant 2088 : index
    %c0_341 = arith.constant 0 : index
    %835 = vector.load %arg0[%c2088, %c0_341] : memref<2144x128xf32, #tpu.memory_space<vmem>>, vector<1x32xf32>
    %c2096 = arith.constant 2096 : index
    %c0_342 = arith.constant 0 : index
    %836 = vector.load %arg0[%c2096, %c0_342] : memref<2144x128xf32, #tpu.memory_space<vmem>>, vector<1x32xf32>
    %cst_343 = arith.constant dense<0.000000e+00> : vector<10xf32>
    %837 = vector.multi_reduction <add>, %834, %cst_343 [1] : vector<10x32xf32> to vector<10xf32>
    %838 = vector.shape_cast %837 : vector<10xf32> to vector<10x1xf32>
    %cst_344 = arith.constant 3.200000e+01 : f32
    %839 = vector.broadcast %cst_344 : f32 to vector<10x1xf32>
    %840 = arith.divf %838, %839 : vector<10x1xf32>
    %841 = vector.broadcast %840 : vector<10x1xf32> to vector<10x32xf32>
    %842 = arith.subf %834, %841 : vector<10x32xf32>
    %843 = arith.mulf %842, %842 : vector<10x32xf32>
    %cst_345 = arith.constant dense<0.000000e+00> : vector<10xf32>
    %844 = vector.multi_reduction <add>, %843, %cst_345 [1] : vector<10x32xf32> to vector<10xf32>
    %845 = vector.shape_cast %844 : vector<10xf32> to vector<10x1xf32>
    %cst_346 = arith.constant 3.200000e+01 : f32
    %846 = vector.broadcast %cst_346 : f32 to vector<10x1xf32>
    %847 = arith.divf %845, %846 : vector<10x1xf32>
    %cst_347 = arith.constant 9.99999974E-6 : f32
    %848 = vector.broadcast %cst_347 : f32 to vector<10x1xf32>
    %849 = arith.addf %847, %848 : vector<10x1xf32>
    %850 = math.rsqrt %849 : vector<10x1xf32>
    %851 = vector.broadcast %850 : vector<10x1xf32> to vector<10x32xf32>
    %852 = arith.mulf %842, %851 : vector<10x32xf32>
    %853 = vector.broadcast %835 : vector<1x32xf32> to vector<10x32xf32>
    %854 = arith.mulf %852, %853 : vector<10x32xf32>
    %855 = vector.broadcast %836 : vector<1x32xf32> to vector<10x32xf32>
    %856 = arith.addf %854, %855 : vector<10x32xf32>
    %857 = vector.extract_strided_slice %856 {offsets = [0, 0], sizes = [5, 32], strides = [1, 1]} : vector<10x32xf32> to vector<5x32xf32>
    %cst_348 = arith.constant dense<0xFF800000> : vector<32xf32>
    %858 = vector.multi_reduction <maximumf>, %857, %cst_348 [0] : vector<5x32xf32> to vector<32xf32>
    %859 = vector.shape_cast %858 : vector<32xf32> to vector<1x32xf32>
    %860 = vector.extract_strided_slice %856 {offsets = [5, 0], sizes = [5, 32], strides = [1, 1]} : vector<10x32xf32> to vector<5x32xf32>
    %cst_349 = arith.constant dense<0xFF800000> : vector<32xf32>
    %861 = vector.multi_reduction <maximumf>, %860, %cst_349 [0] : vector<5x32xf32> to vector<32xf32>
    %862 = vector.shape_cast %861 : vector<32xf32> to vector<1x32xf32>
    %863 = tpu.concatenate %859, %862 in 0 : vector<1x32xf32>, vector<1x32xf32> -> vector<2x32xf32>
    %c2104 = arith.constant 2104 : index
    %c0_350 = arith.constant 0 : index
    %864 = vector.load %arg0[%c2104, %c0_350] : memref<2144x128xf32, #tpu.memory_space<vmem>>, vector<32x20xf32>
    %cst_351 = arith.constant dense<0.000000e+00> : vector<2x20xf32>
    %865 = tpu.matmul %863, %864, %cst_351 {dimension_numbers = #tpu.dot_dimension_numbers<[1], [0], [0], [1], [0, 0, 1, 1], [], []>} : vector<2x32xf32>, vector<32x20xf32>, vector<2x20xf32> -> vector<2x20xf32>
    %c2136 = arith.constant 2136 : index
    %c0_352 = arith.constant 0 : index
    %866 = vector.load %arg0[%c2136, %c0_352] : memref<2144x128xf32, #tpu.memory_space<vmem>>, vector<1x20xf32>
    %867 = vector.broadcast %866 : vector<1x20xf32> to vector<2x20xf32>
    %868 = arith.addf %865, %867 : vector<2x20xf32>
    %cst_353 = arith.constant dense<0xFF800000> : vector<2xf32>
    %869 = vector.multi_reduction <maximumf>, %868, %cst_353 [1] : vector<2x20xf32> to vector<2xf32>
    %870 = vector.shape_cast %869 : vector<2xf32> to vector<2x1xf32>
    %871 = vector.broadcast %870 : vector<2x1xf32> to vector<2x20xf32>
    %872 = arith.subf %868, %871 : vector<2x20xf32>
    %873 = math.exp %872 : vector<2x20xf32>
    %cst_354 = arith.constant dense<0.000000e+00> : vector<2xf32>
    %874 = vector.multi_reduction <add>, %873, %cst_354 [1] : vector<2x20xf32> to vector<2xf32>
    %875 = vector.shape_cast %874 : vector<2xf32> to vector<2x1xf32>
    %876 = math.log %875 : vector<2x1xf32>
    %877 = vector.broadcast %876 : vector<2x1xf32> to vector<2x20xf32>
    %878 = arith.subf %872, %877 : vector<2x20xf32>
    %c0_355 = arith.constant 0 : index
    %c0_356 = arith.constant 0 : index
    %879 = vector.load %arg6[%c0_355, %c0_356] : memref<2x20xf32, #tpu.memory_space<vmem>>, vector<2x20xf32>
    tpu.vector_store %arg6[%c0_355, %c0_356], %878 {strides = array<i32>} : memref<2x20xf32, #tpu.memory_space<vmem>>, vector<2x20xf32>,
    return
  }
}

</mosaic_0001>

<bundles_post_ra>
// kernel: robustfill_policy_forward.1
= control target key start
LH: loop header
LB: loop body
LE: loop exit
PB: predicated region body
PF: predicated region fallthrough
CT: control target
= control target key end

     0   :  { %vm96_vm0 = vcmask 1046528   ;;  %vm53_vm1 = vcmask 56320   ;;  %s27932_s0 = inlined_call_operand.vmem [shape: f32[2144,128], index: 0, kind: input, shape index: {}]   ;;  %s27933_s1 = inlined_call_operand.vmem [shape: f32[64,128], index: 1, kind: input, shape index: {}]   ;;  %s27934_s2 = inlined_call_operand.vmem [shape: f32[108,16], index: 2, kind: input, shape index: {}]   ;;  %s27935_s3 = inlined_call_operand.vmem [shape: f32[108,7], index: 3, kind: input, shape index: {}]   ;;  %s27936_s4 = inlined_call_operand.vmem [shape: f32[5,32], index: 4, kind: input, shape index: {}]   ;;  %s27937_s5 = inlined_call_operand.vmem [shape: f32[8,1,32], index: 5, kind: input, shape index: {}]   ;;  %s27938_s6 = inlined_call_operand.hbm [shape: f32[2,20], index: 6, kind: output, shape index: {}]  }
   0x1   :  { %v52_v0 = vld [vmem:[%s27932_s0] sm:$0x7f]  ;;  %v39_v2 = vld [vmem:[%s27935_s3 + $0x8] sm:$0xff]  ;;  %v40_v3 = vld [vmem:[%s27935_s3 + $0x10] sm:$0xff] }
   0x2   :  { %v38_v1 = vld [vmem:[%s27935_s3] sm:$0xff]  ;;  %20732 = vmatprep.subr.msk.mxu0 %vm96_vm0, %v52_v0  ;;  %22419 = vmatprep.subr.msk.mxu1 %vm96_vm0, %v52_v0  ;;  %v41_v5 = vld [vmem:[%s27935_s3 + $0x18] sm:$0xff]  ;;  %v51_v6 = vld [vmem:[%s27935_s3 + $0x68] sm:$0xf] }
   0x3   :  { %20734 = vmatprep.mubr.msk.f32.mxu0 %vm53_vm1, %v38_v1  ;;  %20733 = vmatpush3.msk.msra.mxu0 %vm96_vm0, %v52_v0  ;;  %v50_v4 = vld [vmem:[%s27935_s3 + $0x60] sm:$0xff] }
   0x4   :  { %20735 = vmatmul.mubr.msk.f32.vlgmr.msra.gmra.mxu0 %vm53_vm1, %v39_v2  ;;  %22420 = vmatpush3.msk.msra.mxu1 %vm96_vm0, %v52_v0  ;;  %v42_v7 = vld [vmem:[%s27935_s3 + $0x20] sm:$0xff] }
   0x5   :  { %20737 = vmatprep.mubr.msk.f32.mxu0 %vm53_vm1, %v40_v3  ;;  %20752 = vmatprep.mubr.msk.f32.mxu1 %vm53_vm1, %v50_v4 }
   0x6   :  { %20753 = vmatmul.mubr.msk.f32.vlgmr.msra.gmra.mxu1 %vm53_vm1, %v51_v6 }
   0x7   :  { %11 = vsyncpa [#allocation3], 0  ;;  %v43_v8 = vld [vmem:[%s27935_s3 + $0x28] sm:$0xff]  ;;  %v44_v9 = vld [vmem:[%s27935_s3 + $0x30] sm:$0xff]  ;;  %vm347_vm2 = vcmask 130048   ;;  %vm282_vm3 = vcmask 1042432  }
   0x8   :  { %20738 = vmatmul.mubr.msk.f32.gmra.mxu0 %vm53_vm1, %v41_v5  ;;  %v45_v10 = vld [vmem:[%s27935_s3 + $0x38] sm:$0xff]  ;;  %v46_v11 = vld [vmem:[%s27935_s3 + $0x40] sm:$0xff]  ;;  %v47_v12 = vld [vmem:[%s27935_s3 + $0x48] sm:$0xff]  ;;  %vm312_vm4 = vcmask 1044480   ;;  %vm341_vm5 = vcmask 1040384   ;;  %vm22933_vm6 = vmmov 0  }
   0x9   :  { %20740 = vmatprep.mubr.msk.f32.mxu0 %vm53_vm1, %v42_v7  ;;  %v48_v13 = vld [vmem:[%s27935_s3 + $0x50] sm:$0xff]  ;;  %v49_v14 = vld [vmem:[%s27935_s3 + $0x58] sm:$0xff]  ;;  %v346_v15 = vld [vmem:[%s27932_s0 + $0x28] sm:$0xff]  ;;  %vm4149_vm7 = vcmask 1041408   ;;  %vm6773_vm8 = vcmask 64512   ;;  %vm6868_vm9 = vcmask 261120  }
   0xa   :  { %20755 = vmatprep.subr.mxu1 %v346_v15  ;;  %v345_v16 = vld [vmem:[%s27932_s0 + $0x20] sm:$0xff]  ;;  %v344_v17 = vld [vmem:[%s27932_s0 + $0x18] sm:$0xff]  ;;  %v343_v18 = vld [vmem:[%s27932_s0 + $0x10] sm:$0xff]  ;;  %s22934_s21 = smov 96   ;;  %vm7721_vm10 = vcmask 74752   ;;  %vm7717_vm11 = vcmask 80896  }
   0xb   :  { %20756 = vmatpush3.msra.mxu1 %v346_v15  ;;  %20780 = vmatprep.subr.mxu0 %v344_v17  ;;  %v676_v19 = vld [vmem:[%s27932_s0 + $0x38] sm:$0xff]  ;;  %v25_v20 = vld [vmem:[%s27934_s2 + $0x8] sm:$0xff]  ;;  %v24_v23 = vld [vmem:[%s27934_s2] sm:$0xff]  ;;  %s22935_s16 = smov 64   ;;  %vm8581_vm12 = vcmask 254976   ;;  %vm8830_vm13 = vcmask 523264  }
   0xc   :  { %20741 = vmatmul.mubr.msk.f32.gmra.mxu0 %vm53_vm1, %v43_v8  ;;  %20757 = vmatprep.subr.mxu1 %v345_v16  ;;  %v23052_v22 = vld [vmem:[%s27932_s0 + $0x8] ss:$0 sm:$0xff]  ;;  %v27_v26 = vld [vmem:[%s27934_s2 + $0x18] sm:$0xff]  ;;  %v26_v30 = vld [vmem:[%s27934_s2 + $0x10] sm:$0xff]  ;;  %vm18903_vm14 = vcmask 258048   ;;  %vm18911_vm15 = vcmask 261125  }
   0xd   :  { %20743 = vmatprep.mubr.msk.f32.mxu0 %vm53_vm1, %v44_v9  ;;  %20758 = vmatpush3.msra.mxu1 %v345_v16  ;;  %v29_v34 = vld [vmem:[%s27934_s2 + $0x28] sm:$0xff]  ;;  %v675_v39 = vld [vmem:[%s27932_s0 + $0x30] sm:$0xff]  ;;  %v28_v41 = vld [vmem:[%s27934_s2 + $0x20] sm:$0xff]  ;;  %vm19004_vm0 = vcmask 156672   ;;  %s22936_s28 = smov [#allocation2]  }
   0xe   :  { %20781 = vmatpush3.msra.mxu0 %v344_v17  ;;  %20805 = vmatprep.subr.mxu1 %v676_v19  ;;  %v31_v47 = vld [vmem:[%s27934_s2 + $0x38] sm:$0xff]  ;;  %v30_v54 = vld [vmem:[%s27934_s2 + $0x30] sm:$0xff]  ;;  %v33_v60 = vld [vmem:[%s27934_s2 + $0x48] sm:$0xff] }
   0xf   :  { %20782 = vmatprep.subr.mxu0 %v343_v18  ;;  %v36_v1 = vld [vmem:[%s27934_s2 + $0x60] sm:$0xff] }
  0x10   :  { %20744 = vmatmul.mubr.msk.f32.gmra.mxu0 %vm53_vm1, %v45_v10  ;;  %v32_v4 = vld [vmem:[%s27934_s2 + $0x40] sm:$0xff]  ;;  %v35_v10 = vld [vmem:[%s27934_s2 + $0x58] sm:$0xff] }
  0x11   :  { %20746 = vmatprep.mubr.msk.f32.mxu0 %vm53_vm1, %v46_v11  ;;  %20783 = vmatpush3.msra.mxu0 %v343_v18  ;;  %v34_v18 = vld [vmem:[%s27934_s2 + $0x50] sm:$0xff] }
  0x14   :  { %20747 = vmatmul.mubr.msk.f32.gmra.mxu0 %vm53_vm1, %v47_v12 }
  0x15   :  { %20749 = vmatprep.mubr.msk.f32.mxu0 %vm53_vm1, %v48_v13 }
  0x18   :  { %20750 = vmatmul.mubr.msk.f32.gmra.mxu0 %vm53_vm1, %v49_v14  ;;  %v37_v14 = vld [vmem:[%s27934_s2 + $0x68] sm:$0xf] }
  0xc4   :  { %v20736_v21 = vpop.f32.mrf.mxu0 }
  0xc5   :  { %v236_v24 = vadd.f32 %v20736_v21, %v25_v20 }
  0xc6   :  { %v166_v25 = vpop.f32.mrf.mxu0  ;;  %v20754_v52 = vpop.f32.mrf.mxu1 }
  0xc7   :  { %v23061_v27 = vadd.f32 %v23052_v22, %v236_v24  ;;  %v235_v28 = vadd.f32 %v166_v25, %v24_v23  ;;  %v248_v24 = vadd.f32 %v20754_v52, %v37_v14 }
  0xc8   :  { %v20739_v29 = vpop.f32.mrf.mxu0  ;;  %v226_v2 = vpop.f32.mrf.mxu1 }
  0xc9   :  { %v23067_v31 = vadd.f32 %v23052_v22, %v235_v28  ;;  %v238_v32 = vadd.f32 %v20739_v29, %v27_v26  ;;  %v284_v35 = vrot.slane %v23061_v27, 5  ;;  %v247_v11 = vadd.f32 %v226_v2, %v36_v1 }
  0xca   :  { %v176_v33 = vpop.f32.mrf.mxu0 }
  0xcb   :  { %v23074_v36 = vadd.f32 %v23052_v22, %v238_v32  ;;  %v237_v37 = vadd.f32 %v176_v33, %v26_v30  ;;  %20759 = vmatprep.mubr.msk.f32.mxu1 %vm347_vm2, %v23067_v31  ;;  %v283_v38 = vrot.slane %v23067_v31, 5  ;;  %v23165_v25 = vadd.f32 %v23052_v22, %v247_v11 }
  0xcc   :  { %v20742_v40 = vpop.f32.mrf.mxu0  ;;  %20760 = vmatmul.mubr.msk.f32.vlgmr.msra.gmra.mxu1 %vm347_vm2, %v23061_v27 }
  0xcd   :  { %v23088_v42 = vadd.f32 %v23052_v22, %v237_v37  ;;  %v240_v43 = vadd.f32 %v20742_v40, %v29_v34  ;;  %v311_v44 = vsel %vm282_vm3, 0.0, %v283_v38  ;;  %v285_v45 = vsel %vm282_vm3, %v283_v38, %v284_v35  ;;  %20806 = vmatpush3.msra.mxu1 %v676_v19 }
  0xce   :  { %v186_v46 = vpop.f32.mrf.mxu0  ;;  %20784 = vmatprep.mubr.msk.f32.mxu0 %vm347_vm2, %v311_v44  ;;  %20807 = vmatprep.subr.mxu1 %v675_v39  ;;  %v288_v51 = vrot.slane %v23074_v36, 5  ;;  %v23184_v37 = vadd.f32 %v23052_v22, %v248_v24  ;;  %v306_v40 = vrot.slane %v23165_v25, 5  ;;  %v314_v44 = vrot.slane %v23061_v27, 3 }
  0xcf   :  { %v23097_v48 = vadd.f32 %v23052_v22, %v240_v43  ;;  %v239_v49 = vadd.f32 %v186_v46, %v28_v41  ;;  %20762 = vmatprep.mubr.msk.f32.mxu1 %vm347_vm2, %v23088_v42  ;;  %20785 = vmatmul.mubr.msk.f32.vlgmr.msra.gmra.mxu0 %vm347_vm2, %v285_v45  ;;  %v286_v50 = vrot.slane %v23088_v42, 5  ;;  %v313_v41 = vrot.slane %v23067_v31, 3 }
  0xd0   :  { %v20745_v53 = vpop.f32.mrf.mxu0  ;;  %20763 = vmatmul.mubr.msk.f32.gmra.mxu1 %vm347_vm2, %v23074_v36  ;;  %v308_v45 = vrot.slane %v23184_v37, 5  ;;  %v316_v46 = vrot.slane %v23088_v42, 3 }
  0xd1   :  { %v23110_v55 = vadd.f32 %v23052_v22, %v239_v49  ;;  %v242_v56 = vadd.f32 %v20745_v53, %v31_v47  ;;  %v287_v57 = vsel %vm282_vm3, %v284_v35, %v286_v50  ;;  %v289_v58 = vsel %vm282_vm3, %v286_v50, %v288_v51  ;;  %20808 = vmatpush3.msra.mxu1 %v675_v39 }
  0xd2   :  { %v196_v59 = vpop.f32.mrf.mxu0  ;;  %20787 = vmatprep.mubr.msk.f32.mxu0 %vm347_vm2, %v287_v57  ;;  %v292_v0 = vrot.slane %v23097_v48, 5  ;;  %v315_v49 = vsel %vm312_vm4, %v313_v41, %v314_v44  ;;  %v309_v50 = vsel %vm282_vm3, %v306_v40, %v308_v45  ;;  %v317_v52 = vsel %vm312_vm4, %v314_v44, %v316_v46 }
  0xd3   :  { %v23119_v61 = vadd.f32 %v23052_v22, %v242_v56  ;;  %v241_v62 = vadd.f32 %v196_v59, %v30_v54  ;;  %20765 = vmatprep.mubr.msk.f32.mxu1 %vm347_vm2, %v23110_v55  ;;  %20788 = vmatmul.mubr.msk.f32.gmra.mxu0 %vm347_vm2, %v289_v58  ;;  %v290_v63 = vrot.slane %v23110_v55, 5  ;;  %v320_v53 = vrot.slane %v23110_v55, 3 }
  0xd4   :  { %v20748_v3 = vpop.f32.mrf.mxu0  ;;  %20766 = vmatmul.mubr.msk.f32.gmra.mxu1 %vm347_vm2, %v23097_v48  ;;  %v322_v56 = vrot.slane %v23097_v48, 3 }
  0xd5   :  { %v23135_v5 = vadd.f32 %v23052_v22, %v241_v62  ;;  %v244_v6 = vadd.f32 %v20748_v3, %v33_v60  ;;  %v291_v7 = vsel %vm282_vm3, %v288_v51, %v290_v63  ;;  %v293_v8 = vsel %vm282_vm3, %v290_v63, %v292_v0 }
  0xd6   :  { %v206_v9 = vpop.f32.mrf.mxu0  ;;  %20790 = vmatprep.mubr.msk.f32.mxu0 %vm347_vm2, %v291_v7  ;;  %v296_v16 = vrot.slane %v23119_v61, 5  ;;  %v318_v51 = vrot.slane %v23074_v36, 3  ;;  %v323_v59 = vsel %vm312_vm4, %v320_v53, %v322_v56  ;;  %v326_v60 = vrot.slane %v23119_v61, 3 }
  0xd7   :  { %v23144_v12 = vadd.f32 %v23052_v22, %v244_v6  ;;  %v243_v13 = vadd.f32 %v206_v9, %v32_v4  ;;  %20768 = vmatprep.mubr.msk.f32.mxu1 %vm347_vm2, %v23135_v5  ;;  %20791 = vmatmul.mubr.msk.f32.gmra.mxu0 %vm347_vm2, %v293_v8  ;;  %v294_v15 = vrot.slane %v23135_v5, 5  ;;  %v324_v58 = vrot.slane %v23135_v5, 3 }
  0xd8   :  { %v20751_v17 = vpop.f32.mrf.mxu0  ;;  %20769 = vmatmul.mubr.msk.f32.gmra.mxu1 %vm347_vm2, %v23119_v61  ;;  %v319_v54 = vsel %vm312_vm4, %v316_v46, %v318_v51  ;;  %v321_v57 = vsel %vm312_vm4, %v318_v51, %v320_v53  ;;  %v336_v8 = vrot.slane %v23165_v25, 3 }
  0xd9   :  { %v23160_v19 = vadd.f32 %v23052_v22, %v243_v13  ;;  %v246_v20 = vadd.f32 %v20751_v17, %v35_v10  ;;  %v295_v21 = vsel %vm282_vm3, %v292_v0, %v294_v15  ;;  %v297_v23 = vsel %vm282_vm3, %v294_v15, %v296_v16  ;;  %v963_v15 = vld [vmem:[%s27932_s0 + $0x58] sm:$0xff]  ;;  %v961_v17 = vld [vmem:[%s27932_s0 + $0x48] sm:$0xff] }
  0xda   :  { %v216_v26 = vpop.f32.mrf.mxu0  ;;  %20793 = vmatprep.mubr.msk.f32.mxu0 %vm347_vm2, %v295_v21  ;;  %v300_v32 = vrot.slane %v23144_v12, 5  ;;  %v325_v62 = vsel %vm312_vm4, %v322_v56, %v324_v58  ;;  %v327_v0 = vsel %vm312_vm4, %v324_v58, %v326_v60  ;;  %v330_v1 = vrot.slane %v23144_v12, 3  ;;  %20830 = vmatprep.subr.mxu0 %v963_v15 }
  0xdb   :  { %v23169_v28 = vadd.f32 %v23052_v22, %v246_v20  ;;  %v245_v29 = vadd.f32 %v216_v26, %v34_v18  ;;  %20771 = vmatprep.mubr.msk.f32.mxu1 %vm347_vm2, %v23160_v19  ;;  %20794 = vmatmul.mubr.msk.f32.gmra.mxu0 %vm347_vm2, %v297_v23  ;;  %v298_v30 = vrot.slane %v23160_v19, 5  ;;  %v328_v63 = vrot.slane %v23160_v19, 3  ;;  %v960_v18 = vld [vmem:[%s27932_s0 + $0x40] sm:$0xff]  ;;  %v1292_v20 = vld [vmem:[%s27932_s0 + $0x68] sm:$0xff] }
  0xdc   :  { %20772 = vmatmul.mubr.msk.f32.gmra.mxu1 %vm347_vm2, %v23144_v12  ;;  %v338_v10 = vrot.slane %v23184_v37, 3  ;;  %20831 = vmatpush3.msra.mxu0 %v963_v15 }
  0xdd   :  { %v23179_v33 = vadd.f32 %v23052_v22, %v245_v29  ;;  %v299_v34 = vsel %vm282_vm3, %v296_v16, %v298_v30  ;;  %v301_v35 = vsel %vm282_vm3, %v298_v30, %v300_v32  ;;  %v304_v39 = vrot.slane %v23169_v28, 5  ;;  %v962_v16 = vld [vmem:[%s27932_s0 + $0x50] sm:$0xff]  ;;  %20855 = vmatprep.subr.mxu1 %v961_v17 }
  0xde   :  { %20796 = vmatprep.mubr.msk.f32.mxu0 %vm347_vm2, %v299_v34  ;;  %v329_v2 = vsel %vm312_vm4, %v326_v60, %v328_v63  ;;  %v331_v4 = vsel %vm312_vm4, %v328_v63, %v330_v1  ;;  %v334_v6 = vrot.slane %v23169_v28, 3  ;;  %v339_v13 = vsel %vm312_vm4, %v336_v8, %v338_v10  ;;  %20832 = vmatprep.subr.mxu0 %v962_v16 }
  0xdf   :  { %20774 = vmatprep.mubr.msk.f32.mxu1 %vm347_vm2, %v23179_v33  ;;  %20797 = vmatmul.mubr.msk.f32.gmra.mxu0 %vm347_vm2, %v301_v35  ;;  %v302_v38 = vrot.slane %v23179_v33, 5  ;;  %v307_v47 = vsel %vm282_vm3, %v304_v39, %v306_v40  ;;  %v332_v3 = vrot.slane %v23179_v33, 3  ;;  %v342_v14 = vsel %vm341_vm5, %v338_v10, 0.0 }
  0xe0   :  { %20775 = vmatmul.mubr.msk.f32.gmra.mxu1 %vm347_vm2, %v23169_v28  ;;  %v337_v11 = vsel %vm312_vm4, %v334_v6, %v336_v8  ;;  %20833 = vmatpush3.msra.mxu0 %v962_v16 }
  0xe1   :  { %20777 = vmatprep.mubr.msk.f32.mxu1 %vm347_vm2, %v23165_v25  ;;  %v303_v22 = vsel %vm282_vm3, %v300_v32, %v302_v38  ;;  %v305_v43 = vsel %vm282_vm3, %v302_v38, %v304_v39  ;;  %v333_v7 = vsel %vm312_vm4, %v330_v1, %v332_v3  ;;  %v335_v9 = vsel %vm312_vm4, %v332_v3, %v334_v6 }
  0xe2   :  { %20799 = vmatprep.mubr.msk.f32.mxu0 %vm347_vm2, %v303_v22  ;;  %20880 = vmatprep.subr.mxu0 %v1292_v20 }
  0xe3   :  { %20800 = vmatmul.mubr.msk.f32.gmra.mxu0 %vm347_vm2, %v305_v43 }
  0xe4   :  { %20778 = vmatmul.mubr.msk.f32.gmra.mxu1 %vm347_vm2, %v23184_v37  ;;  %20802 = vmatprep.mubr.msk.f32.mxu0 %vm347_vm2, %v307_v47 }
  0xe5   :  { %20809 = vmatprep.mubr.msk.f32.mxu1 %vm347_vm2, %v315_v49 }
  0xe7   :  { %20803 = vmatmul.mubr.msk.f32.gmra.mxu0 %vm347_vm2, %v309_v50 }
  0xe8   :  { %20810 = vmatmul.mubr.msk.f32.vlgmr.msra.gmra.mxu1 %vm347_vm2, %v317_v52 }
  0xe9   :  { %20812 = vmatprep.mubr.msk.f32.mxu1 %vm347_vm2, %v319_v54  ;;  %20856 = vmatpush3.msra.mxu1 %v961_v17  ;;  %v23280_v54 = vld [vmem:[%s27932_s0 + $0xa0] ss:$0 sm:$0xff] }
  0xea   :  { %20857 = vmatprep.subr.mxu1 %v960_v18  ;;  %v1291_v17 = vld [vmem:[%s27932_s0 + $0x60] sm:$0xff] }
  0xeb   :  { %20858 = vmatpush3.msra.mxu1 %v960_v18 }
  0xec   :  { %20813 = vmatmul.mubr.msk.f32.gmra.mxu1 %vm347_vm2, %v321_v57 }
  0xed   :  { %20815 = vmatprep.mubr.msk.f32.mxu1 %vm347_vm2, %v323_v59 }
  0xf0   :  { %20816 = vmatmul.mubr.msk.f32.gmra.mxu1 %vm347_vm2, %v325_v62 }
  0xf1   :  { %20818 = vmatprep.mubr.msk.f32.mxu1 %vm347_vm2, %v327_v0 }
  0xf4   :  { %20819 = vmatmul.mubr.msk.f32.gmra.mxu1 %vm347_vm2, %v329_v2 }
  0xf5   :  { %20821 = vmatprep.mubr.msk.f32.mxu1 %vm347_vm2, %v331_v4 }
  0xf8   :  { %20822 = vmatmul.mubr.msk.f32.gmra.mxu1 %vm347_vm2, %v333_v7 }
  0xf9   :  { %20824 = vmatprep.mubr.msk.f32.mxu1 %vm347_vm2, %v335_v9 }
  0xfc   :  { %20825 = vmatmul.mubr.msk.f32.gmra.mxu1 %vm347_vm2, %v337_v11 }
  0xfd   :  { %20827 = vmatprep.mubr.msk.f32.mxu1 %vm347_vm2, %v339_v13 }
 0x100   :  { %20828 = vmatmul.mubr.msk.f32.gmra.mxu1 %vm347_vm2, %v342_v14 }
 0x18c   :  { %v20761_v21 = vpop.f32.mrf.mxu1 }
 0x18e   :  { %v442_v23 = vpop.f32.mrf.mxu1 }
 0x18f   :  { %v20786_v24 = vpop.f32.mrf.mxu0 }
 0x190   :  { %v20764_v26 = vpop.f32.mrf.mxu1  ;;  %v612_v52 = vadd.f32 %v20786_v24, %v20761_v21 }
 0x191   :  { %v606_v29 = vpop.f32.mrf.mxu0 }
 0x192   :  { %v452_v30 = vpop.f32.mrf.mxu1  ;;  %v607_v56 = vadd.f32 %v606_v29, %v442_v23 }
 0x193   :  { %v20789_v32 = vpop.f32.mrf.mxu0 }
 0x194   :  { %v20767_v34 = vpop.f32.mrf.mxu1  ;;  %v622_v60 = vadd.f32 %v20789_v32, %v20764_v26 }
 0x195   :  { %v616_v35 = vpop.f32.mrf.mxu0 }
 0x196   :  { %v462_v38 = vpop.f32.mrf.mxu1  ;;  %v617_v3 = vadd.f32 %v616_v35, %v452_v30 }
 0x197   :  { %v20792_v40 = vpop.f32.mrf.mxu0 }
 0x198   :  { %v20770_v39 = vpop.f32.mrf.mxu1  ;;  %v632_v8 = vadd.f32 %v20792_v40, %v20767_v34 }
 0x199   :  { %v626_v43 = vpop.f32.mrf.mxu0 }
 0x19a   :  { %v472_v41 = vpop.f32.mrf.mxu1  ;;  %v627_v14 = vadd.f32 %v626_v43, %v462_v38 }
 0x19b   :  { %v20795_v46 = vpop.f32.mrf.mxu0 }
 0x19c   :  { %v23265_v22 = vpop.f32.mrf.mxu1  ;;  %v642_v29 = vadd.f32 %v20795_v46, %v20770_v39 }
 0x19d   :  { %v636_v50 = vpop.f32.mrf.mxu0 }
 0x19e   :  { %v23267_v44 = vpop.f32.mrf.mxu1 }
 0x19f   :  { %v20798_v58 = vpop.f32.mrf.mxu0 }
 0x1a0   :  { %v23269_v45 = vpop.f32.mrf.mxu1 }
 0x1a1   :  { %v646_v4 = vpop.f32.mrf.mxu0 }
 0x1a2   :  { %v23271_v47 = vpop.f32.mrf.mxu1 }
 0x1a3   :  { %v20801_v18 = vpop.f32.mrf.mxu0 }
 0x1a4   :  { %v23273_v49 = vpop.f32.mrf.mxu1 }
 0x1a5   :  { %v656_v39 = vpop.f32.mrf.mxu0 }
 0x1a6   :  { %v23275_v51 = vpop.f32.mrf.mxu1 }
 0x1a8   :  { %v20811_v53 = vpop.f32.mrf.mxu1 }
 0x1a9   :  { %v842_v57 = vadd.f32 %v20811_v53, %v612_v52  ;;  %v637_v53 = vadd.f32 %v636_v50, %v472_v41 }
 0x1aa   :  { %v772_v59 = vpop.f32.mrf.mxu1 }
 0x1ab   :  { %v861_v62 = vadd.f32 %v23280_v54, %v842_v57  ;;  %v841_v63 = vadd.f32 %v772_v59, %v607_v56  ;;  %v652_v59 = vadd.f32 %v20798_v58, %v23265_v22  ;;  %v20804_v58 = vpop.f32.mrf.mxu0 }
 0x1ac   :  { %v20814_v0 = vpop.f32.mrf.mxu1 }
 0x1ad   :  { %v860_v1 = vadd.f32 %v23280_v54, %v841_v63  ;;  %v844_v2 = vadd.f32 %v20814_v0, %v622_v60  ;;  %v23284_v6 = vmax.f32 %v861_v62, 0.0 }
 0x1ae   :  { %v782_v7 = vpop.f32.mrf.mxu1 }
 0x1af   :  { %v23286_v9 = vmax.f32 %v860_v1, 0.0  ;;  %v863_v10 = vadd.f32 %v23280_v54, %v844_v2  ;;  %v843_v11 = vadd.f32 %v782_v7, %v617_v3  ;;  %v903_v21 = vrot.slane %v23284_v6, 5 }
 0x1b0   :  { %v20817_v13 = vpop.f32.mrf.mxu1  ;;  %v647_v1 = vadd.f32 %v646_v4, %v23267_v44  ;;  %v662_v44 = vadd.f32 %v20801_v18, %v23269_v45  ;;  %v657_v45 = vadd.f32 %v656_v39, %v23271_v47  ;;  %v666_v18 = vpop.f32.mrf.mxu0 }
 0x1b1   :  { %v846_v15 = vadd.f32 %v20817_v13, %v632_v8  ;;  %20834 = vmatprep.mubr.msk.f32.mxu0 %vm347_vm2, %v23286_v9  ;;  %v902_v16 = vrot.slane %v23286_v9, 5  ;;  %v23296_v23 = vmax.f32 %v863_v10, 0.0  ;;  %v862_v24 = vadd.f32 %v23280_v54, %v843_v11 }
 0x1b2   :  { %v792_v26 = vpop.f32.mrf.mxu1  ;;  %20835 = vmatmul.mubr.msk.f32.vlgmr.msra.gmra.mxu0 %vm347_vm2, %v23284_v6 }
 0x1b3   :  { %v865_v30 = vadd.f32 %v23280_v54, %v846_v15  ;;  %v845_v32 = vadd.f32 %v792_v26, %v627_v14  ;;  %20881 = vmatpush3.msra.mxu0 %v1292_v20  ;;  %v23302_v34 = vmax.f32 %v862_v24, 0.0  ;;  %v930_v38 = vsel %vm282_vm3, 0.0, %v902_v16 }
 0x1b4   :  { %v20820_v35 = vpop.f32.mrf.mxu1  ;;  %v904_v40 = vsel %vm282_vm3, %v902_v16, %v903_v21  ;;  %20882 = vmatprep.subr.mxu0 %v1291_v17  ;;  %20859 = vmatprep.mubr.msk.f32.mxu1 %vm347_vm2, %v930_v38  ;;  %v907_v46 = vrot.slane %v23296_v23, 5 }
 0x1b5   :  { %v864_v43 = vadd.f32 %v23280_v54, %v845_v32  ;;  %v848_v52 = vadd.f32 %v20820_v35, %v642_v29  ;;  %20883 = vmatpush3.msra.mxu0 %v1291_v17  ;;  %v23309_v56 = vmax.f32 %v865_v30, 0.0  ;;  %20837 = vmatprep.mubr.msk.f32.mxu0 %vm347_vm2, %v23302_v34  ;;  %v905_v57 = vrot.slane %v23302_v34, 5 }
 0x1b6   :  { %20860 = vmatmul.mubr.msk.f32.vlgmr.msra.gmra.mxu1 %vm347_vm2, %v904_v40  ;;  %v802_v20 = vpop.f32.mrf.mxu1  ;;  %20838 = vmatmul.mubr.msk.f32.gmra.mxu0 %vm347_vm2, %v23296_v23  ;;  %v672_v32 = vadd.f32 %v20804_v58, %v23273_v49 }
 0x1b7   :  { %v23316_v60 = vmax.f32 %v864_v43, 0.0  ;;  %v867_v62 = vadd.f32 %v23280_v54, %v848_v52  ;;  %v847_v41 = vadd.f32 %v802_v20, %v637_v53  ;;  %v906_v63 = vsel %vm282_vm3, %v903_v21, %v905_v57 }
 0x1b8   :  { %v20823_v50 = vpop.f32.mrf.mxu1  ;;  %v908_v0 = vsel %vm282_vm3, %v905_v57, %v907_v46  ;;  %20862 = vmatprep.mubr.msk.f32.mxu1 %vm347_vm2, %v906_v63  ;;  %v911_v3 = vrot.slane %v23309_v56, 5  ;;  %v667_v53 = vadd.f32 %v666_v18, %v23275_v51 }
 0x1b9   :  { %v850_v2 = vadd.f32 %v20823_v50, %v652_v59  ;;  %20840 = vmatprep.mubr.msk.f32.mxu0 %vm347_vm2, %v23316_v60  ;;  %v909_v22 = vrot.slane %v23316_v60, 5  ;;  %v23329_v7 = vmax.f32 %v867_v62, 0.0  ;;  %v866_v8 = vadd.f32 %v23280_v54, %v847_v41 }
 0x1ba   :  { %20863 = vmatmul.mubr.msk.f32.gmra.mxu1 %vm347_vm2, %v908_v0  ;;  %v812_v10 = vpop.f32.mrf.mxu1  ;;  %20841 = vmatmul.mubr.msk.f32.gmra.mxu0 %vm347_vm2, %v23309_v56 }
 0x1bb   :  { %v869_v4 = vadd.f32 %v23280_v54, %v850_v2  ;;  %v849_v11 = vadd.f32 %v812_v10, %v647_v1  ;;  %v23337_v13 = vmax.f32 %v866_v8, 0.0  ;;  %v910_v15 = vsel %vm282_vm3, %v907_v46, %v909_v22 }
 0x1bc   :  { %v20826_v14 = vpop.f32.mrf.mxu1  ;;  %v912_v16 = vsel %vm282_vm3, %v909_v22, %v911_v3  ;;  %20865 = vmatprep.mubr.msk.f32.mxu1 %vm347_vm2, %v910_v15  ;;  %v915_v24 = vrot.slane %v23329_v7, 5 }
 0x1bd   :  { %v868_v17 = vadd.f32 %v23280_v54, %v849_v11  ;;  %v852_v21 = vadd.f32 %v20826_v14, %v662_v44  ;;  %v23345_v26 = vmax.f32 %v869_v4, 0.0  ;;  %20843 = vmatprep.mubr.msk.f32.mxu0 %vm347_vm2, %v23337_v13  ;;  %v913_v30 = vrot.slane %v23337_v13, 5 }
 0x1be   :  { %20866 = vmatmul.mubr.msk.f32.gmra.mxu1 %vm347_vm2, %v912_v16  ;;  %v822_v29 = vpop.f32.mrf.mxu1  ;;  %20844 = vmatmul.mubr.msk.f32.gmra.mxu0 %vm347_vm2, %v23329_v7  ;;  %v934_v11 = vrot.slane %v23302_v34, 3  ;;  %v938_v16 = vrot.slane %v23316_v60, 3  ;;  %v942_v18 = vrot.slane %v23337_v13, 3  ;;  %v944_v60 = vrot.slane %v23329_v7, 3 }
 0x1bf   :  { %v23352_v35 = vmax.f32 %v868_v17, 0.0  ;;  %v871_v38 = vadd.f32 %v23280_v54, %v852_v21  ;;  %v851_v47 = vadd.f32 %v822_v29, %v657_v45  ;;  %v914_v43 = vsel %vm282_vm3, %v911_v3, %v913_v30 }
 0x1c0   :  { %v20829_v40 = vpop.f32.mrf.mxu1  ;;  %v916_v52 = vsel %vm282_vm3, %v913_v30, %v915_v24  ;;  %20868 = vmatprep.mubr.msk.f32.mxu1 %vm347_vm2, %v914_v43  ;;  %v919_v46 = vrot.slane %v23345_v26, 5  ;;  %v931_v3 = vrot.slane %v23286_v9, 3  ;;  %v940_v21 = vrot.slane %v23309_v56, 3 }
 0x1c1   :  { %v854_v39 = vadd.f32 %v20829_v40, %v672_v32  ;;  %20846 = vmatprep.mubr.msk.f32.mxu0 %vm347_vm2, %v23352_v35  ;;  %v917_v49 = vrot.slane %v23352_v35, 5  ;;  %v23365_v20 = vmax.f32 %v871_v38, 0.0  ;;  %v870_v57 = vadd.f32 %v23280_v54, %v851_v47 }
 0x1c2   :  { %20869 = vmatmul.mubr.msk.f32.gmra.mxu1 %vm347_vm2, %v916_v52  ;;  %v832_v59 = vpop.f32.mrf.mxu1  ;;  %20847 = vmatmul.mubr.msk.f32.gmra.mxu0 %vm347_vm2, %v23345_v26  ;;  %v946_v29 = vrot.slane %v23352_v35, 3  ;;  %v945_v56 = vsel %vm312_vm4, %v942_v18, %v944_v60  ;;  %v948_v13 = vrot.slane %v23345_v26, 3 }
 0x1c3   :  { %v873_v62 = vadd.f32 %v23280_v54, %v854_v39  ;;  %v853_v51 = vadd.f32 %v832_v59, %v667_v53  ;;  %v884_v41 = vmax.f32 %v870_v57, 0.0  ;;  %v918_v50 = vsel %vm282_vm3, %v915_v24, %v917_v49  ;;  %v1579_v39 = vld [vmem:[%s27932_s0 + $0x88] sm:$0xff]  ;;  %v1908_v57 = vld [vmem:[%s27932_s0 + $0x98] sm:$0xff] }
 0x1c4   :  { %v920_v63 = vsel %vm282_vm3, %v917_v49, %v919_v46  ;;  %20871 = vmatprep.mubr.msk.f32.mxu1 %vm347_vm2, %v918_v50  ;;  %v923_v2 = vrot.slane %v23365_v20, 5  ;;  %v943_v24 = vsel %vm312_vm4, %v940_v21, %v942_v18  ;;  %v947_v30 = vsel %vm312_vm4, %v944_v60, %v946_v29  ;;  %20905 = vmatprep.subr.mxu1 %v1579_v39  ;;  %v1578_v49 = vld [vmem:[%s27932_s0 + $0x80] sm:$0xff] }
 0x1c5   :  { %v887_v0 = vmax.f32 %v873_v62, 0.0  ;;  %v872_v1 = vadd.f32 %v23280_v54, %v853_v51  ;;  %20849 = vmatprep.mubr.msk.f32.mxu0 %vm347_vm2, %v884_v41  ;;  %v921_v22 = vrot.slane %v884_v41, 5  ;;  %v932_v54 = vrot.slane %v23284_v6, 3  ;;  %20906 = vmatpush3.msra.mxu1 %v1579_v39 }
 0x1c6   :  { %20872 = vmatmul.mubr.msk.f32.gmra.mxu1 %vm347_vm2, %v920_v63  ;;  %20850 = vmatmul.mubr.msk.f32.gmra.mxu0 %vm347_vm2, %v23365_v20  ;;  %v936_v6 = vrot.slane %v23296_v23, 3  ;;  %v941_v23 = vsel %vm312_vm4, %v938_v16, %v940_v21  ;;  %v950_v32 = vrot.slane %v884_v41, 3  ;;  %v949_v38 = vsel %vm312_vm4, %v946_v29, %v948_v13 }
 0x1c7   :  { %v886_v58 = vmax.f32 %v872_v1, 0.0  ;;  %v922_v8 = vsel %vm282_vm3, %v919_v46, %v921_v22  ;;  %v924_v10 = vsel %vm282_vm3, %v921_v22, %v923_v2  ;;  %v927_v44 = vrot.slane %v887_v0, 5  ;;  %20907 = vmatprep.subr.mxu1 %v1578_v49  ;;  %v1577_v46 = vld [vmem:[%s27932_s0 + $0x78] sm:$0xff] }
 0x1c8   :  { %20874 = vmatprep.mubr.msk.f32.mxu1 %vm347_vm2, %v922_v8  ;;  %v933_v9 = vsel %vm312_vm4, %v931_v3, %v932_v54  ;;  %v935_v34 = vsel %vm312_vm4, %v932_v54, %v934_v11  ;;  %v937_v17 = vsel %vm312_vm4, %v934_v11, %v936_v6  ;;  %v939_v45 = vsel %vm312_vm4, %v936_v6, %v938_v16 }
 0x1c9   :  { %20852 = vmatprep.mubr.msk.f32.mxu0 %vm347_vm2, %v886_v58  ;;  %v925_v4 = vrot.slane %v886_v58, 5  ;;  %v952_v7 = vrot.slane %v23365_v20, 3  ;;  %v951_v35 = vsel %vm312_vm4, %v948_v13, %v950_v32  ;;  %v954_v47 = vrot.slane %v886_v58, 3  ;;  %20908 = vmatpush3.msra.mxu1 %v1578_v49  ;;  %v1576_v20 = vld [vmem:[%s27932_s0 + $0x70] sm:$0xff] }
 0x1ca   :  { %20875 = vmatmul.mubr.msk.f32.gmra.mxu1 %vm347_vm2, %v924_v10  ;;  %20853 = vmatmul.mubr.msk.f32.gmra.mxu0 %vm347_vm2, %v887_v0  ;;  %v956_v26 = vrot.slane %v887_v0, 3 }
 0x1cb   :  { %v926_v14 = vsel %vm282_vm3, %v923_v2, %v925_v4  ;;  %v928_v15 = vsel %vm282_vm3, %v925_v4, %v927_v44  ;;  %20884 = vmatprep.mubr.msk.f32.mxu0 %vm347_vm2, %v933_v9  ;;  %v953_v40 = vsel %vm312_vm4, %v950_v32, %v952_v7  ;;  %v955_v43 = vsel %vm312_vm4, %v952_v7, %v954_v47 }
 0x1cc   :  { %20877 = vmatprep.mubr.msk.f32.mxu1 %vm347_vm2, %v926_v14  ;;  %v957_v52 = vsel %vm312_vm4, %v954_v47, %v956_v26  ;;  %v959_v53 = vsel %vm341_vm5, %v956_v26, 0.0  ;;  %20930 = vmatprep.subr.mxu0 %v1577_v46 }
 0x1cd   :  { %20955 = vmatprep.subr.mxu1 %v1908_v57 }
 0x1ce   :  { %20878 = vmatmul.mubr.msk.f32.gmra.mxu1 %vm347_vm2, %v928_v15  ;;  %20885 = vmatmul.mubr.msk.f32.vlgmr.msra.gmra.mxu0 %vm347_vm2, %v935_v34 }
 0x1cf   :  { %20887 = vmatprep.mubr.msk.f32.mxu0 %vm347_vm2, %v937_v17  ;;  %20931 = vmatpush3.msra.mxu0 %v1577_v46  ;;  %v23460_v17 = vld [vmem:[%s27932_s0 + $0xa1] ss:$0 sm:$0xff]  ;;  %v1907_v46 = vld [vmem:[%s27932_s0 + $0x90] sm:$0xff] }
 0x1d0   :  { %20932 = vmatprep.subr.mxu0 %v1576_v20 }
 0x1d1   :  { %20933 = vmatpush3.msra.mxu0 %v1576_v20 }
 0x1d2   :  { %20888 = vmatmul.mubr.msk.f32.gmra.mxu0 %vm347_vm2, %v939_v45 }
 0x1d3   :  { %20890 = vmatprep.mubr.msk.f32.mxu0 %vm347_vm2, %v941_v23 }
 0x1d6   :  { %20891 = vmatmul.mubr.msk.f32.gmra.mxu0 %vm347_vm2, %v943_v24 }
 0x1d7   :  { %20893 = vmatprep.mubr.msk.f32.mxu0 %vm347_vm2, %v945_v56 }
 0x1da   :  { %20894 = vmatmul.mubr.msk.f32.gmra.mxu0 %vm347_vm2, %v947_v30 }
 0x1db   :  { %20896 = vmatprep.mubr.msk.f32.mxu0 %vm347_vm2, %v949_v38 }
 0x1de   :  { %20897 = vmatmul.mubr.msk.f32.gmra.mxu0 %vm347_vm2, %v951_v35 }
 0x1df   :  { %20899 = vmatprep.mubr.msk.f32.mxu0 %vm347_vm2, %v953_v40 }
 0x1e2   :  { %20900 = vmatmul.mubr.msk.f32.gmra.mxu0 %vm347_vm2, %v955_v43 }
 0x1e3   :  { %20902 = vmatprep.mubr.msk.f32.mxu0 %vm347_vm2, %v957_v52 }
 0x1e6   :  { %20903 = vmatmul.mubr.msk.f32.gmra.mxu0 %vm347_vm2, %v959_v53 }
 0x272   :  { %v20836_v59 = vpop.f32.mrf.mxu0 }
 0x274   :  { %v1058_v62 = vpop.f32.mrf.mxu0 }
 0x276   :  { %v20861_v51 = vpop.f32.mrf.mxu1  ;;  %v20839_v41 = vpop.f32.mrf.mxu0 }
 0x277   :  { %v1228_v34 = vadd.f32 %v20861_v51, %v20836_v59 }
 0x278   :  { %v1222_v50 = vpop.f32.mrf.mxu1  ;;  %v1068_v63 = vpop.f32.mrf.mxu0 }
 0x279   :  { %v1223_v21 = vadd.f32 %v1222_v50, %v1058_v62 }
 0x27a   :  { %v20864_v0 = vpop.f32.mrf.mxu1  ;;  %v20842_v1 = vpop.f32.mrf.mxu0 }
 0x27b   :  { %v1238_v60 = vadd.f32 %v20864_v0, %v20839_v41 }
 0x27c   :  { %v1232_v2 = vpop.f32.mrf.mxu1  ;;  %v1078_v22 = vpop.f32.mrf.mxu0 }
 0x27d   :  { %v1233_v32 = vadd.f32 %v1232_v2, %v1068_v63 }
 0x27e   :  { %v20845_v58 = vpop.f32.mrf.mxu0  ;;  %v20867_v3 = vpop.f32.mrf.mxu1 }
 0x27f   :  { %v1248_v47 = vadd.f32 %v20867_v3, %v20842_v1 }
 0x280   :  { %v1088_v8 = vpop.f32.mrf.mxu0  ;;  %v1242_v54 = vpop.f32.mrf.mxu1 }
 0x281   :  { %v1243_v53 = vadd.f32 %v1242_v54, %v1078_v22 }
 0x282   :  { %v23445_v10 = vpop.f32.mrf.mxu0  ;;  %v20870_v11 = vpop.f32.mrf.mxu1 }
 0x283   :  { %v1258_v50 = vadd.f32 %v20870_v11, %v20845_v58 }
 0x284   :  { %v23447_v44 = vpop.f32.mrf.mxu0  ;;  %v1252_v15 = vpop.f32.mrf.mxu1 }
 0x286   :  { %v23449_v4 = vpop.f32.mrf.mxu0  ;;  %v20873_v18 = vpop.f32.mrf.mxu1 }
 0x288   :  { %v23451_v9 = vpop.f32.mrf.mxu0  ;;  %v1262_v38 = vpop.f32.mrf.mxu1 }
 0x28a   :  { %v23453_v14 = vpop.f32.mrf.mxu0  ;;  %v20876_v20 = vpop.f32.mrf.mxu1 }
 0x28c   :  { %v23455_v6 = vpop.f32.mrf.mxu0  ;;  %v1272_v58 = vpop.f32.mrf.mxu1 }
 0x28e   :  { %v20886_v16 = vpop.f32.mrf.mxu0 }
 0x28f   :  { %v1458_v45 = vadd.f32 %v20886_v16, %v1228_v34  ;;  %v1253_v16 = vadd.f32 %v1252_v15, %v1088_v8 }
 0x290   :  { %v1388_v23 = vpop.f32.mrf.mxu0 }
 0x291   :  { %v1477_v24 = vadd.f32 %v23460_v17, %v1458_v45  ;;  %v1457_v29 = vadd.f32 %v1388_v23, %v1223_v21  ;;  %v1268_v23 = vadd.f32 %v20873_v18, %v23445_v10  ;;  %v20879_v18 = vpop.f32.mrf.mxu1 }
 0x292   :  { %v20889_v56 = vpop.f32.mrf.mxu0 }
 0x293   :  { %v1476_v13 = vadd.f32 %v23460_v17, %v1457_v29  ;;  %v1460_v30 = vadd.f32 %v20889_v56, %v1238_v60  ;;  %v23464_v7 = vmax.f32 %v1477_v24, 0.0 }
 0x294   :  { %v1398_v35 = vpop.f32.mrf.mxu0 }
 0x295   :  { %v23466_v40 = vmax.f32 %v1476_v13, 0.0  ;;  %v1479_v26 = vadd.f32 %v23460_v17, %v1460_v30  ;;  %v1459_v43 = vadd.f32 %v1398_v35, %v1233_v32  ;;  %v1519_v59 = vrot.slane %v23464_v7, 5 }
 0x296   :  { %v20892_v52 = vpop.f32.mrf.mxu0  ;;  %v1263_v13 = vadd.f32 %v1262_v38, %v23447_v44  ;;  %v1278_v44 = vadd.f32 %v20876_v20, %v23449_v4  ;;  %v1273_v4 = vadd.f32 %v1272_v58, %v23451_v9  ;;  %v1282_v20 = vpop.f32.mrf.mxu1 }
 0x297   :  { %v1462_v39 = vadd.f32 %v20892_v52, %v1248_v47  ;;  %20909 = vmatprep.mubr.msk.f32.mxu1 %vm347_vm2, %v23466_v40  ;;  %v1518_v49 = vrot.slane %v23466_v40, 5  ;;  %v23476_v62 = vmax.f32 %v1479_v26, 0.0  ;;  %v1478_v51 = vadd.f32 %v23460_v17, %v1459_v43 }
 0x298   :  { %v1408_v41 = vpop.f32.mrf.mxu0  ;;  %20910 = vmatmul.mubr.msk.f32.vlgmr.msra.gmra.mxu1 %vm347_vm2, %v23464_v7 }
 0x299   :  { %v1481_v63 = vadd.f32 %v23460_v17, %v1462_v39  ;;  %v1461_v0 = vadd.f32 %v1408_v41, %v1243_v53  ;;  %20956 = vmatpush3.msra.mxu1 %v1908_v57  ;;  %v23482_v1 = vmax.f32 %v1478_v51, 0.0  ;;  %v1546_v22 = vsel %vm282_vm3, 0.0, %v1518_v49 }
 0x29a   :  { %v20895_v2 = vpop.f32.mrf.mxu0  ;;  %v1520_v3 = vsel %vm282_vm3, %v1518_v49, %v1519_v59  ;;  %20957 = vmatprep.subr.mxu1 %v1907_v46  ;;  %20934 = vmatprep.mubr.msk.f32.mxu0 %vm347_vm2, %v1546_v22  ;;  %v1523_v11 = vrot.slane %v23476_v62, 5 }
 0x29b   :  { %v1480_v54 = vadd.f32 %v23460_v17, %v1461_v0  ;;  %v1464_v34 = vadd.f32 %v20895_v2, %v1258_v50  ;;  %20958 = vmatpush3.msra.mxu1 %v1907_v46  ;;  %v23489_v21 = vmax.f32 %v1481_v63, 0.0  ;;  %20912 = vmatprep.mubr.msk.f32.mxu1 %vm347_vm2, %v23482_v1  ;;  %v1521_v45 = vrot.slane %v23482_v1, 5 }
 0x29c   :  { %20935 = vmatmul.mubr.msk.f32.vlgmr.msra.gmra.mxu0 %vm347_vm2, %v1520_v3  ;;  %v1418_v57 = vpop.f32.mrf.mxu0  ;;  %20913 = vmatmul.mubr.msk.f32.gmra.mxu1 %vm347_vm2, %v23476_v62  ;;  %v1288_v0 = vadd.f32 %v20879_v18, %v23453_v14 }
 0x29d   :  { %v23496_v60 = vmax.f32 %v1480_v54, 0.0  ;;  %v1483_v24 = vadd.f32 %v23460_v17, %v1464_v34  ;;  %v1463_v8 = vadd.f32 %v1418_v57, %v1253_v16  ;;  %v1522_v29 = vsel %vm282_vm3, %v1519_v59, %v1521_v45 }
 0x29e   :  { %v20898_v15 = vpop.f32.mrf.mxu0  ;;  %v1524_v56 = vsel %vm282_vm3, %v1521_v45, %v1523_v11  ;;  %20937 = vmatprep.mubr.msk.f32.mxu0 %vm347_vm2, %v1522_v29  ;;  %v1527_v32 = vrot.slane %v23489_v21, 5  ;;  %v1283_v16 = vadd.f32 %v1282_v20, %v23455_v6 }
 0x29f   :  { %v1466_v30 = vadd.f32 %v20898_v15, %v1268_v23  ;;  %20915 = vmatprep.mubr.msk.f32.mxu1 %vm347_vm2, %v23496_v60  ;;  %v1525_v10 = vrot.slane %v23496_v60, 5  ;;  %v23509_v35 = vmax.f32 %v1483_v24, 0.0  ;;  %v1482_v47 = vadd.f32 %v23460_v17, %v1463_v8 }
 0x2a0   :  { %20938 = vmatmul.mubr.msk.f32.gmra.mxu0 %vm347_vm2, %v1524_v56  ;;  %v1428_v26 = vpop.f32.mrf.mxu0  ;;  %20916 = vmatmul.mubr.msk.f32.gmra.mxu1 %vm347_vm2, %v23489_v21 }
 0x2a1   :  { %v1485_v38 = vadd.f32 %v23460_v17, %v1466_v30  ;;  %v1465_v43 = vadd.f32 %v1428_v26, %v1263_v13  ;;  %v23517_v52 = vmax.f32 %v1482_v47, 0.0  ;;  %v1526_v39 = vsel %vm282_vm3, %v1523_v11, %v1525_v10 }
 0x2a2   :  { %v20901_v53 = vpop.f32.mrf.mxu0  ;;  %v1528_v49 = vsel %vm282_vm3, %v1525_v10, %v1527_v32  ;;  %20940 = vmatprep.mubr.msk.f32.mxu0 %vm347_vm2, %v1526_v39  ;;  %v1531_v51 = vrot.slane %v23509_v35, 5 }
 0x2a3   :  { %v1484_v46 = vadd.f32 %v23460_v17, %v1465_v43  ;;  %v1468_v59 = vadd.f32 %v20901_v53, %v1278_v44  ;;  %v23525_v41 = vmax.f32 %v1485_v38, 0.0  ;;  %20918 = vmatprep.mubr.msk.f32.mxu1 %vm347_vm2, %v23517_v52  ;;  %v1529_v63 = vrot.slane %v23517_v52, 5 }
 0x2a4   :  { %20941 = vmatmul.mubr.msk.f32.gmra.mxu0 %vm347_vm2, %v1528_v49  ;;  %v1438_v50 = vpop.f32.mrf.mxu0  ;;  %20919 = vmatmul.mubr.msk.f32.gmra.mxu1 %vm347_vm2, %v23509_v35  ;;  %v1550_v43 = vrot.slane %v23482_v1, 3  ;;  %v1554_v49 = vrot.slane %v23496_v60, 3  ;;  %v1558_v20 = vrot.slane %v23517_v52, 3  ;;  %v1560_v60 = vrot.slane %v23509_v35, 3 }
 0x2a5   :  { %v23532_v2 = vmax.f32 %v1484_v46, 0.0  ;;  %v1487_v22 = vadd.f32 %v23460_v17, %v1468_v59  ;;  %v1467_v9 = vadd.f32 %v1438_v50, %v1273_v4  ;;  %v1530_v54 = vsel %vm282_vm3, %v1527_v32, %v1529_v63 }
 0x2a6   :  { %v20904_v3 = vpop.f32.mrf.mxu0  ;;  %v1532_v34 = vsel %vm282_vm3, %v1529_v63, %v1531_v51  ;;  %20943 = vmatprep.mubr.msk.f32.mxu0 %vm347_vm2, %v1530_v54  ;;  %v1535_v11 = vrot.slane %v23525_v41, 5  ;;  %v1547_v32 = vrot.slane %v23466_v40, 3  ;;  %v1556_v59 = vrot.slane %v23489_v21, 3 }
 0x2a7   :  { %v1470_v58 = vadd.f32 %v20904_v3, %v1288_v0  ;;  %20921 = vmatprep.mubr.msk.f32.mxu1 %vm347_vm2, %v23532_v2  ;;  %v1533_v14 = vrot.slane %v23532_v2, 5  ;;  %v23545_v57 = vmax.f32 %v1487_v22, 0.0  ;;  %v1486_v45 = vadd.f32 %v23460_v17, %v1467_v9 }
 0x2a8   :  { %20944 = vmatmul.mubr.msk.f32.gmra.mxu0 %vm347_vm2, %v1532_v34  ;;  %v1448_v23 = vpop.f32.mrf.mxu0  ;;  %20922 = vmatmul.mubr.msk.f32.gmra.mxu1 %vm347_vm2, %v23525_v41  ;;  %v1562_v50 = vrot.slane %v23532_v2, 3  ;;  %v1561_v21 = vsel %vm312_vm4, %v1558_v20, %v1560_v60  ;;  %v1564_v52 = vrot.slane %v23525_v41, 3 }
 0x2a9   :  { %v1489_v24 = vadd.f32 %v23460_v17, %v1470_v58  ;;  %v1469_v6 = vadd.f32 %v1448_v23, %v1283_v16  ;;  %v1500_v8 = vmax.f32 %v1486_v45, 0.0  ;;  %v1534_v15 = vsel %vm282_vm3, %v1531_v51, %v1533_v14  ;;  %v2209_v58 = vld [vmem:[%s27932_s0 + $0xc0] sm:$0xff]  ;;  %v23625_v45 = vld [vmem:[%s27932_s0 + $0xd0] sm:$0xff] }
 0x2aa   :  { %v1536_v29 = vsel %vm282_vm3, %v1533_v14, %v1535_v11  ;;  %20946 = vmatprep.mubr.msk.f32.mxu0 %vm347_vm2, %v1534_v15  ;;  %v1539_v30 = vrot.slane %v23545_v57, 5  ;;  %v1559_v51 = vsel %vm312_vm4, %v1556_v59, %v1558_v20  ;;  %v1563_v63 = vsel %vm312_vm4, %v1560_v60, %v1562_v50  ;;  %20980 = vmatprep.subr.mxu0 %v2209_v58  ;;  %v2208_v14 = vld [vmem:[%s27932_s0 + $0xb8] sm:$0xff] }
 0x2ab   :  { %v1503_v56 = vmax.f32 %v1489_v24, 0.0  ;;  %v1488_v13 = vadd.f32 %v23460_v17, %v1469_v6  ;;  %20924 = vmatprep.mubr.msk.f32.mxu1 %vm347_vm2, %v1500_v8  ;;  %v1537_v10 = vrot.slane %v1500_v8, 5  ;;  %v1548_v17 = vrot.slane %v23464_v7, 3  ;;  %20981 = vmatpush3.msra.mxu0 %v2209_v58 }
 0x2ac   :  { %20947 = vmatmul.mubr.msk.f32.gmra.mxu0 %vm347_vm2, %v1536_v29  ;;  %20925 = vmatmul.mubr.msk.f32.gmra.mxu1 %vm347_vm2, %v23545_v57  ;;  %v1552_v7 = vrot.slane %v23476_v62, 3  ;;  %v1557_v62 = vsel %vm312_vm4, %v1554_v49, %v1556_v59  ;;  %v1566_v0 = vrot.slane %v1500_v8, 3  ;;  %v1565_v22 = vsel %vm312_vm4, %v1562_v50, %v1564_v52 }
 0x2ad   :  { %v1502_v18 = vmax.f32 %v1488_v13, 0.0  ;;  %v1538_v47 = vsel %vm282_vm3, %v1535_v11, %v1537_v10  ;;  %v1540_v26 = vsel %vm282_vm3, %v1537_v10, %v1539_v30  ;;  %v1543_v44 = vrot.slane %v1503_v56, 5  ;;  %20982 = vmatprep.subr.mxu0 %v2208_v14  ;;  %v2207_v11 = vld [vmem:[%s27932_s0 + $0xb0] sm:$0xff] }
 0x2ae   :  { %20949 = vmatprep.mubr.msk.f32.mxu0 %vm347_vm2, %v1538_v47  ;;  %v1549_v40 = vsel %vm312_vm4, %v1547_v32, %v1548_v17  ;;  %v1551_v1 = vsel %vm312_vm4, %v1548_v17, %v1550_v43  ;;  %v1553_v46 = vsel %vm312_vm4, %v1550_v43, %v1552_v7  ;;  %v1555_v4 = vsel %vm312_vm4, %v1552_v7, %v1554_v49 }
 0x2af   :  { %20927 = vmatprep.mubr.msk.f32.mxu1 %vm347_vm2, %v1502_v18  ;;  %v1541_v38 = vrot.slane %v1502_v18, 5  ;;  %v1568_v35 = vrot.slane %v23545_v57, 3  ;;  %v1567_v2 = vsel %vm312_vm4, %v1564_v52, %v1566_v0  ;;  %v1570_v9 = vrot.slane %v1502_v18, 3  ;;  %20983 = vmatpush3.msra.mxu0 %v2208_v14  ;;  %v2206_v57 = vld [vmem:[%s27932_s0 + $0xa8] sm:$0xff] }
 0x2b0   :  { %20950 = vmatmul.mubr.msk.f32.gmra.mxu0 %vm347_vm2, %v1540_v26  ;;  %20928 = vmatmul.mubr.msk.f32.gmra.mxu1 %vm347_vm2, %v1503_v56  ;;  %v1572_v41 = vrot.slane %v1503_v56, 3 }
 0x2b1   :  { %v1542_v53 = vsel %vm282_vm3, %v1539_v30, %v1541_v38  ;;  %v1544_v39 = vsel %vm282_vm3, %v1541_v38, %v1543_v44  ;;  %20959 = vmatprep.mubr.msk.f32.mxu1 %vm347_vm2, %v1549_v40  ;;  %v1569_v3 = vsel %vm312_vm4, %v1566_v0, %v1568_v35  ;;  %v1571_v54 = vsel %vm312_vm4, %v1568_v35, %v1570_v9 }
 0x2b2   :  { %20952 = vmatprep.mubr.msk.f32.mxu0 %vm347_vm2, %v1542_v53  ;;  %v1573_v34 = vsel %vm312_vm4, %v1570_v9, %v1572_v41  ;;  %v1575_v16 = vsel %vm341_vm5, %v1572_v41, 0.0  ;;  %21005 = vmatprep.subr.mxu1 %v2207_v11 }
 0x2b3   :  { %21030 = vmatprep.subr.mxu0 %v23625_v45 }
 0x2b4   :  { %20953 = vmatmul.mubr.msk.f32.gmra.mxu0 %vm347_vm2, %v1544_v39  ;;  %20960 = vmatmul.mubr.msk.f32.vlgmr.msra.gmra.mxu1 %vm347_vm2, %v1551_v1 }
 0x2b5   :  { %20962 = vmatprep.mubr.msk.f32.mxu1 %vm347_vm2, %v1553_v46  ;;  %21006 = vmatpush3.msra.mxu1 %v2207_v11  ;;  %v23641_v46 = vld [vmem:[%s27932_s0 + $0xa2] ss:$0 sm:$0xff] }
 0x2b6   :  { %21007 = vmatprep.subr.mxu1 %v2206_v57 }
 0x2b7   :  { %21008 = vmatpush3.msra.mxu1 %v2206_v57 }
 0x2b8   :  { %20963 = vmatmul.mubr.msk.f32.gmra.mxu1 %vm347_vm2, %v1555_v4 }
 0x2b9   :  { %20965 = vmatprep.mubr.msk.f32.mxu1 %vm347_vm2, %v1557_v62 }
 0x2bc   :  { %20966 = vmatmul.mubr.msk.f32.gmra.mxu1 %vm347_vm2, %v1559_v51 }
 0x2bd   :  { %20968 = vmatprep.mubr.msk.f32.mxu1 %vm347_vm2, %v1561_v21 }
 0x2c0   :  { %20969 = vmatmul.mubr.msk.f32.gmra.mxu1 %vm347_vm2, %v1563_v63 }
 0x2c1   :  { %20971 = vmatprep.mubr.msk.f32.mxu1 %vm347_vm2, %v1565_v22 }
 0x2c4   :  { %20972 = vmatmul.mubr.msk.f32.gmra.mxu1 %vm347_vm2, %v1567_v2 }
 0x2c5   :  { %20974 = vmatprep.mubr.msk.f32.mxu1 %vm347_vm2, %v1569_v3 }
 0x2c8   :  { %20975 = vmatmul.mubr.msk.f32.gmra.mxu1 %vm347_vm2, %v1571_v54 }
 0x2c9   :  { %20977 = vmatprep.mubr.msk.f32.mxu1 %vm347_vm2, %v1573_v34 }
 0x2cc   :  { %20978 = vmatmul.mubr.msk.f32.gmra.mxu1 %vm347_vm2, %v1575_v16 }
 0x358   :  { %v20911_v23 = vpop.f32.mrf.mxu1 }
 0x35a   :  { %v1674_v24 = vpop.f32.mrf.mxu1 }
 0x35c   :  { %v20936_v6 = vpop.f32.mrf.mxu0  ;;  %v20914_v8 = vpop.f32.mrf.mxu1 }
 0x35d   :  { %v1844_v1 = vadd.f32 %v20936_v6, %v20911_v23 }
 0x35e   :  { %v1838_v15 = vpop.f32.mrf.mxu0  ;;  %v1684_v29 = vpop.f32.mrf.mxu1 }
 0x35f   :  { %v1839_v59 = vadd.f32 %v1838_v15, %v1674_v24 }
 0x360   :  { %v20939_v56 = vpop.f32.mrf.mxu0  ;;  %v20917_v13 = vpop.f32.mrf.mxu1 }
 0x361   :  { %v1854_v60 = vadd.f32 %v20939_v56, %v20914_v8 }
 0x362   :  { %v1848_v30 = vpop.f32.mrf.mxu0  ;;  %v1694_v10 = vpop.f32.mrf.mxu1 }
 0x363   :  { %v1849_v52 = vadd.f32 %v1848_v30, %v1684_v29 }
 0x364   :  { %v20920_v18 = vpop.f32.mrf.mxu1  ;;  %v20942_v32 = vpop.f32.mrf.mxu0 }
 0x365   :  { %v1864_v9 = vadd.f32 %v20942_v32, %v20917_v13 }
 0x366   :  { %v1704_v47 = vpop.f32.mrf.mxu1  ;;  %v1858_v17 = vpop.f32.mrf.mxu0 }
 0x367   :  { %v1859_v34 = vadd.f32 %v1858_v17, %v1694_v10 }
 0x368   :  { %v20923_v26 = vpop.f32.mrf.mxu1  ;;  %v20945_v43 = vpop.f32.mrf.mxu0 }
 0x369   :  { %v1874_v8 = vadd.f32 %v20945_v43, %v20920_v18 }
 0x36a   :  { %v23628_v44 = vpop.f32.mrf.mxu1  ;;  %v1868_v39 = vpop.f32.mrf.mxu0 }
 0x36b   :  { %v1869_v13 = vadd.f32 %v1868_v39, %v1704_v47 }
 0x36c   :  { %v23630_v38 = vpop.f32.mrf.mxu1  ;;  %v20948_v4 = vpop.f32.mrf.mxu0 }
 0x36e   :  { %v23632_v40 = vpop.f32.mrf.mxu1  ;;  %v1878_v63 = vpop.f32.mrf.mxu0 }
 0x370   :  { %v23634_v53 = vpop.f32.mrf.mxu1  ;;  %v20951_v14 = vpop.f32.mrf.mxu0 }
 0x372   :  { %v23636_v7 = vpop.f32.mrf.mxu1  ;;  %v1888_v32 = vpop.f32.mrf.mxu0 }
 0x374   :  { %v20961_v49 = vpop.f32.mrf.mxu1 }
 0x375   :  { %v2074_v20 = vadd.f32 %v20961_v49, %v1844_v1 }
 0x376   :  { %v2004_v62 = vpop.f32.mrf.mxu1 }
 0x377   :  { %v2093_v51 = vadd.f32 %v23641_v46, %v2074_v20  ;;  %v2073_v50 = vadd.f32 %v2004_v62, %v1839_v59  ;;  %v1884_v59 = vadd.f32 %v20948_v4, %v20923_v26 }
 0x378   :  { %v20964_v21 = vpop.f32.mrf.mxu1 }
 0x379   :  { %v2107_v0 = vmax.f32 %v2093_v51, 0.0  ;;  %v2092_v22 = vadd.f32 %v23641_v46, %v2073_v50  ;;  %v2076_v35 = vadd.f32 %v20964_v21, %v1854_v60  ;;  %v20954_v50 = vpop.f32.mrf.mxu0 }
 0x37a   :  { %v2014_v2 = vpop.f32.mrf.mxu1 }
 0x37b   :  { %v2106_v3 = vmax.f32 %v2092_v22, 0.0  ;;  %v2095_v41 = vadd.f32 %v23641_v46, %v2076_v35  ;;  %v2075_v54 = vadd.f32 %v2014_v2, %v1849_v52  ;;  %v23647_v16 = vadd.f32 %v2107_v0, %v23061_v27  ;;  %v2537_v27 = vld [vmem:[%s27932_s0 + $0xc8] sm:$0xff] }
 0x37c   :  { %v20967_v58 = vpop.f32.mrf.mxu1  ;;  %v1894_v35 = vadd.f32 %v20951_v14, %v23630_v38 }
 0x37d   :  { %v23650_v11 = vadd.f32 %v2106_v3, %v23067_v31  ;;  %v2109_v57 = vmax.f32 %v2095_v41, 0.0  ;;  %v2094_v23 = vadd.f32 %v23641_v46, %v2075_v54  ;;  %v2078_v24 = vadd.f32 %v20967_v58, %v1864_v9  ;;  %v1898_v58 = vpop.f32.mrf.mxu0 }
 0x37e   :  { %v2024_v6 = vpop.f32.mrf.mxu1  ;;  %v2149_v18 = vrot.slane %v23647_v16, 5 }
 0x37f   :  { %v2108_v15 = vmax.f32 %v2094_v23, 0.0  ;;  %v2097_v29 = vadd.f32 %v23641_v46, %v2078_v24  ;;  %v2077_v56 = vadd.f32 %v2024_v6, %v1859_v34  ;;  %20984 = vmatprep.mubr.msk.f32.mxu0 %vm347_vm2, %v23650_v11  ;;  %v23660_v31 = vadd.f32 %v2109_v57, %v23074_v36 }
 0x380   :  { %v20970_v30 = vpop.f32.mrf.mxu1  ;;  %20985 = vmatmul.mubr.msk.f32.vlgmr.msra.gmra.mxu0 %vm347_vm2, %v23647_v16  ;;  %v2148_v10 = vrot.slane %v23650_v11, 5 }
 0x381   :  { %v23667_v17 = vadd.f32 %v2108_v15, %v23088_v42  ;;  %v2111_v43 = vmax.f32 %v2097_v29, 0.0  ;;  %v2096_v1 = vadd.f32 %v23641_v46, %v2077_v56  ;;  %v2080_v49 = vadd.f32 %v20970_v30, %v1874_v8  ;;  %21031 = vmatpush3.msra.mxu0 %v23625_v45 }
 0x382   :  { %v2034_v36 = vpop.f32.mrf.mxu1  ;;  %v2176_v47 = vsel %vm282_vm3, 0.0, %v2148_v10  ;;  %v2150_v39 = vsel %vm282_vm3, %v2148_v10, %v2149_v18  ;;  %21032 = vmatprep.subr.mxu0 %v2537_v27  ;;  %v1879_v42 = vadd.f32 %v1878_v63, %v23628_v44  ;;  %v2153_v4 = vrot.slane %v23660_v31, 5 }
 0x383   :  { %v2110_v20 = vmax.f32 %v2096_v1, 0.0  ;;  %v2099_v62 = vadd.f32 %v23641_v46, %v2080_v49  ;;  %v2079_v60 = vadd.f32 %v2034_v36, %v1869_v13  ;;  %21009 = vmatprep.mubr.msk.f32.mxu1 %vm347_vm2, %v2176_v47  ;;  %20987 = vmatprep.mubr.msk.f32.mxu0 %vm347_vm2, %v23667_v17  ;;  %v23679_v45 = vadd.f32 %v2111_v43, %v23097_v48 }
 0x384   :  { %21010 = vmatmul.mubr.msk.f32.vlgmr.msra.gmra.mxu1 %vm347_vm2, %v2150_v39  ;;  %v20973_v51 = vpop.f32.mrf.mxu1  ;;  %20988 = vmatmul.mubr.msk.f32.gmra.mxu0 %vm347_vm2, %v23660_v31  ;;  %v2151_v26 = vrot.slane %v23667_v17, 5  ;;  %v1904_v8 = vadd.f32 %v20954_v50, %v23634_v53 }
 0x385   :  { %v23687_v21 = vadd.f32 %v2110_v20, %v23110_v55  ;;  %v2113_v52 = vmax.f32 %v2099_v62, 0.0  ;;  %v2098_v44 = vadd.f32 %v23641_v46, %v2079_v60  ;;  %v2082_v63 = vadd.f32 %v20973_v51, %v1884_v59  ;;  %21033 = vmatpush3.msra.mxu0 %v2537_v27 }
 0x386   :  { %v2044_v48 = vpop.f32.mrf.mxu1  ;;  %v2152_v0 = vsel %vm282_vm3, %v2149_v18, %v2151_v26  ;;  %v2154_v22 = vsel %vm282_vm3, %v2151_v26, %v2153_v4  ;;  %v1889_v55 = vadd.f32 %v1888_v32, %v23632_v40  ;;  %v2157_v34 = vrot.slane %v23679_v45, 5 }
 0x387   :  { %v2112_v2 = vmax.f32 %v2098_v44, 0.0  ;;  %v2101_v9 = vadd.f32 %v23641_v46, %v2082_v63  ;;  %v2081_v3 = vadd.f32 %v2044_v48, %v1879_v42  ;;  %21012 = vmatprep.mubr.msk.f32.mxu1 %vm347_vm2, %v2152_v0  ;;  %20990 = vmatprep.mubr.msk.f32.mxu0 %vm347_vm2, %v23687_v21  ;;  %v23699_v41 = vadd.f32 %v2113_v52, %v23119_v61 }
 0x388   :  { %21013 = vmatmul.mubr.msk.f32.gmra.mxu1 %vm347_vm2, %v2154_v22  ;;  %v20976_v54 = vpop.f32.mrf.mxu1  ;;  %20991 = vmatmul.mubr.msk.f32.gmra.mxu0 %vm347_vm2, %v23679_v45  ;;  %v2155_v38 = vrot.slane %v23687_v21, 5  ;;  %v2178_v44 = vrot.slane %v23647_v16, 3  ;;  %v2180_v0 = vrot.slane %v23667_v17, 3 }
 0x389   :  { %v23707_v14 = vadd.f32 %v2112_v2, %v23135_v5  ;;  %v2115_v57 = vmax.f32 %v2101_v9, 0.0  ;;  %v2100_v40 = vadd.f32 %v23641_v46, %v2081_v3  ;;  %v2084_v23 = vadd.f32 %v20976_v54, %v1894_v35 }
 0x38a   :  { %v2054_v61 = vpop.f32.mrf.mxu1  ;;  %v2156_v24 = vsel %vm282_vm3, %v2153_v4, %v2155_v38  ;;  %v2158_v6 = vsel %vm282_vm3, %v2155_v38, %v2157_v34  ;;  %v1899_v5 = vadd.f32 %v1898_v58, %v23636_v7  ;;  %v2161_v30 = vrot.slane %v23699_v41, 5 }
 0x38b   :  { %v2114_v15 = vmax.f32 %v2100_v40, 0.0  ;;  %v2103_v29 = vadd.f32 %v23641_v46, %v2084_v23  ;;  %v2083_v56 = vadd.f32 %v2054_v61, %v1889_v55  ;;  %21015 = vmatprep.mubr.msk.f32.mxu1 %vm347_vm2, %v2156_v24  ;;  %20993 = vmatprep.mubr.msk.f32.mxu0 %vm347_vm2, %v23707_v14  ;;  %v23719_v27 = vadd.f32 %v2115_v57, %v23144_v12 }
 0x38c   :  { %21016 = vmatmul.mubr.msk.f32.gmra.mxu1 %vm347_vm2, %v2158_v6  ;;  %v20979_v13 = vpop.f32.mrf.mxu1  ;;  %20994 = vmatmul.mubr.msk.f32.gmra.mxu0 %vm347_vm2, %v23699_v41  ;;  %v2159_v53 = vrot.slane %v23707_v14, 5  ;;  %v2182_v2 = vrot.slane %v23660_v31, 3  ;;  %v2181_v9 = vsel %vm312_vm4, %v2178_v44, %v2180_v0  ;;  %v2184_v3 = vrot.slane %v23687_v21, 3 }
 0x38d   :  { %v23727_v10 = vadd.f32 %v2114_v15, %v23160_v19  ;;  %v2117_v18 = vmax.f32 %v2103_v29, 0.0  ;;  %v2102_v32 = vadd.f32 %v23641_v46, %v2083_v56  ;;  %v2086_v7 = vadd.f32 %v20979_v13, %v1904_v8 }
 0x38e   :  { %v2064_v43 = vpop.f32.mrf.mxu1  ;;  %v2160_v12 = vsel %vm282_vm3, %v2157_v34, %v2159_v53  ;;  %v2162_v1 = vsel %vm282_vm3, %v2159_v53, %v2161_v30  ;;  %v2165_v59 = vrot.slane %v23719_v27, 5  ;;  %v2183_v55 = vsel %vm312_vm4, %v2180_v0, %v2182_v2 }
 0x38f   :  { %v23733_v49 = vadd.f32 %v2117_v18, %v23169_v28  ;;  %v2116_v36 = vmax.f32 %v2102_v32, 0.0  ;;  %v2105_v47 = vadd.f32 %v23641_v46, %v2086_v7  ;;  %v2085_v39 = vadd.f32 %v2064_v43, %v1899_v5  ;;  %21018 = vmatprep.mubr.msk.f32.mxu1 %vm347_vm2, %v2160_v12  ;;  %20996 = vmatprep.mubr.msk.f32.mxu0 %vm347_vm2, %v23727_v10  ;;  %v2825_v7 = vld [vmem:[%s27932_s0 + $0xf0] sm:$0xff]  ;;  %v2824_v43 = vld [vmem:[%s27932_s0 + $0xe8] sm:$0xff]  ;;  %v2823_v12 = vld [vmem:[%s27932_s0 + $0xe0] sm:$0xff] }
 0x390   :  { %21019 = vmatmul.mubr.msk.f32.gmra.mxu1 %vm347_vm2, %v2162_v1  ;;  %20997 = vmatmul.mubr.msk.f32.gmra.mxu0 %vm347_vm2, %v23719_v27  ;;  %v2163_v19 = vrot.slane %v23727_v10, 5  ;;  %v2186_v54 = vrot.slane %v23679_v45, 3  ;;  %v2185_v38 = vsel %vm312_vm4, %v2182_v2, %v2184_v3  ;;  %v2188_v34 = vrot.slane %v23707_v14, 3  ;;  %v2822_v1 = vld [vmem:[%s27932_s0 + $0xd8] sm:$0xff] }
 0x391   :  { %v23745_v28 = vadd.f32 %v2116_v36, %v23179_v33  ;;  %v2119_v20 = vmax.f32 %v2105_v47, 0.0  ;;  %v2104_v62 = vadd.f32 %v23641_v46, %v2085_v39  ;;  %v2169_v33 = vrot.slane %v23733_v49, 5  ;;  %21055 = vmatprep.subr.mxu1 %v2825_v7  ;;  %21080 = vmatprep.subr.mxu0 %v2823_v12  ;;  %v3154_v36 = vld [vmem:[%s27932_s0 + $0x100] sm:$0xff] }
 0x392   :  { %v2164_v60 = vsel %vm282_vm3, %v2161_v30, %v2163_v19  ;;  %v2166_v42 = vsel %vm282_vm3, %v2163_v19, %v2165_v59  ;;  %v2177_v46 = vrot.slane %v23650_v11, 3  ;;  %v2187_v58 = vsel %vm312_vm4, %v2184_v3, %v2186_v54  ;;  %21056 = vmatpush3.msra.mxu1 %v2825_v7 }
 0x393   :  { %v23751_v51 = vadd.f32 %v2119_v20, %v23184_v37  ;;  %v2118_v26 = vmax.f32 %v2104_v62, 0.0  ;;  %21021 = vmatprep.mubr.msk.f32.mxu1 %vm347_vm2, %v2164_v60  ;;  %20999 = vmatprep.mubr.msk.f32.mxu0 %vm347_vm2, %v23745_v28  ;;  %v2167_v4 = vrot.slane %v23745_v28, 5  ;;  %v2190_v57 = vrot.slane %v23699_v41, 3 }
 0x394   :  { %21022 = vmatmul.mubr.msk.f32.gmra.mxu1 %vm347_vm2, %v2166_v42  ;;  %21000 = vmatmul.mubr.msk.f32.gmra.mxu0 %vm347_vm2, %v23733_v49  ;;  %v2189_v40 = vsel %vm312_vm4, %v2186_v54, %v2188_v34  ;;  %v2192_v23 = vrot.slane %v23727_v10, 3  ;;  %v2194_v24 = vrot.slane %v23719_v27, 3  ;;  %v2196_v8 = vrot.slane %v23745_v28, 3 }
 0x395   :  { %v23763_v37 = vadd.f32 %v2118_v26, %v23165_v25  ;;  %v2168_v50 = vsel %vm282_vm3, %v2165_v59, %v2167_v4  ;;  %v2170_v52 = vsel %vm282_vm3, %v2167_v4, %v2169_v33  ;;  %v2173_v48 = vrot.slane %v23751_v51, 5  ;;  %21057 = vmatprep.subr.mxu1 %v2824_v43 }
 0x396   :  { %21024 = vmatprep.mubr.msk.f32.mxu1 %vm347_vm2, %v2168_v50  ;;  %v2179_v25 = vsel %vm312_vm4, %v2177_v46, %v2178_v44  ;;  %v2191_v61 = vsel %vm312_vm4, %v2188_v34, %v2190_v57  ;;  %v2193_v6 = vsel %vm312_vm4, %v2190_v57, %v2192_v23  ;;  %v2195_v15 = vsel %vm312_vm4, %v2192_v23, %v2194_v24 }
 0x397   :  { %21002 = vmatprep.mubr.msk.f32.mxu0 %vm347_vm2, %v23763_v37  ;;  %v2171_v63 = vrot.slane %v23763_v37, 5  ;;  %v2198_v29 = vrot.slane %v23733_v49, 3  ;;  %v2197_v56 = vsel %vm312_vm4, %v2194_v24, %v2196_v8  ;;  %v2200_v5 = vrot.slane %v23763_v37, 3  ;;  %21058 = vmatpush3.msra.mxu1 %v2824_v43 }
 0x398   :  { %21025 = vmatmul.mubr.msk.f32.gmra.mxu1 %vm347_vm2, %v2170_v52  ;;  %21003 = vmatmul.mubr.msk.f32.gmra.mxu0 %vm347_vm2, %v23751_v51  ;;  %v2202_v53 = vrot.slane %v23751_v51, 3 }
 0x399   :  { %21034 = vmatprep.mubr.msk.f32.mxu0 %vm347_vm2, %v2179_v25  ;;  %v2172_v22 = vsel %vm282_vm3, %v2169_v33, %v2171_v63  ;;  %v2174_v35 = vsel %vm282_vm3, %v2171_v63, %v2173_v48  ;;  %v2199_v13 = vsel %vm312_vm4, %v2196_v8, %v2198_v29  ;;  %v2201_v30 = vsel %vm312_vm4, %v2198_v29, %v2200_v5 }
 0x39a   :  { %21027 = vmatprep.mubr.msk.f32.mxu1 %vm347_vm2, %v2172_v22  ;;  %v2203_v18 = vsel %vm312_vm4, %v2200_v5, %v2202_v53  ;;  %v2205_v32 = vsel %vm341_vm5, %v2202_v53, 0.0  ;;  %21105 = vmatprep.subr.mxu1 %v3154_v36 }
 0x39c   :  { %21028 = vmatmul.mubr.msk.f32.gmra.mxu1 %vm347_vm2, %v2174_v35  ;;  %21035 = vmatmul.mubr.msk.f32.vlgmr.msra.gmra.mxu0 %vm347_vm2, %v2181_v9 }
 0x39d   :  { %21037 = vmatprep.mubr.msk.f32.mxu0 %vm347_vm2, %v2183_v55  ;;  %21081 = vmatpush3.msra.mxu0 %v2823_v12  ;;  %v23850_v55 = vld [vmem:[%s27932_s0 + $0x138] ss:$0 sm:$0xff] }
 0x39e   :  { %21082 = vmatprep.subr.mxu0 %v2822_v1  ;;  %v3153_v12 = vld [vmem:[%s27932_s0 + $0xf8] sm:$0xff] }
 0x39f   :  { %21083 = vmatpush3.msra.mxu0 %v2822_v1 }
 0x3a0   :  { %21038 = vmatmul.mubr.msk.f32.gmra.mxu0 %vm347_vm2, %v2185_v38 }
 0x3a1   :  { %21040 = vmatprep.mubr.msk.f32.mxu0 %vm347_vm2, %v2187_v58 }
 0x3a4   :  { %21041 = vmatmul.mubr.msk.f32.gmra.mxu0 %vm347_vm2, %v2189_v40 }
 0x3a5   :  { %21043 = vmatprep.mubr.msk.f32.mxu0 %vm347_vm2, %v2191_v61 }
 0x3a8   :  { %21044 = vmatmul.mubr.msk.f32.gmra.mxu0 %vm347_vm2, %v2193_v6 }
 0x3a9   :  { %21046 = vmatprep.mubr.msk.f32.mxu0 %vm347_vm2, %v2195_v15 }
 0x3ac   :  { %21047 = vmatmul.mubr.msk.f32.gmra.mxu0 %vm347_vm2, %v2197_v56 }
 0x3ad   :  { %21049 = vmatprep.mubr.msk.f32.mxu0 %vm347_vm2, %v2199_v13 }
 0x3b0   :  { %21050 = vmatmul.mubr.msk.f32.gmra.mxu0 %vm347_vm2, %v2201_v30 }
 0x3b1   :  { %21052 = vmatprep.mubr.msk.f32.mxu0 %vm347_vm2, %v2203_v18 }
 0x3b4   :  { %21053 = vmatmul.mubr.msk.f32.gmra.mxu0 %vm347_vm2, %v2205_v32 }
 0x440   :  { %v20986_v47 = vpop.f32.mrf.mxu0 }
 0x442   :  { %v2304_v39 = vpop.f32.mrf.mxu0 }
 0x444   :  { %v21011_v19 = vpop.f32.mrf.mxu1  ;;  %v20989_v59 = vpop.f32.mrf.mxu0 }
 0x445   :  { %v2474_v9 = vadd.f32 %v21011_v19, %v20986_v47 }
 0x446   :  { %v2468_v20 = vpop.f32.mrf.mxu1  ;;  %v2314_v62 = vpop.f32.mrf.mxu0 }
 0x447   :  { %v2469_v54 = vadd.f32 %v2468_v20, %v2304_v39 }
 0x448   :  { %v21014_v60 = vpop.f32.mrf.mxu1  ;;  %v20992_v42 = vpop.f32.mrf.mxu0 }
 0x449   :  { %v2484_v57 = vadd.f32 %v21014_v60, %v20989_v59 }
 0x44a   :  { %v2478_v26 = vpop.f32.mrf.mxu1  ;;  %v2324_v4 = vpop.f32.mrf.mxu0 }
 0x44b   :  { %v2479_v8 = vadd.f32 %v2478_v26, %v2314_v62 }
 0x44c   :  { %v20995_v33 = vpop.f32.mrf.mxu0  ;;  %v21017_v46 = vpop.f32.mrf.mxu1 }
 0x44d   :  { %v2494_v5 = vadd.f32 %v21017_v46, %v20992_v42 }
 0x44e   :  { %v2334_v50 = vpop.f32.mrf.mxu0  ;;  %v2488_v44 = vpop.f32.mrf.mxu1 }
 0x44f   :  { %v2489_v32 = vadd.f32 %v2488_v44, %v2324_v4 }
 0x450   :  { %v23835_v52 = vpop.f32.mrf.mxu0  ;;  %v21020_v0 = vpop.f32.mrf.mxu1 }
 0x451   :  { %v2504_v20 = vadd.f32 %v21020_v0, %v20995_v33 }
 0x452   :  { %v23837_v63 = vpop.f32.mrf.mxu0  ;;  %v2498_v35 = vpop.f32.mrf.mxu1 }
 0x454   :  { %v23839_v48 = vpop.f32.mrf.mxu0  ;;  %v21023_v34 = vpop.f32.mrf.mxu1 }
 0x456   :  { %v23841_v25 = vpop.f32.mrf.mxu0  ;;  %v2508_v15 = vpop.f32.mrf.mxu1 }
 0x458   :  { %v23843_v22 = vpop.f32.mrf.mxu0  ;;  %v21026_v1 = vpop.f32.mrf.mxu1 }
 0x45a   :  { %v23845_v2 = vpop.f32.mrf.mxu0  ;;  %v2518_v33 = vpop.f32.mrf.mxu1 }
 0x45c   :  { %v21036_v3 = vpop.f32.mrf.mxu0 }
 0x45d   :  { %v2704_v38 = vadd.f32 %v21036_v3, %v2474_v9  ;;  %v2499_v3 = vadd.f32 %v2498_v35, %v2334_v50 }
 0x45e   :  { %v2634_v58 = vpop.f32.mrf.mxu0 }
 0x45f   :  { %v2723_v40 = vadd.f32 %v23850_v55, %v2704_v38  ;;  %v2703_v23 = vadd.f32 %v2634_v58, %v2469_v54  ;;  %v2514_v58 = vadd.f32 %v21023_v34, %v23835_v52  ;;  %v21029_v34 = vpop.f32.mrf.mxu1 }
 0x460   :  { %v21039_v61 = vpop.f32.mrf.mxu0 }
 0x461   :  { %v2722_v24 = vadd.f32 %v23850_v55, %v2703_v23  ;;  %v2706_v6 = vadd.f32 %v21039_v61, %v2484_v57  ;;  %v23854_v29 = vmax.f32 %v2723_v40, 0.0 }
 0x462   :  { %v2644_v56 = vpop.f32.mrf.mxu0 }
 0x463   :  { %v23856_v13 = vmax.f32 %v2722_v24, 0.0  ;;  %v2725_v53 = vadd.f32 %v23850_v55, %v2706_v6  ;;  %v2705_v30 = vadd.f32 %v2644_v56, %v2479_v8  ;;  %v2765_v47 = vrot.slane %v23854_v29, 5 }
 0x464   :  { %v21042_v18 = vpop.f32.mrf.mxu0  ;;  %v2509_v24 = vadd.f32 %v2508_v15, %v23837_v63  ;;  %v2524_v63 = vadd.f32 %v21026_v1, %v23839_v48  ;;  %v2519_v48 = vadd.f32 %v2518_v33, %v23841_v25  ;;  %v2528_v1 = vpop.f32.mrf.mxu1 }
 0x465   :  { %v2708_v7 = vadd.f32 %v21042_v18, %v2494_v5  ;;  %21059 = vmatprep.mubr.msk.f32.mxu1 %vm347_vm2, %v23856_v13  ;;  %v2764_v43 = vrot.slane %v23856_v13, 5  ;;  %v23866_v39 = vmax.f32 %v2725_v53, 0.0  ;;  %v2724_v19 = vadd.f32 %v23850_v55, %v2705_v30 }
 0x466   :  { %v2654_v59 = vpop.f32.mrf.mxu0  ;;  %21060 = vmatmul.mubr.msk.f32.vlgmr.msra.gmra.mxu1 %vm347_vm2, %v23854_v29 }
 0x467   :  { %v2727_v62 = vadd.f32 %v23850_v55, %v2708_v7  ;;  %v2707_v60 = vadd.f32 %v2654_v59, %v2489_v32  ;;  %21106 = vmatpush3.msra.mxu1 %v3154_v36  ;;  %v23872_v42 = vmax.f32 %v2724_v19, 0.0  ;;  %v2792_v4 = vsel %vm282_vm3, 0.0, %v2764_v43 }
 0x468   :  { %v21045_v26 = vpop.f32.mrf.mxu0  ;;  %v2766_v46 = vsel %vm282_vm3, %v2764_v43, %v2765_v47  ;;  %21107 = vmatprep.subr.mxu1 %v3153_v12  ;;  %21084 = vmatprep.mubr.msk.f32.mxu0 %vm347_vm2, %v2792_v4  ;;  %v2769_v0 = vrot.slane %v23866_v39, 5 }
 0x469   :  { %v2726_v44 = vadd.f32 %v23850_v55, %v2707_v60  ;;  %v2710_v9 = vadd.f32 %v21045_v26, %v2504_v20  ;;  %21108 = vmatpush3.msra.mxu1 %v3153_v12  ;;  %v23879_v54 = vmax.f32 %v2727_v62, 0.0  ;;  %21062 = vmatprep.mubr.msk.f32.mxu1 %vm347_vm2, %v23872_v42  ;;  %v2767_v38 = vrot.slane %v23872_v42, 5 }
 0x46a   :  { %21085 = vmatmul.mubr.msk.f32.vlgmr.msra.gmra.mxu0 %vm347_vm2, %v2766_v46  ;;  %v2664_v36 = vpop.f32.mrf.mxu0  ;;  %21063 = vmatmul.mubr.msk.f32.gmra.mxu1 %vm347_vm2, %v23866_v39  ;;  %v2534_v60 = vadd.f32 %v21029_v34, %v23843_v22 }
 0x46b   :  { %v23886_v57 = vmax.f32 %v2726_v44, 0.0  ;;  %v2729_v40 = vadd.f32 %v23850_v55, %v2710_v9  ;;  %v2709_v50 = vadd.f32 %v2664_v36, %v2499_v3  ;;  %v2768_v23 = vsel %vm282_vm3, %v2765_v47, %v2767_v38 }
 0x46c   :  { %v21048_v35 = vpop.f32.mrf.mxu0  ;;  %v2770_v61 = vsel %vm282_vm3, %v2767_v38, %v2769_v0  ;;  %21087 = vmatprep.mubr.msk.f32.mxu0 %vm347_vm2, %v2768_v23  ;;  %v2773_v8 = vrot.slane %v23879_v54, 5  ;;  %v2529_v3 = vadd.f32 %v2528_v1, %v23845_v2 }
 0x46d   :  { %v2712_v6 = vadd.f32 %v21048_v35, %v2514_v58  ;;  %21065 = vmatprep.mubr.msk.f32.mxu1 %vm347_vm2, %v23886_v57  ;;  %v2771_v52 = vrot.slane %v23886_v57, 5  ;;  %v23899_v56 = vmax.f32 %v2729_v40, 0.0  ;;  %v2728_v5 = vadd.f32 %v23850_v55, %v2709_v50 }
 0x46e   :  { %21088 = vmatmul.mubr.msk.f32.gmra.mxu0 %vm347_vm2, %v2770_v61  ;;  %v2674_v53 = vpop.f32.mrf.mxu0  ;;  %21066 = vmatmul.mubr.msk.f32.gmra.mxu1 %vm347_vm2, %v23879_v54 }
 0x46f   :  { %v2731_v15 = vadd.f32 %v23850_v55, %v2712_v6  ;;  %v2711_v30 = vadd.f32 %v2674_v53, %v2509_v24  ;;  %v23907_v18 = vmax.f32 %v2728_v5, 0.0  ;;  %v2772_v7 = vsel %vm282_vm3, %v2769_v0, %v2771_v52 }
 0x470   :  { %v21051_v32 = vpop.f32.mrf.mxu0  ;;  %v2774_v43 = vsel %vm282_vm3, %v2771_v52, %v2773_v8  ;;  %21090 = vmatprep.mubr.msk.f32.mxu0 %vm347_vm2, %v2772_v7  ;;  %v2777_v19 = vrot.slane %v23899_v56, 5 }
 0x471   :  { %v2730_v12 = vadd.f32 %v23850_v55, %v2711_v30  ;;  %v2714_v47 = vadd.f32 %v21051_v32, %v2524_v63  ;;  %v23915_v59 = vmax.f32 %v2731_v15, 0.0  ;;  %21068 = vmatprep.mubr.msk.f32.mxu1 %vm347_vm2, %v23907_v18  ;;  %v2775_v62 = vrot.slane %v23907_v18, 5 }
 0x472   :  { %21091 = vmatmul.mubr.msk.f32.gmra.mxu0 %vm347_vm2, %v2774_v43  ;;  %v2684_v20 = vpop.f32.mrf.mxu0  ;;  %21069 = vmatmul.mubr.msk.f32.gmra.mxu1 %vm347_vm2, %v23899_v56  ;;  %v2796_v30 = vrot.slane %v23872_v42, 3  ;;  %v2800_v43 = vrot.slane %v23886_v57, 3  ;;  %v2804_v1 = vrot.slane %v23907_v18, 3  ;;  %v2806_v57 = vrot.slane %v23899_v56, 3 }
 0x473   :  { %v23922_v26 = vmax.f32 %v2730_v12, 0.0  ;;  %v2733_v4 = vadd.f32 %v23850_v55, %v2714_v47  ;;  %v2713_v25 = vadd.f32 %v2684_v20, %v2519_v48  ;;  %v2776_v44 = vsel %vm282_vm3, %v2773_v8, %v2775_v62 }
 0x474   :  { %v21054_v46 = vpop.f32.mrf.mxu0  ;;  %v2778_v9 = vsel %vm282_vm3, %v2775_v62, %v2777_v19  ;;  %21093 = vmatprep.mubr.msk.f32.mxu0 %vm347_vm2, %v2776_v44  ;;  %v2781_v0 = vrot.slane %v23915_v59, 5  ;;  %v2793_v8 = vrot.slane %v23856_v13, 3  ;;  %v2802_v47 = vrot.slane %v23879_v54, 3 }
 0x475   :  { %v2716_v33 = vadd.f32 %v21054_v46, %v2534_v60  ;;  %21071 = vmatprep.mubr.msk.f32.mxu1 %vm347_vm2, %v23922_v26  ;;  %v2779_v22 = vrot.slane %v23922_v26, 5  ;;  %v23935_v36 = vmax.f32 %v2733_v4, 0.0  ;;  %v2732_v38 = vadd.f32 %v23850_v55, %v2713_v25 }
 0x476   :  { %21094 = vmatmul.mubr.msk.f32.gmra.mxu0 %vm347_vm2, %v2778_v9  ;;  %v2694_v58 = vpop.f32.mrf.mxu0  ;;  %21072 = vmatmul.mubr.msk.f32.gmra.mxu1 %vm347_vm2, %v23915_v59  ;;  %v2808_v20 = vrot.slane %v23922_v26, 3  ;;  %v2807_v54 = vsel %vm312_vm4, %v2804_v1, %v2806_v57  ;;  %v2810_v18 = vrot.slane %v23915_v59, 3 }
 0x477   :  { %v2735_v40 = vadd.f32 %v23850_v55, %v2716_v33  ;;  %v2715_v2 = vadd.f32 %v2694_v58, %v2529_v3  ;;  %v2746_v50 = vmax.f32 %v2732_v38, 0.0  ;;  %v2780_v35 = vsel %vm282_vm3, %v2777_v19, %v2779_v22  ;;  %v3441_v33 = vld [vmem:[%s27932_s0 + $0x120] sm:$0xff]  ;;  %v3770_v38 = vld [vmem:[%s27932_s0 + $0x130] sm:$0xff] }
 0x478   :  { %v2782_v23 = vsel %vm282_vm3, %v2779_v22, %v2781_v0  ;;  %21096 = vmatprep.mubr.msk.f32.mxu0 %vm347_vm2, %v2780_v35  ;;  %v2785_v6 = vrot.slane %v23935_v36, 5  ;;  %v2805_v19 = vsel %vm312_vm4, %v2802_v47, %v2804_v1  ;;  %v2809_v62 = vsel %vm312_vm4, %v2806_v57, %v2808_v20  ;;  %21130 = vmatprep.subr.mxu0 %v3441_v33  ;;  %v3440_v22 = vld [vmem:[%s27932_s0 + $0x118] sm:$0xff] }
 0x479   :  { %v2749_v61 = vmax.f32 %v2735_v40, 0.0  ;;  %v2734_v24 = vadd.f32 %v23850_v55, %v2715_v2  ;;  %21074 = vmatprep.mubr.msk.f32.mxu1 %vm347_vm2, %v2746_v50  ;;  %v2783_v52 = vrot.slane %v2746_v50, 5  ;;  %v2794_v55 = vrot.slane %v23854_v29, 3  ;;  %21131 = vmatpush3.msra.mxu0 %v3441_v33 }
 0x47a   :  { %21097 = vmatmul.mubr.msk.f32.gmra.mxu0 %vm347_vm2, %v2782_v23  ;;  %21075 = vmatmul.mubr.msk.f32.gmra.mxu1 %vm347_vm2, %v23935_v36  ;;  %v2798_v29 = vrot.slane %v23866_v39, 3  ;;  %v2803_v39 = vsel %vm312_vm4, %v2800_v43, %v2802_v47  ;;  %v2812_v60 = vrot.slane %v2746_v50, 3  ;;  %v2811_v4 = vsel %vm312_vm4, %v2808_v20, %v2810_v18 }
 0x47b   :  { %v2748_v34 = vmax.f32 %v2734_v24, 0.0  ;;  %v2784_v5 = vsel %vm282_vm3, %v2781_v0, %v2783_v52  ;;  %v2786_v53 = vsel %vm282_vm3, %v2783_v52, %v2785_v6  ;;  %v2789_v63 = vrot.slane %v2749_v61, 5  ;;  %21132 = vmatprep.subr.mxu0 %v3440_v22  ;;  %v3439_v0 = vld [vmem:[%s27932_s0 + $0x110] sm:$0xff] }
 0x47c   :  { %21099 = vmatprep.mubr.msk.f32.mxu0 %vm347_vm2, %v2784_v5  ;;  %v2795_v13 = vsel %vm312_vm4, %v2793_v8, %v2794_v55  ;;  %v2797_v42 = vsel %vm312_vm4, %v2794_v55, %v2796_v30  ;;  %v2799_v12 = vsel %vm312_vm4, %v2796_v30, %v2798_v29  ;;  %v2801_v48 = vsel %vm312_vm4, %v2798_v29, %v2800_v43 }
 0x47d   :  { %21077 = vmatprep.mubr.msk.f32.mxu1 %vm347_vm2, %v2748_v34  ;;  %v2787_v15 = vrot.slane %v2748_v34, 5  ;;  %v2814_v56 = vrot.slane %v23935_v36, 3  ;;  %v2813_v26 = vsel %vm312_vm4, %v2810_v18, %v2812_v60  ;;  %v2816_v25 = vrot.slane %v2748_v34, 3  ;;  %21133 = vmatpush3.msra.mxu0 %v3440_v22  ;;  %v3438_v36 = vld [vmem:[%s27932_s0 + $0x108] sm:$0xff] }
 0x47e   :  { %21100 = vmatmul.mubr.msk.f32.gmra.mxu0 %vm347_vm2, %v2786_v53  ;;  %21078 = vmatmul.mubr.msk.f32.gmra.mxu1 %vm347_vm2, %v2749_v61  ;;  %v2818_v59 = vrot.slane %v2749_v61, 3 }
 0x47f   :  { %v2788_v32 = vsel %vm282_vm3, %v2785_v6, %v2787_v15  ;;  %v2790_v7 = vsel %vm282_vm3, %v2787_v15, %v2789_v63  ;;  %21109 = vmatprep.mubr.msk.f32.mxu1 %vm347_vm2, %v2795_v13  ;;  %v2815_v46 = vsel %vm312_vm4, %v2812_v60, %v2814_v56  ;;  %v2817_v44 = vsel %vm312_vm4, %v2814_v56, %v2816_v25 }
 0x480   :  { %21102 = vmatprep.mubr.msk.f32.mxu0 %vm347_vm2, %v2788_v32  ;;  %v2819_v9 = vsel %vm312_vm4, %v2816_v25, %v2818_v59  ;;  %v2821_v3 = vsel %vm341_vm5, %v2818_v59, 0.0  ;;  %21155 = vmatprep.subr.mxu1 %v3439_v0 }
 0x481   :  { %21180 = vmatprep.subr.mxu0 %v3770_v38 }
 0x482   :  { %21103 = vmatmul.mubr.msk.f32.gmra.mxu0 %vm347_vm2, %v2790_v7  ;;  %21110 = vmatmul.mubr.msk.f32.vlgmr.msra.gmra.mxu1 %vm347_vm2, %v2797_v42 }
 0x483   :  { %21112 = vmatprep.mubr.msk.f32.mxu1 %vm347_vm2, %v2799_v12  ;;  %21156 = vmatpush3.msra.mxu1 %v3439_v0  ;;  %v24030_v12 = vld [vmem:[%s27932_s0 + $0x139] ss:$0 sm:$0xff]  ;;  %v3769_v0 = vld [vmem:[%s27932_s0 + $0x128] sm:$0xff] }
 0x484   :  { %21157 = vmatprep.subr.mxu1 %v3438_v36 }
 0x485   :  { %21158 = vmatpush3.msra.mxu1 %v3438_v36 }
 0x486   :  { %21113 = vmatmul.mubr.msk.f32.gmra.mxu1 %vm347_vm2, %v2801_v48 }
 0x487   :  { %21115 = vmatprep.mubr.msk.f32.mxu1 %vm347_vm2, %v2803_v39 }
 0x48a   :  { %21116 = vmatmul.mubr.msk.f32.gmra.mxu1 %vm347_vm2, %v2805_v19 }
 0x48b   :  { %21118 = vmatprep.mubr.msk.f32.mxu1 %vm347_vm2, %v2807_v54 }
 0x48e   :  { %21119 = vmatmul.mubr.msk.f32.gmra.mxu1 %vm347_vm2, %v2809_v62 }
 0x48f   :  { %21121 = vmatprep.mubr.msk.f32.mxu1 %vm347_vm2, %v2811_v4 }
 0x492   :  { %21122 = vmatmul.mubr.msk.f32.gmra.mxu1 %vm347_vm2, %v2813_v26 }
 0x493   :  { %21124 = vmatprep.mubr.msk.f32.mxu1 %vm347_vm2, %v2815_v46 }
 0x496   :  { %21125 = vmatmul.mubr.msk.f32.gmra.mxu1 %vm347_vm2, %v2817_v44 }
 0x497   :  { %21127 = vmatprep.mubr.msk.f32.mxu1 %vm347_vm2, %v2819_v9 }
 0x49a   :  { %21128 = vmatmul.mubr.msk.f32.gmra.mxu1 %vm347_vm2, %v2821_v3 }
 0x526   :  { %v21061_v58 = vpop.f32.mrf.mxu1 }
 0x528   :  { %v2920_v40 = vpop.f32.mrf.mxu1 }
 0x52a   :  { %v21086_v2 = vpop.f32.mrf.mxu0  ;;  %v21064_v50 = vpop.f32.mrf.mxu1 }
 0x52b   :  { %v3090_v42 = vadd.f32 %v21086_v2, %v21061_v58 }
 0x52c   :  { %v3084_v35 = vpop.f32.mrf.mxu0  ;;  %v2930_v23 = vpop.f32.mrf.mxu1 }
 0x52d   :  { %v3085_v47 = vadd.f32 %v3084_v35, %v2920_v40 }
 0x52e   :  { %v21089_v61 = vpop.f32.mrf.mxu0  ;;  %v21067_v24 = vpop.f32.mrf.mxu1 }
 0x52f   :  { %v3100_v57 = vadd.f32 %v21089_v61, %v21064_v50 }
 0x530   :  { %v3094_v6 = vpop.f32.mrf.mxu0  ;;  %v2940_v52 = vpop.f32.mrf.mxu1 }
 0x531   :  { %v3095_v60 = vadd.f32 %v3094_v6, %v2930_v23 }
 0x532   :  { %v21070_v34 = vpop.f32.mrf.mxu1  ;;  %v21092_v8 = vpop.f32.mrf.mxu0 }
 0x533   :  { %v3110_v25 = vadd.f32 %v21092_v8, %v21067_v24 }
 0x534   :  { %v2950_v5 = vpop.f32.mrf.mxu1  ;;  %v3104_v55 = vpop.f32.mrf.mxu0 }
 0x535   :  { %v3105_v3 = vadd.f32 %v3104_v55, %v2940_v52 }
 0x536   :  { %v24015_v53 = vpop.f32.mrf.mxu1  ;;  %v21095_v30 = vpop.f32.mrf.mxu0 }
 0x537   :  { %v3120_v35 = vadd.f32 %v21095_v30, %v21070_v34 }
 0x538   :  { %v24017_v63 = vpop.f32.mrf.mxu1  ;;  %v3114_v7 = vpop.f32.mrf.mxu0 }
 0x53a   :  { %v24019_v15 = vpop.f32.mrf.mxu1  ;;  %v21098_v1 = vpop.f32.mrf.mxu0 }
 0x53c   :  { %v24021_v13 = vpop.f32.mrf.mxu1  ;;  %v3124_v4 = vpop.f32.mrf.mxu0 }
 0x53e   :  { %v24023_v32 = vpop.f32.mrf.mxu1  ;;  %v21101_v36 = vpop.f32.mrf.mxu0 }
 0x540   :  { %v24025_v29 = vpop.f32.mrf.mxu1  ;;  %v3134_v34 = vpop.f32.mrf.mxu0 }
 0x542   :  { %v21111_v43 = vpop.f32.mrf.mxu1 }
 0x543   :  { %v3320_v48 = vadd.f32 %v21111_v43, %v3090_v42  ;;  %v3115_v43 = vadd.f32 %v3114_v7, %v2950_v5 }
 0x544   :  { %v3250_v39 = vpop.f32.mrf.mxu1 }
 0x545   :  { %v3339_v19 = vadd.f32 %v24030_v12, %v3320_v48  ;;  %v3319_v20 = vadd.f32 %v3250_v39, %v3085_v47  ;;  %v3130_v39 = vadd.f32 %v21098_v1, %v24015_v53  ;;  %v21104_v1 = vpop.f32.mrf.mxu0 }
 0x546   :  { %v21114_v54 = vpop.f32.mrf.mxu1 }
 0x547   :  { %v3338_v18 = vadd.f32 %v24030_v12, %v3319_v20  ;;  %v3322_v62 = vadd.f32 %v21114_v54, %v3100_v57  ;;  %v24034_v56 = vmax.f32 %v3339_v19, 0.0 }
 0x548   :  { %v3260_v26 = vpop.f32.mrf.mxu1 }
 0x549   :  { %v24036_v46 = vmax.f32 %v3338_v18, 0.0  ;;  %v3341_v59 = vadd.f32 %v24030_v12, %v3322_v62  ;;  %v3321_v44 = vadd.f32 %v3260_v26, %v3095_v60  ;;  %v3381_v58 = vrot.slane %v24034_v56, 5 }
 0x54a   :  { %v21117_v9 = vpop.f32.mrf.mxu1  ;;  %v3125_v18 = vadd.f32 %v3124_v4, %v24017_v63  ;;  %v3140_v63 = vadd.f32 %v21101_v36, %v24019_v15  ;;  %v3135_v15 = vadd.f32 %v3134_v34, %v24021_v13  ;;  %v3144_v36 = vpop.f32.mrf.mxu0 }
 0x54b   :  { %v3324_v33 = vadd.f32 %v21117_v9, %v3110_v25  ;;  %21134 = vmatprep.mubr.msk.f32.mxu0 %vm347_vm2, %v24036_v46  ;;  %v3380_v22 = vrot.slane %v24036_v46, 5  ;;  %v24046_v40 = vmax.f32 %v3341_v59, 0.0  ;;  %v3340_v2 = vadd.f32 %v24030_v12, %v3321_v44 }
 0x54c   :  { %v3270_v50 = vpop.f32.mrf.mxu1  ;;  %21135 = vmatmul.mubr.msk.f32.vlgmr.msra.gmra.mxu0 %vm347_vm2, %v24034_v56 }
 0x54d   :  { %v3343_v23 = vadd.f32 %v24030_v12, %v3324_v33  ;;  %v3323_v61 = vadd.f32 %v3270_v50, %v3105_v3  ;;  %21181 = vmatpush3.msra.mxu0 %v3770_v38  ;;  %v24052_v24 = vmax.f32 %v3340_v2, 0.0  ;;  %v3382_v52 = vsel %vm282_vm3, %v3380_v22, %v3381_v58 }
 0x54e   :  { %v21120_v6 = vpop.f32.mrf.mxu1  ;;  %v3408_v8 = vsel %vm282_vm3, 0.0, %v3380_v22  ;;  %21182 = vmatprep.subr.mxu0 %v3769_v0  ;;  %v3385_v30 = vrot.slane %v24046_v40, 5 }
 0x54f   :  { %v3342_v55 = vadd.f32 %v24030_v12, %v3323_v61  ;;  %v3326_v42 = vadd.f32 %v21120_v6, %v3120_v35  ;;  %21159 = vmatprep.mubr.msk.f32.mxu1 %vm347_vm2, %v3408_v8  ;;  %21183 = vmatpush3.msra.mxu0 %v3769_v0  ;;  %v24059_v47 = vmax.f32 %v3343_v23, 0.0  ;;  %v3383_v48 = vrot.slane %v24052_v24, 5 }
 0x550   :  { %21137 = vmatprep.mubr.msk.f32.mxu0 %vm347_vm2, %v24052_v24  ;;  %21160 = vmatmul.mubr.msk.f32.vlgmr.msra.gmra.mxu1 %vm347_vm2, %v3382_v52  ;;  %v3280_v38 = vpop.f32.mrf.mxu1  ;;  %v3150_v61 = vadd.f32 %v21104_v1, %v24023_v32 }
 0x551   :  { %v24066_v57 = vmax.f32 %v3342_v55, 0.0  ;;  %v3345_v19 = vadd.f32 %v24030_v12, %v3326_v42  ;;  %21138 = vmatmul.mubr.msk.f32.gmra.mxu0 %vm347_vm2, %v24046_v40  ;;  %v3325_v5 = vadd.f32 %v3280_v38, %v3115_v43  ;;  %v3384_v20 = vsel %vm282_vm3, %v3381_v58, %v3383_v48 }
 0x552   :  { %v21123_v7 = vpop.f32.mrf.mxu1  ;;  %v3386_v54 = vsel %vm282_vm3, %v3383_v48, %v3385_v30  ;;  %21162 = vmatprep.mubr.msk.f32.mxu1 %vm347_vm2, %v3384_v20  ;;  %v3389_v60 = vrot.slane %v24059_v47, 5  ;;  %v3145_v43 = vadd.f32 %v3144_v36, %v24025_v29 }
 0x553   :  { %v3328_v62 = vadd.f32 %v21123_v7, %v3130_v39  ;;  %21140 = vmatprep.mubr.msk.f32.mxu0 %vm347_vm2, %v24066_v57  ;;  %v3387_v53 = vrot.slane %v24066_v57, 5  ;;  %v24079_v26 = vmax.f32 %v3345_v19, 0.0  ;;  %v3344_v25 = vadd.f32 %v24030_v12, %v3325_v5 }
 0x554   :  { %21163 = vmatmul.mubr.msk.f32.gmra.mxu1 %vm347_vm2, %v3386_v54  ;;  %v3290_v59 = vpop.f32.mrf.mxu1 }
 0x555   :  { %v3347_v4 = vadd.f32 %v24030_v12, %v3328_v62  ;;  %v3327_v44 = vadd.f32 %v3290_v59, %v3125_v18  ;;  %21141 = vmatmul.mubr.msk.f32.gmra.mxu0 %vm347_vm2, %v24059_v47  ;;  %v24087_v9 = vmax.f32 %v3344_v25, 0.0  ;;  %v3388_v33 = vsel %vm282_vm3, %v3385_v30, %v3387_v53 }
 0x556   :  { %v21126_v3 = vpop.f32.mrf.mxu1  ;;  %v3390_v22 = vsel %vm282_vm3, %v3387_v53, %v3389_v60  ;;  %21165 = vmatprep.mubr.msk.f32.mxu1 %vm347_vm2, %v3388_v33  ;;  %v3393_v2 = vrot.slane %v24079_v26, 5 }
 0x557   :  { %v3346_v0 = vadd.f32 %v24030_v12, %v3327_v44  ;;  %v3330_v58 = vadd.f32 %v21126_v3, %v3140_v63  ;;  %v24095_v50 = vmax.f32 %v3347_v4, 0.0  ;;  %21143 = vmatprep.mubr.msk.f32.mxu0 %vm347_vm2, %v24087_v9  ;;  %v3391_v23 = vrot.slane %v24087_v9, 5 }
 0x558   :  { %21166 = vmatmul.mubr.msk.f32.gmra.mxu1 %vm347_vm2, %v3390_v22  ;;  %v3300_v35 = vpop.f32.mrf.mxu1  ;;  %v3412_v44 = vrot.slane %v24052_v24, 3  ;;  %v3416_v22 = vrot.slane %v24066_v57, 3  ;;  %v3422_v57 = vrot.slane %v24079_v26, 3 }
 0x559   :  { %v24102_v6 = vmax.f32 %v3346_v0, 0.0  ;;  %v3349_v52 = vadd.f32 %v24030_v12, %v3330_v58  ;;  %21144 = vmatmul.mubr.msk.f32.gmra.mxu0 %vm347_vm2, %v24079_v26  ;;  %v3329_v13 = vadd.f32 %v3300_v35, %v3135_v15  ;;  %v3392_v55 = vsel %vm282_vm3, %v3389_v60, %v3391_v23 }
 0x55a   :  { %v21129_v8 = vpop.f32.mrf.mxu1  ;;  %v3394_v42 = vsel %vm282_vm3, %v3391_v23, %v3393_v2  ;;  %21168 = vmatprep.mubr.msk.f32.mxu1 %vm347_vm2, %v3392_v55  ;;  %v3397_v30 = vrot.slane %v24095_v50, 5  ;;  %v3409_v60 = vrot.slane %v24036_v46, 3  ;;  %v3418_v58 = vrot.slane %v24059_v47, 3 }
 0x55b   :  { %v3332_v34 = vadd.f32 %v21129_v8, %v3150_v61  ;;  %21146 = vmatprep.mubr.msk.f32.mxu0 %vm347_vm2, %v24102_v6  ;;  %v3395_v32 = vrot.slane %v24102_v6, 5  ;;  %v24115_v38 = vmax.f32 %v3349_v52, 0.0  ;;  %v3348_v48 = vadd.f32 %v24030_v12, %v3329_v13 }
 0x55c   :  { %21169 = vmatmul.mubr.msk.f32.gmra.mxu1 %vm347_vm2, %v3394_v42  ;;  %v3310_v39 = vpop.f32.mrf.mxu1  ;;  %v3420_v15 = vrot.slane %v24087_v9, 3  ;;  %v3426_v9 = vrot.slane %v24095_v50, 3 }
 0x55d   :  { %v3351_v19 = vadd.f32 %v24030_v12, %v3332_v34  ;;  %v3331_v29 = vadd.f32 %v3310_v39, %v3145_v43  ;;  %21147 = vmatmul.mubr.msk.f32.gmra.mxu0 %vm347_vm2, %v24095_v50  ;;  %v3362_v5 = vmax.f32 %v3348_v48, 0.0  ;;  %v3396_v7 = vsel %vm282_vm3, %v3393_v2, %v3395_v32  ;;  %v3999_v34 = vld [vmem:[%s27932_s0 + $0x158] sm:$0xff]  ;;  %v4533_v48 = vld [vmem:[%s27932_s0 + $0x1b0] sm:$0xff] }
 0x55e   :  { %v3398_v20 = vsel %vm282_vm3, %v3395_v32, %v3397_v30  ;;  %21171 = vmatprep.mubr.msk.f32.mxu1 %vm347_vm2, %v3396_v7  ;;  %v3401_v62 = vrot.slane %v24115_v38, 5  ;;  %v3424_v2 = vrot.slane %v24102_v6, 3  ;;  %v3421_v35 = vsel %vm312_vm4, %v3418_v58, %v3420_v15 }
 0x55f   :  { %v3365_v54 = vmax.f32 %v3351_v19, 0.0  ;;  %v3350_v18 = vadd.f32 %v24030_v12, %v3331_v29  ;;  %21149 = vmatprep.mubr.msk.f32.mxu0 %vm347_vm2, %v3362_v5  ;;  %v3399_v53 = vrot.slane %v3362_v5, 5  ;;  %v3410_v12 = vrot.slane %v24034_v56, 3 }
 0x560   :  { %21172 = vmatmul.mubr.msk.f32.gmra.mxu1 %vm347_vm2, %v3398_v20  ;;  %v3414_v56 = vrot.slane %v24046_v40, 3  ;;  %v3419_v40 = vsel %vm312_vm4, %v3416_v22, %v3418_v58  ;;  %v3423_v47 = vsel %vm312_vm4, %v3420_v15, %v3422_v57  ;;  %v3428_v23 = vrot.slane %v3362_v5, 3 }
 0x561   :  { %v3364_v1 = vmax.f32 %v3350_v18, 0.0  ;;  %21150 = vmatmul.mubr.msk.f32.gmra.mxu0 %vm347_vm2, %v24115_v38  ;;  %v3400_v25 = vsel %vm282_vm3, %v3397_v30, %v3399_v53  ;;  %v3402_v59 = vsel %vm282_vm3, %v3399_v53, %v3401_v62  ;;  %v3405_v63 = vrot.slane %v3365_v54, 5  ;;  %v3998_v30 = vld [vmem:[%s27932_s0 + $0x150] sm:$0xff] }
 0x562   :  { %21174 = vmatprep.mubr.msk.f32.mxu1 %vm347_vm2, %v3400_v25  ;;  %v3411_v46 = vsel %vm312_vm4, %v3409_v60, %v3410_v12  ;;  %v3413_v24 = vsel %vm312_vm4, %v3410_v12, %v3412_v44  ;;  %v3415_v0 = vsel %vm312_vm4, %v3412_v44, %v3414_v56  ;;  %v3417_v36 = vsel %vm312_vm4, %v3414_v56, %v3416_v22 }
 0x563   :  { %21152 = vmatprep.mubr.msk.f32.mxu0 %vm347_vm2, %v3364_v1  ;;  %v3403_v4 = vrot.slane %v3364_v1, 5  ;;  %v3425_v61 = vsel %vm312_vm4, %v3422_v57, %v3424_v2  ;;  %v3427_v52 = vsel %vm312_vm4, %v3424_v2, %v3426_v9  ;;  %v3430_v26 = vrot.slane %v24115_v38, 3  ;;  %v4534_v38 = vld [vmem:[%s27932_s0 + $0x1b8] sm:$0xff] }
 0x564   :  { %21175 = vmatmul.mubr.msk.f32.gmra.mxu1 %vm347_vm2, %v3402_v59  ;;  %v3432_v6 = vrot.slane %v3364_v1, 3  ;;  %v3429_v13 = vsel %vm312_vm4, %v3426_v9, %v3428_v23  ;;  %v3434_v50 = vrot.slane %v3365_v54, 3  ;;  %v22932_v32 = vmov 0.0   ;;  %v24223_v2 = vld [vmem:[%s27932_s0 + $0x13a] ss:$0 sm:$0xff] }
 0x565   :  { %21153 = vmatmul.mubr.msk.f32.gmra.mxu0 %vm347_vm2, %v3365_v54  ;;  %v3404_v3 = vsel %vm282_vm3, %v3401_v62, %v3403_v4  ;;  %v3406_v33 = vsel %vm282_vm3, %v3403_v4, %v3405_v63  ;;  %v3431_v8 = vsel %vm312_vm4, %v3428_v23, %v3430_v26  ;;  %21205 = vmatprep.subr.mxu1 %v22932_v32 }
 0x566   :  { %21184 = vmatprep.mubr.msk.f32.mxu0 %vm347_vm2, %v3411_v46  ;;  %21177 = vmatprep.mubr.msk.f32.mxu1 %vm347_vm2, %v3404_v3  ;;  %v3433_v55 = vsel %vm312_vm4, %v3430_v26, %v3432_v6  ;;  %v3435_v42 = vsel %vm312_vm4, %v3432_v6, %v3434_v50  ;;  %v3437_v43 = vsel %vm341_vm5, %v3434_v50, 0.0 }
 0x567   :  { %21254 = vmatprep.subr.mxu0 %v22932_v32  ;;  %21206 = vmatpush3.msra.mxu1 %v3999_v34 }
 0x568   :  { %21178 = vmatmul.mubr.msk.f32.gmra.mxu1 %vm347_vm2, %v3406_v33  ;;  %21207 = vmatprep.subr.mxu1 %v22932_v32 }
 0x569   :  { %21185 = vmatmul.mubr.msk.f32.vlgmr.msra.gmra.mxu0 %vm347_vm2, %v3413_v24  ;;  %21208 = vmatpush3.msra.mxu1 %v3998_v30 }
 0x56a   :  { %21187 = vmatprep.mubr.msk.f32.mxu0 %vm347_vm2, %v3415_v0  ;;  %21212 = vmatprep.subr.mxu1 %v22932_v32 }
 0x56b   :  { %21209 = vmatprep.mubr.msk.f32.mxu1 %vm22933_vm6, %v22932_v32  ;;  %21255 = vmatpush3.msra.mxu0 %v4534_v38 }
 0x56c   :  { %21256 = vmatprep.subr.mxu0 %v22932_v32 }
 0x56d   :  { %21188 = vmatmul.mubr.msk.f32.gmra.mxu0 %vm347_vm2, %v3417_v36 }
 0x56e   :  { %21190 = vmatprep.mubr.msk.f32.mxu0 %vm347_vm2, %v3419_v40  ;;  %21257 = vmatpush3.msra.mxu0 %v4533_v48 }
 0x56f   :  { %21268 = vmatprep.subr.mxu0 %v22932_v32 }
 0x571   :  { %21191 = vmatmul.mubr.msk.f32.gmra.mxu0 %vm347_vm2, %v3421_v35 }
 0x572   :  { %21193 = vmatprep.mubr.msk.f32.mxu0 %vm347_vm2, %v3423_v47 }
 0x575   :  { %21194 = vmatmul.mubr.msk.f32.gmra.mxu0 %vm347_vm2, %v3425_v61 }
 0x576   :  { %21196 = vmatprep.mubr.msk.f32.mxu0 %vm347_vm2, %v3427_v52 }
 0x579   :  { %21197 = vmatmul.mubr.msk.f32.gmra.mxu0 %vm347_vm2, %v3429_v13 }
 0x57a   :  { %21199 = vmatprep.mubr.msk.f32.mxu0 %vm347_vm2, %v3431_v8 }
 0x57d   :  { %21200 = vmatmul.mubr.msk.f32.gmra.mxu0 %vm347_vm2, %v3433_v55 }
 0x57e   :  { %21202 = vmatprep.mubr.msk.f32.mxu0 %vm347_vm2, %v3435_v42 }
 0x581   :  { %21203 = vmatmul.mubr.msk.f32.gmra.mxu0 %vm347_vm2, %v3437_v43 }
 0x582   :  { %21258 = vmatprep.mubr.msk.f32.mxu0 %vm22933_vm6, %v22932_v32 }
 0x60c   :  { %v21136_v39 = vpop.f32.mrf.mxu0 }
 0x60e   :  { %v3536_v19 = vpop.f32.mrf.mxu0 }
 0x610   :  { %v21161_v29 = vpop.f32.mrf.mxu1 }
 0x611   :  { %v21139_v5 = vpop.f32.mrf.mxu0  ;;  %v3706_v24 = vadd.f32 %v21161_v29, %v21136_v39 }
 0x612   :  { %v3700_v7 = vpop.f32.mrf.mxu1 }
 0x613   :  { %v3546_v20 = vpop.f32.mrf.mxu0  ;;  %v3701_v0 = vadd.f32 %v3700_v7, %v3536_v19  ;;  %v3997_v19 = vld [vmem:[%s27932_s0 + $0x148] sm:$0xff] }
 0x614   :  { %v21164_v54 = vpop.f32.mrf.mxu1 }
 0x615   :  { %v21142_v18 = vpop.f32.mrf.mxu0  ;;  %v3716_v36 = vadd.f32 %v21164_v54, %v21139_v5 }
 0x616   :  { %v3710_v62 = vpop.f32.mrf.mxu1 }
 0x617   :  { %v3556_v53 = vpop.f32.mrf.mxu0  ;;  %v3711_v47 = vadd.f32 %v3710_v62, %v3546_v20 }
 0x618   :  { %v21167_v60 = vpop.f32.mrf.mxu1 }
 0x619   :  { %v24202_v1 = vpop.f32.mrf.mxu0  ;;  %v3726_v20 = vadd.f32 %v21167_v60, %v21142_v18  ;;  %v4147_v18 = vld [vmem:[%s27932_s0 + $0x168] sm:$0xff] }
 0x61a   :  { %v3720_v12 = vpop.f32.mrf.mxu1 }
 0x61b   :  { %v24204_v25 = vpop.f32.mrf.mxu0  ;;  %v3721_v50 = vadd.f32 %v3720_v12, %v3556_v53 }
 0x61c   :  { %v24210_v44 = vpop.f32.mrf.mxu1 }
 0x61d   :  { %v21148_v59 = vpop.f32.mrf.mxu0 }
 0x61e   :  { %v24216_v33 = vpop.f32.mrf.mxu1 }
 0x61f   :  { %v24206_v63 = vpop.f32.mrf.mxu0 }
 0x620   :  { %v21173_v58 = vpop.f32.mrf.mxu1 }
 0x621   :  { %v24208_v4 = vpop.f32.mrf.mxu0 }
 0x622   :  { %v24226_v61 = vpop.f32.mrf.mxu1 }
 0x623   :  { %v24212_v46 = vpop.f32.mrf.mxu0 }
 0x624   :  { %v21176_v43 = vpop.f32.mrf.mxu1 }
 0x625   :  { %v24214_v3 = vpop.f32.mrf.mxu0 }
 0x626   :  { %v3750_v54 = vpop.f32.mrf.mxu1 }
 0x627   :  { %v24218_v56 = vpop.f32.mrf.mxu0 }
 0x629   :  { %v21186_v22 = vpop.f32.mrf.mxu0 }
 0x62a   :  { %v3936_v40 = vadd.f32 %v21186_v22, %v3706_v24  ;;  %v3746_v22 = vadd.f32 %v21173_v58, %v21148_v59  ;;  %v4146_v58 = vld [vmem:[%s27932_s0 + $0x160] sm:$0xff] }
 0x62b   :  { %v3866_v15 = vpop.f32.mrf.mxu0 }
 0x62c   :  { %v3935_v57 = vadd.f32 %v3866_v15, %v3701_v0  ;;  %v3955_v26 = vadd.f32 %v24223_v2, %v3936_v40  ;;  %v4686_v15 = vld [vmem:[%s27932_s0 + $0x1d8] sm:$0xff]  ;;  %v21179_v40 = vpop.f32.mrf.mxu1 }
 0x62d   :  { %v21189_v35 = vpop.f32.mrf.mxu0 }
 0x62e   :  { %v3954_v9 = vadd.f32 %v24223_v2, %v3935_v57  ;;  %v3938_v23 = vadd.f32 %v21189_v35, %v3716_v36  ;;  %v3969_v38 = vmax.f32 %v3955_v26, 0.0 }
 0x62f   :  { %v3876_v52 = vpop.f32.mrf.mxu0 }
 0x630   :  { %v3968_v6 = vmax.f32 %v3954_v9, 0.0  ;;  %v3937_v13 = vadd.f32 %v3876_v52, %v3711_v47  ;;  %v3957_v42 = vadd.f32 %v24223_v2, %v3938_v23  ;;  %v24250_v24 = vadd.f32 %v3969_v38, %v23647_v16 }
 0x631   :  { %v21192_v8 = vpop.f32.mrf.mxu0  ;;  %v3756_v47 = vadd.f32 %v21176_v43, %v24208_v4 }
 0x632   :  { %v3982_v55 = vadd.f32 %v3968_v6, %v23650_v11  ;;  %v3956_v34 = vadd.f32 %v24223_v2, %v3937_v13  ;;  %v3971_v7 = vmax.f32 %v3957_v42, 0.0  ;;  %v3996_v11 = vld [vmem:[%s27932_s0 + $0x140] sm:$0xff]  ;;  %v3940_v60 = vadd.f32 %v21192_v8, %v3726_v20 }
 0x633   :  { %v3886_v30 = vpop.f32.mrf.mxu0  ;;  %v4151_v9 = vrot.slane %v24250_v24, 6  ;;  %v3751_v6 = vadd.f32 %v3750_v54, %v24212_v46  ;;  %v3731_v54 = vadd.f32 %v24216_v33, %v24204_v25 }
 0x634   :  { %v4001_v48 = vrot.slane %v3982_v55, 3  ;;  %v3939_v39 = vadd.f32 %v3886_v30, %v3721_v50  ;;  %v3970_v29 = vmax.f32 %v3956_v34, 0.0  ;;  %v4150_v36 = vrot.slane %v3982_v55, 6  ;;  %v4227_v50 = vld [vmem:[%s27932_s0 + $0x178] sm:$0xff] }
 0x635   :  { %v24235_v5 = vpop.f32.mrf.mxu0  ;;  %v24261_v59 = vadd.f32 %v3971_v7, %v23660_v31  ;;  %v4685_v31 = vld [vmem:[%s27932_s0 + $0x1d0] sm:$0xff]  ;;  %v3959_v23 = vadd.f32 %v24223_v2, %v3940_v60  ;;  %v4841_v34 = vld [vmem:[%s27932_s0 + $0x1f8] sm:$0xff]  ;;  %v3766_v30 = vadd.f32 %v21179_v40, %v24214_v3 }
 0x636   :  { %21210 = vmatmul.mubr.msk.f32.vlgmr.msra.gmra.mxu1 %vm347_vm2, %v4001_v48  ;;  %v24242_v62 = vadd.f32 %v3970_v29, %v23667_v17  ;;  %v3958_v53 = vadd.f32 %v24223_v2, %v3939_v39  ;;  %v4152_v4 = vsel %vm4149_vm7, %v4150_v36, %v4151_v9  ;;  %v4226_v48 = vld [vmem:[%s27932_s0 + $0x170] sm:$0xff] }
 0x637   :  { %v24245_v12 = vpop.f32.mrf.mxu0  ;;  %21213 = vmatpush3.msra.mxu1 %v3997_v19  ;;  %21216 = vmatprep.mubr.msk.f32.mxu1 %vm22933_vm6, %v22932_v32  ;;  %v4687_v13 = vrot.slane %v24261_v59, 3  ;;  %v3973_v39 = vmax.f32 %v3959_v23, 0.0  ;;  %v4840_v3 = vld [vmem:[%s27932_s0 + $0x1f0] sm:$0xff] }
 0x638   :  { %21214 = vmatprep.subr.mxu1 %v22932_v32  ;;  %v4535_v17 = vrot.slane %v24242_v62, 5  ;;  %v3972_v57 = vmax.f32 %v3958_v53, 0.0  ;;  %v4228_v53 = vrot.slane %v24250_v24, 1 }
 0x639   :  { %v21198_v0 = vpop.f32.mrf.mxu0  ;;  %21215 = vmatpush3.msra.mxu1 %v3996_v11  ;;  %v24329_v33 = vadd.f32 %v3973_v39, %v23679_v45  ;;  %v4302_v45 = vld [vmem:[%s27932_s0 + $0x180] sm:$0xff] }
 0x63a   :  { %v3944_v16 = vadd.f32 %v21198_v0, %v3746_v22  ;;  %21217 = vmatmul.mubr.msk.f32.vlgmr.msra.gmra.mxu1 %vm347_vm2, %v3982_v55  ;;  %21219 = vmatprep.subr.mxu1 %v22932_v32  ;;  %v3760_v55 = vpop.f32.mrf.mxu1  ;;  %v24289_v42 = vadd.f32 %v3972_v57, %v23687_v21 }
 0x63b   :  { %21259 = vmatmul.mubr.msk.f32.vlgmr.msra.gmra.mxu0 %vm347_vm2, %v4535_v17  ;;  %v24269_v35 = vpop.f32.mrf.mxu0  ;;  %21220 = vmatpush3.msra.mxu1 %v4147_v18  ;;  %v3761_v29 = vadd.f32 %v3760_v55, %v24218_v56  ;;  %v4996_v9 = vrot.slane %v24329_v33, 7  ;;  %v4382_v55 = vrot.slane %v24242_v62, 7 }
 0x63c   :  { %21269 = vmatpush3.msra.mxu0 %v4686_v15  ;;  %21221 = vmatprep.subr.mxu1 %v22932_v32  ;;  %v3963_v52 = vadd.f32 %v24223_v2, %v3944_v16  ;;  %v4842_v22 = vrot.slane %v24289_v42, 1  ;;  %v3941_v15 = vadd.f32 %v24245_v12, %v3731_v54  ;;  %v3736_v16 = vadd.f32 %v24210_v44, %v24202_v1 }
 0x63d   :  { %21270 = vmatprep.subr.mxu0 %v22932_v32  ;;  %v21201_v26 = vpop.f32.mrf.mxu0  ;;  %21222 = vmatpush3.msra.mxu1 %v4146_v58  ;;  %v4995_v12 = vrot.slane %v24289_v42, 7 }
 0x63e   :  { %v3946_v8 = vadd.f32 %v21201_v26, %v3756_v47  ;;  %21223 = vmatprep.mubr.msk.f32.mxu1 %vm22933_vm6, %v22932_v32  ;;  %21271 = vmatpush3.msra.mxu0 %v4685_v31  ;;  %v3977_v43 = vmax.f32 %v3963_v52, 0.0  ;;  %v4304_v47 = vrot.slane %v24250_v24, 4  ;;  %v3960_v26 = vadd.f32 %v24223_v2, %v3941_v15 }
 0x63f   :  { %21272 = vmatprep.mubr.msk.f32.mxu0 %vm22933_vm6, %v22932_v32  ;;  %21224 = vmatmul.mubr.msk.f32.vlgmr.msra.gmra.mxu1 %vm347_vm2, %v4152_v4  ;;  %v3916_v46 = vpop.f32.mrf.mxu0  ;;  %v4997_v4 = vsel %vm341_vm5, %v4995_v12, %v4996_v9  ;;  %v5762_v12 = vld [vmem:[%s27932_s0 + $0x2b8] sm:$0xff]  ;;  %v5071_v9 = vld [vmem:[%s27932_s0 + $0x220] sm:$0xff] }
 0x640   :  { %v3965_v38 = vadd.f32 %v24223_v2, %v3946_v8  ;;  %21226 = vmatprep.subr.mxu1 %v22932_v32  ;;  %21273 = vmatmul.mubr.msk.f32.vlgmr.msra.gmra.mxu0 %vm347_vm2, %v4687_v13  ;;  %v3945_v21 = vadd.f32 %v3916_v46, %v3751_v6  ;;  %v24316_v18 = vadd.f32 %v3977_v43, %v23719_v27  ;;  %v4303_v27 = vld [vmem:[%s27932_s0 + $0x188] sm:$0xff]  ;;  %v4379_v6 = vld [vmem:[%s27932_s0 + $0x198] sm:$0xff] }
 0x641   :  { %21282 = vmatprep.subr.mxu0 %v22932_v32  ;;  %21227 = vmatpush3.msra.mxu1 %v4227_v50  ;;  %v21204_v19 = vpop.f32.mrf.mxu0  ;;  %v5148_v50 = vld [vmem:[%s27932_s0 + $0x238] sm:$0xff]  ;;  %v3942_v43 = vadd.f32 %v24235_v5, %v3736_v16  ;;  %v3741_v46 = vadd.f32 %v24226_v61, %v24206_v63  ;;  %v5147_v5 = vld [vmem:[%s27932_s0 + $0x230] sm:$0xff]  ;;  %v5149_v61 = vrot.slane %v24329_v33, 5  ;;  %v4764_v16 = vrot.slane %v24261_v59, 6 }
 0x642   :  { %v3979_v7 = vmax.f32 %v3965_v38, 0.0  ;;  %v3964_v11 = vadd.f32 %v24223_v2, %v3945_v21  ;;  %21283 = vmatpush3.msra.mxu0 %v4841_v34  ;;  %21228 = vmatprep.subr.mxu1 %v22932_v32  ;;  %v3948_v20 = vadd.f32 %v21204_v19, %v3766_v30  ;;  %v5992_v57 = vrot.slane %v24316_v18, 6 }
 0x643   :  { %21284 = vmatprep.subr.mxu0 %v22932_v32  ;;  %21229 = vmatpush3.msra.mxu1 %v4226_v48  ;;  %v3926_v56 = vpop.f32.mrf.mxu0  ;;  %v3974_v38 = vmax.f32 %v3960_v26, 0.0  ;;  %v4381_v21 = vrot.slane %v24250_v24, 7  ;;  %v3943_v48 = vadd.f32 %v24269_v35, %v3741_v46  ;;  %v3961_v39 = vadd.f32 %v24223_v2, %v3942_v43  ;;  %v4458_v24 = vld [vmem:[%s27932_s0 + $0x1a8] sm:$0xff]  ;;  %v5300_v35 = vld [vmem:[%s27932_s0 + $0x258] sm:$0xff] }
 0x644   :  { %v24320_v17 = vadd.f32 %v3979_v7, %v23733_v49  ;;  %v3978_v60 = vmax.f32 %v3964_v11, 0.0  ;;  %v3967_v0 = vadd.f32 %v24223_v2, %v3948_v20  ;;  %21230 = vmatprep.mubr.msk.f32.mxu1 %vm22933_vm6, %v22932_v32  ;;  %21285 = vmatpush3.msra.mxu0 %v4840_v3  ;;  %v3947_v25 = vadd.f32 %v3926_v56, %v3761_v29  ;;  %v4993_v49 = vld [vmem:[%s27932_s0 + $0x218] sm:$0xff]  ;;  %v4457_v29 = vld [vmem:[%s27932_s0 + $0x1a0] sm:$0xff]  ;;  %v5299_v11 = vld [vmem:[%s27932_s0 + $0x250] sm:$0xff] }
 0x645   :  { %21286 = vmatprep.mubr.msk.f32.mxu0 %vm22933_vm6, %v22932_v32  ;;  %21231 = vmatmul.mubr.msk.f32.vlgmr.msra.gmra.mxu1 %vm347_vm2, %v4228_v53  ;;  %v4383_v19 = vsel %vm341_vm5, %v4381_v21, %v4382_v55  ;;  %v24424_v3 = vadd.f32 %v3974_v38, %v23707_v14  ;;  %v3962_v7 = vadd.f32 %v24223_v2, %v3943_v48  ;;  %v3975_v20 = vmax.f32 %v3961_v39, 0.0  ;;  %v4609_v56 = vld [vmem:[%s27932_s0 + $0x1c0] sm:$0xff]  ;;  %v6068_v55 = vld [vmem:[%s27932_s0 + $0x2f0] sm:$0xff]  ;;  %v6221_v46 = vld [vmem:[%s27932_s0 + $0x318] sm:$0xff] }
 0x646   :  { %v24339_v36 = vadd.f32 %v3978_v60, %v23745_v28  ;;  %21233 = vmatprep.subr.mxu1 %v22932_v32  ;;  %21287 = vmatmul.mubr.msk.f32.vlgmr.msra.gmra.mxu0 %vm347_vm2, %v4842_v22  ;;  %v3981_v58 = vmax.f32 %v3967_v0, 0.0  ;;  %v3966_v40 = vadd.f32 %v24223_v2, %v3947_v25  ;;  %v4992_v28 = vld [vmem:[%s27932_s0 + $0x210] sm:$0xff]  ;;  %v6224_v31 = vrot.slane %v24320_v17, 7  ;;  %v4610_v2 = vld [vmem:[%s27932_s0 + $0x1c8] sm:$0xff]  ;;  %v5530_v39 = vld [vmem:[%s27932_s0 + $0x280] sm:$0xff] }
 0x647   :  { %21296 = vmatprep.subr.mxu0 %v22932_v32  ;;  %21234 = vmatpush3.msra.mxu1 %v4303_v27  ;;  %v4459_v14 = vrot.slane %v24242_v62, 2  ;;  %v5301_v54 = vrot.slane %v24424_v3, 3  ;;  %v3976_v53 = vmax.f32 %v3962_v7, 0.0  ;;  %v5455_v62 = vld [vmem:[%s27932_s0 + $0x278] sm:$0xff]  ;;  %v24452_v22 = vadd.f32 %v3975_v20, %v23699_v41  ;;  %v5454_v60 = vld [vmem:[%s27932_s0 + $0x270] sm:$0xff]  ;;  %v4762_v25 = vld [vmem:[%s27932_s0 + $0x1e8] sm:$0xff] }
 0x648   :  { %21297 = vmatpush3.msra.mxu0 %v4993_v49  ;;  %21235 = vmatprep.subr.mxu1 %v22932_v32  ;;  %v6223_v1 = vrot.slane %v24339_v36, 7  ;;  %v5993_v44 = vrot.slane %v24339_v36, 6  ;;  %v24362_v23 = vadd.f32 %v3981_v58, %v23751_v51  ;;  %v3980_v52 = vmax.f32 %v3966_v40, 0.0  ;;  %v4761_v27 = vld [vmem:[%s27932_s0 + $0x1e0] sm:$0xff]  ;;  %v5531_v48 = vld [vmem:[%s27932_s0 + $0x288] sm:$0xff]  ;;  %v6527_v7 = vld [vmem:[%s27932_s0 + $0x350] sm:$0xff] }
 0x649   :  { %21298 = vmatprep.subr.mxu0 %v22932_v32  ;;  %21236 = vmatpush3.msra.mxu1 %v4302_v45  ;;  %v24465_v41 = vadd.f32 %v3976_v53, %v23727_v10  ;;  %v5456_v0 = vrot.slane %v24452_v22, 1  ;;  %v5607_v10 = vld [vmem:[%s27932_s0 + $0x298] sm:$0xff]  ;;  %v4765_v49 = vrot.slane %v24289_v42, 6  ;;  %v5606_v45 = vld [vmem:[%s27932_s0 + $0x290] sm:$0xff]  ;;  %v5609_v58 = vrot.slane %v24452_v22, 7 }
 0x64a   :  { %21237 = vmatprep.mubr.msk.f32.mxu1 %vm22933_vm6, %v22932_v32  ;;  %21299 = vmatpush3.msra.mxu0 %v4992_v28  ;;  %v24372_v13 = vsel %vm341_vm5, %v6223_v1, %v6224_v31  ;;  %v24375_v51 = vsel %vm4149_vm7, %v5992_v57, %v5993_v44  ;;  %v24378_v8 = vadd.f32 %v3980_v52, %v23763_v37  ;;  %v4378_v37 = vld [vmem:[%s27932_s0 + $0x190] sm:$0xff]  ;;  %v6607_v34 = vrot.slane %v24362_v23, 6  ;;  %v4917_v28 = vld [vmem:[%s27932_s0 + $0x208] sm:$0xff]  ;;  %v4916_v57 = vld [vmem:[%s27932_s0 + $0x200] sm:$0xff] }
 0x64b   :  { %21300 = vmatprep.mubr.msk.f32.mxu0 %vm22933_vm6, %v22932_v32  ;;  %21238 = vmatmul.mubr.msk.f32.vlgmr.msra.gmra.mxu1 %vm347_vm2, %v4304_v47  ;;  %v5610_v15 = vrot.slane %v24465_v41, 7  ;;  %v4766_v40 = vsel %vm4149_vm7, %v4764_v16, %v4765_v49  ;;  %v5761_v31 = vld [vmem:[%s27932_s0 + $0x2b0] sm:$0xff]  ;;  %v4918_v1 = vrot.slane %v24289_v42, 4  ;;  %v5763_v44 = vrot.slane %v24465_v41, 5  ;;  %v5072_v47 = vld [vmem:[%s27932_s0 + $0x228] sm:$0xff]  ;;  %v5914_v42 = vld [vmem:[%s27932_s0 + $0x2d8] sm:$0xff] }
 0x64c   :  { %21240 = vmatprep.subr.mxu1 %v22932_v32  ;;  %21301 = vmatmul.mubr.msk.f32.vlgmr.msra.gmra.mxu0 %vm347_vm2, %v4997_v4  ;;  %v6606_v30 = vrot.slane %v24378_v8, 6  ;;  %v5913_v52 = vld [vmem:[%s27932_s0 + $0x2d0] sm:$0xff]  ;;  %v5073_v26 = vrot.slane %v24329_v33, 2  ;;  %v5224_v4 = vld [vmem:[%s27932_s0 + $0x248] sm:$0xff]  ;;  %v6069_v33 = vld [vmem:[%s27932_s0 + $0x2f8] sm:$0xff]  ;;  %v6070_v43 = vrot.slane %v24339_v36, 1 }
 0x64d   :  { %21310 = vmatprep.subr.mxu0 %v22932_v32  ;;  %21241 = vmatpush3.msra.mxu1 %v4379_v6  ;;  %v5915_v6 = vrot.slane %v24316_v18, 3  ;;  %v5379_v38 = vrot.slane %v24452_v22, 6  ;;  %v6529_v20 = vrot.slane %v24378_v8, 3  ;;  %v6682_v53 = vld [vmem:[%s27932_s0 + $0x370] sm:$0xff] }
 0x64e   :  { %21311 = vmatpush3.msra.mxu0 %v5148_v50  ;;  %21242 = vmatprep.subr.mxu1 %v22932_v32  ;;  %v24407_v63 = vsel %vm4149_vm7, %v6606_v30, %v6607_v34  ;;  %v5223_v50 = vld [vmem:[%s27932_s0 + $0x240] sm:$0xff]  ;;  %v5378_v34 = vrot.slane %v24424_v3, 6 }
 0x64f   :  { %21312 = vmatprep.subr.mxu0 %v22932_v32  ;;  %21243 = vmatpush3.msra.mxu1 %v4378_v37  ;;  %v5376_v37 = vld [vmem:[%s27932_s0 + $0x268] sm:$0xff]  ;;  %v5375_v30 = vld [vmem:[%s27932_s0 + $0x260] sm:$0xff] }
 0x650   :  { %21244 = vmatprep.mubr.msk.f32.mxu1 %vm22933_vm6, %v22932_v32  ;;  %21313 = vmatpush3.msra.mxu0 %v5147_v5  ;;  %v6220_v5 = vld [vmem:[%s27932_s0 + $0x310] sm:$0xff]  ;;  %v5380_v21 = vsel %vm4149_vm7, %v5378_v34, %v5379_v38 }
 0x651   :  { %21314 = vmatprep.mubr.msk.f32.mxu0 %vm22933_vm6, %v22932_v32  ;;  %21245 = vmatmul.mubr.msk.f32.vlgmr.msra.gmra.mxu1 %vm347_vm2, %v4383_v19  ;;  %v6375_v19 = vld [vmem:[%s27932_s0 + $0x330] sm:$0xff] }
 0x652   :  { %21247 = vmatprep.subr.mxu1 %v22932_v32  ;;  %21315 = vmatmul.mubr.msk.f32.vlgmr.msra.gmra.mxu0 %vm347_vm2, %v5149_v61  ;;  %v6376_v61 = vld [vmem:[%s27932_s0 + $0x338] sm:$0xff] }
 0x653   :  { %21324 = vmatprep.subr.mxu0 %v22932_v32  ;;  %21248 = vmatpush3.msra.mxu1 %v4458_v24  ;;  %v5532_v24 = vrot.slane %v24452_v22, 4  ;;  %v5990_v22 = vld [vmem:[%s27932_s0 + $0x2e8] sm:$0xff] }
 0x654   :  { %21325 = vmatpush3.msra.mxu0 %v5300_v35  ;;  %21249 = vmatprep.subr.mxu1 %v22932_v32  ;;  %v5686_v35 = vld [vmem:[%s27932_s0 + $0x2a8] sm:$0xff] }
 0x655   :  { %21326 = vmatprep.subr.mxu0 %v22932_v32  ;;  %21250 = vmatpush3.msra.mxu1 %v4457_v29  ;;  %v5685_v29 = vld [vmem:[%s27932_s0 + $0x2a0] sm:$0xff] }
 0x656   :  { %21251 = vmatprep.mubr.msk.f32.mxu1 %vm22933_vm6, %v22932_v32  ;;  %21327 = vmatpush3.msra.mxu0 %v5299_v11  ;;  %v5687_v11 = vrot.slane %v24465_v41, 2  ;;  %v6300_v41 = vld [vmem:[%s27932_s0 + $0x328] sm:$0xff] }
 0x657   :  { %21328 = vmatprep.mubr.msk.f32.mxu0 %vm22933_vm6, %v22932_v32  ;;  %21252 = vmatmul.mubr.msk.f32.vlgmr.msra.gmra.mxu1 %vm347_vm2, %v4459_v14  ;;  %v5838_v14 = vld [vmem:[%s27932_s0 + $0x2c8] sm:$0xff] }
 0x658   :  { %21261 = vmatprep.subr.mxu1 %v22932_v32  ;;  %21329 = vmatmul.mubr.msk.f32.vlgmr.msra.gmra.mxu0 %vm347_vm2, %v5301_v54  ;;  %v6683_v54 = vld [vmem:[%s27932_s0 + $0x378] sm:$0xff] }
 0x659   :  { %21338 = vmatprep.subr.mxu0 %v22932_v32  ;;  %21262 = vmatpush3.msra.mxu1 %v4610_v2  ;;  %v5837_v2 = vld [vmem:[%s27932_s0 + $0x2c0] sm:$0xff] }
 0x65a   :  { %21339 = vmatpush3.msra.mxu0 %v5455_v62  ;;  %21263 = vmatprep.subr.mxu1 %v22932_v32  ;;  %v6684_v62 = vrot.slane %v24362_v23, 1  ;;  %v5989_v23 = vld [vmem:[%s27932_s0 + $0x2e0] sm:$0xff] }
 0x65b   :  { %21340 = vmatprep.subr.mxu0 %v22932_v32  ;;  %21264 = vmatpush3.msra.mxu1 %v4609_v56  ;;  %v6145_v56 = vld [vmem:[%s27932_s0 + $0x308] sm:$0xff] }
 0x65c   :  { %21265 = vmatprep.mubr.msk.f32.mxu1 %vm22933_vm6, %v22932_v32  ;;  %21341 = vmatpush3.msra.mxu0 %v5454_v60  ;;  %v6146_v60 = vrot.slane %v24339_v36, 4  ;;  %v6301_v36 = vrot.slane %v24320_v17, 2 }
 0x65d   :  { %21342 = vmatprep.mubr.msk.f32.mxu0 %vm22933_vm6, %v22932_v32  ;;  %21266 = vmatmul.mubr.msk.f32.vlgmr.msra.gmra.mxu1 %vm347_vm2, %v24261_v59  ;;  %v5611_v59 = vsel %vm341_vm5, %v5609_v58, %v5610_v15 }
 0x65e   :  { %21275 = vmatprep.subr.mxu1 %v22932_v32  ;;  %21343 = vmatmul.mubr.msk.f32.vlgmr.msra.gmra.mxu0 %vm347_vm2, %v5456_v0  ;;  %v6452_v0 = vld [vmem:[%s27932_s0 + $0x348] sm:$0xff] }
 0x65f   :  { %21352 = vmatprep.subr.mxu0 %v22932_v32  ;;  %21276 = vmatpush3.msra.mxu1 %v4762_v25  ;;  %v6451_v25 = vld [vmem:[%s27932_s0 + $0x340] sm:$0xff] }
 0x660   :  { %21353 = vmatpush3.msra.mxu0 %v5607_v10  ;;  %21277 = vmatprep.subr.mxu1 %v22932_v32  ;;  %v6603_v10 = vld [vmem:[%s27932_s0 + $0x360] sm:$0xff] }
 0x661   :  { %21354 = vmatprep.subr.mxu0 %v22932_v32  ;;  %21278 = vmatpush3.msra.mxu1 %v4761_v27  ;;  %v6862_v27 = vld [vmem:[%s27932_s0 + $0x3a0] sm:$0xff] }
 0x662   :  { %21279 = vmatprep.mubr.msk.f32.mxu1 %vm22933_vm6, %v22932_v32  ;;  %21355 = vmatpush3.msra.mxu0 %v5606_v45 }
 0x663   :  { %21356 = vmatprep.mubr.msk.f32.mxu0 %vm22933_vm6, %v22932_v32  ;;  %21280 = vmatmul.mubr.msk.f32.vlgmr.msra.gmra.mxu1 %vm347_vm2, %v4766_v40 }
 0x664   :  { %21289 = vmatprep.subr.mxu1 %v22932_v32  ;;  %21357 = vmatmul.mubr.msk.f32.vlgmr.msra.gmra.mxu0 %vm347_vm2, %v5611_v59 }
 0x665   :  { %21366 = vmatprep.subr.mxu0 %v22932_v32  ;;  %21290 = vmatpush3.msra.mxu1 %v4917_v28 }
 0x666   :  { %21367 = vmatpush3.msra.mxu0 %v5762_v12  ;;  %21291 = vmatprep.subr.mxu1 %v22932_v32 }
 0x667   :  { %21368 = vmatprep.subr.mxu0 %v22932_v32  ;;  %21292 = vmatpush3.msra.mxu1 %v4916_v57 }
 0x668   :  { %21293 = vmatprep.mubr.msk.f32.mxu1 %vm22933_vm6, %v22932_v32  ;;  %21369 = vmatpush3.msra.mxu0 %v5761_v31 }
 0x669   :  { %21370 = vmatprep.mubr.msk.f32.mxu0 %vm22933_vm6, %v22932_v32  ;;  %21294 = vmatmul.mubr.msk.f32.vlgmr.msra.gmra.mxu1 %vm347_vm2, %v4918_v1 }
 0x66a   :  { %21303 = vmatprep.subr.mxu1 %v22932_v32  ;;  %21371 = vmatmul.mubr.msk.f32.vlgmr.msra.gmra.mxu0 %vm347_vm2, %v5763_v44 }
 0x66b   :  { %21380 = vmatprep.subr.mxu0 %v22932_v32  ;;  %21304 = vmatpush3.msra.mxu1 %v5072_v47 }
 0x66c   :  { %21381 = vmatpush3.msra.mxu0 %v5914_v42  ;;  %21305 = vmatprep.subr.mxu1 %v22932_v32 }
 0x66d   :  { %21382 = vmatprep.subr.mxu0 %v22932_v32  ;;  %21306 = vmatpush3.msra.mxu1 %v5071_v9 }
 0x66e   :  { %21307 = vmatprep.mubr.msk.f32.mxu1 %vm22933_vm6, %v22932_v32  ;;  %21383 = vmatpush3.msra.mxu0 %v5913_v52 }
 0x66f   :  { %21384 = vmatprep.mubr.msk.f32.mxu0 %vm22933_vm6, %v22932_v32  ;;  %21308 = vmatmul.mubr.msk.f32.vlgmr.msra.gmra.mxu1 %vm347_vm2, %v5073_v26 }
 0x670   :  { %21317 = vmatprep.subr.mxu1 %v22932_v32  ;;  %21385 = vmatmul.mubr.msk.f32.vlgmr.msra.gmra.mxu0 %vm347_vm2, %v5915_v6 }
 0x671   :  { %21394 = vmatprep.subr.mxu0 %v22932_v32  ;;  %21318 = vmatpush3.msra.mxu1 %v5224_v4 }
 0x672   :  { %21395 = vmatpush3.msra.mxu0 %v6069_v33  ;;  %21319 = vmatprep.subr.mxu1 %v22932_v32 }
 0x673   :  { %21396 = vmatprep.subr.mxu0 %v22932_v32  ;;  %21320 = vmatpush3.msra.mxu1 %v5223_v50 }
 0x674   :  { %21321 = vmatprep.mubr.msk.f32.mxu1 %vm22933_vm6, %v22932_v32  ;;  %21397 = vmatpush3.msra.mxu0 %v6068_v55 }
 0x675   :  { %21398 = vmatprep.mubr.msk.f32.mxu0 %vm22933_vm6, %v22932_v32  ;;  %21322 = vmatmul.mubr.msk.f32.vlgmr.msra.gmra.mxu1 %vm347_vm2, %v24424_v3  ;;  %v6528_v3 = vld [vmem:[%s27932_s0 + $0x358] sm:$0xff] }
 0x676   :  { %21331 = vmatprep.subr.mxu1 %v22932_v32  ;;  %21399 = vmatmul.mubr.msk.f32.vlgmr.msra.gmra.mxu0 %vm347_vm2, %v6070_v43 }
 0x677   :  { %21408 = vmatprep.subr.mxu0 %v22932_v32  ;;  %21332 = vmatpush3.msra.mxu1 %v5376_v37 }
 0x678   :  { %21409 = vmatpush3.msra.mxu0 %v6221_v46  ;;  %21333 = vmatprep.subr.mxu1 %v22932_v32 }
 0x679   :  { %21410 = vmatprep.subr.mxu0 %v22932_v32  ;;  %21334 = vmatpush3.msra.mxu1 %v5375_v30 }
 0x67a   :  { %21335 = vmatprep.mubr.msk.f32.mxu1 %vm22933_vm6, %v22932_v32  ;;  %21411 = vmatpush3.msra.mxu0 %v6220_v5 }
 0x67b   :  { %21412 = vmatprep.mubr.msk.f32.mxu0 %vm22933_vm6, %v22932_v32  ;;  %21336 = vmatmul.mubr.msk.f32.vlgmr.msra.gmra.mxu1 %vm347_vm2, %v5380_v21 }
 0x67c   :  { %21345 = vmatprep.subr.mxu1 %v22932_v32  ;;  %21413 = vmatmul.mubr.msk.f32.vlgmr.msra.gmra.mxu0 %vm347_vm2, %v24372_v13  ;;  %v6377_v13 = vrot.slane %v24320_v17, 5  ;;  %v6604_v17 = vld [vmem:[%s27932_s0 + $0x368] sm:$0xff] }
 0x67d   :  { %21422 = vmatprep.subr.mxu0 %v22932_v32  ;;  %21346 = vmatpush3.msra.mxu1 %v5531_v48 }
 0x67e   :  { %21423 = vmatpush3.msra.mxu0 %v6376_v61  ;;  %21347 = vmatprep.subr.mxu1 %v22932_v32 }
 0x67f   :  { %21424 = vmatprep.subr.mxu0 %v22932_v32  ;;  %21348 = vmatpush3.msra.mxu1 %v5530_v39 }
 0x680   :  { %21349 = vmatprep.mubr.msk.f32.mxu1 %vm22933_vm6, %v22932_v32  ;;  %21425 = vmatpush3.msra.mxu0 %v6375_v19 }
 0x681   :  { %21426 = vmatprep.mubr.msk.f32.mxu0 %vm22933_vm6, %v22932_v32  ;;  %21350 = vmatmul.mubr.msk.f32.vlgmr.msra.gmra.mxu1 %vm347_vm2, %v5532_v24 }
 0x682   :  { %21359 = vmatprep.subr.mxu1 %v22932_v32  ;;  %21427 = vmatmul.mubr.msk.f32.vlgmr.msra.gmra.mxu0 %vm347_vm2, %v6377_v13 }
 0x683   :  { %21436 = vmatprep.subr.mxu0 %v22932_v32  ;;  %21360 = vmatpush3.msra.mxu1 %v5686_v35 }
 0x684   :  { %21437 = vmatpush3.msra.mxu0 %v6528_v3  ;;  %21361 = vmatprep.subr.mxu1 %v22932_v32 }
 0x685   :  { %21438 = vmatprep.subr.mxu0 %v22932_v32  ;;  %21362 = vmatpush3.msra.mxu1 %v5685_v29 }
 0x686   :  { %21363 = vmatprep.mubr.msk.f32.mxu1 %vm22933_vm6, %v22932_v32  ;;  %21439 = vmatpush3.msra.mxu0 %v6527_v7 }
 0x687   :  { %21440 = vmatprep.mubr.msk.f32.mxu0 %vm22933_vm6, %v22932_v32  ;;  %21364 = vmatmul.mubr.msk.f32.vlgmr.msra.gmra.mxu1 %vm347_vm2, %v5687_v11 }
 0x688   :  { %21373 = vmatprep.subr.mxu1 %v22932_v32  ;;  %21441 = vmatmul.mubr.msk.f32.vlgmr.msra.gmra.mxu0 %vm347_vm2, %v6529_v20 }
 0x689   :  { %21450 = vmatprep.subr.mxu0 %v22932_v32  ;;  %21374 = vmatpush3.msra.mxu1 %v5838_v14 }
 0x68a   :  { %21451 = vmatpush3.msra.mxu0 %v6683_v54  ;;  %21375 = vmatprep.subr.mxu1 %v22932_v32 }
 0x68b   :  { %21452 = vmatprep.subr.mxu0 %v22932_v32  ;;  %21376 = vmatpush3.msra.mxu1 %v5837_v2 }
 0x68c   :  { %21377 = vmatprep.mubr.msk.f32.mxu1 %vm22933_vm6, %v22932_v32  ;;  %21453 = vmatpush3.msra.mxu0 %v6682_v53 }
 0x68d   :  { %21454 = vmatprep.mubr.msk.f32.mxu0 %vm22933_vm6, %v22932_v32  ;;  %21378 = vmatmul.mubr.msk.f32.vlgmr.msra.gmra.mxu1 %vm347_vm2, %v24316_v18  ;;  %v6144_v18 = vld [vmem:[%s27932_s0 + $0x300] sm:$0xff] }
 0x68e   :  { %21387 = vmatprep.subr.mxu1 %v22932_v32  ;;  %21455 = vmatmul.mubr.msk.f32.vlgmr.msra.gmra.mxu0 %vm347_vm2, %v6684_v62 }
 0x68f   :  { %21388 = vmatpush3.msra.mxu1 %v5990_v22  ;;  %21391 = vmatprep.mubr.msk.f32.mxu1 %vm22933_vm6, %v22932_v32 }
 0x690   :  { %21389 = vmatprep.subr.mxu1 %v22932_v32  ;;  %21462 = vmatprep.subr.mxu0 %v6862_v27 }
 0x691   :  { %21390 = vmatpush3.msra.mxu1 %v5989_v23  ;;  %21463 = vmatpush3.msra.mxu0 %v6862_v27 }
 0x692   :  { %21392 = vmatmul.mubr.msk.f32.vlgmr.msra.gmra.mxu1 %vm347_vm2, %v24375_v51  ;;  %21401 = vmatprep.subr.mxu1 %v22932_v32  ;;  %v6299_v51 = vld [vmem:[%s27932_s0 + $0x320] sm:$0xff] }
 0x693   :  { %21402 = vmatpush3.msra.mxu1 %v6145_v56  ;;  %21405 = vmatprep.mubr.msk.f32.mxu1 %vm22933_vm6, %v22932_v32 }
 0x694   :  { %21403 = vmatprep.subr.mxu1 %v22932_v32 }
 0x695   :  { %21404 = vmatpush3.msra.mxu1 %v6144_v18 }
 0x696   :  { %21406 = vmatmul.mubr.msk.f32.vlgmr.msra.gmra.mxu1 %vm347_vm2, %v6146_v60  ;;  %21415 = vmatprep.subr.mxu1 %v22932_v32 }
 0x697   :  { %21416 = vmatpush3.msra.mxu1 %v6300_v41  ;;  %21419 = vmatprep.mubr.msk.f32.mxu1 %vm22933_vm6, %v22932_v32 }
 0x698   :  { %21417 = vmatprep.subr.mxu1 %v22932_v32 }
 0x699   :  { %21418 = vmatpush3.msra.mxu1 %v6299_v51 }
 0x69a   :  { %21420 = vmatmul.mubr.msk.f32.vlgmr.msra.gmra.mxu1 %vm347_vm2, %v6301_v36  ;;  %21429 = vmatprep.subr.mxu1 %v22932_v32 }
 0x69b   :  { %21430 = vmatpush3.msra.mxu1 %v6452_v0  ;;  %21433 = vmatprep.mubr.msk.f32.mxu1 %vm22933_vm6, %v22932_v32 }
 0x69c   :  { %21431 = vmatprep.subr.mxu1 %v22932_v32 }
 0x69d   :  { %21432 = vmatpush3.msra.mxu1 %v6451_v25 }
 0x69e   :  { %21434 = vmatmul.mubr.msk.f32.vlgmr.msra.gmra.mxu1 %vm347_vm2, %v24378_v8  ;;  %21443 = vmatprep.subr.mxu1 %v22932_v32  ;;  %v6769_v8 = vld [vmem:[%s27933_s1] sm:$0xff] }
 0x69f   :  { %21444 = vmatpush3.msra.mxu1 %v6604_v17  ;;  %21447 = vmatprep.mubr.msk.f32.mxu1 %vm22933_vm6, %v22932_v32 }
 0x6a0   :  { %21445 = vmatprep.subr.mxu1 %v22932_v32 }
 0x6a1   :  { %21446 = vmatpush3.msra.mxu1 %v6603_v10 }
 0x6a2   :  { %21448 = vmatmul.mubr.msk.f32.vlgmr.msra.gmra.mxu1 %vm347_vm2, %v24407_v63 }
 0x6a3   :  { %21459 = vmatprep.mubr.msk.f32.mxu1 %vm6773_vm8, %v6769_v8 }
 0x6f6   :  { %v4070_v49 = vpop.f32.mrf.mxu1 }
 0x6f8   :  { %v21211_v15 = vpop.f32.mrf.mxu1 }
 0x6fa   :  { %v4142_v45 = vpop.f32.mrf.mxu1 }
 0x6fb   :  { %v4604_v16 = vpop.f32.mrf.mxu0  ;;  %v4143_v52 = vadd.f32 %v4142_v45, %v4070_v49 }
 0x6fc   :  { %v21218_v58 = vpop.f32.mrf.mxu1 }
 0x6fd   :  { %v21260_v40 = vpop.f32.mrf.mxu0 }
 0x6ff   :  { %v4221_v63 = vpop.f32.mrf.mxu1 }
 0x700   :  { %v4756_v28 = vpop.f32.mrf.mxu0  ;;  %v4225_v6 = vadd.f32 %v4221_v63, %v4143_v52 }
 0x701   :  { %v21225_v59 = vpop.f32.mrf.mxu1 }
 0x702   :  { %v21274_v12 = vpop.f32.mrf.mxu0 }
 0x705   :  { %v4297_v57 = vpop.f32.mrf.mxu1 }
 0x706   :  { %v4911_v31 = vpop.f32.mrf.mxu0  ;;  %v4301_v33 = vadd.f32 %v4297_v57, %v4225_v6 }
 0x707   :  { %v21232_v1 = vpop.f32.mrf.mxu1 }
 0x708   :  { %v21288_v44 = vpop.f32.mrf.mxu0 }
 0x70b   :  { %v4373_v47 = vpop.f32.mrf.mxu1 }
 0x70c   :  { %v5066_v42 = vpop.f32.mrf.mxu0  ;;  %v4377_v43 = vadd.f32 %v4373_v47, %v4301_v33 }
 0x70d   :  { %v21239_v9 = vpop.f32.mrf.mxu1 }
 0x70e   :  { %v21302_v26 = vpop.f32.mrf.mxu0 }
 0x711   :  { %v4452_v4 = vpop.f32.mrf.mxu1 }
 0x712   :  { %v5218_v50 = vpop.f32.mrf.mxu0  ;;  %v4456_v46 = vadd.f32 %v4452_v4, %v4377_v43 }
 0x713   :  { %v21246_v55 = vpop.f32.mrf.mxu1 }
 0x714   :  { %v21316_v37 = vpop.f32.mrf.mxu0 }
 0x717   :  { %v4528_v34 = vpop.f32.mrf.mxu1 }
 0x718   :  { %v4532_v30 = vadd.f32 %v4528_v34, %v4456_v46  ;;  %v5370_v5 = vpop.f32.mrf.mxu0 }
 0x719   :  { %v21253_v38 = vpop.f32.mrf.mxu1 }
 0x71a   :  { %v21330_v21 = vpop.f32.mrf.mxu0  ;;  %v4608_v48 = vadd.f32 %v4604_v16, %v4532_v30 }
 0x71d   :  { %v4680_v61 = vpop.f32.mrf.mxu1 }
 0x71e   :  { %v4684_v39 = vadd.f32 %v4680_v61, %v4608_v48  ;;  %v5525_v19 = vpop.f32.mrf.mxu0 }
 0x71f   :  { %v21267_v24 = vpop.f32.mrf.mxu1 }
 0x720   :  { %v21344_v13 = vpop.f32.mrf.mxu0  ;;  %v4760_v35 = vadd.f32 %v4756_v28, %v4684_v39 }
 0x723   :  { %v4835_v3 = vpop.f32.mrf.mxu1 }
 0x724   :  { %v4839_v29 = vadd.f32 %v4835_v3, %v4760_v35  ;;  %v5680_v7 = vpop.f32.mrf.mxu0 }
 0x725   :  { %v21281_v11 = vpop.f32.mrf.mxu1 }
 0x726   :  { %v21358_v20 = vpop.f32.mrf.mxu0  ;;  %v4915_v14 = vadd.f32 %v4911_v31, %v4839_v29  ;;  %v19342_v11 = vld [vmem:[%s27932_s0 + $0x380] ss:$0 sm:$0xff] }
 0x729   :  { %v4987_v54 = vpop.f32.mrf.mxu1 }
 0x72a   :  { %v4991_v2 = vadd.f32 %v4987_v54, %v4915_v14  ;;  %v5832_v53 = vpop.f32.mrf.mxu0 }
 0x72b   :  { %v21295_v62 = vpop.f32.mrf.mxu1 }
 0x72c   :  { %v21372_v22 = vpop.f32.mrf.mxu0  ;;  %v5070_v23 = vadd.f32 %v5066_v42, %v4991_v2  ;;  %v6764_v2 = vld [vmem:[%s27936_s4] sm:$0x1f] }
 0x72d   :  { %v6770_v22 = vld [vmem:[%s27933_s1 + $0x8] sm:$0x3] }
 0x72f   :  { %v5142_v56 = vpop.f32.mrf.mxu1 }
 0x730   :  { %v5146_v18 = vadd.f32 %v5142_v56, %v5070_v23  ;;  %v5984_v60 = vpop.f32.mrf.mxu0  ;;  %v6861_v23 = vld [vmem:[%s27932_s0 + $0x398] sm:$0xff]  ;;  %v6860_v56 = vld [vmem:[%s27932_s0 + $0x390] sm:$0xff] }
 0x731   :  { %v21309_v41 = vpop.f32.mrf.mxu1  ;;  %21464 = vmatprep.subr.mxu0 %v6861_v23 }
 0x732   :  { %v21386_v51 = vpop.f32.mrf.mxu0  ;;  %v5222_v36 = vadd.f32 %v5218_v50, %v5146_v18  ;;  %21465 = vmatpush3.msra.mxu0 %v6861_v23  ;;  %v6859_v18 = vld [vmem:[%s27932_s0 + $0x388] sm:$0xff]  ;;  %v6771_v41 = vld [vmem:[%s27933_s1 + $0x10] sm:$0xff] }
 0x733   :  { %21466 = vmatprep.subr.mxu0 %v6860_v56  ;;  %v6772_v51 = vld [vmem:[%s27933_s1 + $0x18] sm:$0x3] }
 0x734   :  { %21467 = vmatpush3.msra.mxu0 %v6860_v56 }
 0x735   :  { %v5294_v0 = vpop.f32.mrf.mxu1  ;;  %21468 = vmatprep.subr.mxu0 %v6859_v18 }
 0x736   :  { %v5298_v25 = vadd.f32 %v5294_v0, %v5222_v36  ;;  %v6139_v17 = vpop.f32.mrf.mxu0  ;;  %21469 = vmatpush3.msra.mxu0 %v6859_v18 }
 0x737   :  { %v21323_v10 = vpop.f32.mrf.mxu1 }
 0x738   :  { %v21400_v8 = vpop.f32.mrf.mxu0  ;;  %v5374_v27 = vadd.f32 %v5370_v5, %v5298_v25 }
 0x73b   :  { %v5449_v49 = vpop.f32.mrf.mxu1 }
 0x73c   :  { %v5453_v15 = vadd.f32 %v5449_v49, %v5374_v27  ;;  %v6294_v45 = vpop.f32.mrf.mxu0 }
 0x73d   :  { %v21337_v16 = vpop.f32.mrf.mxu1 }
 0x73e   :  { %v21414_v58 = vpop.f32.mrf.mxu0  ;;  %v5529_v40 = vadd.f32 %v5525_v19, %v5453_v15  ;;  %v24787_v15 = vld [vmem:[%s27937_s5] ss:$0 sm:$0xff] }
 0x741   :  { %v5601_v63 = vpop.f32.mrf.mxu1 }
 0x742   :  { %v5605_v28 = vadd.f32 %v5601_v63, %v5529_v40  ;;  %v6446_v59 = vpop.f32.mrf.mxu0 }
 0x743   :  { %v21351_v12 = vpop.f32.mrf.mxu1 }
 0x744   :  { %v21428_v57 = vpop.f32.mrf.mxu0  ;;  %v5684_v31 = vadd.f32 %v5680_v7, %v5605_v28  ;;  %v24819_v12 = vld [vmem:[%s27937_s5 + $0x2] ss:$0 sm:$0xff] }
 0x747   :  { %v5756_v1 = vpop.f32.mrf.mxu1 }
 0x748   :  { %v5760_v44 = vadd.f32 %v5756_v1, %v5684_v31  ;;  %v6598_v47 = vpop.f32.mrf.mxu0  ;;  %v24826_v31 = vld [vmem:[%s27937_s5 + $0x3] ss:$0 sm:$0xff] }
 0x749   :  { %v21365_v42 = vpop.f32.mrf.mxu1 }
 0x74a   :  { %v21442_v9 = vpop.f32.mrf.mxu0  ;;  %v5836_v52 = vadd.f32 %v5832_v53, %v5760_v44  ;;  %v24849_v42 = vld [vmem:[%s27937_s5 + $0x4] ss:$0 sm:$0xff] }
 0x74d   :  { %v5908_v26 = vpop.f32.mrf.mxu1 }
 0x74e   :  { %v5912_v6 = vadd.f32 %v5908_v26, %v5836_v52  ;;  %v6753_v4 = vpop.f32.mrf.mxu0  ;;  %v24857_v52 = vld [vmem:[%s27937_s5 + $0x5] ss:$0 sm:$0xff] }
 0x74f   :  { %v21379_v33 = vpop.f32.mrf.mxu1 }
 0x750   :  { %v21456_v50 = vpop.f32.mrf.mxu0  ;;  %v5988_v55 = vadd.f32 %v5984_v60, %v5912_v6  ;;  %v24879_v33 = vld [vmem:[%s27937_s5 + $0x6] ss:$0 sm:$0xff] }
 0x752   :  { %v6063_v43 = vpop.f32.mrf.mxu1 }
 0x753   :  { %v6067_v37 = vadd.f32 %v6063_v43, %v5988_v55  ;;  %v24887_v55 = vld [vmem:[%s27937_s5 + $0x7] ss:$0 sm:$0xff] }
 0x754   :  { %v21393_v46 = vpop.f32.mrf.mxu1 }
 0x755   :  { %v6143_v34 = vadd.f32 %v6139_v17, %v6067_v37  ;;  %v19345_v17 = vld [vmem:[%s27932_s0 + $0x3a8] ss:$0 sm:$0xff] }
 0x756   :  { %v6215_v30 = vpop.f32.mrf.mxu1 }
 0x757   :  { %v6219_v5 = vadd.f32 %v6215_v30, %v6143_v34 }
 0x758   :  { %v21407_v38 = vpop.f32.mrf.mxu1 }
 0x759   :  { %v6298_v21 = vadd.f32 %v6294_v45, %v6219_v5  ;;  %v24792_v45 = vld [vmem:[%s27937_s5 + $0x1] ss:$0 sm:$0xff]  ;;  %v6856_v5 = vld [vmem:[%s27933_s1 + $0x28] sm:$0x3] }
 0x75a   :  { %v6370_v48 = vpop.f32.mrf.mxu1 }
 0x75b   :  { %v6374_v61 = vadd.f32 %v6370_v48, %v6298_v21 }
 0x75c   :  { %v21421_v39 = vpop.f32.mrf.mxu1 }
 0x75d   :  { %v6450_v19 = vadd.f32 %v6446_v59, %v6374_v61  ;;  %v24912_v61 = vld [vmem:[%s27933_s1 + $0x20] sm:$0xff] }
 0x75e   :  { %v6522_v24 = vpop.f32.mrf.mxu1 }
 0x75f   :  { %v6526_v13 = vadd.f32 %v6522_v24, %v6450_v19 }
 0x760   :  { %v21435_v35 = vpop.f32.mrf.mxu1 }
 0x761   :  { %v6602_v3 = vadd.f32 %v6598_v47, %v6526_v13 }
 0x762   :  { %v6677_v29 = vpop.f32.mrf.mxu1 }
 0x763   :  { %v6681_v7 = vadd.f32 %v6677_v29, %v6602_v3 }
 0x764   :  { %v21449_v20 = vpop.f32.mrf.mxu1 }
 0x765   :  { %v6757_v14 = vadd.f32 %v6753_v4, %v6681_v7 }
 0x767   :  { %v6763_v54 = vadd.f32 %v19342_v11, %v6757_v14 }
 0x769   :  { %v6766_v53 = vrot.slane %v6763_v54, 3 }
 0x76b   :  { %v6768_v62 = vsel %vm312_vm4, %v6764_v2, %v6766_v53 }
 0x76c   :  { %21457 = vmatprep.subr.mxu1 %v6768_v62 }
 0x76d   :  { %21458 = vmatpush3.msra.mxu1 %v6768_v62 }
 0x76e   :  { %21460 = vmatmul.mubr.msk.f32.vlgmr.msra.gmra.mxu1 %vm6773_vm8, %v6770_v22 }
 0x82e   :  { %v21461_v60 = vpop.f32.mrf.mxu1 }
 0x82f   :  { %v24769_v25 = vadd.f32 %v21461_v60, %v6772_v51 }
 0x830   :  { %v6846_v36 = vpop.f32.mrf.mxu1 }
 0x831   :  { %v24767_v0 = vadd.f32 %v6846_v36, %v6771_v41 }
 0x833   :  { %21470 = vmatprep.mubr.msk.f32.mxu0 %vm6868_vm9, %v24767_v0 }
 0x834   :  { %21471 = vmatmul.mubr.msk.f32.vlgmr.msra.gmra.mxu0 %vm6868_vm9, %v24769_v25 }
 0x8f4   :  { %v21472_v10 = vpop.f32.mrf.mxu0 }
 0x8f5   :  { %v24778_v8 = vadd.f32 %v21472_v10, %v19345_v17 }
 0x8f6   :  { %v6941_v27 = vpop.f32.mrf.mxu0 }
 0x8f7   :  { %v24780_v49 = vadd.f32 %v19345_v17, %v6941_v27  ;;  %7031 = vrot.lane.b32.xlu0 %v24778_v8, %s22934_s21  ;;  %v7012_v28 = vmul.f32 %v24787_v15, %v24778_v8  ;;  %v7014_v59 = vmul.f32 %v24792_v45, %v24778_v8  ;;  %v7016_v44 = vmul.f32 %v24819_v12, %v24778_v8 }
 0x8f8   :  { %v7018_v47 = vmul.f32 %v24826_v31, %v24778_v8  ;;  %v7020_v6 = vmul.f32 %v24849_v42, %v24778_v8  ;;  %v7022_v4 = vmul.f32 %v24857_v52, %v24778_v8  ;;  %v7024_v37 = vmul.f32 %v24879_v33, %v24778_v8 }
 0x8f9   :  { %v7011_v16 = vmul.f32 %v24787_v15, %v24780_v49  ;;  %v7013_v58 = vmul.f32 %v24792_v45, %v24780_v49  ;;  %v7015_v57 = vmul.f32 %v24819_v12, %v24780_v49  ;;  %v7017_v1 = vmul.f32 %v24826_v31, %v24780_v49 }
 0x8fa   :  { %v7019_v9 = vmul.f32 %v24849_v42, %v24780_v49  ;;  %v7021_v26 = vmul.f32 %v24857_v52, %v24780_v49  ;;  %v7023_v50 = vmul.f32 %v24879_v33, %v24780_v49  ;;  %v7025_v43 = vmul.f32 %v24887_v55, %v24780_v49 }
 0x8fb   :  { %7029 = vrot.lane.b32.xlu0 %v24780_v49, %s22934_s21  ;;  %21477 = vmatprep.mubr.msk.f32.mxu1 %vm6868_vm9, %v7011_v16  ;;  %v7026_v46 = vmul.f32 %v24887_v55, %v24778_v8 }
 0x8fc   :  { %21484 = vmatprep.mubr.msk.f32.mxu0 %vm6868_vm9, %v7013_v58 }
 0x969   :  { %v7032_v40 = vpop.permute.xlu0 %7031 }
 0x96a   :  { %21473 = vmatprep.subr.msk.mxu1 %vm6868_vm9, %v7032_v40  ;;  %21480 = vmatprep.subr.msk.mxu0 %vm6868_vm9, %v7032_v40 }
 0x96b   :  { %21474 = vmatpush3.xpose.msk.msra.mxu1 %vm6868_vm9, %v7032_v40  ;;  %21481 = vmatpush3.xpose.msk.msra.mxu0 %vm6868_vm9, %v7032_v40 }
 0x96d   :  { %v7030_v63 = vpop.permute.xlu0 %7029 }
 0x96e   :  { %21475 = vmatprep.subr.msk.mxu1 %vm6868_vm9, %v7030_v63  ;;  %21482 = vmatprep.subr.msk.mxu0 %vm6868_vm9, %v7030_v63 }
 0x96f   :  { %21476 = vmatpush3.xpose.msk.msra.mxu1 %vm6868_vm9, %v7030_v63  ;;  %21483 = vmatpush3.xpose.msk.msra.mxu0 %vm6868_vm9, %v7030_v63 }
 0x970   :  { %21487 = vmatprep.subr.msk.mxu1 %vm6868_vm9, %v7032_v40  ;;  %21494 = vmatprep.subr.msk.mxu0 %vm6868_vm9, %v7032_v40 }
 0x972   :  { %21478 = vmatmul.mubr.msk.f32.vlgmr.msra.gmra.mxu1 %vm6868_vm9, %v7012_v28  ;;  %21485 = vmatmul.mubr.msk.f32.vlgmr.msra.gmra.mxu0 %vm6868_vm9, %v7014_v59 }
 0x973   :  { %21488 = vmatpush3.xpose.msk.msra.mxu1 %vm6868_vm9, %v7032_v40  ;;  %21491 = vmatprep.mubr.msk.f32.mxu1 %vm6868_vm9, %v7015_v57 }
 0x974   :  { %21495 = vmatpush3.xpose.msk.msra.mxu0 %vm6868_vm9, %v7032_v40  ;;  %21498 = vmatprep.mubr.msk.f32.mxu0 %vm6868_vm9, %v7017_v1 }
 0x975   :  { %21489 = vmatprep.subr.msk.mxu1 %vm6868_vm9, %v7030_v63  ;;  %21496 = vmatprep.subr.msk.mxu0 %vm6868_vm9, %v7030_v63 }
 0x977   :  { %21490 = vmatpush3.xpose.msk.msra.mxu1 %vm6868_vm9, %v7030_v63 }
 0x978   :  { %21497 = vmatpush3.xpose.msk.msra.mxu0 %vm6868_vm9, %v7030_v63  ;;  %21501 = vmatprep.subr.msk.mxu1 %vm6868_vm9, %v7032_v40 }
 0x979   :  { %21508 = vmatprep.subr.msk.mxu0 %vm6868_vm9, %v7032_v40 }
 0x97a   :  { %21492 = vmatmul.mubr.msk.f32.vlgmr.msra.gmra.mxu1 %vm6868_vm9, %v7016_v44 }
 0x97b   :  { %21499 = vmatmul.mubr.msk.f32.vlgmr.msra.gmra.mxu0 %vm6868_vm9, %v7018_v47  ;;  %21502 = vmatpush3.xpose.msk.msra.mxu1 %vm6868_vm9, %v7032_v40 }
 0x97c   :  { %21505 = vmatprep.mubr.msk.f32.mxu1 %vm6868_vm9, %v7019_v9  ;;  %21509 = vmatpush3.xpose.msk.msra.mxu0 %vm6868_vm9, %v7032_v40 }
 0x97d   :  { %21512 = vmatprep.mubr.msk.f32.mxu0 %vm6868_vm9, %v7021_v26  ;;  %21503 = vmatprep.subr.msk.mxu1 %vm6868_vm9, %v7030_v63 }
 0x97e   :  { %21510 = vmatprep.subr.msk.mxu0 %vm6868_vm9, %v7030_v63 }
 0x97f   :  { %21504 = vmatpush3.xpose.msk.msra.mxu1 %vm6868_vm9, %v7030_v63 }
 0x980   :  { %21511 = vmatpush3.xpose.msk.msra.mxu0 %vm6868_vm9, %v7030_v63  ;;  %21515 = vmatprep.subr.msk.mxu1 %vm6868_vm9, %v7032_v40 }
 0x981   :  { %21522 = vmatprep.subr.msk.mxu0 %vm6868_vm9, %v7032_v40 }
 0x982   :  { %21506 = vmatmul.mubr.msk.f32.vlgmr.msra.gmra.mxu1 %vm6868_vm9, %v7020_v6 }
 0x983   :  { %21513 = vmatmul.mubr.msk.f32.vlgmr.msra.gmra.mxu0 %vm6868_vm9, %v7022_v4  ;;  %21516 = vmatpush3.xpose.msk.msra.mxu1 %vm6868_vm9, %v7032_v40 }
 0x984   :  { %21519 = vmatprep.mubr.msk.f32.mxu1 %vm6868_vm9, %v7023_v50  ;;  %21523 = vmatpush3.xpose.msk.msra.mxu0 %vm6868_vm9, %v7032_v40 }
 0x985   :  { %21526 = vmatprep.mubr.msk.f32.mxu0 %vm6868_vm9, %v7025_v43  ;;  %21517 = vmatprep.subr.msk.mxu1 %vm6868_vm9, %v7030_v63 }
 0x986   :  { %21524 = vmatprep.subr.msk.mxu0 %vm6868_vm9, %v7030_v63 }
 0x987   :  { %21518 = vmatpush3.xpose.msk.msra.mxu1 %vm6868_vm9, %v7030_v63 }
 0x988   :  { %21525 = vmatpush3.xpose.msk.msra.mxu0 %vm6868_vm9, %v7030_v63 }
 0x98a   :  { %21520 = vmatmul.mubr.msk.f32.vlgmr.msra.gmra.mxu1 %vm6868_vm9, %v7024_v37 }
 0x98b   :  { %21527 = vmatmul.mubr.msk.f32.vlgmr.msra.gmra.mxu0 %vm6868_vm9, %v7026_v46 }
 0xa32   :  { %v21479_v34 = vpop.f32.mrf.mxu1  ;;  %v21486_v30 = vpop.f32.mrf.mxu0 }
 0xa33   :  { %v7686_v38 = vmul.f32 0.5, %v21479_v34  ;;  %v7688_v13 = vmul.f32 0.5, %v21486_v30 }
 0xa34   :  { %v7109_v21 = vpop.f32.mrf.mxu1  ;;  %v7190_v48 = vpop.f32.mrf.mxu0 }
 0xa35   :  { %v7685_v39 = vmul.f32 0.5, %v7109_v21  ;;  %v7687_v19 = vmul.f32 0.5, %v7190_v48  ;;  %v24914_v24 = vadd.f32 %v7686_v38, %v6856_v5  ;;  %v24928_v54 = vadd.f32 %v7688_v13, %v6856_v5 }
 0xa37   :  { %v7722_v35 = vsel %vm7721_vm10, %v24914_v24, -inf  ;;  %v24919_v3 = vadd.f32 %v7687_v19, %v24912_v61  ;;  %v24922_v29 = vadd.f32 %v7685_v39, %v24912_v61  ;;  %v7728_v62 = vsel %vm7721_vm10, %v24928_v54, -inf }
 0xa38   :  { %7723 = vmax.xlane.f32.xlu1 %v7722_v35 }
 0xa39   :  { %v7725_v7 = vsel %vm7717_vm11, %v24919_v3, -inf  ;;  %v7718_v14 = vsel %vm7717_vm11, %v24922_v29, -inf }
 0xa3a   :  { %7726 = vmax.xlane.f32.xlu0 %v7725_v7  ;;  %v21493_v11 = vpop.f32.mrf.mxu1 }
 0xa3b   :  { %v7690_v20 = vmul.f32 0.5, %v21493_v11  ;;  %v21500_v2 = vpop.f32.mrf.mxu0 }
 0xa3c   :  { %7719 = vmax.xlane.f32.xlu1 %v7718_v14  ;;  %v7692_v53 = vmul.f32 0.5, %v21500_v2  ;;  %v7271_v23 = vpop.f32.mrf.mxu1 }
 0xa3d   :  { %v24932_v22 = vadd.f32 %v7690_v20, %v6856_v5  ;;  %v7352_v56 = vpop.f32.mrf.mxu0  ;;  %v7689_v18 = vmul.f32 0.5, %v7271_v23 }
 0xa3e   :  { %v24936_v51 = vadd.f32 %v7692_v53, %v6856_v5  ;;  %v7691_v10 = vmul.f32 0.5, %v7352_v56 }
 0xa3f   :  { %v7734_v41 = vsel %vm7721_vm10, %v24932_v22, -inf  ;;  %v24943_v58 = vadd.f32 %v7689_v18, %v24912_v61 }
 0xa40   :  { %7729 = vmax.xlane.f32.xlu1 %v7728_v62  ;;  %v7740_v16 = vsel %vm7721_vm10, %v24936_v51, -inf  ;;  %v24948_v57 = vadd.f32 %v7691_v10, %v24912_v61 }
 0xa41   :  { %v7731_v9 = vsel %vm7717_vm11, %v24943_v58, -inf }
 0xa42   :  { %v21507_v36 = vpop.f32.mrf.mxu1  ;;  %v7737_v4 = vsel %vm7717_vm11, %v24948_v57, -inf }
 0xa43   :  { %v21514_v60 = vpop.f32.mrf.mxu0  ;;  %v7694_v1 = vmul.f32 0.5, %v21507_v36 }
 0xa44   :  { %v7696_v17 = vmul.f32 0.5, %v21514_v60  ;;  %7735 = vmax.xlane.f32.xlu1 %v7734_v41  ;;  %v7433_v40 = vpop.f32.mrf.mxu1 }
 0xa45   :  { %v7514_v28 = vpop.f32.mrf.mxu0  ;;  %v7693_v50 = vmul.f32 0.5, %v7433_v40  ;;  %v24958_v37 = vadd.f32 %v7694_v1, %v6856_v5 }
 0xa46   :  { %v24938_v27 = vadd.f32 %v7696_v17, %v6856_v5  ;;  %v7695_v34 = vmul.f32 0.5, %v7514_v28 }
 0xa47   :  { %v7746_v30 = vsel %vm7721_vm10, %v24958_v37, -inf  ;;  %v24967_v21 = vadd.f32 %v7693_v50, %v24912_v61 }
 0xa48   :  { %v7752_v63 = vsel %vm7721_vm10, %v24938_v27, -inf  ;;  %7741 = vmax.xlane.f32.xlu1 %v7740_v16  ;;  %v24972_v19 = vadd.f32 %v7695_v34, %v24912_v61 }
 0xa49   :  { %7753 = vmax.xlane.f32.xlu0 %v7752_v63 }
 0xa4a   :  { %v21521_v59 = vpop.f32.mrf.mxu1  ;;  %v7749_v7 = vsel %vm7717_vm11, %v24972_v19, -inf }
 0xa4b   :  { %v7698_v44 = vmul.f32 0.5, %v21521_v59  ;;  %v21528_v47 = vpop.f32.mrf.mxu0 }
 0xa4c   :  { %v7700_v26 = vmul.f32 0.5, %v21528_v47  ;;  %7732 = vmax.xlane.f32.xlu1 %v7731_v9  ;;  %v7595_v48 = vpop.f32.mrf.mxu1 }
 0xa4d   :  { %v24952_v6 = vadd.f32 %v7698_v44, %v6856_v5  ;;  %v7697_v39 = vmul.f32 0.5, %v7595_v48  ;;  %v7676_v13 = vpop.f32.mrf.mxu0 }
 0xa4e   :  { %v24960_v46 = vadd.f32 %v7700_v26, %v6856_v5  ;;  %v7743_v5 = vsel %vm7717_vm11, %v24967_v21, -inf  ;;  %v7699_v35 = vmul.f32 0.5, %v7676_v13 }
 0xa4f   :  { %v7758_v43 = vsel %vm7721_vm10, %v24952_v6, -inf  ;;  %v24977_v11 = vadd.f32 %v7697_v39, %v24912_v61 }
 0xa50   :  { %7738 = vmax.xlane.f32.xlu1 %v7737_v4  ;;  %7759 = vmax.xlane.f32.xlu0 %v7758_v43  ;;  %v7764_v38 = vsel %vm7721_vm10, %v24960_v46, -inf  ;;  %v24982_v14 = vadd.f32 %v7699_v35, %v24912_v61 }
 0xa51   :  { %v7755_v20 = vsel %vm7717_vm11, %v24977_v11, -inf }
 0xa52   :  { %v7761_v2 = vsel %vm7717_vm11, %v24982_v14, -inf }
 0xa54   :  { %7747 = vmax.xlane.f32.xlu1 %v7746_v30  ;;  %7765 = vmax.xlane.f32.xlu0 %v7764_v38 }
 0xa58   :  { %7744 = vmax.xlane.f32.xlu1 %v7743_v5 }
 0xa5c   :  { %7750 = vmax.xlane.f32.xlu1 %v7749_v7 }
 0xa60   :  { %7756 = vmax.xlane.f32.xlu1 %v7755_v20 }
 0xa64   :  { %7762 = vmax.xlane.f32.xlu1 %v7761_v2 }
 0xac1   :  { %v7724_v53 = vpop.xlane.xlu1 %7723 }
 0xac2   :  { %v7768_v62 = vsub.f32 %v24914_v24, %v7724_v53 }
 0xac3   :  { %v7727_v23 = vpop.xlane.xlu0 %7726 }
 0xac4   :  { %v7785_v56 = vmul.f32 1.442695, %v7768_v62  ;;  %v7769_v18 = vsub.f32 %v24919_v3, %v7727_v23 }
 0xac5   :  { %v7720_v60 = vpop.xlane.xlu1 %7719 }
 0xac6   :  { %22426 = vpow2.f32 %v7785_v56  ;;  %v7767_v41 = vsub.f32 %v24922_v29, %v7720_v60  ;;  %v7787_v36 = vmul.f32 1.442695, %v7769_v18 }
 0xac8   :  { %v7783_v17 = vmul.f32 1.442695, %v7767_v41 }
 0xac9   :  { %v7730_v61 = vpop.xlane.xlu1 %7729 }
 0xaca   :  { %22428 = vpow2.f32 %v7783_v17  ;;  %v7770_v10 = vsub.f32 %v24928_v54, %v7730_v61 }
 0xacb   :  { %22430 = vpow2.f32 %v7787_v36 }
 0xacc   :  { %v7789_v16 = vmul.f32 1.442695, %v7770_v10 }
 0xacd   :  { %v7736_v40 = vpop.xlane.xlu1 %7735 }
 0xace   :  { %22432 = vpow2.f32 %v7789_v16  ;;  %v7772_v24 = vsub.f32 %v24932_v22, %v7736_v40 }
 0xad0   :  { %v7793_v63 = vmul.f32 1.442695, %v7772_v24 }
 0xad1   :  { %v7742_v28 = vpop.xlane.xlu1 %7741 }
 0xad2   :  { %22434 = vpow2.f32 %v7793_v63  ;;  %v7774_v3 = vsub.f32 %v24936_v51, %v7742_v28  ;;  %v7754_v9 = vpop.xlane.xlu0 %7753 }
 0xad3   :  { %v24992_v59 = vpop.eup %22426  ;;  %v7778_v34 = vsub.f32 %v24938_v27, %v7754_v9 }
 0xad4   :  { %v7797_v29 = vmul.f32 1.442695, %v7774_v3  ;;  %v7818_v1 = vsel %vm7721_vm10, %v24992_v59, 0.0 }
 0xad5   :  { %v7733_v44 = vpop.xlane.xlu1 %7732  ;;  %7819 = vadd.xlane.f32.xlu0 %v7818_v1 }
 0xad6   :  { %22436 = vpow2.f32 %v7797_v29  ;;  %v7771_v54 = vsub.f32 %v24943_v58, %v7733_v44 }
 0xad7   :  { %v24997_v47 = vpop.eup %22428 }
 0xad8   :  { %v7791_v22 = vmul.f32 1.442695, %v7771_v54  ;;  %v7815_v26 = vsel %vm7717_vm11, %v24997_v47, 0.0  ;;  %v25001_v4 = vpop.eup %22430 }
 0xad9   :  { %v7739_v51 = vpop.xlane.xlu1 %7738  ;;  %7816 = vadd.xlane.f32.xlu1 %v7815_v26  ;;  %v7760_v30 = vpop.xlane.xlu0 %7759  ;;  %v7821_v48 = vsel %vm7717_vm11, %v25001_v4, 0.0 }
 0xada   :  { %22438 = vpow2.f32 %v7791_v22  ;;  %v7773_v50 = vsub.f32 %v24948_v57, %v7739_v51  ;;  %v7805_v57 = vmul.f32 1.442695, %v7778_v34  ;;  %v7780_v35 = vsub.f32 %v24952_v6, %v7760_v30 }
 0xadb   :  { %v25004_v43 = vpop.eup %22432 }
 0xadc   :  { %v7795_v58 = vmul.f32 1.442695, %v7773_v50  ;;  %v7824_v38 = vsel %vm7721_vm10, %v25004_v43, 0.0  ;;  %v7809_v23 = vmul.f32 1.442695, %v7780_v35 }
 0xadd   :  { %v7748_v39 = vpop.xlane.xlu1 %7747  ;;  %7825 = vadd.xlane.f32.xlu0 %v7824_v38  ;;  %7822 = vadd.xlane.f32.xlu1 %v7821_v48  ;;  %v7766_v20 = vpop.xlane.xlu0 %7765 }
 0xade   :  { %22440 = vpow2.f32 %v7795_v58  ;;  %v7776_v5 = vsub.f32 %v24958_v37, %v7748_v39  ;;  %v7782_v37 = vsub.f32 %v24960_v46, %v7766_v20 }
 0xadf   :  { %v25012_v13 = vpop.eup %22434 }
 0xae0   :  { %v7801_v27 = vmul.f32 1.442695, %v7776_v5  ;;  %v7830_v7 = vsel %vm7721_vm10, %v25012_v13, 0.0  ;;  %v7813_v36 = vmul.f32 1.442695, %v7782_v37 }
 0xae1   :  { %v7745_v2 = vpop.xlane.xlu1 %7744  ;;  %7831 = vadd.xlane.f32.xlu0 %v7830_v7 }
 0xae2   :  { %22442 = vpow2.f32 %v7801_v27  ;;  %v7775_v53 = vsub.f32 %v24967_v21, %v7745_v2 }
 0xae3   :  { %v25018_v62 = vpop.eup %22436  ;;  %22444 = vpow2.f32 %v7805_v57 }
 0xae4   :  { %v7799_v56 = vmul.f32 1.442695, %v7775_v53  ;;  %v7836_v6 = vsel %vm7721_vm10, %v25018_v62, 0.0 }
 0xae5   :  { %v7751_v18 = vpop.xlane.xlu1 %7750  ;;  %7837 = vadd.xlane.f32.xlu0 %v7836_v6 }
 0xae6   :  { %22446 = vpow2.f32 %v7799_v56  ;;  %v7777_v60 = vsub.f32 %v24972_v19, %v7751_v18 }
 0xae7   :  { %v25024_v41 = vpop.eup %22438  ;;  %22448 = vpow2.f32 %v7809_v23 }
 0xae8   :  { %v7803_v21 = vmul.f32 1.442695, %v7777_v60  ;;  %v7827_v17 = vsel %vm7717_vm11, %v25024_v41, 0.0 }
 0xae9   :  { %7828 = vadd.xlane.f32.xlu1 %v7827_v17  ;;  %v7757_v61 = vpop.xlane.xlu1 %7756 }
 0xaea   :  { %22450 = vpow2.f32 %v7803_v21  ;;  %v7779_v46 = vsub.f32 %v24977_v11, %v7757_v61 }
 0xaeb   :  { %v25029_v10 = vpop.eup %22440  ;;  %22452 = vpow2.f32 %v7813_v36 }
 0xaec   :  { %v7807_v16 = vmul.f32 1.442695, %v7779_v46  ;;  %v7833_v19 = vsel %vm7717_vm11, %v25029_v10, 0.0 }
 0xaed   :  { %7834 = vadd.xlane.f32.xlu1 %v7833_v19  ;;  %v7763_v40 = vpop.xlane.xlu1 %7762 }
 0xaee   :  { %22454 = vpow2.f32 %v7807_v16  ;;  %v7781_v24 = vsub.f32 %v24982_v14, %v7763_v40 }
 0xaef   :  { %v25034_v63 = vpop.eup %22442 }
 0xaf0   :  { %v25036_v28 = vpop.eup %22444  ;;  %v7811_v3 = vmul.f32 1.442695, %v7781_v24  ;;  %v7842_v11 = vsel %vm7721_vm10, %v25034_v63, 0.0 }
 0xaf1   :  { %7843 = vadd.xlane.f32.xlu0 %v7842_v11  ;;  %v7848_v1 = vsel %vm7721_vm10, %v25036_v28, 0.0 }
 0xaf2   :  { %22456 = vpow2.f32 %v7811_v3 }
 0xaf3   :  { %v25040_v29 = vpop.eup %22446 }
 0xaf4   :  { %v7839_v44 = vsel %vm7717_vm11, %v25040_v29, 0.0  ;;  %v25046_v54 = vpop.eup %22448 }
 0xaf5   :  { %7849 = vadd.xlane.f32.xlu0 %v7848_v1  ;;  %7840 = vadd.xlane.f32.xlu1 %v7839_v44  ;;  %v7854_v9 = vsel %vm7721_vm10, %v25046_v54, 0.0 }
 0xaf7   :  { %v25048_v14 = vpop.eup %22450 }
 0xaf8   :  { %v7845_v22 = vsel %vm7717_vm11, %v25048_v14, 0.0  ;;  %v25054_v26 = vpop.eup %22452 }
 0xaf9   :  { %7855 = vadd.xlane.f32.xlu0 %v7854_v9  ;;  %7846 = vadd.xlane.f32.xlu1 %v7845_v22  ;;  %v7860_v50 = vsel %vm7721_vm10, %v25054_v26, 0.0 }
 0xafb   :  { %v25056_v51 = vpop.eup %22454 }
 0xafc   :  { %v7851_v34 = vsel %vm7717_vm11, %v25056_v51, 0.0 }
 0xafd   :  { %7861 = vadd.xlane.f32.xlu0 %v7860_v50  ;;  %7852 = vadd.xlane.f32.xlu1 %v7851_v34 }
 0xaff   :  { %v25062_v30 = vpop.eup %22456 }
 0xb00   :  { %v7857_v58 = vsel %vm7717_vm11, %v25062_v30, 0.0 }
 0xb01   :  { %7858 = vadd.xlane.f32.xlu1 %v7857_v58 }
 0xb12   :  { %7897 = vrot.lane.b32.xlu1 %v24778_v8, %s22935_s16 }
 0xb13   :  { %7895 = vrot.lane.b32.xlu0 %v24780_v49, %s22935_s16 }
 0xb5e   :  { %v7820_v48 = vpop.xlane.xlu0 %7819 }
 0xb62   :  { %v7817_v38 = vpop.xlane.xlu1 %7816 }
 0xb63   :  { %22458 = vrcp.f32 %v7817_v38  ;;  %v6950_v38 = vld [vmem:[%s27932_s0 + $0x3b0] sm:$0xff] }
 0xb66   :  { %v7826_v39 = vpop.xlane.xlu0 %7825  ;;  %v7823_v5 = vpop.xlane.xlu1 %7822 }
 0xb6a   :  { %v7832_v35 = vpop.xlane.xlu0 %7831 }
 0xb6e   :  { %v7838_v20 = vpop.xlane.xlu0 %7837 }
 0xb70   :  { %v22459_v57 = vpop.eup %22458 }
 0xb71   :  { %v7864_v27 = vmul.f32 %v22459_v57, %v24997_v47 }
 0xb72   :  { %v7829_v7 = vpop.xlane.xlu1 %7828 }
 0xb73   :  { %22460 = vrcp.f32 %v7829_v7  ;;  %21533 = vmatprep.mubr.msk.f32.mxu1 %vm7717_vm11, %v7864_v27 }
 0xb74   :  { %22462 = vrcp.f32 %v7820_v48 }
 0xb75   :  { %22464 = vrcp.f32 %v7832_v35 }
 0xb76   :  { %v7835_v2 = vpop.xlane.xlu1 %7834  ;;  %22466 = vrcp.f32 %v7823_v5 }
 0xb7a   :  { %v7844_v53 = vpop.xlane.xlu0 %7843 }
 0xb7e   :  { %v7850_v8 = vpop.xlane.xlu0 %7849  ;;  %v7841_v23 = vpop.xlane.xlu1 %7840 }
 0xb7f   :  { %22468 = vrcp.f32 %v7841_v23 }
 0xb80   :  { %v22461_v37 = vpop.eup %22460  ;;  %22470 = vrcp.f32 %v7826_v39 }
 0xb81   :  { %v7872_v49 = vmul.f32 %v22461_v37, %v25024_v41  ;;  %22472 = vrcp.f32 %v7844_v53  ;;  %v22463_v36 = vpop.eup %22462 }
 0xb82   :  { %v7847_v56 = vpop.xlane.xlu1 %7846  ;;  %v7856_v47 = vpop.xlane.xlu0 %7855  ;;  %v7866_v16 = vmul.f32 %v22463_v36, %v24992_v59 }
 0xb83   :  { %21547 = vmatprep.mubr.msk.f32.mxu0 %vm7717_vm11, %v7872_v49  ;;  %v22465_v41 = vpop.eup %22464 }
 0xb84   :  { %v22467_v17 = vpop.eup %22466  ;;  %v7874_v19 = vmul.f32 %v22465_v41, %v25012_v13 }
 0xb85   :  { %v7868_v59 = vmul.f32 %v22467_v17, %v25001_v4 }
 0xb86   :  { %v7853_v6 = vpop.xlane.xlu1 %7852  ;;  %v7862_v18 = vpop.xlane.xlu0 %7861 }
 0xb87   :  { %22474 = vrcp.f32 %v7853_v6 }
 0xb88   :  { %22476 = vrcp.f32 %v7835_v2 }
 0xb89   :  { %22478 = vrcp.f32 %v7838_v20 }
 0xb8a   :  { %v7859_v60 = vpop.xlane.xlu1 %7858  ;;  %22480 = vrcp.f32 %v7856_v47  ;;  %v25080_v61 = vpop.permute.xlu0 %7895 }
 0xb8b   :  { %22482 = vrcp.f32 %v7847_v56 }
 0xb8c   :  { %v22469_v46 = vpop.eup %22468  ;;  %22484 = vrcp.f32 %v7850_v8 }
 0xb8d   :  { %22486 = vrcp.f32 %v7859_v60  ;;  %v22471_v40 = vpop.eup %22470  ;;  %v7880_v13 = vmul.f32 %v22469_v46, %v25040_v29 }
 0xb8e   :  { %v25074_v21 = vpop.permute.xlu1 %7897  ;;  %v22473_v24 = vpop.eup %22472  ;;  %22488 = vrcp.f32 %v7862_v18  ;;  %v7870_v4 = vmul.f32 %v22471_v40, %v25004_v43 }
 0xb8f   :  { %21529 = vmatprep.subr.msk.mxu1 %vm4149_vm7, %v25074_v21  ;;  %21543 = vmatprep.subr.msk.mxu0 %vm4149_vm7, %v25074_v21  ;;  %v7882_v29 = vmul.f32 %v22473_v24, %v25034_v63 }
 0xb90   :  { %21530 = vmatpush3.msk.msra.mxu1 %vm4149_vm7, %v25074_v21  ;;  %21544 = vmatpush3.msk.msra.mxu0 %vm4149_vm7, %v25074_v21 }
 0xb91   :  { %21531 = vmatprep.subr.mxu1 %v25080_v61  ;;  %21545 = vmatprep.subr.mxu0 %v25080_v61 }
 0xb92   :  { %21532 = vmatpush3.msra.mxu1 %v25080_v61  ;;  %21546 = vmatpush3.msra.mxu0 %v25080_v61 }
 0xb93   :  { %21534 = vmatmul.mubr.msk.f32.vlgmr.msra.gmra.mxu1 %vm7717_vm11, %v7866_v16  ;;  %21536 = vmatprep.subr.msk.mxu1 %vm4149_vm7, %v25074_v21 }
 0xb94   :  { %21548 = vmatmul.mubr.msk.f32.vlgmr.msra.gmra.mxu0 %vm7717_vm11, %v7874_v19  ;;  %21557 = vmatprep.subr.msk.mxu0 %vm4149_vm7, %v25074_v21  ;;  %v22475_v3 = vpop.eup %22474 }
 0xb95   :  { %21537 = vmatpush3.msk.msra.mxu1 %vm4149_vm7, %v25074_v21  ;;  %21540 = vmatprep.mubr.msk.f32.mxu1 %vm7717_vm11, %v7868_v59  ;;  %v22477_v11 = vpop.eup %22476  ;;  %v7888_v1 = vmul.f32 %v22475_v3, %v25056_v51 }
 0xb96   :  { %21558 = vmatpush3.msk.msra.mxu0 %vm4149_vm7, %v25074_v21  ;;  %21561 = vmatprep.mubr.msk.f32.mxu0 %vm7717_vm11, %v7880_v13  ;;  %v7876_v44 = vmul.f32 %v22477_v11, %v25029_v10  ;;  %v22479_v43 = vpop.eup %22478 }
 0xb97   :  { %21538 = vmatprep.subr.mxu1 %v25080_v61  ;;  %21559 = vmatprep.subr.mxu0 %v25080_v61  ;;  %v22481_v63 = vpop.eup %22480  ;;  %v7878_v10 = vmul.f32 %v22479_v43, %v25018_v62 }
 0xb98   :  { %21539 = vmatpush3.msra.mxu1 %v25080_v61  ;;  %21560 = vmatpush3.msra.mxu0 %v25080_v61  ;;  %v22483_v9 = vpop.eup %22482  ;;  %v7890_v51 = vmul.f32 %v22481_v63, %v25046_v54 }
 0xb99   :  { %21541 = vmatmul.mubr.msk.f32.vlgmr.msra.gmra.mxu1 %vm7717_vm11, %v7870_v4  ;;  %21550 = vmatprep.subr.msk.mxu1 %vm4149_vm7, %v25074_v21  ;;  %v22485_v22 = vpop.eup %22484  ;;  %v7884_v34 = vmul.f32 %v22483_v9, %v25048_v14  ;;  %v6953_v14 = vld [vmem:[%s27932_s0 + $0x3c8] sm:$0xff] }
 0xb9a   :  { %21562 = vmatmul.mubr.msk.f32.vlgmr.msra.gmra.mxu0 %vm7717_vm11, %v7882_v29  ;;  %21571 = vmatprep.subr.msk.mxu0 %vm4149_vm7, %v25074_v21  ;;  %v22487_v50 = vpop.eup %22486  ;;  %v7886_v62 = vmul.f32 %v22485_v22, %v25036_v28 }
 0xb9b   :  { %21551 = vmatpush3.msk.msra.mxu1 %vm4149_vm7, %v25074_v21  ;;  %21554 = vmatprep.mubr.msk.f32.mxu1 %vm7717_vm11, %v7876_v44  ;;  %v22489_v54 = vpop.eup %22488  ;;  %v7892_v58 = vmul.f32 %v22487_v50, %v25062_v30  ;;  %v6952_v30 = vld [vmem:[%s27932_s0 + $0x3c0] sm:$0xff] }
 0xb9c   :  { %21572 = vmatpush3.msk.msra.mxu0 %vm4149_vm7, %v25074_v21  ;;  %21575 = vmatprep.mubr.msk.f32.mxu0 %vm7717_vm11, %v7888_v1  ;;  %v7894_v28 = vmul.f32 %v22489_v54, %v25054_v26  ;;  %v6951_v26 = vld [vmem:[%s27932_s0 + $0x3b8] sm:$0xff] }
 0xb9d   :  { %21552 = vmatprep.subr.mxu1 %v25080_v61  ;;  %21573 = vmatprep.subr.mxu0 %v25080_v61 }
 0xb9e   :  { %21553 = vmatpush3.msra.mxu1 %v25080_v61  ;;  %21574 = vmatpush3.msra.mxu0 %v25080_v61 }
 0xb9f   :  { %21555 = vmatmul.mubr.msk.f32.vlgmr.msra.gmra.mxu1 %vm7717_vm11, %v7878_v10  ;;  %21564 = vmatprep.subr.msk.mxu1 %vm4149_vm7, %v25074_v21 }
 0xba0   :  { %21576 = vmatmul.mubr.msk.f32.vlgmr.msra.gmra.mxu0 %vm7717_vm11, %v7890_v51  ;;  %21565 = vmatpush3.msk.msra.mxu1 %vm4149_vm7, %v25074_v21 }
 0xba1   :  { %21568 = vmatprep.mubr.msk.f32.mxu1 %vm7717_vm11, %v7884_v34  ;;  %21566 = vmatprep.subr.mxu1 %v25080_v61 }
 0xba2   :  { %21567 = vmatpush3.msra.mxu1 %v25080_v61  ;;  %21585 = vmatprep.subr.mxu0 %v6953_v14 }
 0xba3   :  { %21569 = vmatmul.mubr.msk.f32.vlgmr.msra.gmra.mxu1 %vm7717_vm11, %v7886_v62  ;;  %21578 = vmatprep.subr.msk.mxu1 %vm4149_vm7, %v25074_v21 }
 0xba4   :  { %21579 = vmatpush3.msk.msra.mxu1 %vm4149_vm7, %v25074_v21  ;;  %21582 = vmatprep.mubr.msk.f32.mxu1 %vm7717_vm11, %v7892_v58 }
 0xba5   :  { %21580 = vmatprep.subr.mxu1 %v25080_v61  ;;  %21586 = vmatpush3.msra.mxu0 %v6953_v14 }
 0xba6   :  { %21581 = vmatpush3.msra.mxu1 %v25080_v61  ;;  %21587 = vmatprep.subr.mxu0 %v6952_v30 }
 0xba7   :  { %21583 = vmatmul.mubr.msk.f32.vlgmr.msra.gmra.mxu1 %vm7717_vm11, %v7894_v28  ;;  %21588 = vmatpush3.msra.mxu0 %v6952_v30 }
 0xba8   :  { %21589 = vmatprep.subr.mxu0 %v6951_v26 }
 0xba9   :  { %21590 = vmatpush3.msra.mxu0 %v6951_v26 }
 0xbaa   :  { %21591 = vmatprep.subr.mxu0 %v6950_v38 }
 0xbab   :  { %21592 = vmatpush3.msra.mxu0 %v6950_v38 }
 0xc53   :  { %v21535_v48 = vpop.f32.mrf.mxu1 }
 0xc54   :  { %v21549_v39 = vpop.f32.mrf.mxu0  ;;  %v8551_v35 = vmul.f32 %v21535_v48, %v24787_v15 }
 0xc55   :  { %v7974_v5 = vpop.f32.mrf.mxu1  ;;  %v8555_v7 = vmul.f32 %v21549_v39, %v24819_v12 }
 0xc56   :  { %v8136_v57 = vpop.f32.mrf.mxu0  ;;  %v8550_v20 = vmul.f32 %v24787_v15, %v7974_v5  ;;  %v8582_v23 = vsel %vm8581_vm12, %v8551_v35, 0.0  ;;  %v19412_v5 = vld [vmem:[%s27932_s0 + $0x3d0] ss:$0 sm:$0xff] }
 0xc57   :  { %v8554_v37 = vmul.f32 %v24819_v12, %v8136_v57  ;;  %v8585_v18 = vsel %vm8581_vm12, %v8555_v7, 0.0 }
 0xc58   :  { %v8566_v60 = vsel %vm6868_vm9, %v8550_v20, 0.0 }
 0xc59   :  { %v21542_v27 = vpop.f32.mrf.mxu1  ;;  %v8569_v17 = vsel %vm6868_vm9, %v8554_v37, 0.0 }
 0xc5a   :  { %v8553_v2 = vmul.f32 %v21542_v27, %v24792_v45  ;;  %v21563_v53 = vpop.f32.mrf.mxu0 }
 0xc5b   :  { %v8055_v8 = vpop.f32.mrf.mxu1  ;;  %v8559_v61 = vmul.f32 %v21563_v53, %v24849_v42 }
 0xc5c   :  { %v8583_v49 = vsel %vm8581_vm12, %v8553_v2, 0.0  ;;  %v8552_v56 = vmul.f32 %v24792_v45, %v8055_v8  ;;  %v8298_v47 = vpop.f32.mrf.mxu0 }
 0xc5d   :  { %v8584_v6 = vadd.f32 %v8583_v49, %v8582_v23  ;;  %v8558_v19 = vmul.f32 %v24849_v42, %v8298_v47  ;;  %v8589_v11 = vsel %vm8581_vm12, %v8559_v61, 0.0  ;;  %v8824_v61 = vld [vmem:[%s27932_s0 + $0x448] sm:$0xff] }
 0xc5e   :  { %v8567_v15 = vsel %vm6868_vm9, %v8552_v56, 0.0  ;;  %21607 = vmatprep.subr.mxu0 %v8824_v61 }
 0xc5f   :  { %v8568_v36 = vadd.f32 %v8567_v15, %v8566_v60  ;;  %v21556_v21 = vpop.f32.mrf.mxu1  ;;  %v8586_v41 = vadd.f32 %v8585_v18, %v8584_v6  ;;  %v8573_v42 = vsel %vm6868_vm9, %v8558_v19, 0.0 }
 0xc60   :  { %v8557_v12 = vmul.f32 %v21556_v21, %v24826_v31  ;;  %v21577_v46 = vpop.f32.mrf.mxu0  ;;  %v8727_v21 = vld [vmem:[%s27932_s0 + $0x3f8] sm:$0xff] }
 0xc61   :  { %v8217_v16 = vpop.f32.mrf.mxu1  ;;  %v8570_v45 = vadd.f32 %v8569_v17, %v8568_v36  ;;  %v8563_v1 = vmul.f32 %v21577_v46, %v24879_v33  ;;  %v8728_v36 = vld [vmem:[%s27932_s0 + $0x400] sm:$0xff]  ;;  %v8725_v17 = vld [vmem:[%s27932_s0 + $0x3e8] sm:$0xff]  ;;  %v8822_v46 = vld [vmem:[%s27932_s0 + $0x438] sm:$0xff] }
 0xc62   :  { %v8587_v40 = vsel %vm8581_vm12, %v8557_v12, 0.0  ;;  %v8556_v59 = vmul.f32 %v24826_v31, %v8217_v16  ;;  %v8460_v13 = vpop.f32.mrf.mxu0  ;;  %21596 = vmatprep.subr.mxu1 %v8728_v36  ;;  %v8823_v12 = vld [vmem:[%s27932_s0 + $0x440] sm:$0xff]  ;;  %v8821_v16 = vld [vmem:[%s27932_s0 + $0x430] sm:$0xff] }
 0xc63   :  { %v8588_v24 = vadd.f32 %v8587_v40, %v8586_v41  ;;  %v21570_v3 = vpop.f32.mrf.mxu1  ;;  %v8562_v9 = vmul.f32 %v24879_v33, %v8460_v13  ;;  %v8593_v54 = vsel %vm8581_vm12, %v8563_v1, 0.0  ;;  %21597 = vmatpush3.msra.mxu1 %v8728_v36  ;;  %v8726_v41 = vld [vmem:[%s27932_s0 + $0x3f0] sm:$0xff] }
 0xc64   :  { %v8571_v4 = vsel %vm6868_vm9, %v8556_v59, 0.0  ;;  %v8561_v29 = vmul.f32 %v21570_v3, %v24857_v52  ;;  %21598 = vmatprep.subr.mxu1 %v8727_v21 }
 0xc65   :  { %v8572_v44 = vadd.f32 %v8571_v4, %v8570_v45  ;;  %v8590_v43 = vadd.f32 %v8589_v11, %v8588_v24  ;;  %v8379_v63 = vpop.f32.mrf.mxu1  ;;  %v8577_v14 = vsel %vm6868_vm9, %v8562_v9, 0.0  ;;  %21599 = vmatpush3.msra.mxu1 %v8727_v21  ;;  %v19415_v11 = vld [vmem:[%s27932_s0 + $0x3d8] ss:$0 sm:$0xff] }
 0xc66   :  { %v8591_v31 = vsel %vm8581_vm12, %v8561_v29, 0.0  ;;  %v8560_v10 = vmul.f32 %v24857_v52, %v8379_v63  ;;  %21600 = vmatprep.subr.mxu1 %v8726_v41 }
 0xc67   :  { %v8592_v22 = vadd.f32 %v8591_v31, %v8590_v43  ;;  %v8574_v51 = vadd.f32 %v8573_v42, %v8572_v44  ;;  %v21584_v50 = vpop.f32.mrf.mxu1  ;;  %21601 = vmatpush3.msra.mxu1 %v8726_v41  ;;  %v19416_v43 = vld [vmem:[%s27932_s0 + $0x3e0] ss:$0 sm:$0xff]  ;;  %v8820_v31 = vld [vmem:[%s27932_s0 + $0x428] sm:$0xff] }
 0xc68   :  { %v8575_v34 = vsel %vm6868_vm9, %v8560_v10, 0.0  ;;  %v8565_v62 = vmul.f32 %v21584_v50, %v24887_v55  ;;  %21602 = vmatprep.subr.mxu1 %v8725_v17  ;;  %v8819_v10 = vld [vmem:[%s27932_s0 + $0x420] sm:$0xff]  ;;  %v19417_v50 = vld [vmem:[%s27932_s0 + $0x408] ss:$0 sm:$0xff] }
 0xc69   :  { %v8576_v58 = vadd.f32 %v8575_v34, %v8574_v51  ;;  %v8541_v28 = vpop.f32.mrf.mxu1  ;;  %v8594_v30 = vadd.f32 %v8593_v54, %v8592_v22  ;;  %21603 = vmatpush3.msra.mxu1 %v8725_v17  ;;  %v8818_v22 = vld [vmem:[%s27932_s0 + $0x418] sm:$0xff]  ;;  %v8817_v51 = vld [vmem:[%s27932_s0 + $0x410] sm:$0xff] }
 0xc6a   :  { %v8564_v33 = vmul.f32 %v24887_v55, %v8541_v28  ;;  %v8595_v26 = vsel %vm8581_vm12, %v8565_v62, 0.0 }
 0xc6b   :  { %v8578_v38 = vadd.f32 %v8577_v14, %v8576_v58  ;;  %v8596_v39 = vadd.f32 %v8595_v26, %v8594_v30  ;;  %v19420_v30 = vld [vmem:[%s27932_s0 + $0x450] ss:$0 sm:$0xff] }
 0xc6c   :  { %v8579_v52 = vsel %vm6868_vm9, %v8564_v33, 0.0 }
 0xc6d   :  { %v8580_v48 = vadd.f32 %v8579_v52, %v8578_v38 }
 0xc6f   :  { %21593 = vmatprep.mubr.msk.f32.mxu0 %vm6868_vm9, %v8580_v48 }
 0xc70   :  { %21594 = vmatmul.mubr.msk.f32.vlgmr.msra.gmra.mxu0 %vm6868_vm9, %v8596_v39 }
 0xc71   :  { %21608 = vmatpush3.msra.mxu0 %v8824_v61  ;;  %v19423_v61 = vld [vmem:[%s27932_s0 + $0x458] ss:$0 sm:$0xff] }
 0xc72   :  { %21609 = vmatprep.subr.mxu0 %v8823_v12 }
 0xc73   :  { %21610 = vmatpush3.msra.mxu0 %v8823_v12 }
 0xc74   :  { %21611 = vmatprep.subr.mxu0 %v8822_v46 }
 0xc75   :  { %21612 = vmatpush3.msra.mxu0 %v8822_v46 }
 0xc76   :  { %21613 = vmatprep.subr.mxu0 %v8821_v16 }
 0xc77   :  { %21614 = vmatpush3.msra.mxu0 %v8821_v16 }
 0xc78   :  { %21615 = vmatprep.subr.mxu0 %v8820_v31 }
 0xc79   :  { %21616 = vmatpush3.msra.mxu0 %v8820_v31 }
 0xc7a   :  { %21617 = vmatprep.subr.mxu0 %v8819_v10 }
 0xc7b   :  { %21618 = vmatpush3.msra.mxu0 %v8819_v10 }
 0xc7c   :  { %21619 = vmatprep.subr.mxu0 %v8818_v22 }
 0xc7d   :  { %21620 = vmatpush3.msra.mxu0 %v8818_v22  ;;  %v25335_v22 = vld [vmem:[%s27937_s5 + $0x2] ss:$0 sm:$0xff] }
 0xc7e   :  { %21621 = vmatprep.subr.mxu0 %v8817_v51 }
 0xc7f   :  { %21622 = vmatpush3.msra.mxu0 %v8817_v51 }
 0xd30   :  { %v21595_v57 = vpop.f32.mrf.mxu0 }
 0xd31   :  { %v8679_v35 = vadd.f32 %v21595_v57, %v19412_v5 }
 0xd32   :  { %v8673_v27 = vpop.f32.mrf.mxu0 }
 0xd33   :  { %v8674_v7 = vadd.f32 %v19412_v5, %v8673_v27  ;;  %v8683_v55 = vadd.f32 %v8679_v35, %v24769_v25 }
 0xd35   :  { %v8689_v20 = vsel %vm8581_vm12, %v8683_v55, 0.0  ;;  %v8682_v2 = vadd.f32 %v8674_v7, %v24767_v0 }
 0xd36   :  { %8690 = vadd.xlane.f32.xlu0 %v8689_v20 }
 0xd37   :  { %v8686_v53 = vsel %vm6868_vm9, %v8682_v2, 0.0 }
 0xd38   :  { %8687 = vadd.xlane.f32.xlu1 %v8686_v53 }
 0xdbf   :  { %v8691_v8 = vpop.xlane.xlu0 %8690 }
 0xdc0   :  { %v8694_v23 = vmul.f32 0.03125, %v8691_v8 }
 0xdc1   :  { %v8688_v37 = vpop.xlane.xlu1 %8687 }
 0xdc2   :  { %v8696_v49 = vsub.f32 %v8683_v55, %v8694_v23  ;;  %v8693_v56 = vmul.f32 0.03125, %v8688_v37 }
 0xdc4   :  { %v8695_v47 = vsub.f32 %v8682_v2, %v8693_v56  ;;  %v8698_v6 = vmul.f32 %v8696_v49, %v8696_v49  ;;  %v8956_v56 = vld [vmem:[%s27932_s0 + $0x478] sm:$0xff] }
 0xdc6   :  { %v8702_v18 = vsel %vm8581_vm12, %v8698_v6, 0.0  ;;  %v8697_v60 = vmul.f32 %v8695_v47, %v8695_v47  ;;  %v8954_v6 = vld [vmem:[%s27932_s0 + $0x468] sm:$0xff] }
 0xdc7   :  { %8703 = vadd.xlane.f32.xlu0 %v8702_v18 }
 0xdc8   :  { %v8699_v15 = vsel %vm6868_vm9, %v8697_v60, 0.0 }
 0xdc9   :  { %8700 = vadd.xlane.f32.xlu1 %v8699_v15 }
 0xe50   :  { %v8704_v45 = vpop.xlane.xlu0 %8703 }
 0xe51   :  { %v8706_v19 = vmul.f32 0.03125, %v8704_v45 }
 0xe52   :  { %v8701_v40 = vpop.xlane.xlu1 %8700 }
 0xe53   :  { %v8708_v59 = vadd.f32 1e-05, %v8706_v19  ;;  %v8705_v24 = vmul.f32 0.03125, %v8701_v40  ;;  %v19424_v19 = vld [vmem:[%s27932_s0 + $0x460] ss:$0 sm:$0xff] }
 0xe55   :  { %22490 = vrsqrt.f32 %v8708_v59  ;;  %v8707_v13 = vadd.f32 1e-05, %v8705_v24 }
 0xe57   :  { %22492 = vrsqrt.f32 %v8707_v13  ;;  %v19425_v13 = vld [vmem:[%s27932_s0 + $0x488] ss:$0 sm:$0xff] }
 0xe62   :  { %v22491_v3 = vpop.eup %22490 }
 0xe63   :  { %v8712_v4 = vmul.f32 %v22491_v3, %v8696_v49  ;;  %v8957_v49 = vld [vmem:[%s27932_s0 + $0x480] sm:$0xff] }
 0xe64   :  { %v22493_v29 = vpop.eup %22492  ;;  %21626 = vmatprep.subr.mxu1 %v8957_v49 }
 0xe65   :  { %v8711_v1 = vmul.f32 %v22493_v29, %v8695_v47  ;;  %v8718_v44 = vmul.f32 %v19415_v11, %v8712_v4  ;;  %v8955_v47 = vld [vmem:[%s27932_s0 + $0x470] sm:$0xff] }
 0xe67   :  { %v8717_v63 = vmul.f32 %v19415_v11, %v8711_v1  ;;  %v8724_v9 = vadd.f32 %v19416_v43, %v8718_v44  ;;  %v25305_v1 = vld [vmem:[%s27937_s5] ss:$0 sm:$0xff] }
 0xe69   :  { %v8723_v42 = vadd.f32 %v19416_v43, %v8717_v63  ;;  %v25312_v43 = vld [vmem:[%s27937_s5 + $0x1] ss:$0 sm:$0xff] }
 0xe6b   :  { %21604 = vmatprep.mubr.msk.f32.mxu1 %vm6868_vm9, %v8723_v42 }
 0xe6c   :  { %21605 = vmatmul.mubr.msk.f32.vlgmr.msra.gmra.mxu1 %vm6868_vm9, %v8724_v9 }
 0xe6d   :  { %21627 = vmatpush3.msra.mxu1 %v8957_v49 }
 0xe6e   :  { %21628 = vmatprep.subr.mxu1 %v8956_v56 }
 0xe6f   :  { %21629 = vmatpush3.msra.mxu1 %v8956_v56  ;;  %v25435_v56 = vld [vmem:[%s27933_s1 + $0x20] sm:$0xff] }
 0xe70   :  { %21630 = vmatprep.subr.mxu1 %v8955_v47 }
 0xe71   :  { %21631 = vmatpush3.msra.mxu1 %v8955_v47 }
 0xe72   :  { %21632 = vmatprep.subr.mxu1 %v8954_v6 }
 0xe73   :  { %21633 = vmatpush3.msra.mxu1 %v8954_v6 }
 0xf2c   :  { %v21606_v34 = vpop.f32.mrf.mxu1 }
 0xf2d   :  { %v8812_v62 = vadd.f32 %v21606_v34, %v19417_v50 }
 0xf2e   :  { %v8806_v54 = vpop.f32.mrf.mxu1 }
 0xf2f   :  { %v8807_v58 = vadd.f32 %v19417_v50, %v8806_v54  ;;  %v8816_v14 = vmax.f32 %v8812_v62, 0.0  ;;  %v25344_v50 = vld [vmem:[%s27937_s5 + $0x3] ss:$0 sm:$0xff] }
 0xf31   :  { %v8815_v28 = vmax.f32 %v8807_v58, 0.0  ;;  %v25366_v58 = vld [vmem:[%s27937_s5 + $0x4] ss:$0 sm:$0xff] }
 0xf33   :  { %21623 = vmatprep.mubr.msk.f32.mxu0 %vm8830_vm13, %v8815_v28 }
 0xf34   :  { %21624 = vmatmul.mubr.msk.f32.vlgmr.msra.gmra.mxu0 %vm8830_vm13, %v8816_v14  ;;  %v25375_v14 = vld [vmem:[%s27937_s5 + $0x5] ss:$0 sm:$0xff] }
 0xff4   :  { %v21625_v33 = vpop.f32.mrf.mxu0 }
 0xff5   :  { %v8909_v26 = vadd.f32 %v21625_v33, %v19420_v30 }
 0xff6   :  { %v8903_v38 = vpop.f32.mrf.mxu0 }
 0xff7   :  { %v8904_v52 = vadd.f32 %v19420_v30, %v8903_v38  ;;  %v8913_v48 = vadd.f32 %v8909_v26, %v8724_v9  ;;  %v25396_v38 = vld [vmem:[%s27937_s5 + $0x6] ss:$0 sm:$0xff] }
 0xff9   :  { %v8919_v39 = vsel %vm8581_vm12, %v8913_v48, 0.0  ;;  %v8912_v5 = vadd.f32 %v8904_v52, %v8723_v42 }
 0xffa   :  { %8920 = vadd.xlane.f32.xlu0 %v8919_v39 }
 0xffb   :  { %v8916_v57 = vsel %vm6868_vm9, %v8912_v5, 0.0 }
 0xffc   :  { %8917 = vadd.xlane.f32.xlu1 %v8916_v57 }
0x1083   :  { %v8921_v35 = vpop.xlane.xlu0 %8920 }
0x1084   :  { %v8923_v27 = vmul.f32 0.03125, %v8921_v35 }
0x1085   :  { %v8918_v7 = vpop.xlane.xlu1 %8917 }
0x1086   :  { %v8925_v55 = vsub.f32 %v8913_v48, %v8923_v27  ;;  %v8922_v20 = vmul.f32 0.03125, %v8918_v7  ;;  %v25405_v48 = vld [vmem:[%s27937_s5 + $0x7] ss:$0 sm:$0xff] }
0x1088   :  { %v8924_v2 = vsub.f32 %v8912_v5, %v8922_v20  ;;  %v8927_v53 = vmul.f32 %v8925_v55, %v8925_v55 }
0x108a   :  { %v8931_v8 = vsel %vm8581_vm12, %v8927_v53, 0.0  ;;  %v8926_v23 = vmul.f32 %v8924_v2, %v8924_v2 }
0x108b   :  { %8932 = vadd.xlane.f32.xlu0 %v8931_v8 }
0x108c   :  { %v8928_v37 = vsel %vm6868_vm9, %v8926_v23, 0.0  ;;  %v25425_v23 = vld [vmem:[%s27933_s1 + $0x28] sm:$0x3] }
0x108d   :  { %8929 = vadd.xlane.f32.xlu1 %v8928_v37 }
0x1114   :  { %v8933_v18 = vpop.xlane.xlu0 %8932 }
0x1115   :  { %v8935_v60 = vmul.f32 0.03125, %v8933_v18 }
0x1116   :  { %v8930_v15 = vpop.xlane.xlu1 %8929 }
0x1117   :  { %v8937_v36 = vadd.f32 1e-05, %v8935_v60  ;;  %v8934_v21 = vmul.f32 0.03125, %v8930_v15 }
0x1119   :  { %22494 = vrsqrt.f32 %v8937_v36  ;;  %v8936_v41 = vadd.f32 1e-05, %v8934_v21 }
0x111b   :  { %22496 = vrsqrt.f32 %v8936_v41 }
0x1126   :  { %v22495_v17 = vpop.eup %22494 }
0x1127   :  { %v8941_v12 = vmul.f32 %v22495_v17, %v8925_v55 }
0x1128   :  { %v22497_v46 = vpop.eup %22496 }
0x1129   :  { %v8940_v16 = vmul.f32 %v22497_v46, %v8924_v2  ;;  %v8947_v45 = vmul.f32 %v19423_v61, %v8941_v12 }
0x112b   :  { %v8946_v40 = vmul.f32 %v19423_v61, %v8940_v16  ;;  %v25285_v24 = vadd.f32 %v19424_v19, %v8947_v45 }
0x112d   :  { %v25283_v59 = vadd.f32 %v19424_v19, %v8946_v40 }
0x112f   :  { %21634 = vmatprep.mubr.msk.f32.mxu1 %vm6868_vm9, %v25283_v59 }
0x1130   :  { %21635 = vmatmul.mubr.msk.f32.vlgmr.msra.gmra.mxu1 %vm6868_vm9, %v25285_v24 }
0x11f0   :  { %v21636_v3 = vpop.f32.mrf.mxu1 }
0x11f1   :  { %v25294_v11 = vadd.f32 %v21636_v3, %v19425_v13 }
0x11f2   :  { %v9035_v4 = vpop.f32.mrf.mxu1 }
0x11f3   :  { %v25296_v29 = vadd.f32 %v19425_v13, %v9035_v4  ;;  %9069 = vrot.lane.b32.xlu1 %v25294_v11, %s22934_s21  ;;  %v9050_v31 = vmul.f32 %v25305_v1, %v25294_v11  ;;  %v9052_v10 = vmul.f32 %v25312_v43, %v25294_v11  ;;  %v9054_v62 = vmul.f32 %v25335_v22, %v25294_v11 }
0x11f4   :  { %v9056_v54 = vmul.f32 %v25344_v50, %v25294_v11  ;;  %v9058_v33 = vmul.f32 %v25366_v58, %v25294_v11  ;;  %v9060_v26 = vmul.f32 %v25375_v14, %v25294_v11  ;;  %v9062_v5 = vmul.f32 %v25396_v38, %v25294_v11 }
0x11f5   :  { %9067 = vrot.lane.b32.xlu0 %v25296_v29, %s22934_s21  ;;  %v9049_v44 = vmul.f32 %v25305_v1, %v25296_v29  ;;  %v9051_v63 = vmul.f32 %v25312_v43, %v25296_v29  ;;  %v9053_v51 = vmul.f32 %v25335_v22, %v25296_v29  ;;  %v9055_v34 = vmul.f32 %v25344_v50, %v25296_v29 }
0x11f6   :  { %v9057_v28 = vmul.f32 %v25366_v58, %v25296_v29  ;;  %v9059_v30 = vmul.f32 %v25375_v14, %v25296_v29  ;;  %v9061_v52 = vmul.f32 %v25396_v38, %v25296_v29  ;;  %v9063_v39 = vmul.f32 %v25405_v48, %v25296_v29 }
0x11f7   :  { %21641 = vmatprep.mubr.msk.f32.mxu1 %vm6868_vm9, %v9049_v44  ;;  %21648 = vmatprep.mubr.msk.f32.mxu0 %vm6868_vm9, %v9051_v63  ;;  %v9064_v57 = vmul.f32 %v25405_v48, %v25294_v11 }
0x1265   :  { %v9070_v42 = vpop.permute.xlu1 %9069 }
0x1266   :  { %21637 = vmatprep.subr.msk.mxu1 %vm6868_vm9, %v9070_v42  ;;  %21644 = vmatprep.subr.msk.mxu0 %vm6868_vm9, %v9070_v42 }
0x1267   :  { %21638 = vmatpush3.xpose.msk.msra.mxu1 %vm6868_vm9, %v9070_v42  ;;  %21645 = vmatpush3.xpose.msk.msra.mxu0 %vm6868_vm9, %v9070_v42  ;;  %v9068_v9 = vpop.permute.xlu0 %9067 }
0x1268   :  { %21639 = vmatprep.subr.msk.mxu1 %vm6868_vm9, %v9068_v9  ;;  %21646 = vmatprep.subr.msk.mxu0 %vm6868_vm9, %v9068_v9 }
0x126b   :  { %21640 = vmatpush3.xpose.msk.msra.mxu1 %vm6868_vm9, %v9068_v9  ;;  %21647 = vmatpush3.xpose.msk.msra.mxu0 %vm6868_vm9, %v9068_v9 }
0x126c   :  { %21651 = vmatprep.subr.msk.mxu1 %vm6868_vm9, %v9070_v42  ;;  %21658 = vmatprep.subr.msk.mxu0 %vm6868_vm9, %v9070_v42 }
0x126e   :  { %21642 = vmatmul.mubr.msk.f32.vlgmr.msra.gmra.mxu1 %vm6868_vm9, %v9050_v31  ;;  %21649 = vmatmul.mubr.msk.f32.vlgmr.msra.gmra.mxu0 %vm6868_vm9, %v9052_v10 }
0x126f   :  { %21652 = vmatpush3.xpose.msk.msra.mxu1 %vm6868_vm9, %v9070_v42  ;;  %21655 = vmatprep.mubr.msk.f32.mxu1 %vm6868_vm9, %v9053_v51 }
0x1270   :  { %21659 = vmatpush3.xpose.msk.msra.mxu0 %vm6868_vm9, %v9070_v42  ;;  %21662 = vmatprep.mubr.msk.f32.mxu0 %vm6868_vm9, %v9055_v34 }
0x1271   :  { %21653 = vmatprep.subr.msk.mxu1 %vm6868_vm9, %v9068_v9  ;;  %21660 = vmatprep.subr.msk.mxu0 %vm6868_vm9, %v9068_v9 }
0x1273   :  { %21654 = vmatpush3.xpose.msk.msra.mxu1 %vm6868_vm9, %v9068_v9 }
0x1274   :  { %21661 = vmatpush3.xpose.msk.msra.mxu0 %vm6868_vm9, %v9068_v9  ;;  %21665 = vmatprep.subr.msk.mxu1 %vm6868_vm9, %v9070_v42 }
0x1275   :  { %21672 = vmatprep.subr.msk.mxu0 %vm6868_vm9, %v9070_v42 }
0x1276   :  { %21656 = vmatmul.mubr.msk.f32.vlgmr.msra.gmra.mxu1 %vm6868_vm9, %v9054_v62 }
0x1277   :  { %21663 = vmatmul.mubr.msk.f32.vlgmr.msra.gmra.mxu0 %vm6868_vm9, %v9056_v54  ;;  %21666 = vmatpush3.xpose.msk.msra.mxu1 %vm6868_vm9, %v9070_v42 }
0x1278   :  { %21669 = vmatprep.mubr.msk.f32.mxu1 %vm6868_vm9, %v9057_v28  ;;  %21673 = vmatpush3.xpose.msk.msra.mxu0 %vm6868_vm9, %v9070_v42 }
0x1279   :  { %21676 = vmatprep.mubr.msk.f32.mxu0 %vm6868_vm9, %v9059_v30  ;;  %21667 = vmatprep.subr.msk.mxu1 %vm6868_vm9, %v9068_v9 }
0x127a   :  { %21674 = vmatprep.subr.msk.mxu0 %vm6868_vm9, %v9068_v9 }
0x127b   :  { %21668 = vmatpush3.xpose.msk.msra.mxu1 %vm6868_vm9, %v9068_v9 }
0x127c   :  { %21675 = vmatpush3.xpose.msk.msra.mxu0 %vm6868_vm9, %v9068_v9  ;;  %21679 = vmatprep.subr.msk.mxu1 %vm6868_vm9, %v9070_v42 }
0x127d   :  { %21686 = vmatprep.subr.msk.mxu0 %vm6868_vm9, %v9070_v42 }
0x127e   :  { %21670 = vmatmul.mubr.msk.f32.vlgmr.msra.gmra.mxu1 %vm6868_vm9, %v9058_v33 }
0x127f   :  { %21677 = vmatmul.mubr.msk.f32.vlgmr.msra.gmra.mxu0 %vm6868_vm9, %v9060_v26  ;;  %21680 = vmatpush3.xpose.msk.msra.mxu1 %vm6868_vm9, %v9070_v42 }
0x1280   :  { %21683 = vmatprep.mubr.msk.f32.mxu1 %vm6868_vm9, %v9061_v52  ;;  %21687 = vmatpush3.xpose.msk.msra.mxu0 %vm6868_vm9, %v9070_v42 }
0x1281   :  { %21690 = vmatprep.mubr.msk.f32.mxu0 %vm6868_vm9, %v9063_v39  ;;  %21681 = vmatprep.subr.msk.mxu1 %vm6868_vm9, %v9068_v9 }
0x1282   :  { %21688 = vmatprep.subr.msk.mxu0 %vm6868_vm9, %v9068_v9 }
0x1283   :  { %21682 = vmatpush3.xpose.msk.msra.mxu1 %vm6868_vm9, %v9068_v9 }
0x1284   :  { %21689 = vmatpush3.xpose.msk.msra.mxu0 %vm6868_vm9, %v9068_v9 }
0x1286   :  { %21684 = vmatmul.mubr.msk.f32.vlgmr.msra.gmra.mxu1 %vm6868_vm9, %v9062_v5 }
0x1287   :  { %21691 = vmatmul.mubr.msk.f32.vlgmr.msra.gmra.mxu0 %vm6868_vm9, %v9064_v57 }
0x132e   :  { %v21643_v35 = vpop.f32.mrf.mxu1  ;;  %v21650_v27 = vpop.f32.mrf.mxu0 }
0x132f   :  { %v9724_v7 = vmul.f32 0.5, %v21643_v35  ;;  %v9726_v55 = vmul.f32 0.5, %v21650_v27 }
0x1330   :  { %v9147_v20 = vpop.f32.mrf.mxu1  ;;  %v9228_v2 = vpop.f32.mrf.mxu0 }
0x1331   :  { %v9723_v53 = vmul.f32 0.5, %v9147_v20  ;;  %v9725_v8 = vmul.f32 0.5, %v9228_v2  ;;  %v25428_v37 = vadd.f32 %v25425_v23, %v9724_v7  ;;  %v25441_v6 = vadd.f32 %v25425_v23, %v9726_v55 }
0x1333   :  { %v9758_v49 = vsel %vm7721_vm10, %v25428_v37, -inf  ;;  %v25438_v47 = vadd.f32 %v25435_v56, %v9723_v53  ;;  %v25446_v60 = vadd.f32 %v25435_v56, %v9725_v8  ;;  %v9764_v41 = vsel %vm7721_vm10, %v25441_v6, -inf }
0x1334   :  { %9759 = vmax.xlane.f32.xlu0 %v9758_v49 }
0x1335   :  { %v9755_v18 = vsel %vm7717_vm11, %v25438_v47, -inf  ;;  %v9761_v16 = vsel %vm7717_vm11, %v25446_v60, -inf }
0x1336   :  { %9756 = vmax.xlane.f32.xlu1 %v9755_v18  ;;  %v21657_v15 = vpop.f32.mrf.mxu1 }
0x1337   :  { %v21664_v36 = vpop.f32.mrf.mxu0  ;;  %v9728_v21 = vmul.f32 0.5, %v21657_v15 }
0x1338   :  { %v9730_v17 = vmul.f32 0.5, %v21664_v36  ;;  %9765 = vmax.xlane.f32.xlu0 %v9764_v41  ;;  %v9309_v61 = vpop.f32.mrf.mxu1 }
0x1339   :  { %v9390_v12 = vpop.f32.mrf.mxu0  ;;  %v9727_v46 = vmul.f32 0.5, %v9309_v61  ;;  %v25453_v45 = vadd.f32 %v25425_v23, %v9728_v21 }
0x133a   :  { %v9729_v19 = vmul.f32 0.5, %v9390_v12  ;;  %9762 = vmax.xlane.f32.xlu1 %v9761_v16  ;;  %v25461_v3 = vadd.f32 %v25425_v23, %v9730_v17 }
0x133b   :  { %v9770_v40 = vsel %vm7721_vm10, %v25453_v45, -inf  ;;  %v25458_v13 = vadd.f32 %v25435_v56, %v9727_v46 }
0x133c   :  { %9771 = vmax.xlane.f32.xlu0 %v9770_v40  ;;  %v25466_v44 = vadd.f32 %v25435_v56, %v9729_v19  ;;  %v9776_v31 = vsel %vm7721_vm10, %v25461_v3, -inf }
0x133d   :  { %v9767_v4 = vsel %vm7717_vm11, %v25458_v13, -inf }
0x133e   :  { %9768 = vmax.xlane.f32.xlu1 %v9767_v4  ;;  %v21671_v63 = vpop.f32.mrf.mxu1  ;;  %v9773_v54 = vsel %vm7717_vm11, %v25466_v44, -inf }
0x133f   :  { %v21678_v42 = vpop.f32.mrf.mxu0  ;;  %v9732_v9 = vmul.f32 0.5, %v21671_v63 }
0x1340   :  { %v9734_v10 = vmul.f32 0.5, %v21678_v42  ;;  %9777 = vmax.xlane.f32.xlu0 %v9776_v31  ;;  %v9471_v51 = vpop.f32.mrf.mxu1 }
0x1341   :  { %v9552_v34 = vpop.f32.mrf.mxu0  ;;  %v9731_v62 = vmul.f32 0.5, %v9471_v51  ;;  %v25473_v28 = vadd.f32 %v25425_v23, %v9732_v9 }
0x1342   :  { %v9733_v30 = vmul.f32 0.5, %v9552_v34  ;;  %9774 = vmax.xlane.f32.xlu1 %v9773_v54  ;;  %v25481_v52 = vadd.f32 %v25425_v23, %v9734_v10 }
0x1343   :  { %v9782_v33 = vsel %vm7721_vm10, %v25473_v28, -inf  ;;  %v25478_v26 = vadd.f32 %v25435_v56, %v9731_v62 }
0x1344   :  { %9783 = vmax.xlane.f32.xlu0 %v9782_v33  ;;  %v25486_v5 = vadd.f32 %v25435_v56, %v9733_v30  ;;  %v9788_v7 = vsel %vm7721_vm10, %v25481_v52, -inf }
0x1345   :  { %v9779_v39 = vsel %vm7717_vm11, %v25478_v26, -inf }
0x1346   :  { %9780 = vmax.xlane.f32.xlu1 %v9779_v39  ;;  %v21685_v57 = vpop.f32.mrf.mxu1  ;;  %v9785_v8 = vsel %vm7717_vm11, %v25486_v5, -inf }
0x1347   :  { %v21692_v35 = vpop.f32.mrf.mxu0  ;;  %v9736_v27 = vmul.f32 0.5, %v21685_v57 }
0x1348   :  { %v9738_v55 = vmul.f32 0.5, %v21692_v35  ;;  %9789 = vmax.xlane.f32.xlu0 %v9788_v7  ;;  %v9633_v20 = vpop.f32.mrf.mxu1 }
0x1349   :  { %v9714_v2 = vpop.f32.mrf.mxu0  ;;  %v9735_v53 = vmul.f32 0.5, %v9633_v20  ;;  %v25493_v49 = vadd.f32 %v25425_v23, %v9736_v27 }
0x134a   :  { %v9737_v18 = vmul.f32 0.5, %v9714_v2  ;;  %9786 = vmax.xlane.f32.xlu1 %v9785_v8  ;;  %v25501_v21 = vadd.f32 %v25425_v23, %v9738_v55 }
0x134b   :  { %v9794_v15 = vsel %vm7721_vm10, %v25493_v49, -inf  ;;  %v25498_v36 = vadd.f32 %v25435_v56, %v9735_v53 }
0x134c   :  { %9795 = vmax.xlane.f32.xlu0 %v9794_v15  ;;  %v25506_v17 = vadd.f32 %v25435_v56, %v9737_v18  ;;  %v9800_v61 = vsel %vm7721_vm10, %v25501_v21, -inf }
0x134d   :  { %v9791_v41 = vsel %vm7717_vm11, %v25498_v36, -inf }
0x134e   :  { %9792 = vmax.xlane.f32.xlu1 %v9791_v41  ;;  %v9797_v12 = vsel %vm7717_vm11, %v25506_v17, -inf }
0x1350   :  { %9801 = vmax.xlane.f32.xlu0 %v9800_v61 }
0x1352   :  { %9798 = vmax.xlane.f32.xlu1 %v9797_v12 }
0x13bd   :  { %v9760_v46 = vpop.xlane.xlu0 %9759 }
0x13be   :  { %v9804_v23 = vsub.f32 %v25428_v37, %v9760_v46 }
0x13bf   :  { %v9757_v16 = vpop.xlane.xlu1 %9756 }
0x13c0   :  { %v9821_v19 = vmul.f32 1.442695, %v9804_v23  ;;  %v9803_v40 = vsub.f32 %v25438_v47, %v9757_v16 }
0x13c1   :  { %v9766_v4 = vpop.xlane.xlu0 %9765 }
0x13c2   :  { %22498 = vpow2.f32 %v9821_v19  ;;  %v9819_v56 = vmul.f32 1.442695, %v9803_v40  ;;  %v9806_v63 = vsub.f32 %v25441_v6, %v9766_v4 }
0x13c3   :  { %v9763_v42 = vpop.xlane.xlu1 %9762 }
0x13c4   :  { %22500 = vpow2.f32 %v9819_v56  ;;  %v9825_v9 = vmul.f32 1.442695, %v9806_v63  ;;  %v9805_v31 = vsub.f32 %v25446_v60, %v9763_v42 }
0x13c5   :  { %v9772_v10 = vpop.xlane.xlu0 %9771 }
0x13c6   :  { %22502 = vpow2.f32 %v9825_v9  ;;  %v9823_v51 = vmul.f32 1.442695, %v9805_v31  ;;  %v9808_v34 = vsub.f32 %v25453_v45, %v9772_v10 }
0x13c7   :  { %v9769_v37 = vpop.xlane.xlu1 %9768 }
0x13c8   :  { %22504 = vpow2.f32 %v9823_v51  ;;  %v9829_v62 = vmul.f32 1.442695, %v9808_v34  ;;  %v9807_v47 = vsub.f32 %v25458_v13, %v9769_v37 }
0x13c9   :  { %v9778_v54 = vpop.xlane.xlu0 %9777 }
0x13ca   :  { %22506 = vpow2.f32 %v9829_v62  ;;  %v9827_v30 = vmul.f32 1.442695, %v9807_v47  ;;  %v9810_v6 = vsub.f32 %v25461_v3, %v9778_v54 }
0x13cb   :  { %v9775_v33 = vpop.xlane.xlu1 %9774 }
0x13cc   :  { %22508 = vpow2.f32 %v9827_v30  ;;  %v9833_v39 = vmul.f32 1.442695, %v9810_v6  ;;  %v9809_v60 = vsub.f32 %v25466_v44, %v9775_v33 }
0x13cd   :  { %v9784_v57 = vpop.xlane.xlu0 %9783 }
0x13ce   :  { %22510 = vpow2.f32 %v9833_v39  ;;  %v9831_v35 = vmul.f32 1.442695, %v9809_v60  ;;  %v9812_v45 = vsub.f32 %v25473_v28, %v9784_v57 }
0x13cf   :  { %v25521_v27 = vpop.eup %22498  ;;  %v9781_v7 = vpop.xlane.xlu1 %9780 }
0x13d0   :  { %22512 = vpow2.f32 %v9831_v35  ;;  %v9837_v13 = vmul.f32 1.442695, %v9812_v45  ;;  %v9811_v55 = vsub.f32 %v25478_v26, %v9781_v7  ;;  %v9854_v3 = vsel %vm7721_vm10, %v25521_v27, 0.0 }
0x13d1   :  { %v25526_v20 = vpop.eup %22500  ;;  %v9790_v2 = vpop.xlane.xlu0 %9789  ;;  %9855 = vadd.xlane.f32.xlu0 %v9854_v3 }
0x13d2   :  { %22514 = vpow2.f32 %v9837_v13  ;;  %v9835_v44 = vmul.f32 1.442695, %v9811_v55  ;;  %v9814_v53 = vsub.f32 %v25481_v52, %v9790_v2  ;;  %v9851_v28 = vsel %vm7717_vm11, %v25526_v20, 0.0 }
0x13d3   :  { %v25531_v8 = vpop.eup %22502  ;;  %v9787_v18 = vpop.xlane.xlu1 %9786  ;;  %9852 = vadd.xlane.f32.xlu1 %v9851_v28 }
0x13d4   :  { %22516 = vpow2.f32 %v9835_v44  ;;  %v9841_v26 = vmul.f32 1.442695, %v9814_v53  ;;  %v9813_v15 = vsub.f32 %v25486_v5, %v9787_v18  ;;  %v9860_v41 = vsel %vm7721_vm10, %v25531_v8, 0.0 }
0x13d5   :  { %v25536_v61 = vpop.eup %22504  ;;  %9861 = vadd.xlane.f32.xlu0 %v9860_v41  ;;  %v9796_v12 = vpop.xlane.xlu0 %9795 }
0x13d6   :  { %22518 = vpow2.f32 %v9841_v26  ;;  %v9839_v52 = vmul.f32 1.442695, %v9813_v15  ;;  %v9816_v46 = vsub.f32 %v25493_v49, %v9796_v12  ;;  %v9857_v23 = vsel %vm7717_vm11, %v25536_v61, 0.0 }
0x13d7   :  { %v25541_v16 = vpop.eup %22506  ;;  %9858 = vadd.xlane.f32.xlu1 %v9857_v23  ;;  %v9793_v19 = vpop.xlane.xlu1 %9792 }
0x13d8   :  { %22520 = vpow2.f32 %v9839_v52  ;;  %v9845_v5 = vmul.f32 1.442695, %v9816_v46  ;;  %v9815_v40 = vsub.f32 %v25498_v36, %v9793_v19  ;;  %v9866_v4 = vsel %vm7721_vm10, %v25541_v16, 0.0 }
0x13d9   :  { %v25546_v56 = vpop.eup %22508  ;;  %9867 = vadd.xlane.f32.xlu0 %v9866_v4  ;;  %v9802_v63 = vpop.xlane.xlu0 %9801 }
0x13da   :  { %22522 = vpow2.f32 %v9845_v5  ;;  %v9843_v49 = vmul.f32 1.442695, %v9815_v40  ;;  %v9818_v42 = vsub.f32 %v25501_v21, %v9802_v63  ;;  %v9863_v9 = vsel %vm7717_vm11, %v25546_v56, 0.0 }
0x13db   :  { %v25551_v31 = vpop.eup %22510  ;;  %9864 = vadd.xlane.f32.xlu1 %v9863_v9  ;;  %v9799_v10 = vpop.xlane.xlu1 %9798 }
0x13dc   :  { %22524 = vpow2.f32 %v9843_v49  ;;  %v9849_v36 = vmul.f32 1.442695, %v9818_v42  ;;  %v9817_v51 = vsub.f32 %v25506_v17, %v9799_v10  ;;  %v9872_v34 = vsel %vm7721_vm10, %v25551_v31, 0.0 }
0x13dd   :  { %v25556_v37 = vpop.eup %22512  ;;  %9873 = vadd.xlane.f32.xlu0 %v9872_v34 }
0x13de   :  { %22526 = vpow2.f32 %v9849_v36  ;;  %v9847_v62 = vmul.f32 1.442695, %v9817_v51  ;;  %v9869_v21 = vsel %vm7717_vm11, %v25556_v37, 0.0 }
0x13df   :  { %v25560_v47 = vpop.eup %22514  ;;  %9870 = vadd.xlane.f32.xlu1 %v9869_v21 }
0x13e0   :  { %22528 = vpow2.f32 %v9847_v62  ;;  %v9878_v54 = vsel %vm7721_vm10, %v25560_v47, 0.0 }
0x13e1   :  { %v25564_v30 = vpop.eup %22516  ;;  %9879 = vadd.xlane.f32.xlu0 %v9878_v54 }
0x13e2   :  { %v9875_v17 = vsel %vm7717_vm11, %v25564_v30, 0.0 }
0x13e3   :  { %v25568_v6 = vpop.eup %22518  ;;  %9876 = vadd.xlane.f32.xlu1 %v9875_v17 }
0x13e4   :  { %v9884_v33 = vsel %vm7721_vm10, %v25568_v6, 0.0 }
0x13e5   :  { %v25572_v39 = vpop.eup %22520  ;;  %9885 = vadd.xlane.f32.xlu0 %v9884_v33 }
0x13e6   :  { %v9881_v60 = vsel %vm7717_vm11, %v25572_v39, 0.0 }
0x13e7   :  { %v25576_v57 = vpop.eup %22522  ;;  %9882 = vadd.xlane.f32.xlu1 %v9881_v60 }
0x13e8   :  { %v9890_v35 = vsel %vm7721_vm10, %v25576_v57, 0.0 }
0x13e9   :  { %v25580_v45 = vpop.eup %22524  ;;  %9891 = vadd.xlane.f32.xlu0 %v9890_v35 }
0x13ea   :  { %v9887_v7 = vsel %vm7717_vm11, %v25580_v45, 0.0 }
0x13eb   :  { %v25584_v13 = vpop.eup %22526  ;;  %9888 = vadd.xlane.f32.xlu1 %v9887_v7 }
0x13ec   :  { %v9896_v55 = vsel %vm7721_vm10, %v25584_v13, 0.0 }
0x13ed   :  { %v25588_v3 = vpop.eup %22528  ;;  %9897 = vadd.xlane.f32.xlu0 %v9896_v55 }
0x13ee   :  { %v9893_v2 = vsel %vm7717_vm11, %v25588_v3, 0.0 }
0x13ef   :  { %9894 = vadd.xlane.f32.xlu1 %v9893_v2 }
0x1400   :  { %9933 = vrot.lane.b32.xlu1 %v25294_v11, %s22935_s16 }
0x1403   :  { %9931 = vrot.lane.b32.xlu0 %v25296_v29, %s22935_s16 }
0x145a   :  { %v9856_v44 = vpop.xlane.xlu0 %9855 }
0x145c   :  { %v9853_v53 = vpop.xlane.xlu1 %9852 }
0x145d   :  { %22530 = vrcp.f32 %v9853_v53 }
0x145e   :  { %v9862_v28 = vpop.xlane.xlu0 %9861 }
0x1460   :  { %v9859_v18 = vpop.xlane.xlu1 %9858 }
0x1462   :  { %v9868_v26 = vpop.xlane.xlu0 %9867 }
0x1464   :  { %v9865_v15 = vpop.xlane.xlu1 %9864 }
0x1465   :  { %22532 = vrcp.f32 %v9865_v15 }
0x1466   :  { %v9874_v41 = vpop.xlane.xlu0 %9873  ;;  %22534 = vrcp.f32 %v9856_v44 }
0x1467   :  { %22536 = vrcp.f32 %v9868_v26 }
0x1468   :  { %v9871_v12 = vpop.xlane.xlu1 %9870  ;;  %22538 = vrcp.f32 %v9859_v18 }
0x146a   :  { %v22531_v52 = vpop.eup %22530  ;;  %v9880_v46 = vpop.xlane.xlu0 %9879 }
0x146b   :  { %v9900_v23 = vmul.f32 %v22531_v52, %v25526_v20 }
0x146c   :  { %v9877_v19 = vpop.xlane.xlu1 %9876 }
0x146d   :  { %21697 = vmatprep.mubr.msk.f32.mxu1 %vm7717_vm11, %v9900_v23  ;;  %22540 = vrcp.f32 %v9877_v19 }
0x146e   :  { %v9886_v11 = vpop.xlane.xlu0 %9885  ;;  %22542 = vrcp.f32 %v9862_v28  ;;  %v9044_v28 = vld [vmem:[%s27932_s0 + $0x490] sm:$0xff] }
0x146f   :  { %22544 = vrcp.f32 %v9880_v46 }
0x1470   :  { %v9883_v29 = vpop.xlane.xlu1 %9882 }
0x1472   :  { %v22533_v5 = vpop.eup %22532  ;;  %v9892_v40 = vpop.xlane.xlu0 %9891 }
0x1473   :  { %v9908_v4 = vmul.f32 %v22533_v5, %v25546_v56  ;;  %v22535_v42 = vpop.eup %22534 }
0x1474   :  { %v9889_v63 = vpop.xlane.xlu1 %9888  ;;  %v22537_v10 = vpop.eup %22536  ;;  %v9902_v34 = vmul.f32 %v22535_v42, %v25521_v27 }
0x1475   :  { %21711 = vmatprep.mubr.msk.f32.mxu0 %vm7717_vm11, %v9908_v4  ;;  %22546 = vrcp.f32 %v9889_v63  ;;  %v22539_v56 = vpop.eup %22538  ;;  %v9910_v62 = vmul.f32 %v22537_v10, %v25541_v16 }
0x1476   :  { %22548 = vrcp.f32 %v9871_v12  ;;  %v9898_v20 = vpop.xlane.xlu0 %9897  ;;  %v9904_v27 = vmul.f32 %v22539_v56, %v25536_v61 }
0x1477   :  { %22550 = vrcp.f32 %v9874_v41 }
0x1478   :  { %v9895_v49 = vpop.xlane.xlu1 %9894  ;;  %22552 = vrcp.f32 %v9892_v40 }
0x1479   :  { %22554 = vrcp.f32 %v9883_v29 }
0x147a   :  { %v25606_v36 = vpop.permute.xlu0 %9931  ;;  %v22541_v51 = vpop.eup %22540  ;;  %22556 = vrcp.f32 %v9886_v11 }
0x147b   :  { %22558 = vrcp.f32 %v9895_v49  ;;  %v22543_v21 = vpop.eup %22542  ;;  %v9916_v16 = vmul.f32 %v22541_v51, %v25564_v30 }
0x147c   :  { %v25600_v9 = vpop.permute.xlu1 %9933  ;;  %v22545_v54 = vpop.eup %22544  ;;  %22560 = vrcp.f32 %v9898_v20  ;;  %v9906_v61 = vmul.f32 %v22543_v21, %v25531_v8 }
0x147d   :  { %21693 = vmatprep.subr.msk.mxu1 %vm4149_vm7, %v25600_v9  ;;  %21707 = vmatprep.subr.msk.mxu0 %vm4149_vm7, %v25600_v9  ;;  %v9918_v30 = vmul.f32 %v22545_v54, %v25560_v47 }
0x147e   :  { %21694 = vmatpush3.msk.msra.mxu1 %vm4149_vm7, %v25600_v9  ;;  %21708 = vmatpush3.msk.msra.mxu0 %vm4149_vm7, %v25600_v9 }
0x147f   :  { %21695 = vmatprep.subr.mxu1 %v25606_v36  ;;  %21709 = vmatprep.subr.mxu0 %v25606_v36 }
0x1480   :  { %21696 = vmatpush3.msra.mxu1 %v25606_v36  ;;  %21710 = vmatpush3.msra.mxu0 %v25606_v36 }
0x1481   :  { %21698 = vmatmul.mubr.msk.f32.vlgmr.msra.gmra.mxu1 %vm7717_vm11, %v9902_v34  ;;  %21700 = vmatprep.subr.msk.mxu1 %vm4149_vm7, %v25600_v9 }
0x1482   :  { %21712 = vmatmul.mubr.msk.f32.vlgmr.msra.gmra.mxu0 %vm7717_vm11, %v9910_v62  ;;  %21721 = vmatprep.subr.msk.mxu0 %vm4149_vm7, %v25600_v9  ;;  %v22547_v17 = vpop.eup %22546 }
0x1483   :  { %21701 = vmatpush3.msk.msra.mxu1 %vm4149_vm7, %v25600_v9  ;;  %21704 = vmatprep.mubr.msk.f32.mxu1 %vm7717_vm11, %v9904_v27  ;;  %v22549_v33 = vpop.eup %22548  ;;  %v9924_v60 = vmul.f32 %v22547_v17, %v25580_v45 }
0x1484   :  { %21722 = vmatpush3.msk.msra.mxu0 %vm4149_vm7, %v25600_v9  ;;  %21725 = vmatprep.mubr.msk.f32.mxu0 %vm7717_vm11, %v9916_v16  ;;  %v9912_v35 = vmul.f32 %v22549_v33, %v25556_v37  ;;  %v22551_v8 = vpop.eup %22550 }
0x1485   :  { %21702 = vmatprep.subr.mxu1 %v25606_v36  ;;  %21723 = vmatprep.subr.mxu0 %v25606_v36  ;;  %v22553_v47 = vpop.eup %22552  ;;  %v9914_v37 = vmul.f32 %v22551_v8, %v25551_v31 }
0x1486   :  { %21703 = vmatpush3.msra.mxu1 %v25606_v36  ;;  %21724 = vmatpush3.msra.mxu0 %v25606_v36  ;;  %v22555_v45 = vpop.eup %22554  ;;  %v9926_v55 = vmul.f32 %v22553_v47, %v25576_v57 }
0x1487   :  { %21705 = vmatmul.mubr.msk.f32.vlgmr.msra.gmra.mxu1 %vm7717_vm11, %v9906_v61  ;;  %21714 = vmatprep.subr.msk.mxu1 %vm4149_vm7, %v25600_v9  ;;  %v22557_v7 = vpop.eup %22556  ;;  %v9920_v44 = vmul.f32 %v22555_v45, %v25572_v39  ;;  %v9047_v39 = vld [vmem:[%s27932_s0 + $0x4a8] sm:$0xff] }
0x1488   :  { %21726 = vmatmul.mubr.msk.f32.vlgmr.msra.gmra.mxu0 %vm7717_vm11, %v9918_v30  ;;  %21735 = vmatprep.subr.msk.mxu0 %vm4149_vm7, %v25600_v9  ;;  %v22559_v2 = vpop.eup %22558  ;;  %v9922_v31 = vmul.f32 %v22557_v7, %v25568_v6 }
0x1489   :  { %21715 = vmatpush3.msk.msra.mxu1 %vm4149_vm7, %v25600_v9  ;;  %21718 = vmatprep.mubr.msk.f32.mxu1 %vm7717_vm11, %v9912_v35  ;;  %v22561_v57 = vpop.eup %22560  ;;  %v9928_v53 = vmul.f32 %v22559_v2, %v25588_v3  ;;  %v9046_v3 = vld [vmem:[%s27932_s0 + $0x4a0] sm:$0xff] }
0x148a   :  { %21736 = vmatpush3.msk.msra.mxu0 %vm4149_vm7, %v25600_v9  ;;  %21739 = vmatprep.mubr.msk.f32.mxu0 %vm7717_vm11, %v9924_v60  ;;  %v9930_v6 = vmul.f32 %v22561_v57, %v25584_v13  ;;  %v9045_v13 = vld [vmem:[%s27932_s0 + $0x498] sm:$0xff] }
0x148b   :  { %21716 = vmatprep.subr.mxu1 %v25606_v36  ;;  %21737 = vmatprep.subr.mxu0 %v25606_v36 }
0x148c   :  { %21717 = vmatpush3.msra.mxu1 %v25606_v36  ;;  %21738 = vmatpush3.msra.mxu0 %v25606_v36 }
0x148d   :  { %21719 = vmatmul.mubr.msk.f32.vlgmr.msra.gmra.mxu1 %vm7717_vm11, %v9914_v37  ;;  %21728 = vmatprep.subr.msk.mxu1 %vm4149_vm7, %v25600_v9 }
0x148e   :  { %21740 = vmatmul.mubr.msk.f32.vlgmr.msra.gmra.mxu0 %vm7717_vm11, %v9926_v55  ;;  %21729 = vmatpush3.msk.msra.mxu1 %vm4149_vm7, %v25600_v9 }
0x148f   :  { %21732 = vmatprep.mubr.msk.f32.mxu1 %vm7717_vm11, %v9920_v44  ;;  %21730 = vmatprep.subr.mxu1 %v25606_v36 }
0x1490   :  { %21731 = vmatpush3.msra.mxu1 %v25606_v36  ;;  %21749 = vmatprep.subr.mxu0 %v9047_v39 }
0x1491   :  { %21733 = vmatmul.mubr.msk.f32.vlgmr.msra.gmra.mxu1 %vm7717_vm11, %v9922_v31  ;;  %21742 = vmatprep.subr.msk.mxu1 %vm4149_vm7, %v25600_v9 }
0x1492   :  { %21743 = vmatpush3.msk.msra.mxu1 %vm4149_vm7, %v25600_v9  ;;  %21746 = vmatprep.mubr.msk.f32.mxu1 %vm7717_vm11, %v9928_v53 }
0x1493   :  { %21744 = vmatprep.subr.mxu1 %v25606_v36  ;;  %21750 = vmatpush3.msra.mxu0 %v9047_v39 }
0x1494   :  { %21745 = vmatpush3.msra.mxu1 %v25606_v36  ;;  %21751 = vmatprep.subr.mxu0 %v9046_v3 }
0x1495   :  { %21747 = vmatmul.mubr.msk.f32.vlgmr.msra.gmra.mxu1 %vm7717_vm11, %v9930_v6  ;;  %21752 = vmatpush3.msra.mxu0 %v9046_v3 }
0x1496   :  { %21753 = vmatprep.subr.mxu0 %v9045_v13 }
0x1497   :  { %21754 = vmatpush3.msra.mxu0 %v9045_v13 }
0x1498   :  { %21755 = vmatprep.subr.mxu0 %v9044_v28 }
0x1499   :  { %21756 = vmatpush3.msra.mxu0 %v9044_v28 }
0x1541   :  { %v21699_v18 = vpop.f32.mrf.mxu1 }
0x1542   :  { %v21713_v26 = vpop.f32.mrf.mxu0  ;;  %v10587_v12 = vmul.f32 %v25305_v1, %v21699_v18 }
0x1543   :  { %v10010_v15 = vpop.f32.mrf.mxu1  ;;  %v10591_v46 = vmul.f32 %v25335_v22, %v21713_v26 }
0x1544   :  { %v10172_v41 = vpop.f32.mrf.mxu0  ;;  %v10586_v23 = vmul.f32 %v25305_v1, %v10010_v15  ;;  %v10617_v5 = vsel %vm8581_vm12, %v10587_v12, 0.0  ;;  %v19484_v12 = vld [vmem:[%s27932_s0 + $0x4b0] ss:$0 sm:$0xff] }
0x1545   :  { %v10590_v40 = vmul.f32 %v25335_v22, %v10172_v41  ;;  %v10620_v42 = vsel %vm8581_vm12, %v10591_v46, 0.0 }
0x1546   :  { %v10602_v9 = vsel %vm6868_vm9, %v10586_v23, 0.0 }
0x1547   :  { %v21706_v52 = vpop.f32.mrf.mxu1  ;;  %v10605_v51 = vsel %vm6868_vm9, %v10590_v40, 0.0 }
0x1548   :  { %v10589_v19 = vmul.f32 %v25312_v43, %v21706_v52  ;;  %v21727_v11 = vpop.f32.mrf.mxu0 }
0x1549   :  { %v10091_v29 = vpop.f32.mrf.mxu1  ;;  %v10595_v34 = vmul.f32 %v25366_v58, %v21727_v11 }
0x154a   :  { %v10618_v4 = vsel %vm8581_vm12, %v10589_v19, 0.0  ;;  %v10588_v63 = vmul.f32 %v25312_v43, %v10091_v29  ;;  %v10334_v20 = vpop.f32.mrf.mxu0 }
0x154b   :  { %v10619_v49 = vadd.f32 %v10618_v4, %v10617_v5  ;;  %v10594_v27 = vmul.f32 %v25366_v58, %v10334_v20  ;;  %v10624_v30 = vsel %vm8581_vm12, %v10595_v34, 0.0  ;;  %v11030_v34 = vld [vmem:[%s27932_s0 + $0x570] sm:$0xff] }
0x154c   :  { %v10603_v1 = vsel %vm6868_vm9, %v10588_v63, 0.0 }
0x154d   :  { %v10604_v10 = vadd.f32 %v10603_v1, %v10602_v9  ;;  %v21720_v56 = vpop.f32.mrf.mxu1  ;;  %v10621_v36 = vadd.f32 %v10620_v42, %v10619_v49  ;;  %v10609_v58 = vsel %vm6868_vm9, %v10594_v27, 0.0 }
0x154e   :  { %v10593_v22 = vmul.f32 %v25344_v50, %v21720_v56  ;;  %v21741_v62 = vpop.f32.mrf.mxu0  ;;  %v10761_v56 = vld [vmem:[%s27932_s0 + $0x4d8] sm:$0xff] }
0x154f   :  { %v10253_v21 = vpop.f32.mrf.mxu1  ;;  %v10606_v43 = vadd.f32 %v10605_v51, %v10604_v10  ;;  %v10599_v8 = vmul.f32 %v25396_v38, %v21741_v62  ;;  %v10759_v51 = vld [vmem:[%s27932_s0 + $0x4c8] sm:$0xff]  ;;  %v10857_v62 = vld [vmem:[%s27932_s0 + $0x520] sm:$0xff] }
0x1550   :  { %v10622_v54 = vsel %vm8581_vm12, %v10593_v22, 0.0  ;;  %v10592_v16 = vmul.f32 %v25344_v50, %v10253_v21  ;;  %v10496_v33 = vpop.f32.mrf.mxu0  ;;  %v10858_v22 = vld [vmem:[%s27932_s0 + $0x528] sm:$0xff]  ;;  %v10856_v21 = vld [vmem:[%s27932_s0 + $0x518] sm:$0xff] }
0x1551   :  { %v10623_v17 = vadd.f32 %v10622_v54, %v10621_v36  ;;  %v21734_v61 = vpop.f32.mrf.mxu1  ;;  %v10598_v7 = vmul.f32 %v25396_v38, %v10496_v33  ;;  %v10628_v6 = vsel %vm8581_vm12, %v10599_v8, 0.0  ;;  %v10760_v36 = vld [vmem:[%s27932_s0 + $0x4d0] sm:$0xff]  ;;  %21771 = vmatprep.subr.mxu0 %v10858_v22 }
0x1552   :  { %v10607_v60 = vsel %vm6868_vm9, %v10592_v16, 0.0  ;;  %v10597_v35 = vmul.f32 %v25375_v14, %v21734_v61 }
0x1553   :  { %v10608_v47 = vadd.f32 %v10607_v60, %v10606_v43  ;;  %v10625_v45 = vadd.f32 %v10624_v30, %v10623_v17  ;;  %v10415_v37 = vpop.f32.mrf.mxu1  ;;  %v10613_v13 = vsel %vm6868_vm9, %v10598_v7, 0.0  ;;  %v10855_v43 = vld [vmem:[%s27932_s0 + $0x510] sm:$0xff]  ;;  %v19487_v60 = vld [vmem:[%s27932_s0 + $0x4b8] ss:$0 sm:$0xff] }
0x1554   :  { %v10626_v50 = vsel %vm8581_vm12, %v10597_v35, 0.0  ;;  %v10596_v55 = vmul.f32 %v25375_v14, %v10415_v37  ;;  %v19488_v37 = vld [vmem:[%s27932_s0 + $0x4c0] ss:$0 sm:$0xff] }
0x1555   :  { %v10627_v2 = vadd.f32 %v10626_v50, %v10625_v45  ;;  %v10610_v44 = vadd.f32 %v10609_v58, %v10608_v47  ;;  %v21748_v31 = vpop.f32.mrf.mxu1 }
0x1556   :  { %v10611_v57 = vsel %vm6868_vm9, %v10596_v55, 0.0  ;;  %v10601_v53 = vmul.f32 %v25405_v48, %v21748_v31  ;;  %v11029_v55 = vld [vmem:[%s27932_s0 + $0x568] sm:$0xff] }
0x1557   :  { %v10612_v39 = vadd.f32 %v10611_v57, %v10610_v44  ;;  %v10577_v3 = vpop.f32.mrf.mxu1  ;;  %v10629_v28 = vadd.f32 %v10628_v6, %v10627_v2  ;;  %v11028_v2 = vld [vmem:[%s27932_s0 + $0x560] sm:$0xff]  ;;  %v11027_v44 = vld [vmem:[%s27932_s0 + $0x558] sm:$0xff]  ;;  %v10854_v31 = vld [vmem:[%s27932_s0 + $0x508] sm:$0xff] }
0x1558   :  { %v10600_v38 = vmul.f32 %v25405_v48, %v10577_v3  ;;  %v10630_v18 = vsel %vm8581_vm12, %v10601_v53, 0.0  ;;  %v10853_v57 = vld [vmem:[%s27932_s0 + $0x500] sm:$0xff]  ;;  %v10852_v53 = vld [vmem:[%s27932_s0 + $0x4f8] sm:$0xff]  ;;  %v10851_v6 = vld [vmem:[%s27932_s0 + $0x4f0] sm:$0xff] }
0x1559   :  { %v10614_v26 = vadd.f32 %v10613_v13, %v10612_v39  ;;  %v10631_v41 = vadd.f32 %v10630_v18, %v10629_v28  ;;  %v19489_v39 = vld [vmem:[%s27932_s0 + $0x4e8] ss:$0 sm:$0xff] }
0x155a   :  { %v10615_v14 = vsel %vm6868_vm9, %v10600_v38, 0.0 }
0x155b   :  { %v10616_v15 = vadd.f32 %v10615_v14, %v10614_v26  ;;  %v19499_v14 = vld [vmem:[%s27932_s0 + $0x578] ss:$0 sm:$0xff] }
0x155d   :  { %21757 = vmatprep.mubr.msk.f32.mxu0 %vm6868_vm9, %v10616_v15 }
0x155e   :  { %21758 = vmatmul.mubr.msk.f32.vlgmr.msra.gmra.mxu0 %vm6868_vm9, %v10631_v41 }
0x155f   :  { %21772 = vmatpush3.msra.mxu0 %v10858_v22  ;;  %v25920_v22 = vld [vmem:[%s27937_s5 + $0x7] ss:$0 sm:$0xff] }
0x1560   :  { %21773 = vmatprep.subr.mxu0 %v10857_v62 }
0x1561   :  { %21774 = vmatpush3.msra.mxu0 %v10857_v62 }
0x1562   :  { %21775 = vmatprep.subr.mxu0 %v10856_v21 }
0x1563   :  { %21776 = vmatpush3.msra.mxu0 %v10856_v21 }
0x1564   :  { %21777 = vmatprep.subr.mxu0 %v10855_v43 }
0x1565   :  { %21778 = vmatpush3.msra.mxu0 %v10855_v43 }
0x1566   :  { %21779 = vmatprep.subr.mxu0 %v10854_v31 }
0x1567   :  { %21780 = vmatpush3.msra.mxu0 %v10854_v31 }
0x1568   :  { %21781 = vmatprep.subr.mxu0 %v10853_v57 }
0x1569   :  { %21782 = vmatpush3.msra.mxu0 %v10853_v57 }
0x156a   :  { %21783 = vmatprep.subr.mxu0 %v10852_v53 }
0x156b   :  { %21784 = vmatpush3.msra.mxu0 %v10852_v53 }
0x156c   :  { %21785 = vmatprep.subr.mxu0 %v10851_v6 }
0x156d   :  { %21786 = vmatpush3.msra.mxu0 %v10851_v6 }
0x161e   :  { %v21759_v52 = vpop.f32.mrf.mxu0 }
0x161f   :  { %v10714_v46 = vadd.f32 %v21759_v52, %v19484_v12 }
0x1620   :  { %v10708_v23 = vpop.f32.mrf.mxu0 }
0x1621   :  { %v10709_v19 = vadd.f32 %v19484_v12, %v10708_v23  ;;  %v10718_v48 = vadd.f32 %v10714_v46, %v25285_v24  ;;  %v25820_v46 = vld [vmem:[%s27937_s5] ss:$0 sm:$0xff] }
0x1623   :  { %v10724_v11 = vsel %vm8581_vm12, %v10718_v48, 0.0  ;;  %v10717_v29 = vadd.f32 %v10709_v19, %v25283_v59  ;;  %v10762_v59 = vld [vmem:[%s27932_s0 + $0x4e0] sm:$0xff] }
0x1624   :  { %10725 = vadd.xlane.f32.xlu0 %v10724_v11  ;;  %21760 = vmatprep.subr.mxu1 %v10762_v59  ;;  %v25827_v19 = vld [vmem:[%s27937_s5 + $0x1] ss:$0 sm:$0xff] }
0x1625   :  { %v10721_v5 = vsel %vm6868_vm9, %v10717_v29, 0.0  ;;  %21761 = vmatpush3.msra.mxu1 %v10762_v59 }
0x1626   :  { %10722 = vadd.xlane.f32.xlu1 %v10721_v5  ;;  %21762 = vmatprep.subr.mxu1 %v10761_v56 }
0x1627   :  { %21763 = vmatpush3.msra.mxu1 %v10761_v56 }
0x1628   :  { %21764 = vmatprep.subr.mxu1 %v10760_v36 }
0x1629   :  { %21765 = vmatpush3.msra.mxu1 %v10760_v36 }
0x162a   :  { %21766 = vmatprep.subr.mxu1 %v10759_v51 }
0x162b   :  { %21767 = vmatpush3.msra.mxu1 %v10759_v51  ;;  %v25911_v51 = vld [vmem:[%s27937_s5 + $0x6] ss:$0 sm:$0xff] }
0x162c   :  { %21790 = vmatprep.subr.mxu1 %v11030_v34 }
0x16ad   :  { %v10726_v40 = vpop.xlane.xlu0 %10725 }
0x16ae   :  { %v10728_v4 = vmul.f32 0.03125, %v10726_v40 }
0x16af   :  { %v10723_v63 = vpop.xlane.xlu1 %10722 }
0x16b0   :  { %v10730_v20 = vsub.f32 %v10718_v48, %v10728_v4  ;;  %v10727_v49 = vmul.f32 0.03125, %v10723_v63  ;;  %v25850_v4 = vld [vmem:[%s27937_s5 + $0x2] ss:$0 sm:$0xff] }
0x16b2   :  { %v10729_v42 = vsub.f32 %v10717_v29, %v10727_v49  ;;  %v10732_v9 = vmul.f32 %v10730_v20, %v10730_v20 }
0x16b4   :  { %v10736_v1 = vsel %vm8581_vm12, %v10732_v9, 0.0  ;;  %v10731_v10 = vmul.f32 %v10729_v42, %v10729_v42 }
0x16b5   :  { %10737 = vadd.xlane.f32.xlu0 %v10736_v1  ;;  %v25881_v1 = vld [vmem:[%s27937_s5 + $0x4] ss:$0 sm:$0xff] }
0x16b6   :  { %v10733_v24 = vsel %vm6868_vm9, %v10731_v10, 0.0 }
0x16b7   :  { %10734 = vadd.xlane.f32.xlu1 %v10733_v24  ;;  %v25890_v24 = vld [vmem:[%s27937_s5 + $0x5] ss:$0 sm:$0xff] }
0x173e   :  { %v10738_v27 = vpop.xlane.xlu0 %10737 }
0x173f   :  { %v10740_v54 = vmul.f32 0.03125, %v10738_v27 }
0x1740   :  { %v10735_v16 = vpop.xlane.xlu1 %10734 }
0x1741   :  { %v10742_v17 = vadd.f32 1e-05, %v10740_v54  ;;  %v10739_v33 = vmul.f32 0.03125, %v10735_v16 }
0x1743   :  { %22562 = vrsqrt.f32 %v10742_v17  ;;  %v10741_v61 = vadd.f32 1e-05, %v10739_v33 }
0x1745   :  { %22564 = vrsqrt.f32 %v10741_v61 }
0x1750   :  { %v22563_v30 = vpop.eup %22562 }
0x1751   :  { %v10746_v35 = vmul.f32 %v22563_v30, %v10730_v20  ;;  %v25859_v20 = vld [vmem:[%s27937_s5 + $0x3] ss:$0 sm:$0xff] }
0x1752   :  { %v22565_v8 = vpop.eup %22564 }
0x1753   :  { %v10745_v47 = vmul.f32 %v22565_v8, %v10729_v42  ;;  %v10752_v45 = vmul.f32 %v19487_v60, %v10746_v35 }
0x1755   :  { %v10751_v58 = vmul.f32 %v19487_v60, %v10745_v47  ;;  %v25770_v50 = vadd.f32 %v19488_v37, %v10752_v45  ;;  %v25944_v47 = vld [vmem:[%s27933_s1 + $0x28] sm:$0x3] }
0x1757   :  { %v25768_v7 = vadd.f32 %v19488_v37, %v10751_v58  ;;  %v25954_v58 = vld [vmem:[%s27933_s1 + $0x20] sm:$0xff] }
0x1759   :  { %21768 = vmatprep.mubr.msk.f32.mxu1 %vm6868_vm9, %v25768_v7 }
0x175a   :  { %21769 = vmatmul.mubr.msk.f32.vlgmr.msra.gmra.mxu1 %vm6868_vm9, %v25770_v50 }
0x175b   :  { %21791 = vmatpush3.msra.mxu1 %v11030_v34  ;;  %21798 = vmatprep.mubr.msk.f32.mxu1 %vm6868_vm9, %v24767_v0 }
0x175c   :  { %21792 = vmatprep.subr.mxu1 %v11029_v55 }
0x175d   :  { %21793 = vmatpush3.msra.mxu1 %v11029_v55 }
0x175e   :  { %21794 = vmatprep.subr.mxu1 %v11028_v2 }
0x175f   :  { %21795 = vmatpush3.msra.mxu1 %v11028_v2 }
0x1760   :  { %21796 = vmatprep.subr.mxu1 %v11027_v44 }
0x1761   :  { %21797 = vmatpush3.msra.mxu1 %v11027_v44 }
0x1762   :  { %21799 = vmatmul.mubr.msk.f32.vlgmr.msra.gmra.mxu1 %vm6868_vm9, %v24769_v25 }
0x181a   :  { %v21770_v3 = vpop.f32.mrf.mxu1 }
0x181b   :  { %v10846_v13 = vadd.f32 %v21770_v3, %v19489_v39 }
0x181c   :  { %v10840_v28 = vpop.f32.mrf.mxu1 }
0x181d   :  { %v10841_v38 = vadd.f32 %v19489_v39, %v10840_v28  ;;  %v10850_v26 = vmax.f32 %v10846_v13, 0.0 }
0x181f   :  { %v10849_v18 = vmax.f32 %v10841_v38, 0.0 }
0x1821   :  { %21787 = vmatprep.mubr.msk.f32.mxu0 %vm8830_vm13, %v10849_v18 }
0x1822   :  { %v21800_v15 = vpop.f32.mrf.mxu1  ;;  %21788 = vmatmul.mubr.msk.f32.vlgmr.msra.gmra.mxu0 %vm8830_vm13, %v10850_v26 }
0x1823   :  { %v25809_v41 = vadd.f32 %v21800_v15, %v19499_v14 }
0x1824   :  { %v11102_v12 = vpop.f32.mrf.mxu1 }
0x1825   :  { %v25811_v52 = vadd.f32 %v19499_v14, %v11102_v12  ;;  %11136 = vrot.lane.b32.xlu1 %v25809_v41, %s22934_s21  ;;  %v11117_v5 = vmul.f32 %v25820_v46, %v25809_v41  ;;  %v11119_v40 = vmul.f32 %v25827_v19, %v25809_v41  ;;  %v11121_v42 = vmul.f32 %v25850_v4, %v25809_v41 }
0x1826   :  { %v11123_v9 = vmul.f32 %v25859_v20, %v25809_v41  ;;  %v11125_v56 = vmul.f32 %v25881_v1, %v25809_v41  ;;  %v11127_v36 = vmul.f32 %v25890_v24, %v25809_v41  ;;  %v11129_v21 = vmul.f32 %v25911_v51, %v25809_v41 }
0x1827   :  { %11134 = vrot.lane.b32.xlu0 %v25811_v52, %s22934_s21  ;;  %v11116_v23 = vmul.f32 %v25820_v46, %v25811_v52  ;;  %v11118_v48 = vmul.f32 %v25827_v19, %v25811_v52  ;;  %v11120_v63 = vmul.f32 %v25850_v4, %v25811_v52  ;;  %v11122_v49 = vmul.f32 %v25859_v20, %v25811_v52 }
0x1828   :  { %v11124_v10 = vmul.f32 %v25881_v1, %v25811_v52  ;;  %v11126_v59 = vmul.f32 %v25890_v24, %v25811_v52  ;;  %v11128_v34 = vmul.f32 %v25911_v51, %v25811_v52  ;;  %v11130_v62 = vmul.f32 %v25920_v22, %v25811_v52 }
0x1829   :  { %21805 = vmatprep.mubr.msk.f32.mxu1 %vm6868_vm9, %v11116_v23  ;;  %21812 = vmatprep.mubr.msk.f32.mxu0 %vm6868_vm9, %v11118_v48  ;;  %v11131_v43 = vmul.f32 %v25920_v22, %v25809_v41 }
0x1897   :  { %v11137_v11 = vpop.permute.xlu1 %11136 }
0x1898   :  { %21801 = vmatprep.subr.msk.mxu1 %vm6868_vm9, %v11137_v11  ;;  %21808 = vmatprep.subr.msk.mxu0 %vm6868_vm9, %v11137_v11 }
0x1899   :  { %21802 = vmatpush3.xpose.msk.msra.mxu1 %vm6868_vm9, %v11137_v11  ;;  %v11135_v29 = vpop.permute.xlu0 %11134  ;;  %21809 = vmatpush3.xpose.msk.msra.mxu0 %vm6868_vm9, %v11137_v11 }
0x189a   :  { %21803 = vmatprep.subr.msk.mxu1 %vm6868_vm9, %v11135_v29  ;;  %21810 = vmatprep.subr.msk.mxu0 %vm6868_vm9, %v11135_v29 }
0x189d   :  { %21804 = vmatpush3.xpose.msk.msra.mxu1 %vm6868_vm9, %v11135_v29  ;;  %21811 = vmatpush3.xpose.msk.msra.mxu0 %vm6868_vm9, %v11135_v29 }
0x189e   :  { %21815 = vmatprep.subr.msk.mxu1 %vm6868_vm9, %v11137_v11  ;;  %21822 = vmatprep.subr.msk.mxu0 %vm6868_vm9, %v11137_v11 }
0x18a0   :  { %21806 = vmatmul.mubr.msk.f32.vlgmr.msra.gmra.mxu1 %vm6868_vm9, %v11117_v5  ;;  %21813 = vmatmul.mubr.msk.f32.vlgmr.msra.gmra.mxu0 %vm6868_vm9, %v11119_v40 }
0x18a1   :  { %21816 = vmatpush3.xpose.msk.msra.mxu1 %vm6868_vm9, %v11137_v11  ;;  %21819 = vmatprep.mubr.msk.f32.mxu1 %vm6868_vm9, %v11120_v63 }
0x18a2   :  { %21823 = vmatpush3.xpose.msk.msra.mxu0 %vm6868_vm9, %v11137_v11  ;;  %21826 = vmatprep.mubr.msk.f32.mxu0 %vm6868_vm9, %v11122_v49 }
0x18a3   :  { %21817 = vmatprep.subr.msk.mxu1 %vm6868_vm9, %v11135_v29  ;;  %21824 = vmatprep.subr.msk.mxu0 %vm6868_vm9, %v11135_v29 }
0x18a5   :  { %21818 = vmatpush3.xpose.msk.msra.mxu1 %vm6868_vm9, %v11135_v29 }
0x18a6   :  { %21825 = vmatpush3.xpose.msk.msra.mxu0 %vm6868_vm9, %v11135_v29  ;;  %21829 = vmatprep.subr.msk.mxu1 %vm6868_vm9, %v11137_v11 }
0x18a7   :  { %21836 = vmatprep.subr.msk.mxu0 %vm6868_vm9, %v11137_v11 }
0x18a8   :  { %21820 = vmatmul.mubr.msk.f32.vlgmr.msra.gmra.mxu1 %vm6868_vm9, %v11121_v42 }
0x18a9   :  { %21827 = vmatmul.mubr.msk.f32.vlgmr.msra.gmra.mxu0 %vm6868_vm9, %v11123_v9  ;;  %21830 = vmatpush3.xpose.msk.msra.mxu1 %vm6868_vm9, %v11137_v11 }
0x18aa   :  { %21833 = vmatprep.mubr.msk.f32.mxu1 %vm6868_vm9, %v11124_v10  ;;  %21837 = vmatpush3.xpose.msk.msra.mxu0 %vm6868_vm9, %v11137_v11 }
0x18ab   :  { %21840 = vmatprep.mubr.msk.f32.mxu0 %vm6868_vm9, %v11126_v59  ;;  %21831 = vmatprep.subr.msk.mxu1 %vm6868_vm9, %v11135_v29 }
0x18ac   :  { %21838 = vmatprep.subr.msk.mxu0 %vm6868_vm9, %v11135_v29 }
0x18ad   :  { %21832 = vmatpush3.xpose.msk.msra.mxu1 %vm6868_vm9, %v11135_v29 }
0x18ae   :  { %21839 = vmatpush3.xpose.msk.msra.mxu0 %vm6868_vm9, %v11135_v29  ;;  %21843 = vmatprep.subr.msk.mxu1 %vm6868_vm9, %v11137_v11 }
0x18af   :  { %21850 = vmatprep.subr.msk.mxu0 %vm6868_vm9, %v11137_v11 }
0x18b0   :  { %21834 = vmatmul.mubr.msk.f32.vlgmr.msra.gmra.mxu1 %vm6868_vm9, %v11125_v56 }
0x18b1   :  { %21841 = vmatmul.mubr.msk.f32.vlgmr.msra.gmra.mxu0 %vm6868_vm9, %v11127_v36  ;;  %21844 = vmatpush3.xpose.msk.msra.mxu1 %vm6868_vm9, %v11137_v11 }
0x18b2   :  { %21847 = vmatprep.mubr.msk.f32.mxu1 %vm6868_vm9, %v11128_v34  ;;  %21851 = vmatpush3.xpose.msk.msra.mxu0 %vm6868_vm9, %v11137_v11 }
0x18b3   :  { %21854 = vmatprep.mubr.msk.f32.mxu0 %vm6868_vm9, %v11130_v62  ;;  %21845 = vmatprep.subr.msk.mxu1 %vm6868_vm9, %v11135_v29 }
0x18b4   :  { %21852 = vmatprep.subr.msk.mxu0 %vm6868_vm9, %v11135_v29 }
0x18b5   :  { %21846 = vmatpush3.xpose.msk.msra.mxu1 %vm6868_vm9, %v11135_v29 }
0x18b6   :  { %21853 = vmatpush3.xpose.msk.msra.mxu0 %vm6868_vm9, %v11135_v29 }
0x18b8   :  { %21848 = vmatmul.mubr.msk.f32.vlgmr.msra.gmra.mxu1 %vm6868_vm9, %v11129_v21 }
0x18b9   :  { %21855 = vmatmul.mubr.msk.f32.vlgmr.msra.gmra.mxu0 %vm6868_vm9, %v11131_v43 }
0x18e2   :  { %v25937_v27 = vpop.f32.mrf.mxu0 }
0x18e4   :  { %v25939_v54 = vpop.f32.mrf.mxu0 }
0x1960   :  { %v21807_v16 = vpop.f32.mrf.mxu1  ;;  %v21814_v17 = vpop.f32.mrf.mxu0 }
0x1961   :  { %v11791_v33 = vmul.f32 0.5, %v21807_v16  ;;  %v11793_v61 = vmul.f32 0.5, %v21814_v17 }
0x1962   :  { %v11214_v30 = vpop.f32.mrf.mxu1  ;;  %v11295_v60 = vpop.f32.mrf.mxu0 }
0x1963   :  { %v11790_v35 = vmul.f32 0.5, %v11214_v30  ;;  %v11792_v8 = vmul.f32 0.5, %v11295_v60  ;;  %v25947_v45 = vadd.f32 %v25944_v47, %v11791_v33  ;;  %v25960_v2 = vadd.f32 %v25944_v47, %v11793_v61 }
0x1965   :  { %v11825_v37 = vsel %vm7721_vm10, %v25947_v45, -inf  ;;  %v25957_v55 = vadd.f32 %v25954_v58, %v11790_v35  ;;  %v25965_v31 = vadd.f32 %v25954_v58, %v11792_v8  ;;  %v11831_v39 = vsel %vm7721_vm10, %v25960_v2, -inf }
0x1966   :  { %11826 = vmax.xlane.f32.xlu0 %v11825_v37 }
0x1967   :  { %v11822_v44 = vsel %vm7717_vm11, %v25957_v55, -inf  ;;  %v11828_v18 = vsel %vm7717_vm11, %v25965_v31, -inf }
0x1968   :  { %11823 = vmax.xlane.f32.xlu1 %v11822_v44  ;;  %v21821_v57 = vpop.f32.mrf.mxu1 }
0x1969   :  { %v11795_v53 = vmul.f32 0.5, %v21821_v57  ;;  %v21828_v6 = vpop.f32.mrf.mxu0 }
0x196a   :  { %v11797_v3 = vmul.f32 0.5, %v21828_v6  ;;  %v11376_v13 = vpop.f32.mrf.mxu1  ;;  %11832 = vmax.xlane.f32.xlu0 %v11831_v39 }
0x196b   :  { %v11794_v28 = vmul.f32 0.5, %v11376_v13  ;;  %v11457_v38 = vpop.f32.mrf.mxu0  ;;  %v25972_v26 = vadd.f32 %v25944_v47, %v11795_v53 }
0x196c   :  { %v11796_v14 = vmul.f32 0.5, %v11457_v38  ;;  %11829 = vmax.xlane.f32.xlu1 %v11828_v18  ;;  %v25980_v23 = vadd.f32 %v25944_v47, %v11797_v3 }
0x196d   :  { %v11837_v15 = vsel %vm7721_vm10, %v25972_v26, -inf  ;;  %v25977_v12 = vadd.f32 %v25954_v58, %v11794_v28 }
0x196e   :  { %11838 = vmax.xlane.f32.xlu0 %v11837_v15  ;;  %v25983_v48 = vadd.f32 %v25954_v58, %v11796_v14  ;;  %v11843_v63 = vsel %vm7721_vm10, %v25980_v23, -inf }
0x196f   :  { %v11834_v11 = vsel %vm7717_vm11, %v25977_v12, -inf }
0x1970   :  { %v21835_v29 = vpop.f32.mrf.mxu1  ;;  %11835 = vmax.xlane.f32.xlu1 %v11834_v11  ;;  %v11840_v59 = vsel %vm7717_vm11, %v25983_v48, -inf }
0x1971   :  { %v11799_v5 = vmul.f32 0.5, %v21835_v29  ;;  %v21842_v40 = vpop.f32.mrf.mxu0 }
0x1972   :  { %v11801_v49 = vmul.f32 0.5, %v21842_v40  ;;  %v11538_v42 = vpop.f32.mrf.mxu1  ;;  %11844 = vmax.xlane.f32.xlu0 %v11843_v63 }
0x1973   :  { %v11798_v9 = vmul.f32 0.5, %v11538_v42  ;;  %v11619_v10 = vpop.f32.mrf.mxu0  ;;  %v25992_v56 = vadd.f32 %v25944_v47, %v11799_v5 }
0x1974   :  { %v11800_v36 = vmul.f32 0.5, %v11619_v10  ;;  %11841 = vmax.xlane.f32.xlu1 %v11840_v59  ;;  %v26000_v21 = vadd.f32 %v25944_v47, %v11801_v49 }
0x1975   :  { %v25995_v34 = vadd.f32 %v25954_v58, %v11798_v9  ;;  %v11849_v62 = vsel %vm7721_vm10, %v25992_v56, -inf }
0x1976   :  { %11850 = vmax.xlane.f32.xlu0 %v11849_v62  ;;  %v26003_v43 = vadd.f32 %v25954_v58, %v11800_v36  ;;  %v11855_v30 = vsel %vm7721_vm10, %v26000_v21, -inf }
0x1977   :  { %v11846_v16 = vsel %vm7717_vm11, %v25995_v34, -inf }
0x1978   :  { %v21849_v17 = vpop.f32.mrf.mxu1  ;;  %11847 = vmax.xlane.f32.xlu1 %v11846_v16  ;;  %v11852_v44 = vsel %vm7717_vm11, %v26003_v43, -inf }
0x1979   :  { %v11803_v33 = vmul.f32 0.5, %v21849_v17  ;;  %v21856_v61 = vpop.f32.mrf.mxu0 }
0x197a   :  { %v11805_v60 = vmul.f32 0.5, %v21856_v61  ;;  %v11700_v35 = vpop.f32.mrf.mxu1  ;;  %11856 = vmax.xlane.f32.xlu0 %v11855_v30 }
0x197b   :  { %v11802_v8 = vmul.f32 0.5, %v11700_v35  ;;  %v11781_v37 = vpop.f32.mrf.mxu0  ;;  %v26012_v57 = vadd.f32 %v25944_v47, %v11803_v33 }
0x197c   :  { %v11804_v53 = vmul.f32 0.5, %v11781_v37  ;;  %11853 = vmax.xlane.f32.xlu1 %v11852_v44  ;;  %v26020_v3 = vadd.f32 %v25944_v47, %v11805_v60 }
0x197d   :  { %v26015_v6 = vadd.f32 %v25954_v58, %v11802_v8  ;;  %v11861_v39 = vsel %vm7721_vm10, %v26012_v57, -inf }
0x197e   :  { %11862 = vmax.xlane.f32.xlu0 %v11861_v39  ;;  %v26023_v13 = vadd.f32 %v25954_v58, %v11804_v53  ;;  %v11867_v38 = vsel %vm7721_vm10, %v26020_v3, -inf }
0x197f   :  { %v11858_v28 = vsel %vm7717_vm11, %v26015_v6, -inf }
0x1980   :  { %11859 = vmax.xlane.f32.xlu1 %v11858_v28  ;;  %v11864_v18 = vsel %vm7717_vm11, %v26023_v13, -inf }
0x1982   :  { %11868 = vmax.xlane.f32.xlu0 %v11867_v38 }
0x1984   :  { %11865 = vmax.xlane.f32.xlu1 %v11864_v18 }
0x19ef   :  { %v11827_v14 = vpop.xlane.xlu0 %11826 }
0x19f0   :  { %v11871_v47 = vsub.f32 %v25947_v45, %v11827_v14 }
0x19f1   :  { %v11824_v15 = vpop.xlane.xlu1 %11823 }
0x19f2   :  { %v11888_v11 = vmul.f32 1.442695, %v11871_v47  ;;  %v11870_v58 = vsub.f32 %v25957_v55, %v11824_v15 }
0x19f3   :  { %v11833_v29 = vpop.xlane.xlu0 %11832 }
0x19f4   :  { %22566 = vpow2.f32 %v11888_v11  ;;  %v11886_v5 = vmul.f32 1.442695, %v11870_v58  ;;  %v11873_v40 = vsub.f32 %v25960_v2, %v11833_v29 }
0x19f5   :  { %v11830_v63 = vpop.xlane.xlu1 %11829 }
0x19f6   :  { %22568 = vpow2.f32 %v11886_v5  ;;  %v11892_v49 = vmul.f32 1.442695, %v11873_v40  ;;  %v11872_v42 = vsub.f32 %v25965_v31, %v11830_v63 }
0x19f7   :  { %v11839_v9 = vpop.xlane.xlu0 %11838 }
0x19f8   :  { %22570 = vpow2.f32 %v11892_v49  ;;  %v11890_v10 = vmul.f32 1.442695, %v11872_v42  ;;  %v11875_v59 = vsub.f32 %v25972_v26, %v11839_v9 }
0x19f9   :  { %v11836_v45 = vpop.xlane.xlu1 %11835 }
0x19fa   :  { %22572 = vpow2.f32 %v11890_v10  ;;  %v11896_v36 = vmul.f32 1.442695, %v11875_v59  ;;  %v11874_v55 = vsub.f32 %v25977_v12, %v11836_v45 }
0x19fb   :  { %v11845_v62 = vpop.xlane.xlu0 %11844 }
0x19fc   :  { %22574 = vpow2.f32 %v11896_v36  ;;  %v11894_v16 = vmul.f32 1.442695, %v11874_v55  ;;  %v11877_v2 = vsub.f32 %v25980_v23, %v11845_v62 }
0x19fd   :  { %v11842_v17 = vpop.xlane.xlu1 %11841 }
0x19fe   :  { %22576 = vpow2.f32 %v11894_v16  ;;  %v11900_v33 = vmul.f32 1.442695, %v11877_v2  ;;  %v11876_v31 = vsub.f32 %v25983_v48, %v11842_v17 }
0x19ff   :  { %v11851_v61 = vpop.xlane.xlu0 %11850 }
0x1a00   :  { %22578 = vpow2.f32 %v11900_v33  ;;  %v11898_v30 = vmul.f32 1.442695, %v11876_v31  ;;  %v11879_v26 = vsub.f32 %v25992_v56, %v11851_v61 }
0x1a01   :  { %v26040_v60 = vpop.eup %22566  ;;  %v11848_v35 = vpop.xlane.xlu1 %11847 }
0x1a02   :  { %22580 = vpow2.f32 %v11898_v30  ;;  %v11904_v12 = vmul.f32 1.442695, %v11879_v26  ;;  %v11878_v8 = vsub.f32 %v25995_v34, %v11848_v35  ;;  %v11921_v23 = vsel %vm7721_vm10, %v26040_v60, 0.0 }
0x1a03   :  { %v26045_v37 = vpop.eup %22568  ;;  %v11857_v44 = vpop.xlane.xlu0 %11856  ;;  %11922 = vadd.xlane.f32.xlu0 %v11921_v23 }
0x1a04   :  { %22582 = vpow2.f32 %v11904_v12  ;;  %v11902_v48 = vmul.f32 1.442695, %v11878_v8  ;;  %v11881_v53 = vsub.f32 %v26000_v21, %v11857_v44  ;;  %v11918_v56 = vsel %vm7717_vm11, %v26045_v37, 0.0 }
0x1a05   :  { %v26050_v39 = vpop.eup %22570  ;;  %v11854_v28 = vpop.xlane.xlu1 %11853  ;;  %11919 = vadd.xlane.f32.xlu1 %v11918_v56  ;;  %v19492_v56 = vld [vmem:[%s27932_s0 + $0x530] ss:$0 sm:$0xff] }
0x1a06   :  { %22584 = vpow2.f32 %v11902_v48  ;;  %v11908_v34 = vmul.f32 1.442695, %v11881_v53  ;;  %v11880_v38 = vsub.f32 %v26003_v43, %v11854_v28  ;;  %v11927_v18 = vsel %vm7721_vm10, %v26050_v39, 0.0 }
0x1a07   :  { %v26055_v14 = vpop.eup %22572  ;;  %v11863_v47 = vpop.xlane.xlu0 %11862  ;;  %11928 = vadd.xlane.f32.xlu0 %v11927_v18  ;;  %v10942_v28 = vadd.f32 %v25937_v27, %v19492_v56 }
0x1a08   :  { %22586 = vpow2.f32 %v11908_v34  ;;  %v11906_v21 = vmul.f32 1.442695, %v11880_v38  ;;  %v11883_v15 = vsub.f32 %v26012_v57, %v11863_v47  ;;  %v11924_v11 = vsel %vm7717_vm11, %v26055_v14, 0.0 }
0x1a09   :  { %v26060_v58 = vpop.eup %22574  ;;  %v11860_v29 = vpop.xlane.xlu1 %11859  ;;  %11925 = vadd.xlane.f32.xlu1 %v11924_v11  ;;  %v10937_v34 = vadd.f32 %v19492_v56, %v25939_v54  ;;  %v26121_v38 = vadd.f32 %v10942_v28, %v25770_v50 }
0x1a0a   :  { %22588 = vpow2.f32 %v11906_v21  ;;  %v11912_v43 = vmul.f32 1.442695, %v11883_v15  ;;  %v11882_v5 = vsub.f32 %v26015_v6, %v11860_v29  ;;  %v11933_v40 = vsel %vm7721_vm10, %v26060_v58, 0.0 }
0x1a0b   :  { %v26065_v63 = vpop.eup %22576  ;;  %11934 = vadd.xlane.f32.xlu0 %v11933_v40  ;;  %v11869_v49 = vpop.xlane.xlu0 %11868  ;;  %v26124_v18 = vadd.f32 %v10937_v34, %v25768_v7 }
0x1a0c   :  { %22590 = vpow2.f32 %v11912_v43  ;;  %v11910_v57 = vmul.f32 1.442695, %v11882_v5  ;;  %v11885_v42 = vsub.f32 %v26020_v3, %v11869_v49  ;;  %v11930_v9 = vsel %vm7717_vm11, %v26065_v63, 0.0 }
0x1a0d   :  { %v26070_v10 = vpop.eup %22578  ;;  %11931 = vadd.xlane.f32.xlu1 %v11930_v9  ;;  %v11866_v59 = vpop.xlane.xlu1 %11865 }
0x1a0e   :  { %22592 = vpow2.f32 %v11910_v57  ;;  %v11916_v6 = vmul.f32 1.442695, %v11885_v42  ;;  %v11884_v45 = vsub.f32 %v26023_v13, %v11866_v59  ;;  %v11939_v36 = vsel %vm7721_vm10, %v26070_v10, 0.0 }
0x1a0f   :  { %v26075_v55 = vpop.eup %22580  ;;  %11940 = vadd.xlane.f32.xlu0 %v11939_v36 }
0x1a10   :  { %22594 = vpow2.f32 %v11916_v6  ;;  %v11914_v62 = vmul.f32 1.442695, %v11884_v45  ;;  %v11936_v3 = vsel %vm7717_vm11, %v26075_v55, 0.0 }
0x1a11   :  { %v26079_v16 = vpop.eup %22582  ;;  %11937 = vadd.xlane.f32.xlu1 %v11936_v3 }
0x1a12   :  { %22596 = vpow2.f32 %v11914_v62  ;;  %v11945_v2 = vsel %vm7721_vm10, %v26079_v16, 0.0 }
0x1a13   :  { %v26083_v17 = vpop.eup %22584  ;;  %11946 = vadd.xlane.f32.xlu0 %v11945_v2 }
0x1a14   :  { %v11942_v13 = vsel %vm7717_vm11, %v26083_v17, 0.0 }
0x1a15   :  { %v26087_v33 = vpop.eup %22586  ;;  %11943 = vadd.xlane.f32.xlu1 %v11942_v13 }
0x1a16   :  { %v11951_v31 = vsel %vm7721_vm10, %v26087_v33, 0.0 }
0x1a17   :  { %v26091_v61 = vpop.eup %22588  ;;  %11952 = vadd.xlane.f32.xlu0 %v11951_v31 }
0x1a18   :  { %v11948_v30 = vsel %vm7717_vm11, %v26091_v61, 0.0 }
0x1a19   :  { %v26095_v26 = vpop.eup %22590  ;;  %11949 = vadd.xlane.f32.xlu1 %v11948_v30 }
0x1a1a   :  { %v11957_v35 = vsel %vm7721_vm10, %v26095_v26, 0.0 }
0x1a1b   :  { %v26099_v12 = vpop.eup %22592  ;;  %11958 = vadd.xlane.f32.xlu0 %v11957_v35 }
0x1a1c   :  { %v11954_v8 = vsel %vm7717_vm11, %v26099_v12, 0.0 }
0x1a1d   :  { %v26103_v23 = vpop.eup %22594  ;;  %11955 = vadd.xlane.f32.xlu1 %v11954_v8 }
0x1a1e   :  { %v11963_v44 = vsel %vm7721_vm10, %v26103_v23, 0.0 }
0x1a1f   :  { %v26107_v48 = vpop.eup %22596  ;;  %11964 = vadd.xlane.f32.xlu0 %v11963_v44 }
0x1a20   :  { %v11960_v53 = vsel %vm7717_vm11, %v26107_v48, 0.0 }
0x1a21   :  { %11961 = vadd.xlane.f32.xlu1 %v11960_v53 }
0x1a32   :  { %12000 = vrot.lane.b32.xlu1 %v25809_v41, %s22935_s16  ;;  %v10952_v41 = vsel %vm8581_vm12, %v26121_v38, 0.0 }
0x1a35   :  { %11998 = vrot.lane.b32.xlu0 %v25811_v52, %s22935_s16  ;;  %v10949_v52 = vsel %vm6868_vm9, %v26124_v18, 0.0 }
0x1a54   :  { %10953 = vadd.xlane.f32.xlu0 %v10952_v41 }
0x1a56   :  { %10950 = vadd.xlane.f32.xlu1 %v10949_v52 }
0x1a8c   :  { %v11923_v47 = vpop.xlane.xlu0 %11922 }
0x1a8e   :  { %v11920_v21 = vpop.xlane.xlu1 %11919 }
0x1a8f   :  { %22598 = vrcp.f32 %v11920_v21 }
0x1a90   :  { %v11929_v27 = vpop.xlane.xlu0 %11928 }
0x1a92   :  { %v11926_v15 = vpop.xlane.xlu1 %11925 }
0x1a94   :  { %v11935_v54 = vpop.xlane.xlu0 %11934 }
0x1a96   :  { %v11932_v11 = vpop.xlane.xlu1 %11931 }
0x1a97   :  { %22600 = vrcp.f32 %v11932_v11 }
0x1a98   :  { %v11941_v50 = vpop.xlane.xlu0 %11940  ;;  %22602 = vrcp.f32 %v11923_v47 }
0x1a99   :  { %22604 = vrcp.f32 %v11935_v54 }
0x1a9a   :  { %v11938_v29 = vpop.xlane.xlu1 %11937  ;;  %22606 = vrcp.f32 %v11926_v15 }
0x1a9c   :  { %v22599_v7 = vpop.eup %22598  ;;  %v11947_v43 = vpop.xlane.xlu0 %11946 }
0x1a9d   :  { %v11967_v5 = vmul.f32 %v22599_v7, %v26045_v37 }
0x1a9e   :  { %v11944_v40 = vpop.xlane.xlu1 %11943 }
0x1a9f   :  { %21861 = vmatprep.mubr.msk.f32.mxu1 %vm7717_vm11, %v11967_v5  ;;  %22608 = vrcp.f32 %v11944_v40  ;;  %v11111_v5 = vld [vmem:[%s27932_s0 + $0x580] sm:$0xff] }
0x1aa0   :  { %v11953_v49 = vpop.xlane.xlu0 %11952  ;;  %22610 = vrcp.f32 %v11929_v27 }
0x1aa1   :  { %22612 = vrcp.f32 %v11947_v43  ;;  %v11114_v43 = vld [vmem:[%s27932_s0 + $0x598] sm:$0xff] }
0x1aa2   :  { %v11950_v57 = vpop.xlane.xlu1 %11949 }
0x1aa4   :  { %v22601_v42 = vpop.eup %22600  ;;  %v11959_v9 = vpop.xlane.xlu0 %11958 }
0x1aa5   :  { %v11975_v59 = vmul.f32 %v22601_v42, %v26065_v63  ;;  %v22603_v36 = vpop.eup %22602 }
0x1aa6   :  { %v11956_v6 = vpop.xlane.xlu1 %11955  ;;  %v22605_v3 = vpop.eup %22604  ;;  %v11969_v31 = vmul.f32 %v22603_v36, %v26040_v60 }
0x1aa7   :  { %21875 = vmatprep.mubr.msk.f32.mxu0 %vm7717_vm11, %v11975_v59  ;;  %22614 = vrcp.f32 %v11956_v6  ;;  %v22607_v63 = vpop.eup %22606  ;;  %v11977_v30 = vmul.f32 %v22605_v3, %v26060_v58 }
0x1aa8   :  { %22616 = vrcp.f32 %v11938_v29  ;;  %v11965_v37 = vpop.xlane.xlu0 %11964  ;;  %v11971_v60 = vmul.f32 %v22607_v63, %v26055_v14 }
0x1aa9   :  { %22618 = vrcp.f32 %v11941_v50 }
0x1aaa   :  { %v11962_v45 = vpop.xlane.xlu1 %11961  ;;  %22620 = vrcp.f32 %v11959_v9 }
0x1aab   :  { %22622 = vrcp.f32 %v11950_v57 }
0x1aac   :  { %v26140_v2 = vpop.permute.xlu0 %11998  ;;  %v22609_v13 = vpop.eup %22608  ;;  %22624 = vrcp.f32 %v11953_v49 }
0x1aad   :  { %22626 = vrcp.f32 %v11962_v45  ;;  %v22611_v35 = vpop.eup %22610  ;;  %v11983_v58 = vmul.f32 %v22609_v13, %v26083_v17 }
0x1aae   :  { %v26134_v62 = vpop.permute.xlu1 %12000  ;;  %v22613_v8 = vpop.eup %22612  ;;  %22628 = vrcp.f32 %v11965_v37  ;;  %v11973_v14 = vmul.f32 %v22611_v35, %v26050_v39 }
0x1aaf   :  { %21857 = vmatprep.subr.msk.mxu1 %vm4149_vm7, %v26134_v62  ;;  %21871 = vmatprep.subr.msk.mxu0 %vm4149_vm7, %v26134_v62  ;;  %v11985_v17 = vmul.f32 %v22613_v8, %v26079_v16 }
0x1ab0   :  { %21858 = vmatpush3.msk.msra.mxu1 %vm4149_vm7, %v26134_v62  ;;  %21872 = vmatpush3.msk.msra.mxu0 %vm4149_vm7, %v26134_v62 }
0x1ab1   :  { %21859 = vmatprep.subr.mxu1 %v26140_v2  ;;  %21873 = vmatprep.subr.mxu0 %v26140_v2 }
0x1ab2   :  { %21860 = vmatpush3.msra.mxu1 %v26140_v2  ;;  %21874 = vmatpush3.msra.mxu0 %v26140_v2 }
0x1ab3   :  { %21862 = vmatmul.mubr.msk.f32.vlgmr.msra.gmra.mxu1 %vm7717_vm11, %v11969_v31  ;;  %21864 = vmatprep.subr.msk.mxu1 %vm4149_vm7, %v26134_v62 }
0x1ab4   :  { %21876 = vmatmul.mubr.msk.f32.vlgmr.msra.gmra.mxu0 %vm7717_vm11, %v11977_v30  ;;  %21885 = vmatprep.subr.msk.mxu0 %vm4149_vm7, %v26134_v62  ;;  %v22615_v44 = vpop.eup %22614 }
0x1ab5   :  { %21865 = vmatpush3.msk.msra.mxu1 %vm4149_vm7, %v26134_v62  ;;  %21868 = vmatprep.mubr.msk.f32.mxu1 %vm7717_vm11, %v11971_v60  ;;  %v22617_v53 = vpop.eup %22616  ;;  %v11991_v56 = vmul.f32 %v22615_v44, %v26099_v12 }
0x1ab6   :  { %21886 = vmatpush3.msk.msra.mxu0 %vm4149_vm7, %v26134_v62  ;;  %21889 = vmatprep.mubr.msk.f32.mxu0 %vm7717_vm11, %v11983_v58  ;;  %v11979_v28 = vmul.f32 %v22617_v53, %v26075_v55  ;;  %v22619_v39 = vpop.eup %22618 }
0x1ab7   :  { %21866 = vmatprep.subr.mxu1 %v26140_v2  ;;  %21887 = vmatprep.subr.mxu0 %v26140_v2  ;;  %v22621_v16 = vpop.eup %22620  ;;  %v11981_v55 = vmul.f32 %v22619_v39, %v26070_v10 }
0x1ab8   :  { %21867 = vmatpush3.msra.mxu1 %v26140_v2  ;;  %21888 = vmatpush3.msra.mxu0 %v26140_v2  ;;  %v22623_v12 = vpop.eup %22622  ;;  %v11993_v41 = vmul.f32 %v22621_v16, %v26095_v26 }
0x1ab9   :  { %21869 = vmatmul.mubr.msk.f32.vlgmr.msra.gmra.mxu1 %vm7717_vm11, %v11973_v14  ;;  %21878 = vmatprep.subr.msk.mxu1 %vm4149_vm7, %v26134_v62  ;;  %v22625_v34 = vpop.eup %22624  ;;  %v11987_v47 = vmul.f32 %v22623_v12, %v26091_v61 }
0x1aba   :  { %21890 = vmatmul.mubr.msk.f32.vlgmr.msra.gmra.mxu0 %vm7717_vm11, %v11985_v17  ;;  %21899 = vmatprep.subr.msk.mxu0 %vm4149_vm7, %v26134_v62  ;;  %v22627_v52 = vpop.eup %22626  ;;  %v11989_v10 = vmul.f32 %v22625_v34, %v26087_v33 }
0x1abb   :  { %21879 = vmatpush3.msk.msra.mxu1 %vm4149_vm7, %v26134_v62  ;;  %21882 = vmatprep.mubr.msk.f32.mxu1 %vm7717_vm11, %v11979_v28  ;;  %v22629_v26 = vpop.eup %22628  ;;  %v11995_v21 = vmul.f32 %v22627_v52, %v26107_v48 }
0x1abc   :  { %21900 = vmatpush3.msk.msra.mxu0 %vm4149_vm7, %v26134_v62  ;;  %21903 = vmatprep.mubr.msk.f32.mxu0 %vm7717_vm11, %v11991_v56  ;;  %v11997_v33 = vmul.f32 %v22629_v26, %v26103_v23 }
0x1abd   :  { %21880 = vmatprep.subr.mxu1 %v26140_v2  ;;  %21901 = vmatprep.subr.mxu0 %v26140_v2 }
0x1abe   :  { %21881 = vmatpush3.msra.mxu1 %v26140_v2  ;;  %21902 = vmatpush3.msra.mxu0 %v26140_v2 }
0x1abf   :  { %21883 = vmatmul.mubr.msk.f32.vlgmr.msra.gmra.mxu1 %vm7717_vm11, %v11981_v55  ;;  %21892 = vmatprep.subr.msk.mxu1 %vm4149_vm7, %v26134_v62 }
0x1ac0   :  { %21904 = vmatmul.mubr.msk.f32.vlgmr.msra.gmra.mxu0 %vm7717_vm11, %v11993_v41  ;;  %21893 = vmatpush3.msk.msra.mxu1 %vm4149_vm7, %v26134_v62  ;;  %v19495_v41 = vld [vmem:[%s27932_s0 + $0x538] ss:$0 sm:$0xff] }
0x1ac1   :  { %21896 = vmatprep.mubr.msk.f32.mxu1 %vm7717_vm11, %v11987_v47  ;;  %21894 = vmatprep.subr.mxu1 %v26140_v2 }
0x1ac2   :  { %21895 = vmatpush3.msra.mxu1 %v26140_v2  ;;  %21913 = vmatprep.subr.mxu0 %v11114_v43 }
0x1ac3   :  { %21897 = vmatmul.mubr.msk.f32.vlgmr.msra.gmra.mxu1 %vm7717_vm11, %v11989_v10  ;;  %21906 = vmatprep.subr.msk.mxu1 %vm4149_vm7, %v26134_v62 }
0x1ac4   :  { %21907 = vmatpush3.msk.msra.mxu1 %vm4149_vm7, %v26134_v62  ;;  %21910 = vmatprep.mubr.msk.f32.mxu1 %vm7717_vm11, %v11995_v21 }
0x1ac5   :  { %21908 = vmatprep.subr.mxu1 %v26140_v2  ;;  %21914 = vmatpush3.msra.mxu0 %v11114_v43 }
0x1ac6   :  { %21909 = vmatpush3.msra.mxu1 %v26140_v2 }
0x1ac7   :  { %21911 = vmatmul.mubr.msk.f32.vlgmr.msra.gmra.mxu1 %vm7717_vm11, %v11997_v33 }
0x1add   :  { %v10954_v61 = vpop.xlane.xlu0 %10953 }
0x1ade   :  { %v10956_v48 = vmul.f32 0.03125, %v10954_v61  ;;  %v19496_v61 = vld [vmem:[%s27932_s0 + $0x540] ss:$0 sm:$0xff] }
0x1adf   :  { %v10951_v27 = vpop.xlane.xlu1 %10950 }
0x1ae0   :  { %v10958_v15 = vsub.f32 %v26121_v38, %v10956_v48  ;;  %v10955_v54 = vmul.f32 0.03125, %v10951_v27  ;;  %v11113_v38 = vld [vmem:[%s27932_s0 + $0x590] sm:$0xff] }
0x1ae1   :  { %21915 = vmatprep.subr.mxu0 %v11113_v38 }
0x1ae2   :  { %v26216_v11 = vsub.f32 %v26124_v18, %v10955_v54  ;;  %v10960_v50 = vmul.f32 %v10958_v15, %v10958_v15  ;;  %21916 = vmatpush3.msra.mxu0 %v11113_v38  ;;  %v11112_v18 = vld [vmem:[%s27932_s0 + $0x588] sm:$0xff] }
0x1ae3   :  { %21917 = vmatprep.subr.mxu0 %v11112_v18 }
0x1ae4   :  { %v10964_v29 = vsel %vm8581_vm12, %v10960_v50, 0.0  ;;  %v10959_v23 = vmul.f32 %v26216_v11, %v26216_v11  ;;  %21918 = vmatpush3.msra.mxu0 %v11112_v18 }
0x1ae5   :  { %10965 = vadd.xlane.f32.xlu0 %v10964_v29  ;;  %21919 = vmatprep.subr.mxu0 %v11111_v5 }
0x1ae6   :  { %v10961_v7 = vsel %vm6868_vm9, %v10959_v23, 0.0  ;;  %21920 = vmatpush3.msra.mxu0 %v11111_v5 }
0x1ae7   :  { %10962 = vadd.xlane.f32.xlu1 %v10961_v7 }
0x1b6e   :  { %v10966_v40 = vpop.xlane.xlu0 %10965 }
0x1b6f   :  { %v10968_v49 = vmul.f32 0.03125, %v10966_v40 }
0x1b70   :  { %v10963_v57 = vpop.xlane.xlu1 %10962 }
0x1b71   :  { %v10970_v42 = vadd.f32 1e-05, %v10968_v49  ;;  %v10967_v9 = vmul.f32 0.03125, %v10963_v57 }
0x1b73   :  { %22630 = vrsqrt.f32 %v10970_v42  ;;  %v10969_v59 = vadd.f32 1e-05, %v10967_v9  ;;  %v21863_v6 = vpop.f32.mrf.mxu1 }
0x1b74   :  { %v21877_v37 = vpop.f32.mrf.mxu0  ;;  %v12654_v62 = vmul.f32 %v25820_v46, %v21863_v6 }
0x1b75   :  { %22632 = vrsqrt.f32 %v10969_v59  ;;  %v12077_v45 = vpop.f32.mrf.mxu1  ;;  %v12658_v63 = vmul.f32 %v25850_v4, %v21877_v37 }
0x1b76   :  { %v12239_v36 = vpop.f32.mrf.mxu0  ;;  %v12653_v2 = vmul.f32 %v25820_v46, %v12077_v45  ;;  %v12684_v35 = vsel %vm8581_vm12, %v12654_v62, 0.0 }
0x1b77   :  { %v12657_v60 = vmul.f32 %v25850_v4, %v12239_v36  ;;  %v12687_v14 = vsel %vm8581_vm12, %v12658_v63, 0.0 }
0x1b78   :  { %v12669_v17 = vsel %vm6868_vm9, %v12653_v2, 0.0 }
0x1b79   :  { %v21870_v3 = vpop.f32.mrf.mxu1  ;;  %v12672_v4 = vsel %vm6868_vm9, %v12657_v60, 0.0 }
0x1b7a   :  { %v12656_v13 = vmul.f32 %v25827_v19, %v21870_v3  ;;  %v21891_v31 = vpop.f32.mrf.mxu0 }
0x1b7b   :  { %v12158_v30 = vpop.f32.mrf.mxu1  ;;  %v12662_v56 = vmul.f32 %v25881_v1, %v21891_v31 }
0x1b7c   :  { %v12685_v8 = vsel %vm8581_vm12, %v12656_v13, 0.0  ;;  %v12655_v58 = vmul.f32 %v25827_v19, %v12158_v30  ;;  %v12401_v44 = vpop.f32.mrf.mxu0 }
0x1b7d   :  { %v12686_v53 = vadd.f32 %v12685_v8, %v12684_v35  ;;  %v12661_v55 = vmul.f32 %v25881_v1, %v12401_v44  ;;  %v12691_v1 = vsel %vm8581_vm12, %v12662_v56, 0.0 }
0x1b7e   :  { %v12670_v46 = vsel %vm6868_vm9, %v12655_v58, 0.0 }
0x1b7f   :  { %v12671_v28 = vadd.f32 %v12670_v46, %v12669_v17  ;;  %v21884_v39 = vpop.f32.mrf.mxu1  ;;  %v12688_v16 = vadd.f32 %v12687_v14, %v12686_v53  ;;  %v12676_v29 = vsel %vm6868_vm9, %v12661_v55, 0.0 }
0x1b80   :  { %v22631_v12 = vpop.eup %22630  ;;  %v12660_v19 = vmul.f32 %v25859_v20, %v21884_v39  ;;  %v21905_v34 = vpop.f32.mrf.mxu0 }
0x1b81   :  { %v12320_v52 = vpop.f32.mrf.mxu1  ;;  %v12673_v47 = vadd.f32 %v12672_v4, %v12671_v28  ;;  %v10974_v10 = vmul.f32 %v22631_v12, %v10958_v15 }
0x1b82   :  { %v22633_v26 = vpop.eup %22632  ;;  %v12689_v21 = vsel %vm8581_vm12, %v12660_v19, 0.0  ;;  %v12659_v33 = vmul.f32 %v25859_v20, %v12320_v52  ;;  %v12563_v27 = vpop.f32.mrf.mxu0  ;;  %v12666_v20 = vmul.f32 %v25911_v51, %v21905_v34 }
0x1b83   :  { %v12690_v48 = vadd.f32 %v12689_v21, %v12688_v16  ;;  %v21898_v54 = vpop.f32.mrf.mxu1  ;;  %v10980_v50 = vmul.f32 %v19495_v41, %v10974_v10  ;;  %v10973_v7 = vmul.f32 %v22633_v26, %v26216_v11  ;;  %v12665_v40 = vmul.f32 %v25911_v51, %v12563_v27  ;;  %v12917_v10 = vld [vmem:[%s27932_s0 + $0x5e8] sm:$0xff]  ;;  %v12916_v26 = vld [vmem:[%s27932_s0 + $0x5e0] sm:$0xff] }
0x1b84   :  { %v12674_v23 = vsel %vm6868_vm9, %v12659_v33, 0.0  ;;  %v12664_v15 = vmul.f32 %v25890_v24, %v21898_v54  ;;  %v12695_v62 = vsel %vm8581_vm12, %v12666_v20, 0.0 }
0x1b85   :  { %v12675_v43 = vadd.f32 %v12674_v23, %v12673_v47  ;;  %v12692_v38 = vadd.f32 %v12691_v1, %v12690_v48  ;;  %v12482_v18 = vpop.f32.mrf.mxu1  ;;  %v10986_v5 = vadd.f32 %v19496_v61, %v10980_v50  ;;  %v10979_v42 = vmul.f32 %v19495_v41, %v10973_v7 }
0x1b86   :  { %v12693_v49 = vsel %vm8581_vm12, %v12664_v15, 0.0  ;;  %v12663_v57 = vmul.f32 %v25890_v24, %v12482_v18  ;;  %v12680_v63 = vsel %vm6868_vm9, %v12665_v40, 0.0  ;;  %v19497_v40 = vld [vmem:[%s27932_s0 + $0x548] ss:$0 sm:$0xff] }
0x1b87   :  { %v12694_v9 = vadd.f32 %v12693_v49, %v12692_v38  ;;  %v12677_v59 = vadd.f32 %v12676_v29, %v12675_v43  ;;  %v21912_v6 = vpop.f32.mrf.mxu1  ;;  %v10992_v37 = vsel %vm8581_vm12, %v10986_v5, 0.0  ;;  %v10985_v36 = vadd.f32 %v19496_v61, %v10979_v42  ;;  %v12829_v42 = vld [vmem:[%s27932_s0 + $0x5d0] sm:$0xff] }
0x1b88   :  { %v12678_v11 = vsel %vm6868_vm9, %v12663_v57, 0.0  ;;  %v12668_v45 = vmul.f32 %v25920_v22, %v21912_v6  ;;  %10993 = vadd.xlane.f32.xlu0 %v10992_v37  ;;  %21924 = vmatprep.subr.mxu1 %v12829_v42  ;;  %v12827_v37 = vld [vmem:[%s27932_s0 + $0x5c0] sm:$0xff] }
0x1b89   :  { %v12679_v3 = vadd.f32 %v12678_v11, %v12677_v59  ;;  %v12644_v51 = vpop.f32.mrf.mxu1  ;;  %v12696_v2 = vadd.f32 %v12695_v62, %v12694_v9  ;;  %v10989_v13 = vsel %vm6868_vm9, %v10985_v36, 0.0  ;;  %v12828_v9 = vld [vmem:[%s27932_s0 + $0x5c8] sm:$0xff]  ;;  %21925 = vmatpush3.msra.mxu1 %v12829_v42  ;;  %v19498_v11 = vld [vmem:[%s27932_s0 + $0x550] ss:$0 sm:$0xff] }
0x1b8a   :  { %v12667_v24 = vmul.f32 %v25920_v22, %v12644_v51  ;;  %v12697_v31 = vsel %vm8581_vm12, %v12668_v45, 0.0  ;;  %10990 = vadd.xlane.f32.xlu1 %v10989_v13  ;;  %v19558_v22 = vld [vmem:[%s27932_s0 + $0x5a0] ss:$0 sm:$0xff]  ;;  %21926 = vmatprep.subr.mxu1 %v12828_v9 }
0x1b8b   :  { %v12681_v30 = vadd.f32 %v12680_v63, %v12679_v3  ;;  %v12698_v8 = vadd.f32 %v12697_v31, %v12696_v2  ;;  %21927 = vmatpush3.msra.mxu1 %v12828_v9 }
0x1b8c   :  { %v12682_v35 = vsel %vm6868_vm9, %v12667_v24, 0.0  ;;  %21928 = vmatprep.subr.mxu1 %v12827_v37 }
0x1b8d   :  { %v12683_v60 = vadd.f32 %v12682_v35, %v12681_v30  ;;  %21929 = vmatpush3.msra.mxu1 %v12827_v37  ;;  %v19561_v35 = vld [vmem:[%s27932_s0 + $0x5a8] ss:$0 sm:$0xff] }
0x1b8f   :  { %21921 = vmatprep.mubr.msk.f32.mxu0 %vm6868_vm9, %v12683_v60 }
0x1b90   :  { %21922 = vmatmul.mubr.msk.f32.vlgmr.msra.gmra.mxu0 %vm6868_vm9, %v12698_v8 }
0x1c11   :  { %v10994_v58 = vpop.xlane.xlu0 %10993 }
0x1c12   :  { %v10996_v53 = vmul.f32 0.03125, %v10994_v58 }
0x1c13   :  { %v10991_v44 = vpop.xlane.xlu1 %10990 }
0x1c14   :  { %v10995_v14 = vmul.f32 0.03125, %v10991_v44  ;;  %v10998_v46 = vsub.f32 %v10986_v5, %v10996_v53  ;;  %v19562_v53 = vld [vmem:[%s27932_s0 + $0x5b0] ss:$0 sm:$0xff] }
0x1c16   :  { %v10997_v39 = vsub.f32 %v10985_v36, %v10995_v14  ;;  %v11000_v19 = vmul.f32 %v10998_v46, %v10998_v46  ;;  %v12826_v36 = vld [vmem:[%s27932_s0 + $0x5b8] sm:$0xff] }
0x1c17   :  { %21930 = vmatprep.subr.mxu1 %v12826_v36 }
0x1c18   :  { %v10999_v41 = vmul.f32 %v10997_v39, %v10997_v39  ;;  %v11004_v52 = vsel %vm8581_vm12, %v11000_v19, 0.0  ;;  %21931 = vmatpush3.msra.mxu1 %v12826_v36 }
0x1c1a   :  { %v11001_v47 = vsel %vm6868_vm9, %v10999_v41, 0.0  ;;  %v26373_v41 = vld [vmem:[%s27937_s5] ss:$0 sm:$0xff] }
0x1c50   :  { %v21923_v17 = vpop.f32.mrf.mxu0 }
0x1c51   :  { %v12781_v56 = vadd.f32 %v21923_v17, %v19558_v22 }
0x1c52   :  { %v12775_v28 = vpop.f32.mrf.mxu0 }
0x1c53   :  { %v12785_v16 = vadd.f32 %v12781_v56, %v24769_v25  ;;  %v12776_v12 = vadd.f32 %v19558_v22, %v12775_v28  ;;  %v12919_v25 = vld [vmem:[%s27932_s0 + $0x5f8] sm:$0xff] }
0x1c54   :  { %21935 = vmatprep.subr.mxu0 %v12919_v25 }
0x1c55   :  { %v12784_v4 = vadd.f32 %v12776_v12, %v24767_v0  ;;  %v12791_v55 = vsel %vm8581_vm12, %v12785_v16, 0.0  ;;  %v12918_v0 = vld [vmem:[%s27932_s0 + $0x5f0] sm:$0xff]  ;;  %21936 = vmatpush3.msra.mxu0 %v12919_v25  ;;  %v19563_v12 = vld [vmem:[%s27932_s0 + $0x5d8] ss:$0 sm:$0xff] }
0x1c56   :  { %12792 = vadd.xlane.f32.xlu0 %v12791_v55  ;;  %21937 = vmatprep.subr.mxu0 %v12918_v0 }
0x1c57   :  { %v12788_v34 = vsel %vm6868_vm9, %v12784_v4, 0.0  ;;  %21938 = vmatpush3.msra.mxu0 %v12918_v0 }
0x1c58   :  { %12789 = vadd.xlane.f32.xlu1 %v12788_v34  ;;  %21939 = vmatprep.subr.mxu0 %v12917_v10 }
0x1c59   :  { %21940 = vmatpush3.msra.mxu0 %v12917_v10 }
0x1c5a   :  { %11005 = vadd.xlane.f32.xlu0 %v11004_v52  ;;  %21941 = vmatprep.subr.mxu0 %v12916_v26 }
0x1c5b   :  { %21942 = vmatpush3.msra.mxu0 %v12916_v26  ;;  %v26391_v26 = vld [vmem:[%s27937_s5 + $0x2] ss:$0 sm:$0xff] }
0x1c5c   :  { %11002 = vadd.xlane.f32.xlu1 %v11001_v47  ;;  %v26379_v47 = vld [vmem:[%s27937_s5 + $0x1] ss:$0 sm:$0xff] }
0x1cdf   :  { %v12793_v21 = vpop.xlane.xlu0 %12792 }
0x1ce0   :  { %v12795_v33 = vmul.f32 0.03125, %v12793_v21 }
0x1ce1   :  { %v12790_v61 = vpop.xlane.xlu1 %12789 }
0x1ce2   :  { %v12797_v1 = vsub.f32 %v12785_v16, %v12795_v33  ;;  %v12794_v48 = vmul.f32 0.03125, %v12790_v61  ;;  %v26401_v33 = vld [vmem:[%s27937_s5 + $0x3] ss:$0 sm:$0xff] }
0x1ce3   :  { %v11006_v27 = vpop.xlane.xlu0 %11005 }
0x1ce4   :  { %v12796_v54 = vsub.f32 %v12784_v4, %v12794_v48  ;;  %v11008_v50 = vmul.f32 0.03125, %v11006_v27  ;;  %v12799_v29 = vmul.f32 %v12797_v1, %v12797_v1  ;;  %v26423_v27 = vld [vmem:[%s27937_s5 + $0x4] ss:$0 sm:$0xff] }
0x1ce5   :  { %v11003_v23 = vpop.xlane.xlu1 %11002 }
0x1ce6   :  { %v11010_v15 = vadd.f32 1e-05, %v11008_v50  ;;  %v11007_v7 = vmul.f32 0.03125, %v11003_v23  ;;  %v12803_v20 = vsel %vm8581_vm12, %v12799_v29, 0.0  ;;  %v12798_v43 = vmul.f32 %v12796_v54, %v12796_v54  ;;  %v26431_v50 = vld [vmem:[%s27937_s5 + $0x5] ss:$0 sm:$0xff] }
0x1ce7   :  { %12804 = vadd.xlane.f32.xlu0 %v12803_v20 }
0x1ce8   :  { %22634 = vrsqrt.f32 %v11010_v15  ;;  %v11009_v38 = vadd.f32 1e-05, %v11007_v7  ;;  %v12800_v18 = vsel %vm6868_vm9, %v12798_v43, 0.0  ;;  %v26458_v7 = vld [vmem:[%s27937_s5 + $0x6] ss:$0 sm:$0xff] }
0x1ce9   :  { %12801 = vadd.xlane.f32.xlu1 %v12800_v18  ;;  %v26467_v43 = vld [vmem:[%s27937_s5 + $0x7] ss:$0 sm:$0xff] }
0x1cea   :  { %22636 = vrsqrt.f32 %v11009_v38 }
0x1cf5   :  { %v22635_v5 = vpop.eup %22634 }
0x1cf6   :  { %v11014_v49 = vmul.f32 %v22635_v5, %v10998_v46  ;;  %v19566_v46 = vld [vmem:[%s27932_s0 + $0x600] ss:$0 sm:$0xff] }
0x1cf7   :  { %v22637_v57 = vpop.eup %22636 }
0x1cf8   :  { %v11013_v59 = vmul.f32 %v22637_v57, %v10997_v39  ;;  %v11020_v6 = vmul.f32 %v19497_v40, %v11014_v49 }
0x1cfa   :  { %v11019_v45 = vmul.f32 %v19497_v40, %v11013_v59  ;;  %v26320_v3 = vadd.f32 %v19498_v11, %v11020_v6  ;;  %v26489_v40 = vld [vmem:[%s27933_s1 + $0x38] sm:$0x3]  ;;  %v26494_v59 = vld [vmem:[%s27933_s1 + $0x30] sm:$0xff] }
0x1cfc   :  { %v26318_v62 = vadd.f32 %v19498_v11, %v11019_v45 }
0x1cfe   :  { %21943 = vmatprep.mubr.msk.f32.mxu0 %vm6868_vm9, %v26318_v62 }
0x1cff   :  { %21944 = vmatmul.mubr.msk.f32.vlgmr.msra.gmra.mxu0 %vm6868_vm9, %v26320_v3 }
0x1d70   :  { %v12805_v51 = vpop.xlane.xlu0 %12804 }
0x1d71   :  { %v12807_v63 = vmul.f32 0.03125, %v12805_v51 }
0x1d72   :  { %v12802_v2 = vpop.xlane.xlu1 %12801 }
0x1d73   :  { %v12809_v24 = vadd.f32 1e-05, %v12807_v63  ;;  %v12806_v13 = vmul.f32 0.03125, %v12802_v2 }
0x1d75   :  { %22638 = vrsqrt.f32 %v12809_v24  ;;  %v12808_v31 = vadd.f32 1e-05, %v12806_v13 }
0x1d77   :  { %22640 = vrsqrt.f32 %v12808_v31 }
0x1d82   :  { %v22639_v30 = vpop.eup %22638 }
0x1d83   :  { %v12813_v60 = vmul.f32 %v22639_v30, %v12797_v1 }
0x1d84   :  { %v22641_v8 = vpop.eup %22640 }
0x1d85   :  { %v12812_v58 = vmul.f32 %v22641_v8, %v12796_v54  ;;  %v12819_v44 = vmul.f32 %v19561_v35, %v12813_v60 }
0x1d87   :  { %v12818_v22 = vmul.f32 %v19561_v35, %v12812_v58  ;;  %v26334_v17 = vadd.f32 %v19562_v53, %v12819_v44 }
0x1d89   :  { %v26332_v14 = vadd.f32 %v19562_v53, %v12818_v22 }
0x1d8b   :  { %21932 = vmatprep.mubr.msk.f32.mxu1 %vm6868_vm9, %v26332_v14 }
0x1d8c   :  { %21933 = vmatmul.mubr.msk.f32.vlgmr.msra.gmra.mxu1 %vm6868_vm9, %v26334_v17 }
0x1dbf   :  { %v21945_v56 = vpop.f32.mrf.mxu0 }
0x1dc0   :  { %v26343_v28 = vadd.f32 %v21945_v56, %v19566_v46 }
0x1dc1   :  { %v12997_v39 = vpop.f32.mrf.mxu0 }
0x1dc2   :  { %v26345_v16 = vadd.f32 %v19566_v46, %v12997_v39  ;;  %21946 = vmatprep.subr.msk.mxu1 %vm6868_vm9, %v26343_v28  ;;  %21953 = vmatprep.subr.msk.mxu0 %vm6868_vm9, %v26343_v28 }
0x1dc3   :  { %21947 = vmatpush3.xpose.msk.msra.mxu1 %vm6868_vm9, %v26343_v28  ;;  %21954 = vmatpush3.xpose.msk.msra.mxu0 %vm6868_vm9, %v26343_v28 }
0x1dc4   :  { %21948 = vmatprep.subr.msk.mxu1 %vm6868_vm9, %v26345_v16  ;;  %21955 = vmatprep.subr.msk.mxu0 %vm6868_vm9, %v26345_v16 }
0x1dc7   :  { %21949 = vmatpush3.xpose.msk.msra.mxu1 %vm6868_vm9, %v26345_v16  ;;  %21956 = vmatpush3.xpose.msk.msra.mxu0 %vm6868_vm9, %v26345_v16 }
0x1dc8   :  { %21960 = vmatprep.subr.msk.mxu1 %vm6868_vm9, %v26343_v28  ;;  %21967 = vmatprep.subr.msk.mxu0 %vm6868_vm9, %v26343_v28 }
0x1e4c   :  { %v21934_v4 = vpop.f32.mrf.mxu1 }
0x1e4d   :  { %v12913_v55 = vadd.f32 %v21934_v4, %v19563_v12 }
0x1e4e   :  { %v12907_v19 = vpop.f32.mrf.mxu1 }
0x1e4f   :  { %v12908_v34 = vadd.f32 %v19563_v12, %v12907_v19  ;;  %v13012_v0 = vmul.f32 %v26373_v41, %v12913_v55  ;;  %v13014_v10 = vmul.f32 %v26379_v47, %v12913_v55  ;;  %v13016_v1 = vmul.f32 %v26391_v26, %v12913_v55 }
0x1e50   :  { %v13018_v48 = vmul.f32 %v26401_v33, %v12913_v55  ;;  %v13020_v23 = vmul.f32 %v26423_v27, %v12913_v55  ;;  %v13022_v15 = vmul.f32 %v26431_v50, %v12913_v55  ;;  %v13024_v18 = vmul.f32 %v26458_v7, %v12913_v55 }
0x1e51   :  { %v13011_v52 = vmul.f32 %v26373_v41, %v12908_v34  ;;  %v13013_v25 = vmul.f32 %v26379_v47, %v12908_v34  ;;  %v13015_v21 = vmul.f32 %v26391_v26, %v12908_v34  ;;  %v13017_v61 = vmul.f32 %v26401_v33, %v12908_v34 }
0x1e52   :  { %v13019_v54 = vmul.f32 %v26423_v27, %v12908_v34  ;;  %v13021_v29 = vmul.f32 %v26431_v50, %v12908_v34  ;;  %v13023_v20 = vmul.f32 %v26458_v7, %v12908_v34  ;;  %v13025_v38 = vmul.f32 %v26467_v43, %v12908_v34 }
0x1e53   :  { %21950 = vmatprep.mubr.msk.f32.mxu1 %vm6868_vm9, %v13011_v52  ;;  %21957 = vmatprep.mubr.msk.f32.mxu0 %vm6868_vm9, %v13013_v25  ;;  %v13026_v5 = vmul.f32 %v26467_v43, %v12913_v55 }
0x1e54   :  { %21951 = vmatmul.mubr.msk.f32.vlgmr.msra.gmra.mxu1 %vm6868_vm9, %v13012_v0  ;;  %21958 = vmatmul.mubr.msk.f32.vlgmr.msra.gmra.mxu0 %vm6868_vm9, %v13014_v10 }
0x1e55   :  { %21961 = vmatpush3.xpose.msk.msra.mxu1 %vm6868_vm9, %v26343_v28  ;;  %21968 = vmatpush3.xpose.msk.msra.mxu0 %vm6868_vm9, %v26343_v28 }
0x1e56   :  { %21962 = vmatprep.subr.msk.mxu1 %vm6868_vm9, %v26345_v16  ;;  %21964 = vmatprep.mubr.msk.f32.mxu1 %vm6868_vm9, %v13015_v21 }
0x1e57   :  { %21969 = vmatprep.subr.msk.mxu0 %vm6868_vm9, %v26345_v16  ;;  %21971 = vmatprep.mubr.msk.f32.mxu0 %vm6868_vm9, %v13017_v61 }
0x1e59   :  { %21963 = vmatpush3.xpose.msk.msra.mxu1 %vm6868_vm9, %v26345_v16  ;;  %21970 = vmatpush3.xpose.msk.msra.mxu0 %vm6868_vm9, %v26345_v16 }
0x1e5a   :  { %21974 = vmatprep.subr.msk.mxu1 %vm6868_vm9, %v26343_v28  ;;  %21981 = vmatprep.subr.msk.mxu0 %vm6868_vm9, %v26343_v28 }
0x1e5c   :  { %21965 = vmatmul.mubr.msk.f32.vlgmr.msra.gmra.mxu1 %vm6868_vm9, %v13016_v1  ;;  %21972 = vmatmul.mubr.msk.f32.vlgmr.msra.gmra.mxu0 %vm6868_vm9, %v13018_v48 }
0x1e5d   :  { %21975 = vmatpush3.xpose.msk.msra.mxu1 %vm6868_vm9, %v26343_v28  ;;  %21978 = vmatprep.mubr.msk.f32.mxu1 %vm6868_vm9, %v13019_v54 }
0x1e5e   :  { %21982 = vmatpush3.xpose.msk.msra.mxu0 %vm6868_vm9, %v26343_v28  ;;  %21985 = vmatprep.mubr.msk.f32.mxu0 %vm6868_vm9, %v13021_v29 }
0x1e5f   :  { %21976 = vmatprep.subr.msk.mxu1 %vm6868_vm9, %v26345_v16  ;;  %21983 = vmatprep.subr.msk.mxu0 %vm6868_vm9, %v26345_v16 }
0x1e61   :  { %21977 = vmatpush3.xpose.msk.msra.mxu1 %vm6868_vm9, %v26345_v16 }
0x1e62   :  { %21984 = vmatpush3.xpose.msk.msra.mxu0 %vm6868_vm9, %v26345_v16  ;;  %21988 = vmatprep.subr.msk.mxu1 %vm6868_vm9, %v26343_v28 }
0x1e63   :  { %21995 = vmatprep.subr.msk.mxu0 %vm6868_vm9, %v26343_v28 }
0x1e64   :  { %21979 = vmatmul.mubr.msk.f32.vlgmr.msra.gmra.mxu1 %vm6868_vm9, %v13020_v23 }
0x1e65   :  { %21986 = vmatmul.mubr.msk.f32.vlgmr.msra.gmra.mxu0 %vm6868_vm9, %v13022_v15  ;;  %21989 = vmatpush3.xpose.msk.msra.mxu1 %vm6868_vm9, %v26343_v28 }
0x1e66   :  { %21992 = vmatprep.mubr.msk.f32.mxu1 %vm6868_vm9, %v13023_v20  ;;  %21996 = vmatpush3.xpose.msk.msra.mxu0 %vm6868_vm9, %v26343_v28 }
0x1e67   :  { %21999 = vmatprep.mubr.msk.f32.mxu0 %vm6868_vm9, %v13025_v38  ;;  %21990 = vmatprep.subr.msk.mxu1 %vm6868_vm9, %v26345_v16 }
0x1e68   :  { %21997 = vmatprep.subr.msk.mxu0 %vm6868_vm9, %v26345_v16 }
0x1e69   :  { %21991 = vmatpush3.xpose.msk.msra.mxu1 %vm6868_vm9, %v26345_v16 }
0x1e6a   :  { %21998 = vmatpush3.xpose.msk.msra.mxu0 %vm6868_vm9, %v26345_v16 }
0x1e6c   :  { %21993 = vmatmul.mubr.msk.f32.vlgmr.msra.gmra.mxu1 %vm6868_vm9, %v13024_v18 }
0x1e6d   :  { %22000 = vmatmul.mubr.msk.f32.vlgmr.msra.gmra.mxu0 %vm6868_vm9, %v13026_v5 }
0x1f14   :  { %v21952_v49 = vpop.f32.mrf.mxu1  ;;  %v21959_v57 = vpop.f32.mrf.mxu0 }
0x1f15   :  { %v13682_v42 = vmul.f32 0.5, %v21952_v49  ;;  %v13684_v9 = vmul.f32 0.5, %v21959_v57 }
0x1f16   :  { %v13105_v6 = vpop.f32.mrf.mxu1  ;;  %v13186_v37 = vpop.f32.mrf.mxu0 }
0x1f17   :  { %v26497_v11 = vadd.f32 %v13682_v42, %v26489_v40  ;;  %v13681_v45 = vmul.f32 0.5, %v13105_v6  ;;  %v13683_v36 = vmul.f32 0.5, %v13186_v37  ;;  %v26500_v51 = vadd.f32 %v13684_v9, %v26489_v40 }
0x1f19   :  { %v26503_v63 = vadd.f32 %v13681_v45, %v26494_v59  ;;  %v13716_v2 = vsel %vm7721_vm10, %v26497_v11, -inf  ;;  %v26508_v24 = vadd.f32 %v13683_v36, %v26494_v59  ;;  %v13722_v8 = vsel %vm7721_vm10, %v26500_v51, -inf }
0x1f1a   :  { %13717 = vmax.xlane.f32.xlu0 %v13716_v2 }
0x1f1b   :  { %v13713_v13 = vsel %vm7717_vm11, %v26503_v63, -inf  ;;  %v13719_v56 = vsel %vm7717_vm11, %v26508_v24, -inf }
0x1f1c   :  { %v21966_v31 = vpop.f32.mrf.mxu1  ;;  %v21973_v30 = vpop.f32.mrf.mxu0  ;;  %13714 = vmax.xlane.f32.xlu1 %v13713_v13 }
0x1f1d   :  { %v13686_v35 = vmul.f32 0.5, %v21966_v31  ;;  %v13688_v60 = vmul.f32 0.5, %v21973_v30 }
0x1f1e   :  { %v13267_v58 = vpop.f32.mrf.mxu1  ;;  %v13348_v44 = vpop.f32.mrf.mxu0  ;;  %13723 = vmax.xlane.f32.xlu0 %v13722_v8 }
0x1f1f   :  { %v26515_v53 = vadd.f32 %v13686_v35, %v26489_v40  ;;  %v13685_v22 = vmul.f32 0.5, %v13267_v58  ;;  %v13687_v46 = vmul.f32 0.5, %v13348_v44  ;;  %v26520_v39 = vadd.f32 %v13688_v60, %v26489_v40 }
0x1f20   :  { %13720 = vmax.xlane.f32.xlu1 %v13719_v56 }
0x1f21   :  { %v26523_v12 = vadd.f32 %v13685_v22, %v26494_v59  ;;  %v13728_v4 = vsel %vm7721_vm10, %v26515_v53, -inf  ;;  %v26528_v55 = vadd.f32 %v13687_v46, %v26494_v59  ;;  %v13734_v0 = vsel %vm7721_vm10, %v26520_v39, -inf }
0x1f22   :  { %13729 = vmax.xlane.f32.xlu0 %v13728_v4 }
0x1f23   :  { %v13725_v19 = vsel %vm7717_vm11, %v26523_v12, -inf  ;;  %v13731_v54 = vsel %vm7717_vm11, %v26528_v55, -inf }
0x1f24   :  { %v21980_v34 = vpop.f32.mrf.mxu1  ;;  %13726 = vmax.xlane.f32.xlu1 %v13725_v19 }
0x1f25   :  { %v13690_v52 = vmul.f32 0.5, %v21980_v34  ;;  %v21987_v25 = vpop.f32.mrf.mxu0 }
0x1f26   :  { %v13692_v10 = vmul.f32 0.5, %v21987_v25  ;;  %v13429_v21 = vpop.f32.mrf.mxu1  ;;  %13735 = vmax.xlane.f32.xlu0 %v13734_v0 }
0x1f27   :  { %v26535_v61 = vadd.f32 %v13690_v52, %v26489_v40  ;;  %v13689_v1 = vmul.f32 0.5, %v13429_v21  ;;  %v13510_v48 = vpop.f32.mrf.mxu0 }
0x1f28   :  { %v13691_v29 = vmul.f32 0.5, %v13510_v48  ;;  %13732 = vmax.xlane.f32.xlu1 %v13731_v54  ;;  %v26540_v23 = vadd.f32 %v13692_v10, %v26489_v40 }
0x1f29   :  { %v26543_v15 = vadd.f32 %v13689_v1, %v26494_v59  ;;  %v13740_v20 = vsel %vm7721_vm10, %v26535_v61, -inf }
0x1f2a   :  { %13741 = vmax.xlane.f32.xlu0 %v13740_v20  ;;  %v26548_v38 = vadd.f32 %v13691_v29, %v26494_v59  ;;  %v13746_v42 = vsel %vm7721_vm10, %v26540_v23, -inf }
0x1f2b   :  { %v13737_v18 = vsel %vm7717_vm11, %v26543_v15, -inf }
0x1f2c   :  { %v21994_v5 = vpop.f32.mrf.mxu1  ;;  %13738 = vmax.xlane.f32.xlu1 %v13737_v18  ;;  %v13743_v2 = vsel %vm7717_vm11, %v26548_v38, -inf }
0x1f2d   :  { %v13694_v49 = vmul.f32 0.5, %v21994_v5  ;;  %v22001_v57 = vpop.f32.mrf.mxu0 }
0x1f2e   :  { %v13696_v9 = vmul.f32 0.5, %v22001_v57  ;;  %v13591_v6 = vpop.f32.mrf.mxu1  ;;  %13747 = vmax.xlane.f32.xlu0 %v13746_v42 }
0x1f2f   :  { %v26555_v37 = vadd.f32 %v13694_v49, %v26489_v40  ;;  %v13693_v45 = vmul.f32 0.5, %v13591_v6  ;;  %v13672_v36 = vpop.f32.mrf.mxu0 }
0x1f30   :  { %v13695_v13 = vmul.f32 0.5, %v13672_v36  ;;  %13744 = vmax.xlane.f32.xlu1 %v13743_v2  ;;  %v26560_v31 = vadd.f32 %v13696_v9, %v26489_v40 }
0x1f31   :  { %v26563_v30 = vadd.f32 %v13693_v45, %v26494_v59  ;;  %v13752_v35 = vsel %vm7721_vm10, %v26555_v37, -inf }
0x1f32   :  { %13753 = vmax.xlane.f32.xlu0 %v13752_v35  ;;  %v26568_v60 = vadd.f32 %v13695_v13, %v26494_v59  ;;  %v13758_v58 = vsel %vm7721_vm10, %v26560_v31, -inf }
0x1f33   :  { %v13749_v8 = vsel %vm7717_vm11, %v26563_v30, -inf }
0x1f34   :  { %13750 = vmax.xlane.f32.xlu1 %v13749_v8  ;;  %v13755_v40 = vsel %vm7717_vm11, %v26568_v60, -inf }
0x1f36   :  { %13759 = vmax.xlane.f32.xlu0 %v13758_v58 }
0x1f38   :  { %13756 = vmax.xlane.f32.xlu1 %v13755_v40 }
0x1fa3   :  { %v13718_v44 = vpop.xlane.xlu0 %13717 }
0x1fa4   :  { %v13762_v22 = vsub.f32 %v26497_v11, %v13718_v44 }
0x1fa5   :  { %v13715_v46 = vpop.xlane.xlu1 %13714 }
0x1fa6   :  { %v13779_v56 = vmul.f32 1.442695, %v13762_v22  ;;  %v13761_v59 = vsub.f32 %v26503_v63, %v13715_v46 }
0x1fa7   :  { %v13724_v4 = vpop.xlane.xlu0 %13723 }
0x1fa8   :  { %22642 = vpow2.f32 %v13779_v56  ;;  %v13777_v19 = vmul.f32 1.442695, %v13761_v59  ;;  %v13764_v34 = vsub.f32 %v26500_v51, %v13724_v4 }
0x1fa9   :  { %v13721_v52 = vpop.xlane.xlu1 %13720 }
0x1faa   :  { %22644 = vpow2.f32 %v13777_v19  ;;  %v13783_v25 = vmul.f32 1.442695, %v13764_v34  ;;  %v13763_v0 = vsub.f32 %v26508_v24, %v13721_v52 }
0x1fab   :  { %v13730_v10 = vpop.xlane.xlu0 %13729 }
0x1fac   :  { %22646 = vpow2.f32 %v13783_v25  ;;  %v13781_v21 = vmul.f32 1.442695, %v13763_v0  ;;  %v13766_v1 = vsub.f32 %v26515_v53, %v13730_v10 }
0x1fad   :  { %v13727_v11 = vpop.xlane.xlu1 %13726 }
0x1fae   :  { %22648 = vpow2.f32 %v13781_v21  ;;  %v13787_v48 = vmul.f32 1.442695, %v13766_v1  ;;  %v13765_v63 = vsub.f32 %v26523_v12, %v13727_v11 }
0x1faf   :  { %v13736_v54 = vpop.xlane.xlu0 %13735 }
0x1fb0   :  { %22650 = vpow2.f32 %v13787_v48  ;;  %v13785_v29 = vmul.f32 1.442695, %v13765_v63  ;;  %v13768_v51 = vsub.f32 %v26520_v39, %v13736_v54 }
0x1fb1   :  { %v13733_v20 = vpop.xlane.xlu1 %13732 }
0x1fb2   :  { %22652 = vpow2.f32 %v13785_v29  ;;  %v13791_v18 = vmul.f32 1.442695, %v13768_v51  ;;  %v13767_v24 = vsub.f32 %v26528_v55, %v13733_v20 }
0x1fb3   :  { %v13742_v5 = vpop.xlane.xlu0 %13741 }
0x1fb4   :  { %22654 = vpow2.f32 %v13791_v18  ;;  %v13789_v49 = vmul.f32 1.442695, %v13767_v24  ;;  %v13770_v53 = vsub.f32 %v26535_v61, %v13742_v5 }
0x1fb5   :  { %v26585_v57 = vpop.eup %22642  ;;  %v13739_v42 = vpop.xlane.xlu1 %13738 }
0x1fb6   :  { %22656 = vpow2.f32 %v13789_v49  ;;  %v13795_v12 = vmul.f32 1.442695, %v13770_v53  ;;  %v13769_v9 = vsub.f32 %v26543_v15, %v13739_v42  ;;  %v13812_v39 = vsel %vm7721_vm10, %v26585_v57, 0.0 }
0x1fb7   :  { %v26590_v6 = vpop.eup %22644  ;;  %v13748_v45 = vpop.xlane.xlu0 %13747  ;;  %13813 = vadd.xlane.f32.xlu0 %v13812_v39 }
0x1fb8   :  { %22658 = vpow2.f32 %v13795_v12  ;;  %v13793_v55 = vmul.f32 1.442695, %v13769_v9  ;;  %v13772_v36 = vsub.f32 %v26540_v23, %v13748_v45  ;;  %v13809_v61 = vsel %vm7717_vm11, %v26590_v6, 0.0 }
0x1fb9   :  { %v26595_v2 = vpop.eup %22646  ;;  %v13745_v13 = vpop.xlane.xlu1 %13744  ;;  %13810 = vadd.xlane.f32.xlu1 %v13809_v61 }
0x1fba   :  { %22660 = vpow2.f32 %v13793_v55  ;;  %v13799_v15 = vmul.f32 1.442695, %v13772_v36  ;;  %v13771_v35 = vsub.f32 %v26548_v38, %v13745_v13  ;;  %v13818_v8 = vsel %vm7721_vm10, %v26595_v2, 0.0 }
0x1fbb   :  { %v26600_v58 = vpop.eup %22648  ;;  %13819 = vadd.xlane.f32.xlu0 %v13818_v8  ;;  %v13754_v40 = vpop.xlane.xlu0 %13753 }
0x1fbc   :  { %22662 = vpow2.f32 %v13799_v15  ;;  %v13797_v23 = vmul.f32 1.442695, %v13771_v35  ;;  %v13774_v44 = vsub.f32 %v26555_v37, %v13754_v40  ;;  %v13815_v22 = vsel %vm7717_vm11, %v26600_v58, 0.0 }
0x1fbd   :  { %v26605_v46 = vpop.eup %22650  ;;  %13816 = vadd.xlane.f32.xlu1 %v13815_v22  ;;  %v13751_v56 = vpop.xlane.xlu1 %13750 }
0x1fbe   :  { %22664 = vpow2.f32 %v13797_v23  ;;  %v13803_v38 = vmul.f32 1.442695, %v13774_v44  ;;  %v13773_v59 = vsub.f32 %v26563_v30, %v13751_v56  ;;  %v13824_v4 = vsel %vm7721_vm10, %v26605_v46, 0.0 }
0x1fbf   :  { %v26610_v19 = vpop.eup %22652  ;;  %13825 = vadd.xlane.f32.xlu0 %v13824_v4  ;;  %v13760_v34 = vpop.xlane.xlu0 %13759 }
0x1fc0   :  { %22666 = vpow2.f32 %v13803_v38  ;;  %v13801_v37 = vmul.f32 1.442695, %v13773_v59  ;;  %v13776_v52 = vsub.f32 %v26560_v31, %v13760_v34  ;;  %v13821_v25 = vsel %vm7717_vm11, %v26610_v19, 0.0 }
0x1fc1   :  { %v26615_v0 = vpop.eup %22654  ;;  %13822 = vadd.xlane.f32.xlu1 %v13821_v25  ;;  %v13757_v10 = vpop.xlane.xlu1 %13756 }
0x1fc2   :  { %22668 = vpow2.f32 %v13801_v37  ;;  %v13807_v30 = vmul.f32 1.442695, %v13776_v52  ;;  %v13775_v21 = vsub.f32 %v26568_v60, %v13757_v10  ;;  %v13830_v1 = vsel %vm7721_vm10, %v26615_v0, 0.0 }
0x1fc3   :  { %v26620_v11 = vpop.eup %22656  ;;  %13831 = vadd.xlane.f32.xlu0 %v13830_v1 }
0x1fc4   :  { %22670 = vpow2.f32 %v13807_v30  ;;  %v13805_v48 = vmul.f32 1.442695, %v13775_v21  ;;  %v13827_v31 = vsel %vm7717_vm11, %v26620_v11, 0.0 }
0x1fc5   :  { %v26624_v63 = vpop.eup %22658  ;;  %13828 = vadd.xlane.f32.xlu1 %v13827_v31 }
0x1fc6   :  { %22672 = vpow2.f32 %v13805_v48  ;;  %v13836_v54 = vsel %vm7721_vm10, %v26624_v63, 0.0 }
0x1fc7   :  { %v26628_v29 = vpop.eup %22660  ;;  %13837 = vadd.xlane.f32.xlu0 %v13836_v54 }
0x1fc8   :  { %v13833_v60 = vsel %vm7717_vm11, %v26628_v29, 0.0 }
0x1fc9   :  { %v26632_v51 = vpop.eup %22662  ;;  %13834 = vadd.xlane.f32.xlu1 %v13833_v60 }
0x1fca   :  { %v13842_v20 = vsel %vm7721_vm10, %v26632_v51, 0.0 }
0x1fcb   :  { %v26636_v18 = vpop.eup %22664  ;;  %13843 = vadd.xlane.f32.xlu0 %v13842_v20 }
0x1fcc   :  { %v13839_v24 = vsel %vm7717_vm11, %v26636_v18, 0.0 }
0x1fcd   :  { %v26640_v5 = vpop.eup %22666  ;;  %13840 = vadd.xlane.f32.xlu1 %v13839_v24 }
0x1fce   :  { %v13848_v49 = vsel %vm7721_vm10, %v26640_v5, 0.0 }
0x1fcf   :  { %v26644_v53 = vpop.eup %22668  ;;  %13849 = vadd.xlane.f32.xlu0 %v13848_v49 }
0x1fd0   :  { %v13845_v42 = vsel %vm7717_vm11, %v26644_v53, 0.0 }
0x1fd1   :  { %v26648_v12 = vpop.eup %22670  ;;  %13846 = vadd.xlane.f32.xlu1 %v13845_v42 }
0x1fd2   :  { %v13854_v9 = vsel %vm7721_vm10, %v26648_v12, 0.0 }
0x1fd3   :  { %v26652_v39 = vpop.eup %22672  ;;  %13855 = vadd.xlane.f32.xlu0 %v13854_v9 }
0x1fd4   :  { %v13851_v45 = vsel %vm7717_vm11, %v26652_v39, 0.0 }
0x1fd5   :  { %13852 = vadd.xlane.f32.xlu1 %v13851_v45 }
0x1fe6   :  { %13891 = vrot.lane.b32.xlu1 %v26343_v28, %s22934_s21 }
0x1fe9   :  { %13889 = vrot.lane.b32.xlu0 %v26345_v16, %s22934_s21 }
0x2040   :  { %v13814_v55 = vpop.xlane.xlu0 %13813 }
0x2042   :  { %v13811_v36 = vpop.xlane.xlu1 %13810 }
0x2043   :  { %22674 = vrcp.f32 %v13811_v36 }
0x2044   :  { %v13820_v61 = vpop.xlane.xlu0 %13819 }
0x2046   :  { %v13817_v13 = vpop.xlane.xlu1 %13816 }
0x2048   :  { %v13826_v15 = vpop.xlane.xlu0 %13825 }
0x204a   :  { %v13823_v35 = vpop.xlane.xlu1 %13822 }
0x204b   :  { %22676 = vrcp.f32 %v13823_v35 }
0x204c   :  { %v13832_v8 = vpop.xlane.xlu0 %13831  ;;  %22678 = vrcp.f32 %v13814_v55 }
0x204d   :  { %22680 = vrcp.f32 %v13826_v15 }
0x204e   :  { %v13829_v40 = vpop.xlane.xlu1 %13828  ;;  %22682 = vrcp.f32 %v13817_v13 }
0x2050   :  { %v22675_v23 = vpop.eup %22674  ;;  %v13838_v44 = vpop.xlane.xlu0 %13837 }
0x2051   :  { %v13858_v22 = vmul.f32 %v22675_v23, %v26590_v6 }
0x2052   :  { %v13835_v56 = vpop.xlane.xlu1 %13834 }
0x2053   :  { %22006 = vmatprep.mubr.msk.f32.mxu1 %vm7717_vm11, %v13858_v22  ;;  %22684 = vrcp.f32 %v13835_v56 }
0x2054   :  { %v13844_v28 = vpop.xlane.xlu0 %13843  ;;  %22686 = vrcp.f32 %v13820_v61  ;;  %v13006_v61 = vld [vmem:[%s27932_s0 + $0x608] sm:$0xff] }
0x2055   :  { %22688 = vrcp.f32 %v13838_v44 }
0x2056   :  { %v13841_v16 = vpop.xlane.xlu1 %13840 }
0x2058   :  { %v22677_v38 = vpop.eup %22676  ;;  %v13850_v59 = vpop.xlane.xlu0 %13849 }
0x2059   :  { %v13866_v4 = vmul.f32 %v22677_v38, %v26610_v19  ;;  %v22679_v52 = vpop.eup %22678 }
0x205a   :  { %v13847_v34 = vpop.xlane.xlu1 %13846  ;;  %v22681_v10 = vpop.eup %22680  ;;  %v13860_v1 = vmul.f32 %v22679_v52, %v26585_v57 }
0x205b   :  { %22020 = vmatprep.mubr.msk.f32.mxu0 %vm7717_vm11, %v13866_v4  ;;  %22690 = vrcp.f32 %v13847_v34  ;;  %v22683_v19 = vpop.eup %22682  ;;  %v13868_v48 = vmul.f32 %v22681_v10, %v26605_v46 }
0x205c   :  { %22692 = vrcp.f32 %v13829_v40  ;;  %v13856_v6 = vpop.xlane.xlu0 %13855  ;;  %v13862_v57 = vmul.f32 %v22683_v19, %v26600_v58 }
0x205d   :  { %22694 = vrcp.f32 %v13832_v8 }
0x205e   :  { %v13853_v37 = vpop.xlane.xlu1 %13852  ;;  %22696 = vrcp.f32 %v13850_v59 }
0x205f   :  { %22698 = vrcp.f32 %v13841_v16 }
0x2060   :  { %v26670_v30 = vpop.permute.xlu0 %13889  ;;  %v22685_v21 = vpop.eup %22684  ;;  %22700 = vrcp.f32 %v13844_v28 }
0x2061   :  { %22702 = vrcp.f32 %v13853_v37  ;;  %v22687_v31 = vpop.eup %22686  ;;  %v13874_v46 = vmul.f32 %v22685_v21, %v26628_v29 }
0x2062   :  { %v26664_v25 = vpop.permute.xlu1 %13891  ;;  %v22689_v54 = vpop.eup %22688  ;;  %22704 = vrcp.f32 %v13856_v6  ;;  %v13864_v58 = vmul.f32 %v22687_v31, %v26595_v2 }
0x2063   :  { %22002 = vmatprep.subr.msk.mxu1 %vm4149_vm7, %v26664_v25  ;;  %22016 = vmatprep.subr.msk.mxu0 %vm4149_vm7, %v26664_v25  ;;  %v13876_v29 = vmul.f32 %v22689_v54, %v26624_v63 }
0x2064   :  { %22003 = vmatpush3.msk.msra.mxu1 %vm4149_vm7, %v26664_v25  ;;  %22017 = vmatpush3.msk.msra.mxu0 %vm4149_vm7, %v26664_v25 }
0x2065   :  { %22004 = vmatprep.subr.mxu1 %v26670_v30  ;;  %22018 = vmatprep.subr.mxu0 %v26670_v30 }
0x2066   :  { %22005 = vmatpush3.msra.mxu1 %v26670_v30  ;;  %22019 = vmatpush3.msra.mxu0 %v26670_v30 }
0x2067   :  { %22007 = vmatmul.mubr.msk.f32.vlgmr.msra.gmra.mxu1 %vm7717_vm11, %v13860_v1  ;;  %22009 = vmatprep.subr.msk.mxu1 %vm4149_vm7, %v26664_v25 }
0x2068   :  { %22021 = vmatmul.mubr.msk.f32.vlgmr.msra.gmra.mxu0 %vm7717_vm11, %v13868_v48  ;;  %22030 = vmatprep.subr.msk.mxu0 %vm4149_vm7, %v26664_v25  ;;  %v22691_v60 = vpop.eup %22690 }
0x2069   :  { %22010 = vmatpush3.msk.msra.mxu1 %vm4149_vm7, %v26664_v25  ;;  %22013 = vmatprep.mubr.msk.f32.mxu1 %vm7717_vm11, %v13862_v57  ;;  %v22693_v20 = vpop.eup %22692  ;;  %v13882_v24 = vmul.f32 %v22691_v60, %v26644_v53 }
0x206a   :  { %22031 = vmatpush3.msk.msra.mxu0 %vm4149_vm7, %v26664_v25  ;;  %22034 = vmatprep.mubr.msk.f32.mxu0 %vm7717_vm11, %v13874_v46  ;;  %v13870_v49 = vmul.f32 %v22693_v20, %v26620_v11  ;;  %v22695_v2 = vpop.eup %22694 }
0x206b   :  { %22011 = vmatprep.subr.mxu1 %v26670_v30  ;;  %22032 = vmatprep.subr.mxu0 %v26670_v30  ;;  %v22697_v63 = vpop.eup %22696  ;;  %v13872_v11 = vmul.f32 %v22695_v2, %v26615_v0 }
0x206c   :  { %22012 = vmatpush3.msra.mxu1 %v26670_v30  ;;  %22033 = vmatpush3.msra.mxu0 %v26670_v30  ;;  %v22699_v53 = vpop.eup %22698  ;;  %v13884_v9 = vmul.f32 %v22697_v63, %v26640_v5 }
0x206d   :  { %22014 = vmatmul.mubr.msk.f32.vlgmr.msra.gmra.mxu1 %vm7717_vm11, %v13864_v58  ;;  %22023 = vmatprep.subr.msk.mxu1 %vm4149_vm7, %v26664_v25  ;;  %v22701_v42 = vpop.eup %22700  ;;  %v13878_v55 = vmul.f32 %v22699_v53, %v26636_v18  ;;  %v13009_v18 = vld [vmem:[%s27932_s0 + $0x620] sm:$0xff] }
0x206e   :  { %22035 = vmatmul.mubr.msk.f32.vlgmr.msra.gmra.mxu0 %vm7717_vm11, %v13876_v29  ;;  %22044 = vmatprep.subr.msk.mxu0 %vm4149_vm7, %v26664_v25  ;;  %v22703_v45 = vpop.eup %22702  ;;  %v13880_v0 = vmul.f32 %v22701_v42, %v26632_v51 }
0x206f   :  { %22024 = vmatpush3.msk.msra.mxu1 %vm4149_vm7, %v26664_v25  ;;  %22027 = vmatprep.mubr.msk.f32.mxu1 %vm7717_vm11, %v13870_v49  ;;  %v22705_v5 = vpop.eup %22704  ;;  %v13886_v36 = vmul.f32 %v22703_v45, %v26652_v39  ;;  %v13008_v39 = vld [vmem:[%s27932_s0 + $0x618] sm:$0xff] }
0x2070   :  { %22045 = vmatpush3.msk.msra.mxu0 %vm4149_vm7, %v26664_v25  ;;  %22048 = vmatprep.mubr.msk.f32.mxu0 %vm7717_vm11, %v13882_v24  ;;  %v13888_v51 = vmul.f32 %v22705_v5, %v26648_v12  ;;  %v13007_v12 = vld [vmem:[%s27932_s0 + $0x610] sm:$0xff] }
0x2071   :  { %22025 = vmatprep.subr.mxu1 %v26670_v30  ;;  %22046 = vmatprep.subr.mxu0 %v26670_v30 }
0x2072   :  { %22026 = vmatpush3.msra.mxu1 %v26670_v30  ;;  %22047 = vmatpush3.msra.mxu0 %v26670_v30 }
0x2073   :  { %22028 = vmatmul.mubr.msk.f32.vlgmr.msra.gmra.mxu1 %vm7717_vm11, %v13872_v11  ;;  %22037 = vmatprep.subr.msk.mxu1 %vm4149_vm7, %v26664_v25 }
0x2074   :  { %22049 = vmatmul.mubr.msk.f32.vlgmr.msra.gmra.mxu0 %vm7717_vm11, %v13884_v9  ;;  %22038 = vmatpush3.msk.msra.mxu1 %vm4149_vm7, %v26664_v25 }
0x2075   :  { %22041 = vmatprep.mubr.msk.f32.mxu1 %vm7717_vm11, %v13878_v55  ;;  %22039 = vmatprep.subr.mxu1 %v26670_v30 }
0x2076   :  { %22040 = vmatpush3.msra.mxu1 %v26670_v30  ;;  %22058 = vmatprep.subr.mxu0 %v13009_v18 }
0x2077   :  { %22042 = vmatmul.mubr.msk.f32.vlgmr.msra.gmra.mxu1 %vm7717_vm11, %v13880_v0  ;;  %22051 = vmatprep.subr.msk.mxu1 %vm4149_vm7, %v26664_v25 }
0x2078   :  { %22052 = vmatpush3.msk.msra.mxu1 %vm4149_vm7, %v26664_v25  ;;  %22055 = vmatprep.mubr.msk.f32.mxu1 %vm7717_vm11, %v13886_v36 }
0x2079   :  { %22053 = vmatprep.subr.mxu1 %v26670_v30  ;;  %22059 = vmatpush3.msra.mxu0 %v13009_v18 }
0x207a   :  { %22054 = vmatpush3.msra.mxu1 %v26670_v30  ;;  %22060 = vmatprep.subr.mxu0 %v13008_v39 }
0x207b   :  { %22056 = vmatmul.mubr.msk.f32.vlgmr.msra.gmra.mxu1 %vm7717_vm11, %v13888_v51  ;;  %22061 = vmatpush3.msra.mxu0 %v13008_v39 }
0x207c   :  { %22062 = vmatprep.subr.mxu0 %v13007_v12 }
0x207d   :  { %22063 = vmatpush3.msra.mxu0 %v13007_v12 }
0x207e   :  { %22064 = vmatprep.subr.mxu0 %v13006_v61 }
0x207f   :  { %22065 = vmatpush3.msra.mxu0 %v13006_v61 }
0x2127   :  { %v22008_v13 = vpop.f32.mrf.mxu1 }
0x2128   :  { %v22022_v15 = vpop.f32.mrf.mxu0  ;;  %v14545_v40 = vmul.f32 %v26373_v41, %v22008_v13 }
0x2129   :  { %v13968_v35 = vpop.f32.mrf.mxu1  ;;  %v14549_v44 = vmul.f32 %v26391_v26, %v22022_v15 }
0x212a   :  { %v14130_v8 = vpop.f32.mrf.mxu0  ;;  %v14544_v22 = vmul.f32 %v26373_v41, %v13968_v35  ;;  %v14575_v38 = vsel %vm8581_vm12, %v14545_v40, 0.0  ;;  %v19625_v40 = vld [vmem:[%s27932_s0 + $0x628] ss:$0 sm:$0xff] }
0x212b   :  { %v14548_v59 = vmul.f32 %v26391_v26, %v14130_v8  ;;  %v14578_v52 = vsel %vm8581_vm12, %v14549_v44, 0.0 }
0x212c   :  { %v14560_v25 = vsel %vm6868_vm9, %v14544_v22, 0.0 }
0x212d   :  { %v22015_v23 = vpop.f32.mrf.mxu1  ;;  %v14563_v21 = vsel %vm6868_vm9, %v14548_v59, 0.0 }
0x212e   :  { %v14547_v56 = vmul.f32 %v26379_v47, %v22015_v23  ;;  %v22036_v28 = vpop.f32.mrf.mxu0 }
0x212f   :  { %v14049_v16 = vpop.f32.mrf.mxu1  ;;  %v14553_v1 = vmul.f32 %v26423_v27, %v22036_v28 }
0x2130   :  { %v14576_v4 = vsel %vm8581_vm12, %v14547_v56, 0.0  ;;  %v14546_v34 = vmul.f32 %v26379_v47, %v14049_v16  ;;  %v14292_v6 = vpop.f32.mrf.mxu0 }
0x2131   :  { %v14577_v37 = vadd.f32 %v14576_v4, %v14575_v38  ;;  %v14552_v57 = vmul.f32 %v26423_v27, %v14292_v6  ;;  %v14582_v29 = vsel %vm8581_vm12, %v14553_v1, 0.0  ;;  %v14816_v1 = vld [vmem:[%s27932_s0 + $0x6a0] sm:$0xff] }
0x2132   :  { %v14561_v41 = vsel %vm6868_vm9, %v14546_v34, 0.0  ;;  %22080 = vmatprep.subr.mxu0 %v14816_v1 }
0x2133   :  { %v14562_v10 = vadd.f32 %v14561_v41, %v14560_v25  ;;  %v22029_v19 = vpop.f32.mrf.mxu1  ;;  %v14579_v30 = vadd.f32 %v14578_v52, %v14577_v37  ;;  %v14567_v27 = vsel %vm6868_vm9, %v14552_v57, 0.0 }
0x2134   :  { %v14551_v26 = vmul.f32 %v26401_v33, %v22029_v19  ;;  %v22050_v48 = vpop.f32.mrf.mxu0  ;;  %v14719_v19 = vld [vmem:[%s27932_s0 + $0x650] sm:$0xff] }
0x2135   :  { %v14211_v31 = vpop.f32.mrf.mxu1  ;;  %v14564_v47 = vadd.f32 %v14563_v21, %v14562_v10  ;;  %v14557_v2 = vmul.f32 %v26458_v7, %v22050_v48  ;;  %v14717_v21 = vld [vmem:[%s27932_s0 + $0x640] sm:$0xff]  ;;  %v14814_v48 = vld [vmem:[%s27932_s0 + $0x690] sm:$0xff] }
0x2136   :  { %v14580_v54 = vsel %vm8581_vm12, %v14551_v26, 0.0  ;;  %v14550_v46 = vmul.f32 %v26401_v33, %v14211_v31  ;;  %v14454_v20 = vpop.f32.mrf.mxu0  ;;  %v14815_v26 = vld [vmem:[%s27932_s0 + $0x698] sm:$0xff]  ;;  %v14813_v31 = vld [vmem:[%s27932_s0 + $0x688] sm:$0xff] }
0x2137   :  { %v14581_v60 = vadd.f32 %v14580_v54, %v14579_v30  ;;  %v22043_v58 = vpop.f32.mrf.mxu1  ;;  %v14556_v42 = vmul.f32 %v26458_v7, %v14454_v20  ;;  %v14586_v51 = vsel %vm8581_vm12, %v14557_v2, 0.0  ;;  %v14718_v30 = vld [vmem:[%s27932_s0 + $0x648] sm:$0xff] }
0x2138   :  { %v14565_v24 = vsel %vm6868_vm9, %v14550_v46, 0.0  ;;  %v14555_v49 = vmul.f32 %v26431_v50, %v22043_v58 }
0x2139   :  { %v14566_v63 = vadd.f32 %v14565_v24, %v14564_v47  ;;  %v14583_v53 = vadd.f32 %v14582_v29, %v14581_v60  ;;  %v14373_v11 = vpop.f32.mrf.mxu1  ;;  %v14571_v12 = vsel %vm6868_vm9, %v14556_v42, 0.0  ;;  %v19628_v29 = vld [vmem:[%s27932_s0 + $0x630] ss:$0 sm:$0xff] }
0x213a   :  { %v14584_v33 = vsel %vm8581_vm12, %v14555_v49, 0.0  ;;  %v14554_v9 = vmul.f32 %v26431_v50, %v14373_v11 }
0x213b   :  { %v14585_v45 = vadd.f32 %v14584_v33, %v14583_v53  ;;  %v14568_v55 = vadd.f32 %v14567_v27, %v14566_v63  ;;  %v22057_v0 = vpop.f32.mrf.mxu1  ;;  %v19629_v53 = vld [vmem:[%s27932_s0 + $0x638] ss:$0 sm:$0xff]  ;;  %v14812_v33 = vld [vmem:[%s27932_s0 + $0x680] sm:$0xff] }
0x213c   :  { %v14569_v5 = vsel %vm6868_vm9, %v14554_v9, 0.0  ;;  %v14559_v36 = vmul.f32 %v26467_v43, %v22057_v0  ;;  %v14811_v9 = vld [vmem:[%s27932_s0 + $0x678] sm:$0xff]  ;;  %v19630_v0 = vld [vmem:[%s27932_s0 + $0x660] ss:$0 sm:$0xff] }
0x213d   :  { %v14570_v18 = vadd.f32 %v14569_v5, %v14568_v55  ;;  %v14535_v39 = vpop.f32.mrf.mxu1  ;;  %v14587_v61 = vadd.f32 %v14586_v51, %v14585_v45  ;;  %v14810_v45 = vld [vmem:[%s27932_s0 + $0x670] sm:$0xff]  ;;  %v14809_v55 = vld [vmem:[%s27932_s0 + $0x668] sm:$0xff] }
0x213e   :  { %v14558_v7 = vmul.f32 %v26467_v43, %v14535_v39  ;;  %v14588_v13 = vsel %vm8581_vm12, %v14559_v36, 0.0 }
0x213f   :  { %v14572_v15 = vadd.f32 %v14571_v12, %v14570_v18  ;;  %v14589_v8 = vadd.f32 %v14588_v13, %v14587_v61  ;;  %v19633_v61 = vld [vmem:[%s27932_s0 + $0x6a8] ss:$0 sm:$0xff] }
0x2140   :  { %v14573_v50 = vsel %vm6868_vm9, %v14558_v7, 0.0 }
0x2141   :  { %v14574_v35 = vadd.f32 %v14573_v50, %v14572_v15 }
0x2143   :  { %22066 = vmatprep.mubr.msk.f32.mxu0 %vm6868_vm9, %v14574_v35 }
0x2144   :  { %22067 = vmatmul.mubr.msk.f32.vlgmr.msra.gmra.mxu0 %vm6868_vm9, %v14589_v8 }
0x2145   :  { %22081 = vmatpush3.msra.mxu0 %v14816_v1  ;;  %v19636_v1 = vld [vmem:[%s27932_s0 + $0x6b0] ss:$0 sm:$0xff] }
0x2146   :  { %22082 = vmatprep.subr.mxu0 %v14815_v26 }
0x2147   :  { %22083 = vmatpush3.msra.mxu0 %v14815_v26 }
0x2148   :  { %22084 = vmatprep.subr.mxu0 %v14814_v48 }
0x2149   :  { %22085 = vmatpush3.msra.mxu0 %v14814_v48 }
0x214a   :  { %22086 = vmatprep.subr.mxu0 %v14813_v31 }
0x214b   :  { %22087 = vmatpush3.msra.mxu0 %v14813_v31 }
0x214c   :  { %22088 = vmatprep.subr.mxu0 %v14812_v33 }
0x214d   :  { %22089 = vmatpush3.msra.mxu0 %v14812_v33 }
0x214e   :  { %22090 = vmatprep.subr.mxu0 %v14811_v9 }
0x214f   :  { %22091 = vmatpush3.msra.mxu0 %v14811_v9 }
0x2150   :  { %22092 = vmatprep.subr.mxu0 %v14810_v45 }
0x2151   :  { %22093 = vmatpush3.msra.mxu0 %v14810_v45  ;;  %v26925_v45 = vld [vmem:[%s27937_s5 + $0x2] ss:$0 sm:$0xff] }
0x2152   :  { %22094 = vmatprep.subr.mxu0 %v14809_v55 }
0x2153   :  { %22095 = vmatpush3.msra.mxu0 %v14809_v55 }
0x2204   :  { %v22068_v23 = vpop.f32.mrf.mxu0 }
0x2205   :  { %v14672_v44 = vadd.f32 %v22068_v23, %v19625_v40 }
0x2206   :  { %v14666_v22 = vpop.f32.mrf.mxu0 }
0x2207   :  { %v14676_v43 = vadd.f32 %v14672_v44, %v26334_v17  ;;  %v14667_v56 = vadd.f32 %v19625_v40, %v14666_v22 }
0x2209   :  { %v14675_v28 = vadd.f32 %v14667_v56, %v26332_v14  ;;  %v14682_v16 = vsel %vm8581_vm12, %v14676_v43, 0.0  ;;  %v14720_v14 = vld [vmem:[%s27932_s0 + $0x658] sm:$0xff] }
0x220a   :  { %14683 = vadd.xlane.f32.xlu0 %v14682_v16  ;;  %22069 = vmatprep.subr.mxu1 %v14720_v14 }
0x220b   :  { %v14679_v38 = vsel %vm6868_vm9, %v14675_v28, 0.0  ;;  %22070 = vmatpush3.msra.mxu1 %v14720_v14 }
0x220c   :  { %14680 = vadd.xlane.f32.xlu1 %v14679_v38  ;;  %22071 = vmatprep.subr.mxu1 %v14719_v19 }
0x220d   :  { %22072 = vmatpush3.msra.mxu1 %v14719_v19 }
0x220e   :  { %22073 = vmatprep.subr.mxu1 %v14718_v30 }
0x220f   :  { %22074 = vmatpush3.msra.mxu1 %v14718_v30 }
0x2210   :  { %22075 = vmatprep.subr.mxu1 %v14717_v21 }
0x2211   :  { %22076 = vmatpush3.msra.mxu1 %v14717_v21 }
0x2293   :  { %v14684_v59 = vpop.xlane.xlu0 %14683 }
0x2294   :  { %v14686_v4 = vmul.f32 0.03125, %v14684_v59 }
0x2295   :  { %v14681_v34 = vpop.xlane.xlu1 %14680 }
0x2296   :  { %v14688_v6 = vsub.f32 %v14676_v43, %v14686_v4  ;;  %v14685_v37 = vmul.f32 0.03125, %v14681_v34 }
0x2298   :  { %v14687_v52 = vsub.f32 %v14675_v28, %v14685_v37  ;;  %v14690_v25 = vmul.f32 %v14688_v6, %v14688_v6  ;;  %v14947_v37 = vld [vmem:[%s27932_s0 + $0x6d0] sm:$0xff] }
0x229a   :  { %v14694_v41 = vsel %vm8581_vm12, %v14690_v25, 0.0  ;;  %v14689_v10 = vmul.f32 %v14687_v52, %v14687_v52  ;;  %v14945_v25 = vld [vmem:[%s27932_s0 + $0x6c0] sm:$0xff] }
0x229b   :  { %14695 = vadd.xlane.f32.xlu0 %v14694_v41 }
0x229c   :  { %v14691_v17 = vsel %vm6868_vm9, %v14689_v10, 0.0 }
0x229d   :  { %14692 = vadd.xlane.f32.xlu1 %v14691_v17 }
0x2324   :  { %v14696_v47 = vpop.xlane.xlu0 %14695 }
0x2325   :  { %v14698_v57 = vmul.f32 0.03125, %v14696_v47 }
0x2326   :  { %v14693_v54 = vpop.xlane.xlu1 %14692 }
0x2327   :  { %v14700_v46 = vadd.f32 1e-05, %v14698_v57  ;;  %v14697_v60 = vmul.f32 0.03125, %v14693_v54  ;;  %v19637_v57 = vld [vmem:[%s27932_s0 + $0x6b8] ss:$0 sm:$0xff] }
0x2329   :  { %22706 = vrsqrt.f32 %v14700_v46  ;;  %v14699_v20 = vadd.f32 1e-05, %v14697_v60 }
0x232b   :  { %22708 = vrsqrt.f32 %v14699_v20  ;;  %v19638_v20 = vld [vmem:[%s27932_s0 + $0x6e0] ss:$0 sm:$0xff] }
0x2336   :  { %v22707_v58 = vpop.eup %22706 }
0x2337   :  { %v14704_v24 = vmul.f32 %v22707_v58, %v14688_v6  ;;  %v14948_v6 = vld [vmem:[%s27932_s0 + $0x6d8] sm:$0xff] }
0x2338   :  { %v22709_v49 = vpop.eup %22708  ;;  %22099 = vmatprep.subr.mxu1 %v14948_v6 }
0x2339   :  { %v14703_v2 = vmul.f32 %v22709_v49, %v14687_v52  ;;  %v14710_v63 = vmul.f32 %v19628_v29, %v14704_v24  ;;  %v14946_v52 = vld [vmem:[%s27932_s0 + $0x6c8] sm:$0xff] }
0x233b   :  { %v14709_v11 = vmul.f32 %v19628_v29, %v14703_v2  ;;  %v14716_v42 = vadd.f32 %v19629_v53, %v14710_v63  ;;  %v26895_v2 = vld [vmem:[%s27937_s5] ss:$0 sm:$0xff] }
0x233d   :  { %v14715_v27 = vadd.f32 %v19629_v53, %v14709_v11  ;;  %v26902_v53 = vld [vmem:[%s27937_s5 + $0x1] ss:$0 sm:$0xff] }
0x233f   :  { %22077 = vmatprep.mubr.msk.f32.mxu1 %vm6868_vm9, %v14715_v27 }
0x2340   :  { %22078 = vmatmul.mubr.msk.f32.vlgmr.msra.gmra.mxu1 %vm6868_vm9, %v14716_v42 }
0x2341   :  { %22100 = vmatpush3.msra.mxu1 %v14948_v6 }
0x2342   :  { %22101 = vmatprep.subr.mxu1 %v14947_v37 }
0x2343   :  { %22102 = vmatpush3.msra.mxu1 %v14947_v37  ;;  %v27026_v37 = vld [vmem:[%s27933_s1 + $0x20] sm:$0xff] }
0x2344   :  { %22103 = vmatprep.subr.mxu1 %v14946_v52 }
0x2345   :  { %22104 = vmatpush3.msra.mxu1 %v14946_v52 }
0x2346   :  { %22105 = vmatprep.subr.mxu1 %v14945_v25 }
0x2347   :  { %22106 = vmatpush3.msra.mxu1 %v14945_v25 }
0x2400   :  { %v22079_v5 = vpop.f32.mrf.mxu1 }
0x2401   :  { %v14804_v36 = vadd.f32 %v22079_v5, %v19630_v0 }
0x2402   :  { %v14798_v51 = vpop.f32.mrf.mxu1 }
0x2403   :  { %v14799_v18 = vadd.f32 %v19630_v0, %v14798_v51  ;;  %v14808_v12 = vmax.f32 %v14804_v36, 0.0  ;;  %v26934_v0 = vld [vmem:[%s27937_s5 + $0x3] ss:$0 sm:$0xff] }
0x2405   :  { %v14807_v39 = vmax.f32 %v14799_v18, 0.0  ;;  %v26956_v18 = vld [vmem:[%s27937_s5 + $0x4] ss:$0 sm:$0xff] }
0x2407   :  { %22096 = vmatprep.mubr.msk.f32.mxu0 %vm8830_vm13, %v14807_v39 }
0x2408   :  { %22097 = vmatmul.mubr.msk.f32.vlgmr.msra.gmra.mxu0 %vm8830_vm13, %v14808_v12  ;;  %v26965_v12 = vld [vmem:[%s27937_s5 + $0x5] ss:$0 sm:$0xff] }
0x24c8   :  { %v22098_v7 = vpop.f32.mrf.mxu0 }
0x24c9   :  { %v14900_v13 = vadd.f32 %v22098_v7, %v19633_v61 }
0x24ca   :  { %v14894_v15 = vpop.f32.mrf.mxu0 }
0x24cb   :  { %v14904_v50 = vadd.f32 %v14900_v13, %v14716_v42  ;;  %v14895_v35 = vadd.f32 %v19633_v61, %v14894_v15  ;;  %v26986_v15 = vld [vmem:[%s27937_s5 + $0x6] ss:$0 sm:$0xff] }
0x24cd   :  { %v14903_v8 = vadd.f32 %v14895_v35, %v14715_v27  ;;  %v14910_v40 = vsel %vm8581_vm12, %v14904_v50, 0.0  ;;  %v26995_v35 = vld [vmem:[%s27937_s5 + $0x7] ss:$0 sm:$0xff] }
0x24ce   :  { %14911 = vadd.xlane.f32.xlu0 %v14910_v40 }
0x24cf   :  { %v14907_v23 = vsel %vm6868_vm9, %v14903_v8, 0.0 }
0x24d0   :  { %14908 = vadd.xlane.f32.xlu1 %v14907_v23 }
0x2557   :  { %v14912_v44 = vpop.xlane.xlu0 %14911 }
0x2558   :  { %v14914_v22 = vmul.f32 0.03125, %v14912_v44 }
0x2559   :  { %v14909_v43 = vpop.xlane.xlu1 %14908 }
0x255a   :  { %v14916_v56 = vsub.f32 %v14904_v50, %v14914_v22  ;;  %v14913_v28 = vmul.f32 0.03125, %v14909_v43 }
0x255c   :  { %v14915_v16 = vsub.f32 %v14903_v8, %v14913_v28  ;;  %v14918_v38 = vmul.f32 %v14916_v56, %v14916_v56 }
0x255e   :  { %v14922_v59 = vsel %vm8581_vm12, %v14918_v38, 0.0  ;;  %v14917_v4 = vmul.f32 %v14915_v16, %v14915_v16  ;;  %v27015_v38 = vld [vmem:[%s27933_s1 + $0x28] sm:$0x3] }
0x255f   :  { %14923 = vadd.xlane.f32.xlu0 %v14922_v59 }
0x2560   :  { %v14919_v34 = vsel %vm6868_vm9, %v14917_v4, 0.0 }
0x2561   :  { %14920 = vadd.xlane.f32.xlu1 %v14919_v34 }
0x25e8   :  { %v14924_v41 = vpop.xlane.xlu0 %14923 }
0x25e9   :  { %v14926_v10 = vmul.f32 0.03125, %v14924_v41 }
0x25ea   :  { %v14921_v17 = vpop.xlane.xlu1 %14920 }
0x25eb   :  { %v14928_v14 = vadd.f32 1e-05, %v14926_v10  ;;  %v14925_v19 = vmul.f32 0.03125, %v14921_v17 }
0x25ed   :  { %22710 = vrsqrt.f32 %v14928_v14  ;;  %v14927_v30 = vadd.f32 1e-05, %v14925_v19 }
0x25ef   :  { %22712 = vrsqrt.f32 %v14927_v30 }
0x25fa   :  { %v22711_v21 = vpop.eup %22710 }
0x25fb   :  { %v14932_v26 = vmul.f32 %v22711_v21, %v14916_v56 }
0x25fc   :  { %v22713_v48 = vpop.eup %22712 }
0x25fd   :  { %v14931_v31 = vmul.f32 %v22713_v48, %v14915_v16  ;;  %v14938_v47 = vmul.f32 %v19636_v1, %v14932_v26 }
0x25ff   :  { %v14937_v54 = vmul.f32 %v19636_v1, %v14931_v31  ;;  %v26875_v60 = vadd.f32 %v19637_v57, %v14938_v47 }
0x2601   :  { %v26873_v46 = vadd.f32 %v19637_v57, %v14937_v54 }
0x2603   :  { %22107 = vmatprep.mubr.msk.f32.mxu1 %vm6868_vm9, %v26873_v46 }
0x2604   :  { %22108 = vmatmul.mubr.msk.f32.vlgmr.msra.gmra.mxu1 %vm6868_vm9, %v26875_v60 }
0x26c4   :  { %v22109_v58 = vpop.f32.mrf.mxu1 }
0x26c5   :  { %v26884_v29 = vadd.f32 %v22109_v58, %v19638_v20 }
0x26c6   :  { %v15026_v24 = vpop.f32.mrf.mxu1 }
0x26c7   :  { %v26886_v49 = vadd.f32 %v19638_v20, %v15026_v24  ;;  %15060 = vrot.lane.b32.xlu1 %v26884_v29, %s22934_s21  ;;  %v15041_v33 = vmul.f32 %v26895_v2, %v26884_v29  ;;  %v15043_v9 = vmul.f32 %v26902_v53, %v26884_v29  ;;  %v15045_v36 = vmul.f32 %v26925_v45, %v26884_v29 }
0x26c8   :  { %v15047_v51 = vmul.f32 %v26934_v0, %v26884_v29  ;;  %v15049_v7 = vmul.f32 %v26956_v18, %v26884_v29  ;;  %v15051_v13 = vmul.f32 %v26965_v12, %v26884_v29  ;;  %v15053_v40 = vmul.f32 %v26986_v15, %v26884_v29 }
0x26c9   :  { %15058 = vrot.lane.b32.xlu0 %v26886_v49, %s22934_s21  ;;  %v15040_v63 = vmul.f32 %v26895_v2, %v26886_v49  ;;  %v15042_v11 = vmul.f32 %v26902_v53, %v26886_v49  ;;  %v15044_v55 = vmul.f32 %v26925_v45, %v26886_v49  ;;  %v15046_v5 = vmul.f32 %v26934_v0, %v26886_v49 }
0x26ca   :  { %v15048_v39 = vmul.f32 %v26956_v18, %v26886_v49  ;;  %v15050_v61 = vmul.f32 %v26965_v12, %v26886_v49  ;;  %v15052_v50 = vmul.f32 %v26986_v15, %v26886_v49  ;;  %v15054_v8 = vmul.f32 %v26995_v35, %v26886_v49 }
0x26cb   :  { %22114 = vmatprep.mubr.msk.f32.mxu1 %vm6868_vm9, %v15040_v63  ;;  %22121 = vmatprep.mubr.msk.f32.mxu0 %vm6868_vm9, %v15042_v11  ;;  %v15055_v23 = vmul.f32 %v26995_v35, %v26884_v29 }
0x2739   :  { %v15061_v27 = vpop.permute.xlu1 %15060 }
0x273a   :  { %22110 = vmatprep.subr.msk.mxu1 %vm6868_vm9, %v15061_v27  ;;  %22117 = vmatprep.subr.msk.mxu0 %vm6868_vm9, %v15061_v27 }
0x273b   :  { %22111 = vmatpush3.xpose.msk.msra.mxu1 %vm6868_vm9, %v15061_v27  ;;  %22118 = vmatpush3.xpose.msk.msra.mxu0 %vm6868_vm9, %v15061_v27  ;;  %v15059_v42 = vpop.permute.xlu0 %15058 }
0x273c   :  { %22112 = vmatprep.subr.msk.mxu1 %vm6868_vm9, %v15059_v42  ;;  %22119 = vmatprep.subr.msk.mxu0 %vm6868_vm9, %v15059_v42 }
0x273f   :  { %22113 = vmatpush3.xpose.msk.msra.mxu1 %vm6868_vm9, %v15059_v42  ;;  %22120 = vmatpush3.xpose.msk.msra.mxu0 %vm6868_vm9, %v15059_v42 }
0x2740   :  { %22124 = vmatprep.subr.msk.mxu1 %vm6868_vm9, %v15061_v27  ;;  %22131 = vmatprep.subr.msk.mxu0 %vm6868_vm9, %v15061_v27 }
0x2742   :  { %22115 = vmatmul.mubr.msk.f32.vlgmr.msra.gmra.mxu1 %vm6868_vm9, %v15041_v33  ;;  %22122 = vmatmul.mubr.msk.f32.vlgmr.msra.gmra.mxu0 %vm6868_vm9, %v15043_v9 }
0x2743   :  { %22125 = vmatpush3.xpose.msk.msra.mxu1 %vm6868_vm9, %v15061_v27  ;;  %22128 = vmatprep.mubr.msk.f32.mxu1 %vm6868_vm9, %v15044_v55 }
0x2744   :  { %22132 = vmatpush3.xpose.msk.msra.mxu0 %vm6868_vm9, %v15061_v27  ;;  %22135 = vmatprep.mubr.msk.f32.mxu0 %vm6868_vm9, %v15046_v5 }
0x2745   :  { %22126 = vmatprep.subr.msk.mxu1 %vm6868_vm9, %v15059_v42  ;;  %22133 = vmatprep.subr.msk.mxu0 %vm6868_vm9, %v15059_v42 }
0x2747   :  { %22127 = vmatpush3.xpose.msk.msra.mxu1 %vm6868_vm9, %v15059_v42 }
0x2748   :  { %22134 = vmatpush3.xpose.msk.msra.mxu0 %vm6868_vm9, %v15059_v42  ;;  %22138 = vmatprep.subr.msk.mxu1 %vm6868_vm9, %v15061_v27 }
0x2749   :  { %22145 = vmatprep.subr.msk.mxu0 %vm6868_vm9, %v15061_v27 }
0x274a   :  { %22129 = vmatmul.mubr.msk.f32.vlgmr.msra.gmra.mxu1 %vm6868_vm9, %v15045_v36 }
0x274b   :  { %22136 = vmatmul.mubr.msk.f32.vlgmr.msra.gmra.mxu0 %vm6868_vm9, %v15047_v51  ;;  %22139 = vmatpush3.xpose.msk.msra.mxu1 %vm6868_vm9, %v15061_v27 }
0x274c   :  { %22142 = vmatprep.mubr.msk.f32.mxu1 %vm6868_vm9, %v15048_v39  ;;  %22146 = vmatpush3.xpose.msk.msra.mxu0 %vm6868_vm9, %v15061_v27 }
0x274d   :  { %22149 = vmatprep.mubr.msk.f32.mxu0 %vm6868_vm9, %v15050_v61  ;;  %22140 = vmatprep.subr.msk.mxu1 %vm6868_vm9, %v15059_v42 }
0x274e   :  { %22147 = vmatprep.subr.msk.mxu0 %vm6868_vm9, %v15059_v42 }
0x274f   :  { %22141 = vmatpush3.xpose.msk.msra.mxu1 %vm6868_vm9, %v15059_v42 }
0x2750   :  { %22148 = vmatpush3.xpose.msk.msra.mxu0 %vm6868_vm9, %v15059_v42  ;;  %22152 = vmatprep.subr.msk.mxu1 %vm6868_vm9, %v15061_v27 }
0x2751   :  { %22159 = vmatprep.subr.msk.mxu0 %vm6868_vm9, %v15061_v27 }
0x2752   :  { %22143 = vmatmul.mubr.msk.f32.vlgmr.msra.gmra.mxu1 %vm6868_vm9, %v15049_v7 }
0x2753   :  { %22150 = vmatmul.mubr.msk.f32.vlgmr.msra.gmra.mxu0 %vm6868_vm9, %v15051_v13  ;;  %22153 = vmatpush3.xpose.msk.msra.mxu1 %vm6868_vm9, %v15061_v27 }
0x2754   :  { %22156 = vmatprep.mubr.msk.f32.mxu1 %vm6868_vm9, %v15052_v50  ;;  %22160 = vmatpush3.xpose.msk.msra.mxu0 %vm6868_vm9, %v15061_v27 }
0x2755   :  { %22163 = vmatprep.mubr.msk.f32.mxu0 %vm6868_vm9, %v15054_v8  ;;  %22154 = vmatprep.subr.msk.mxu1 %vm6868_vm9, %v15059_v42 }
0x2756   :  { %22161 = vmatprep.subr.msk.mxu0 %vm6868_vm9, %v15059_v42 }
0x2757   :  { %22155 = vmatpush3.xpose.msk.msra.mxu1 %vm6868_vm9, %v15059_v42 }
0x2758   :  { %22162 = vmatpush3.xpose.msk.msra.mxu0 %vm6868_vm9, %v15059_v42 }
0x275a   :  { %22157 = vmatmul.mubr.msk.f32.vlgmr.msra.gmra.mxu1 %vm6868_vm9, %v15053_v40 }
0x275b   :  { %22164 = vmatmul.mubr.msk.f32.vlgmr.msra.gmra.mxu0 %vm6868_vm9, %v15055_v23 }
0x2802   :  { %v22116_v44 = vpop.f32.mrf.mxu1  ;;  %v22123_v22 = vpop.f32.mrf.mxu0 }
0x2803   :  { %v15715_v43 = vmul.f32 0.5, %v22116_v44  ;;  %v15717_v56 = vmul.f32 0.5, %v22123_v22 }
0x2804   :  { %v15138_v28 = vpop.f32.mrf.mxu1  ;;  %v15219_v16 = vpop.f32.mrf.mxu0 }
0x2805   :  { %v27018_v59 = vadd.f32 %v27015_v38, %v15715_v43  ;;  %v15714_v4 = vmul.f32 0.5, %v15138_v28  ;;  %v15716_v34 = vmul.f32 0.5, %v15219_v16  ;;  %v27021_v6 = vadd.f32 %v27015_v38, %v15717_v56 }
0x2807   :  { %v27029_v52 = vadd.f32 %v27026_v37, %v15714_v4  ;;  %v15749_v25 = vsel %vm7721_vm10, %v27018_v59, -inf  ;;  %v27034_v41 = vadd.f32 %v27026_v37, %v15716_v34  ;;  %v15755_v30 = vsel %vm7721_vm10, %v27021_v6, -inf }
0x2808   :  { %15750 = vmax.xlane.f32.xlu0 %v15749_v25 }
0x2809   :  { %v15746_v10 = vsel %vm7717_vm11, %v27029_v52, -inf  ;;  %v15752_v47 = vsel %vm7717_vm11, %v27034_v41, -inf }
0x280a   :  { %15747 = vmax.xlane.f32.xlu1 %v15746_v10  ;;  %v22130_v17 = vpop.f32.mrf.mxu1 }
0x280b   :  { %v22137_v14 = vpop.f32.mrf.mxu0  ;;  %v15719_v19 = vmul.f32 0.5, %v22130_v17 }
0x280c   :  { %v15721_v21 = vmul.f32 0.5, %v22137_v14  ;;  %15756 = vmax.xlane.f32.xlu0 %v15755_v30  ;;  %v15300_v1 = vpop.f32.mrf.mxu1 }
0x280d   :  { %v27041_v26 = vadd.f32 %v27015_v38, %v15719_v19  ;;  %v15381_v48 = vpop.f32.mrf.mxu0  ;;  %v15718_v31 = vmul.f32 0.5, %v15300_v1 }
0x280e   :  { %v15720_v57 = vmul.f32 0.5, %v15381_v48  ;;  %15753 = vmax.xlane.f32.xlu1 %v15752_v47  ;;  %v27046_v54 = vadd.f32 %v27015_v38, %v15721_v21 }
0x280f   :  { %v27049_v20 = vadd.f32 %v27026_v37, %v15718_v31  ;;  %v15761_v58 = vsel %vm7721_vm10, %v27041_v26, -inf }
0x2810   :  { %15762 = vmax.xlane.f32.xlu0 %v15761_v58  ;;  %v27054_v24 = vadd.f32 %v27026_v37, %v15720_v57  ;;  %v15767_v33 = vsel %vm7721_vm10, %v27046_v54, -inf }
0x2811   :  { %v15758_v63 = vsel %vm7717_vm11, %v27049_v20, -inf }
0x2812   :  { %15759 = vmax.xlane.f32.xlu1 %v15758_v63  ;;  %v22144_v11 = vpop.f32.mrf.mxu1  ;;  %v15764_v39 = vsel %vm7717_vm11, %v27054_v24, -inf }
0x2813   :  { %v22151_v27 = vpop.f32.mrf.mxu0  ;;  %v15723_v42 = vmul.f32 0.5, %v22144_v11 }
0x2814   :  { %v15725_v9 = vmul.f32 0.5, %v22151_v27  ;;  %15768 = vmax.xlane.f32.xlu0 %v15767_v33  ;;  %v15462_v55 = vpop.f32.mrf.mxu1 }
0x2815   :  { %v27061_v5 = vadd.f32 %v27015_v38, %v15723_v42  ;;  %v15543_v36 = vpop.f32.mrf.mxu0  ;;  %v15722_v51 = vmul.f32 0.5, %v15462_v55 }
0x2816   :  { %v15724_v61 = vmul.f32 0.5, %v15543_v36  ;;  %15765 = vmax.xlane.f32.xlu1 %v15764_v39  ;;  %v27066_v7 = vadd.f32 %v27015_v38, %v15725_v9 }
0x2817   :  { %v27069_v13 = vadd.f32 %v27026_v37, %v15722_v51  ;;  %v15773_v50 = vsel %vm7721_vm10, %v27061_v5, -inf }
0x2818   :  { %15774 = vmax.xlane.f32.xlu0 %v15773_v50  ;;  %v27074_v8 = vadd.f32 %v27026_v37, %v15724_v61  ;;  %v15779_v43 = vsel %vm7721_vm10, %v27066_v7, -inf }
0x2819   :  { %v15770_v40 = vsel %vm7717_vm11, %v27069_v13, -inf }
0x281a   :  { %15771 = vmax.xlane.f32.xlu1 %v15770_v40  ;;  %v22158_v23 = vpop.f32.mrf.mxu1  ;;  %v15776_v25 = vsel %vm7717_vm11, %v27074_v8, -inf }
0x281b   :  { %v22165_v44 = vpop.f32.mrf.mxu0  ;;  %v15727_v22 = vmul.f32 0.5, %v22158_v23 }
0x281c   :  { %v15729_v56 = vmul.f32 0.5, %v22165_v44  ;;  %15780 = vmax.xlane.f32.xlu0 %v15779_v43  ;;  %v15624_v28 = vpop.f32.mrf.mxu1 }
0x281d   :  { %v27081_v16 = vadd.f32 %v27015_v38, %v15727_v22  ;;  %v15705_v4 = vpop.f32.mrf.mxu0  ;;  %v15726_v34 = vmul.f32 0.5, %v15624_v28 }
0x281e   :  { %v15728_v10 = vmul.f32 0.5, %v15705_v4  ;;  %15777 = vmax.xlane.f32.xlu1 %v15776_v25  ;;  %v27086_v17 = vadd.f32 %v27015_v38, %v15729_v56 }
0x281f   :  { %v27089_v14 = vadd.f32 %v27026_v37, %v15726_v34  ;;  %v15785_v19 = vsel %vm7721_vm10, %v27081_v16, -inf }
0x2820   :  { %15786 = vmax.xlane.f32.xlu0 %v15785_v19  ;;  %v27094_v30 = vadd.f32 %v27026_v37, %v15728_v10  ;;  %v15791_v1 = vsel %vm7721_vm10, %v27086_v17, -inf }
0x2821   :  { %v15782_v21 = vsel %vm7717_vm11, %v27089_v14, -inf }
0x2822   :  { %15783 = vmax.xlane.f32.xlu1 %v15782_v21  ;;  %v15788_v38 = vsel %vm7717_vm11, %v27094_v30, -inf }
0x2824   :  { %15792 = vmax.xlane.f32.xlu0 %v15791_v1 }
0x2826   :  { %15789 = vmax.xlane.f32.xlu1 %v15788_v38 }
0x2891   :  { %v15751_v48 = vpop.xlane.xlu0 %15750 }
0x2892   :  { %v15795_v31 = vsub.f32 %v27018_v59, %v15751_v48 }
0x2893   :  { %v15748_v47 = vpop.xlane.xlu1 %15747 }
0x2894   :  { %v15812_v57 = vmul.f32 1.442695, %v15795_v31  ;;  %v15794_v37 = vsub.f32 %v27029_v52, %v15748_v47 }
0x2895   :  { %v15757_v58 = vpop.xlane.xlu0 %15756 }
0x2896   :  { %22714 = vpow2.f32 %v15812_v57  ;;  %v15810_v63 = vmul.f32 1.442695, %v15794_v37  ;;  %v15797_v11 = vsub.f32 %v27021_v6, %v15757_v58 }
0x2897   :  { %v15754_v27 = vpop.xlane.xlu1 %15753 }
0x2898   :  { %22716 = vpow2.f32 %v15810_v63  ;;  %v15816_v42 = vmul.f32 1.442695, %v15797_v11  ;;  %v15796_v33 = vsub.f32 %v27034_v41, %v15754_v27 }
0x2899   :  { %v15763_v9 = vpop.xlane.xlu0 %15762 }
0x289a   :  { %22718 = vpow2.f32 %v15816_v42  ;;  %v15814_v55 = vmul.f32 1.442695, %v15796_v33  ;;  %v15799_v36 = vsub.f32 %v27041_v26, %v15763_v9 }
0x289b   :  { %v15760_v59 = vpop.xlane.xlu1 %15759 }
0x289c   :  { %22720 = vpow2.f32 %v15814_v55  ;;  %v15820_v51 = vmul.f32 1.442695, %v15799_v36  ;;  %v15798_v52 = vsub.f32 %v27049_v20, %v15760_v59 }
0x289d   :  { %v15769_v39 = vpop.xlane.xlu0 %15768 }
0x289e   :  { %22722 = vpow2.f32 %v15820_v51  ;;  %v15818_v61 = vmul.f32 1.442695, %v15798_v52  ;;  %v15801_v6 = vsub.f32 %v27046_v54, %v15769_v39 }
0x289f   :  { %v15766_v50 = vpop.xlane.xlu1 %15765 }
0x28a0   :  { %22724 = vpow2.f32 %v15818_v61  ;;  %v15824_v40 = vmul.f32 1.442695, %v15801_v6  ;;  %v15800_v41 = vsub.f32 %v27054_v24, %v15766_v50 }
0x28a1   :  { %v15775_v23 = vpop.xlane.xlu0 %15774 }
0x28a2   :  { %22726 = vpow2.f32 %v15824_v40  ;;  %v15822_v44 = vmul.f32 1.442695, %v15800_v41  ;;  %v15803_v26 = vsub.f32 %v27061_v5, %v15775_v23 }
0x28a3   :  { %v27111_v22 = vpop.eup %22714  ;;  %v15772_v43 = vpop.xlane.xlu1 %15771 }
0x28a4   :  { %22728 = vpow2.f32 %v15822_v44  ;;  %v15828_v20 = vmul.f32 1.442695, %v15803_v26  ;;  %v15802_v56 = vsub.f32 %v27069_v13, %v15772_v43  ;;  %v15845_v54 = vsel %vm7721_vm10, %v27111_v22, 0.0 }
0x28a5   :  { %v27116_v28 = vpop.eup %22716  ;;  %v15781_v4 = vpop.xlane.xlu0 %15780  ;;  %15846 = vadd.xlane.f32.xlu0 %v15845_v54 }
0x28a6   :  { %22730 = vpow2.f32 %v15828_v20  ;;  %v15826_v24 = vmul.f32 1.442695, %v15802_v56  ;;  %v15805_v34 = vsub.f32 %v27066_v7, %v15781_v4  ;;  %v15842_v5 = vsel %vm7717_vm11, %v27116_v28, 0.0 }
0x28a7   :  { %v27121_v25 = vpop.eup %22718  ;;  %v15778_v10 = vpop.xlane.xlu1 %15777  ;;  %15843 = vadd.xlane.f32.xlu1 %v15842_v5 }
0x28a8   :  { %22732 = vpow2.f32 %v15826_v24  ;;  %v15832_v13 = vmul.f32 1.442695, %v15805_v34  ;;  %v15804_v19 = vsub.f32 %v27074_v8, %v15778_v10  ;;  %v15851_v21 = vsel %vm7721_vm10, %v27121_v25, 0.0 }
0x28a9   :  { %v27126_v1 = vpop.eup %22720  ;;  %15852 = vadd.xlane.f32.xlu0 %v15851_v21  ;;  %v15787_v38 = vpop.xlane.xlu0 %15786 }
0x28aa   :  { %22734 = vpow2.f32 %v15832_v13  ;;  %v15830_v7 = vmul.f32 1.442695, %v15804_v19  ;;  %v15807_v48 = vsub.f32 %v27081_v16, %v15787_v38  ;;  %v15848_v31 = vsel %vm7717_vm11, %v27126_v1, 0.0 }
0x28ab   :  { %v27131_v47 = vpop.eup %22722  ;;  %15849 = vadd.xlane.f32.xlu1 %v15848_v31  ;;  %v15784_v57 = vpop.xlane.xlu1 %15783 }
0x28ac   :  { %22736 = vpow2.f32 %v15830_v7  ;;  %v15836_v8 = vmul.f32 1.442695, %v15807_v48  ;;  %v15806_v37 = vsub.f32 %v27089_v14, %v15784_v57  ;;  %v15857_v58 = vsel %vm7721_vm10, %v27131_v47, 0.0 }
0x28ad   :  { %v27136_v63 = vpop.eup %22724  ;;  %15858 = vadd.xlane.f32.xlu0 %v15857_v58  ;;  %v15793_v11 = vpop.xlane.xlu0 %15792 }
0x28ae   :  { %22738 = vpow2.f32 %v15836_v8  ;;  %v15834_v16 = vmul.f32 1.442695, %v15806_v37  ;;  %v15809_v27 = vsub.f32 %v27086_v17, %v15793_v11  ;;  %v15854_v42 = vsel %vm7717_vm11, %v27136_v63, 0.0 }
0x28af   :  { %v27141_v33 = vpop.eup %22726  ;;  %15855 = vadd.xlane.f32.xlu1 %v15854_v42  ;;  %v15790_v9 = vpop.xlane.xlu1 %15789 }
0x28b0   :  { %22740 = vpow2.f32 %v15834_v16  ;;  %v15840_v14 = vmul.f32 1.442695, %v15809_v27  ;;  %v15808_v55 = vsub.f32 %v27094_v30, %v15790_v9  ;;  %v15863_v36 = vsel %vm7721_vm10, %v27141_v33, 0.0 }
0x28b1   :  { %v27146_v59 = vpop.eup %22728  ;;  %15864 = vadd.xlane.f32.xlu0 %v15863_v36 }
0x28b2   :  { %22742 = vpow2.f32 %v15840_v14  ;;  %v15838_v51 = vmul.f32 1.442695, %v15808_v55  ;;  %v15860_v17 = vsel %vm7717_vm11, %v27146_v59, 0.0 }
0x28b3   :  { %v27150_v52 = vpop.eup %22730  ;;  %15861 = vadd.xlane.f32.xlu1 %v15860_v17 }
0x28b4   :  { %22744 = vpow2.f32 %v15838_v51  ;;  %v15869_v39 = vsel %vm7721_vm10, %v27150_v52, 0.0 }
0x28b5   :  { %v27154_v61 = vpop.eup %22732  ;;  %15870 = vadd.xlane.f32.xlu0 %v15869_v39 }
0x28b6   :  { %v15866_v30 = vsel %vm7717_vm11, %v27154_v61, 0.0 }
0x28b7   :  { %v27158_v6 = vpop.eup %22734  ;;  %15867 = vadd.xlane.f32.xlu1 %v15866_v30 }
0x28b8   :  { %v15875_v50 = vsel %vm7721_vm10, %v27158_v6, 0.0 }
0x28b9   :  { %v27162_v40 = vpop.eup %22736  ;;  %15876 = vadd.xlane.f32.xlu0 %v15875_v50 }
0x28ba   :  { %v15872_v41 = vsel %vm7717_vm11, %v27162_v40, 0.0 }
0x28bb   :  { %v27166_v23 = vpop.eup %22738  ;;  %15873 = vadd.xlane.f32.xlu1 %v15872_v41 }
0x28bc   :  { %v15881_v44 = vsel %vm7721_vm10, %v27166_v23, 0.0 }
0x28bd   :  { %v27170_v26 = vpop.eup %22740  ;;  %15882 = vadd.xlane.f32.xlu0 %v15881_v44 }
0x28be   :  { %v15878_v43 = vsel %vm7717_vm11, %v27170_v26, 0.0 }
0x28bf   :  { %v27174_v20 = vpop.eup %22742  ;;  %15879 = vadd.xlane.f32.xlu1 %v15878_v43 }
0x28c0   :  { %v15887_v56 = vsel %vm7721_vm10, %v27174_v20, 0.0 }
0x28c1   :  { %v27178_v54 = vpop.eup %22744  ;;  %15888 = vadd.xlane.f32.xlu0 %v15887_v56 }
0x28c2   :  { %v15884_v4 = vsel %vm7717_vm11, %v27178_v54, 0.0 }
0x28c3   :  { %15885 = vadd.xlane.f32.xlu1 %v15884_v4 }
0x28d4   :  { %15924 = vrot.lane.b32.xlu1 %v26884_v29, %s22935_s16 }
0x28d7   :  { %15922 = vrot.lane.b32.xlu0 %v26886_v49, %s22935_s16 }
0x292e   :  { %v15847_v24 = vpop.xlane.xlu0 %15846 }
0x2930   :  { %v15844_v34 = vpop.xlane.xlu1 %15843 }
0x2931   :  { %22746 = vrcp.f32 %v15844_v34 }
0x2932   :  { %v15853_v5 = vpop.xlane.xlu0 %15852 }
0x2934   :  { %v15850_v10 = vpop.xlane.xlu1 %15849 }
0x2936   :  { %v15859_v13 = vpop.xlane.xlu0 %15858 }
0x2938   :  { %v15856_v19 = vpop.xlane.xlu1 %15855 }
0x2939   :  { %22748 = vrcp.f32 %v15856_v19 }
0x293a   :  { %v15865_v21 = vpop.xlane.xlu0 %15864  ;;  %22750 = vrcp.f32 %v15847_v24 }
0x293b   :  { %22752 = vrcp.f32 %v15859_v13 }
0x293c   :  { %v15862_v38 = vpop.xlane.xlu1 %15861  ;;  %22754 = vrcp.f32 %v15850_v10  ;;  %v27285_v10 = vld [vmem:[%s27932_s0 + $0x760] sm:$0xff] }
0x293e   :  { %v22747_v7 = vpop.eup %22746  ;;  %v15871_v48 = vpop.xlane.xlu0 %15870 }
0x293f   :  { %v15891_v31 = vmul.f32 %v22747_v7, %v27116_v28 }
0x2940   :  { %v15868_v57 = vpop.xlane.xlu1 %15867 }
0x2941   :  { %22170 = vmatprep.mubr.msk.f32.mxu1 %vm7717_vm11, %v15891_v31  ;;  %22756 = vrcp.f32 %v15868_v57 }
0x2942   :  { %v15877_v29 = vpop.xlane.xlu0 %15876  ;;  %22758 = vrcp.f32 %v15853_v5  ;;  %v15035_v5 = vld [vmem:[%s27932_s0 + $0x6e8] sm:$0xff] }
0x2943   :  { %22760 = vrcp.f32 %v15871_v48 }
0x2944   :  { %v15874_v49 = vpop.xlane.xlu1 %15873 }
0x2946   :  { %v22749_v8 = vpop.eup %22748  ;;  %v15883_v37 = vpop.xlane.xlu0 %15882 }
0x2947   :  { %v15899_v58 = vmul.f32 %v22749_v8, %v27136_v63  ;;  %v22751_v27 = vpop.eup %22750 }
0x2948   :  { %v15880_v11 = vpop.xlane.xlu1 %15879  ;;  %v22753_v9 = vpop.eup %22752  ;;  %v15893_v36 = vmul.f32 %v22751_v27, %v27111_v22 }
0x2949   :  { %22184 = vmatprep.mubr.msk.f32.mxu0 %vm7717_vm11, %v15899_v58  ;;  %22762 = vrcp.f32 %v15880_v11  ;;  %v22755_v63 = vpop.eup %22754  ;;  %v15901_v51 = vmul.f32 %v22753_v9, %v27131_v47 }
0x294a   :  { %22764 = vrcp.f32 %v15862_v38  ;;  %v15889_v28 = vpop.xlane.xlu0 %15888  ;;  %v15895_v22 = vmul.f32 %v22755_v63, %v27126_v1 }
0x294b   :  { %22766 = vrcp.f32 %v15865_v21 }
0x294c   :  { %v15886_v16 = vpop.xlane.xlu1 %15885  ;;  %22768 = vrcp.f32 %v15883_v37 }
0x294d   :  { %22770 = vrcp.f32 %v15874_v49 }
0x294e   :  { %v27196_v14 = vpop.permute.xlu0 %15922  ;;  %v22757_v55 = vpop.eup %22756  ;;  %22772 = vrcp.f32 %v15877_v29 }
0x294f   :  { %22774 = vrcp.f32 %v15886_v16  ;;  %v22759_v17 = vpop.eup %22758  ;;  %v15907_v47 = vmul.f32 %v22757_v55, %v27154_v61 }
0x2950   :  { %v27190_v42 = vpop.permute.xlu1 %15924  ;;  %v22761_v39 = vpop.eup %22760  ;;  %22776 = vrcp.f32 %v15889_v28  ;;  %v15897_v1 = vmul.f32 %v22759_v17, %v27121_v25 }
0x2951   :  { %22166 = vmatprep.subr.msk.mxu1 %vm4149_vm7, %v27190_v42  ;;  %22180 = vmatprep.subr.msk.mxu0 %vm4149_vm7, %v27190_v42  ;;  %v15909_v61 = vmul.f32 %v22761_v39, %v27150_v52 }
0x2952   :  { %22167 = vmatpush3.msk.msra.mxu1 %vm4149_vm7, %v27190_v42  ;;  %22181 = vmatpush3.msk.msra.mxu0 %vm4149_vm7, %v27190_v42 }
0x2953   :  { %22168 = vmatprep.subr.mxu1 %v27196_v14  ;;  %22182 = vmatprep.subr.mxu0 %v27196_v14 }
0x2954   :  { %22169 = vmatpush3.msra.mxu1 %v27196_v14  ;;  %22183 = vmatpush3.msra.mxu0 %v27196_v14 }
0x2955   :  { %22171 = vmatmul.mubr.msk.f32.vlgmr.msra.gmra.mxu1 %vm7717_vm11, %v15893_v36  ;;  %22173 = vmatprep.subr.msk.mxu1 %vm4149_vm7, %v27190_v42 }
0x2956   :  { %22185 = vmatmul.mubr.msk.f32.vlgmr.msra.gmra.mxu0 %vm7717_vm11, %v15901_v51  ;;  %22194 = vmatprep.subr.msk.mxu0 %vm4149_vm7, %v27190_v42  ;;  %v22763_v30 = vpop.eup %22762 }
0x2957   :  { %22174 = vmatpush3.msk.msra.mxu1 %vm4149_vm7, %v27190_v42  ;;  %22177 = vmatprep.mubr.msk.f32.mxu1 %vm7717_vm11, %v15895_v22  ;;  %v22765_v50 = vpop.eup %22764  ;;  %v15915_v41 = vmul.f32 %v22763_v30, %v27170_v26 }
0x2958   :  { %22195 = vmatpush3.msk.msra.mxu0 %vm4149_vm7, %v27190_v42  ;;  %22198 = vmatprep.mubr.msk.f32.mxu0 %vm7717_vm11, %v15907_v47  ;;  %v15903_v44 = vmul.f32 %v22765_v50, %v27146_v59  ;;  %v22767_v25 = vpop.eup %22766 }
0x2959   :  { %22175 = vmatprep.subr.mxu1 %v27196_v14  ;;  %22196 = vmatprep.subr.mxu0 %v27196_v14  ;;  %v22769_v52 = vpop.eup %22768  ;;  %v15905_v59 = vmul.f32 %v22767_v25, %v27141_v33 }
0x295a   :  { %22176 = vmatpush3.msra.mxu1 %v27196_v14  ;;  %22197 = vmatpush3.msra.mxu0 %v27196_v14  ;;  %v22771_v26 = vpop.eup %22770  ;;  %v15917_v56 = vmul.f32 %v22769_v52, %v27166_v23 }
0x295b   :  { %22178 = vmatmul.mubr.msk.f32.vlgmr.msra.gmra.mxu1 %vm7717_vm11, %v15897_v1  ;;  %22187 = vmatprep.subr.msk.mxu1 %vm4149_vm7, %v27190_v42  ;;  %v22773_v43 = vpop.eup %22772  ;;  %v15911_v24 = vmul.f32 %v22771_v26, %v27162_v40  ;;  %v15038_v40 = vld [vmem:[%s27932_s0 + $0x700] sm:$0xff] }
0x295c   :  { %22199 = vmatmul.mubr.msk.f32.vlgmr.msra.gmra.mxu0 %vm7717_vm11, %v15909_v61  ;;  %22208 = vmatprep.subr.msk.mxu0 %vm4149_vm7, %v27190_v42  ;;  %v22775_v4 = vpop.eup %22774  ;;  %v15913_v33 = vmul.f32 %v22773_v43, %v27158_v6 }
0x295d   :  { %22188 = vmatpush3.msk.msra.mxu1 %vm4149_vm7, %v27190_v42  ;;  %22191 = vmatprep.mubr.msk.f32.mxu1 %vm7717_vm11, %v15903_v44  ;;  %v22777_v23 = vpop.eup %22776  ;;  %v15919_v34 = vmul.f32 %v22775_v4, %v27178_v54  ;;  %v15037_v54 = vld [vmem:[%s27932_s0 + $0x6f8] sm:$0xff] }
0x295e   :  { %22209 = vmatpush3.msk.msra.mxu0 %vm4149_vm7, %v27190_v42  ;;  %22212 = vmatprep.mubr.msk.f32.mxu0 %vm7717_vm11, %v15915_v41  ;;  %v15921_v6 = vmul.f32 %v22777_v23, %v27174_v20  ;;  %v15036_v20 = vld [vmem:[%s27932_s0 + $0x6f0] sm:$0xff] }
0x295f   :  { %22189 = vmatprep.subr.mxu1 %v27196_v14  ;;  %22210 = vmatprep.subr.mxu0 %v27196_v14 }
0x2960   :  { %22190 = vmatpush3.msra.mxu1 %v27196_v14  ;;  %22211 = vmatpush3.msra.mxu0 %v27196_v14 }
0x2961   :  { %22192 = vmatmul.mubr.msk.f32.vlgmr.msra.gmra.mxu1 %vm7717_vm11, %v15905_v59  ;;  %22201 = vmatprep.subr.msk.mxu1 %vm4149_vm7, %v27190_v42 }
0x2962   :  { %22213 = vmatmul.mubr.msk.f32.vlgmr.msra.gmra.mxu0 %vm7717_vm11, %v15917_v56  ;;  %22202 = vmatpush3.msk.msra.mxu1 %vm4149_vm7, %v27190_v42 }
0x2963   :  { %22205 = vmatprep.mubr.msk.f32.mxu1 %vm7717_vm11, %v15911_v24  ;;  %22203 = vmatprep.subr.mxu1 %v27196_v14 }
0x2964   :  { %22204 = vmatpush3.msra.mxu1 %v27196_v14  ;;  %22222 = vmatprep.subr.mxu0 %v15038_v40 }
0x2965   :  { %22206 = vmatmul.mubr.msk.f32.vlgmr.msra.gmra.mxu1 %vm7717_vm11, %v15913_v33  ;;  %22215 = vmatprep.subr.msk.mxu1 %vm4149_vm7, %v27190_v42 }
0x2966   :  { %22216 = vmatpush3.msk.msra.mxu1 %vm4149_vm7, %v27190_v42  ;;  %22219 = vmatprep.mubr.msk.f32.mxu1 %vm7717_vm11, %v15919_v34 }
0x2967   :  { %22217 = vmatprep.subr.mxu1 %v27196_v14  ;;  %22223 = vmatpush3.msra.mxu0 %v15038_v40 }
0x2968   :  { %22218 = vmatpush3.msra.mxu1 %v27196_v14  ;;  %22224 = vmatprep.subr.mxu0 %v15037_v54 }
0x2969   :  { %22220 = vmatmul.mubr.msk.f32.vlgmr.msra.gmra.mxu1 %vm7717_vm11, %v15921_v6  ;;  %22225 = vmatpush3.msra.mxu0 %v15037_v54 }
0x296a   :  { %22226 = vmatprep.subr.mxu0 %v15036_v20 }
0x296b   :  { %22227 = vmatpush3.msra.mxu0 %v15036_v20 }
0x296c   :  { %22228 = vmatprep.subr.mxu0 %v15035_v5 }
0x296d   :  { %22229 = vmatpush3.msra.mxu0 %v15035_v5 }
0x296e   :  { %22244 = vmatprep.subr.mxu0 %v27285_v10 }
0x2a15   :  { %v22172_v13 = vpop.f32.mrf.mxu1 }
0x2a16   :  { %v22186_v19 = vpop.f32.mrf.mxu0  ;;  %v16578_v7 = vmul.f32 %v26895_v2, %v22172_v13 }
0x2a17   :  { %v16001_v21 = vpop.f32.mrf.mxu1  ;;  %v16582_v31 = vmul.f32 %v26925_v45, %v22186_v19 }
0x2a18   :  { %v16163_v38 = vpop.f32.mrf.mxu0  ;;  %v16577_v57 = vmul.f32 %v26895_v2, %v16001_v21  ;;  %v16608_v37 = vsel %vm8581_vm12, %v16578_v7, 0.0 }
0x2a19   :  { %v16581_v58 = vmul.f32 %v26925_v45, %v16163_v38  ;;  %v16611_v42 = vsel %vm8581_vm12, %v16582_v31, 0.0  ;;  %v16840_v31 = vld [vmem:[%s27932_s0 + $0x748] sm:$0xff] }
0x2a1a   :  { %v16593_v9 = vsel %vm6868_vm9, %v16577_v57, 0.0  ;;  %v16751_v57 = vld [vmem:[%s27932_s0 + $0x728] sm:$0xff] }
0x2a1b   :  { %v22179_v48 = vpop.f32.mrf.mxu1  ;;  %v16596_v36 = vsel %vm6868_vm9, %v16581_v58, 0.0 }
0x2a1c   :  { %v16580_v29 = vmul.f32 %v26902_v53, %v22179_v48  ;;  %v22200_v49 = vpop.f32.mrf.mxu0  ;;  %v16842_v48 = vld [vmem:[%s27932_s0 + $0x758] sm:$0xff] }
0x2a1d   :  { %v16082_v8 = vpop.f32.mrf.mxu1  ;;  %v16586_v51 = vmul.f32 %v26956_v18, %v22200_v49 }
0x2a1e   :  { %v16609_v11 = vsel %vm8581_vm12, %v16580_v29, 0.0  ;;  %v16579_v28 = vmul.f32 %v26902_v53, %v16082_v8  ;;  %v16325_v16 = vpop.f32.mrf.mxu0  ;;  %v19697_v29 = vld [vmem:[%s27932_s0 + $0x708] ss:$0 sm:$0xff] }
0x2a1f   :  { %v16610_v27 = vadd.f32 %v16609_v11, %v16608_v37  ;;  %v16585_v39 = vmul.f32 %v26956_v18, %v16325_v16  ;;  %v16615_v41 = vsel %vm8581_vm12, %v16586_v51, 0.0 }
0x2a20   :  { %v16594_v2 = vsel %vm6868_vm9, %v16579_v28, 0.0 }
0x2a21   :  { %v16595_v63 = vadd.f32 %v16594_v2, %v16593_v9  ;;  %v22193_v14 = vpop.f32.mrf.mxu1  ;;  %v16612_v55 = vadd.f32 %v16611_v42, %v16610_v27  ;;  %v16600_v18 = vsel %vm6868_vm9, %v16585_v39, 0.0  ;;  %v19705_v27 = vld [vmem:[%s27932_s0 + $0x768] ss:$0 sm:$0xff] }
0x2a22   :  { %v16584_v45 = vmul.f32 %v26934_v0, %v22193_v14  ;;  %v22214_v17 = vpop.f32.mrf.mxu0 }
0x2a23   :  { %v16244_v22 = vpop.f32.mrf.mxu1  ;;  %v16597_v53 = vadd.f32 %v16596_v36, %v16595_v63  ;;  %v16590_v52 = vmul.f32 %v26986_v15, %v22214_v17 }
0x2a24   :  { %v16613_v47 = vsel %vm8581_vm12, %v16584_v45, 0.0  ;;  %v16583_v30 = vmul.f32 %v26934_v0, %v16244_v22  ;;  %v16487_v1 = vpop.f32.mrf.mxu0 }
0x2a25   :  { %v16614_v50 = vadd.f32 %v16613_v47, %v16612_v55  ;;  %v22207_v61 = vpop.f32.mrf.mxu1  ;;  %v16589_v56 = vmul.f32 %v26986_v15, %v16487_v1  ;;  %v16619_v40 = vsel %vm8581_vm12, %v16590_v52, 0.0 }
0x2a26   :  { %v16598_v44 = vsel %vm6868_vm9, %v16583_v30, 0.0  ;;  %v16588_v25 = vmul.f32 %v26965_v12, %v22207_v61 }
0x2a27   :  { %v16599_v26 = vadd.f32 %v16598_v44, %v16597_v53  ;;  %v16616_v59 = vadd.f32 %v16615_v41, %v16614_v50  ;;  %v16406_v43 = vpop.f32.mrf.mxu1  ;;  %v16604_v5 = vsel %vm6868_vm9, %v16589_v56, 0.0 }
0x2a28   :  { %v16617_v0 = vsel %vm8581_vm12, %v16588_v25, 0.0  ;;  %v16587_v4 = vmul.f32 %v26965_v12, %v16406_v43  ;;  %v19700_v25 = vld [vmem:[%s27932_s0 + $0x710] ss:$0 sm:$0xff] }
0x2a29   :  { %v16618_v24 = vadd.f32 %v16617_v0, %v16616_v59  ;;  %v16601_v33 = vadd.f32 %v16600_v18, %v16599_v26  ;;  %v22221_v23 = vpop.f32.mrf.mxu1  ;;  %v19701_v18 = vld [vmem:[%s27932_s0 + $0x718] ss:$0 sm:$0xff] }
0x2a2a   :  { %v16602_v34 = vsel %vm6868_vm9, %v16587_v4, 0.0  ;;  %v16592_v6 = vmul.f32 %v26995_v35, %v22221_v23 }
0x2a2b   :  { %v16603_v54 = vadd.f32 %v16602_v34, %v16601_v33  ;;  %v16568_v20 = vpop.f32.mrf.mxu1  ;;  %v16620_v13 = vadd.f32 %v16619_v40, %v16618_v24  ;;  %v19702_v24 = vld [vmem:[%s27932_s0 + $0x740] ss:$0 sm:$0xff] }
0x2a2c   :  { %v16591_v15 = vmul.f32 %v26995_v35, %v16568_v20  ;;  %v16621_v19 = vsel %vm8581_vm12, %v16592_v6, 0.0  ;;  %v16841_v35 = vld [vmem:[%s27932_s0 + $0x750] sm:$0xff]  ;;  %v27404_v40 = vld [vmem:[%s27937_s5] ss:$0 sm:$0xff]  ;;  %v27410_v20 = vld [vmem:[%s27937_s5 + $0x1] ss:$0 sm:$0xff] }
0x2a2d   :  { %v16605_v21 = vadd.f32 %v16604_v5, %v16603_v54  ;;  %v16622_v7 = vadd.f32 %v16621_v19, %v16620_v13  ;;  %v27422_v19 = vld [vmem:[%s27937_s5 + $0x2] ss:$0 sm:$0xff] }
0x2a2e   :  { %v16606_v12 = vsel %vm6868_vm9, %v16591_v15, 0.0 }
0x2a2f   :  { %v16607_v38 = vadd.f32 %v16606_v12, %v16605_v21  ;;  %v27432_v12 = vld [vmem:[%s27937_s5 + $0x3] ss:$0 sm:$0xff] }
0x2a31   :  { %22230 = vmatprep.mubr.msk.f32.mxu0 %vm6868_vm9, %v16607_v38 }
0x2a32   :  { %22231 = vmatmul.mubr.msk.f32.vlgmr.msra.gmra.mxu0 %vm6868_vm9, %v16622_v7 }
0x2a33   :  { %22245 = vmatpush3.msra.mxu0 %v27285_v10  ;;  %22252 = vmatprep.mubr.msk.f32.mxu0 %vm6868_vm9, %v26318_v62  ;;  %v16753_v62 = vld [vmem:[%s27932_s0 + $0x738] sm:$0xff]  ;;  %v16752_v10 = vld [vmem:[%s27932_s0 + $0x730] sm:$0xff] }
0x2a34   :  { %22246 = vmatprep.subr.mxu0 %v16842_v48  ;;  %22233 = vmatprep.subr.mxu1 %v16753_v62 }
0x2a35   :  { %22247 = vmatpush3.msra.mxu0 %v16842_v48  ;;  %22234 = vmatpush3.msra.mxu1 %v16753_v62  ;;  %v27462_v62 = vld [vmem:[%s27937_s5 + $0x5] ss:$0 sm:$0xff] }
0x2a36   :  { %22248 = vmatprep.subr.mxu0 %v16841_v35  ;;  %22235 = vmatprep.subr.mxu1 %v16752_v10 }
0x2a37   :  { %22249 = vmatpush3.msra.mxu0 %v16841_v35  ;;  %22236 = vmatpush3.msra.mxu1 %v16752_v10  ;;  %v27454_v35 = vld [vmem:[%s27937_s5 + $0x4] ss:$0 sm:$0xff] }
0x2a38   :  { %22250 = vmatprep.subr.mxu0 %v16840_v31  ;;  %22237 = vmatprep.subr.mxu1 %v16751_v57 }
0x2a39   :  { %22251 = vmatpush3.msra.mxu0 %v16840_v31  ;;  %22238 = vmatpush3.msra.mxu1 %v16751_v57 }
0x2a3a   :  { %22253 = vmatmul.mubr.msk.f32.vlgmr.msra.gmra.mxu0 %vm6868_vm9, %v26320_v3  ;;  %v16750_v3 = vld [vmem:[%s27932_s0 + $0x720] sm:$0xff] }
0x2a3b   :  { %22239 = vmatprep.subr.mxu1 %v16750_v3 }
0x2a3c   :  { %22240 = vmatpush3.msra.mxu1 %v16750_v3 }
0x2af2   :  { %v22232_v49 = vpop.f32.mrf.mxu0 }
0x2af3   :  { %v16705_v8 = vadd.f32 %v22232_v49, %v19697_v29 }
0x2af4   :  { %v16699_v37 = vpop.f32.mrf.mxu0 }
0x2af5   :  { %v16709_v58 = vadd.f32 %v16705_v8, %v26875_v60  ;;  %v16700_v11 = vadd.f32 %v19697_v29, %v16699_v37  ;;  %v27489_v29 = vld [vmem:[%s27937_s5 + $0x6] ss:$0 sm:$0xff]  ;;  %v27498_v8 = vld [vmem:[%s27937_s5 + $0x7] ss:$0 sm:$0xff] }
0x2af7   :  { %v16708_v28 = vadd.f32 %v16700_v11, %v26873_v46  ;;  %v16715_v16 = vsel %vm8581_vm12, %v16709_v58, 0.0 }
0x2af8   :  { %16716 = vadd.xlane.f32.xlu0 %v16715_v16 }
0x2af9   :  { %v16712_v42 = vsel %vm6868_vm9, %v16708_v28, 0.0 }
0x2afa   :  { %v22254_v9 = vpop.f32.mrf.mxu0  ;;  %16713 = vadd.xlane.f32.xlu1 %v16712_v42 }
0x2afb   :  { %v27358_v2 = vadd.f32 %v22254_v9, %v19705_v27 }
0x2afc   :  { %v16915_v63 = vpop.f32.mrf.mxu0 }
0x2afd   :  { %v27360_v14 = vadd.f32 %v19705_v27, %v16915_v63  ;;  %22255 = vmatprep.subr.msk.mxu1 %vm6868_vm9, %v27358_v2  ;;  %22262 = vmatprep.subr.msk.mxu0 %vm6868_vm9, %v27358_v2 }
0x2afe   :  { %22263 = vmatpush3.xpose.msk.msra.mxu0 %vm6868_vm9, %v27358_v2 }
0x2aff   :  { %22264 = vmatprep.subr.msk.mxu0 %vm6868_vm9, %v27360_v14 }
0x2b02   :  { %22265 = vmatpush3.xpose.msk.msra.mxu0 %vm6868_vm9, %v27360_v14 }
0x2b03   :  { %22276 = vmatprep.subr.msk.mxu0 %vm6868_vm9, %v27358_v2 }
0x2b81   :  { %v16717_v46 = vpop.xlane.xlu0 %16716 }
0x2b82   :  { %v16719_v60 = vmul.f32 0.03125, %v16717_v46  ;;  %v27520_v46 = vld [vmem:[%s27933_s1 + $0x38] sm:$0x3] }
0x2b83   :  { %v16714_v55 = vpop.xlane.xlu1 %16713 }
0x2b84   :  { %v16721_v36 = vsub.f32 %v16709_v58, %v16719_v60  ;;  %v16718_v51 = vmul.f32 0.03125, %v16714_v55 }
0x2b86   :  { %v16720_v45 = vsub.f32 %v16708_v28, %v16718_v51  ;;  %v16723_v17 = vmul.f32 %v16721_v36, %v16721_v36 }
0x2b88   :  { %v16727_v22 = vsel %vm8581_vm12, %v16723_v17, 0.0  ;;  %v16722_v53 = vmul.f32 %v16720_v45, %v16720_v45 }
0x2b89   :  { %16728 = vadd.xlane.f32.xlu0 %v16727_v22 }
0x2b8a   :  { %v16724_v39 = vsel %vm6868_vm9, %v16722_v53, 0.0 }
0x2b8b   :  { %16725 = vadd.xlane.f32.xlu1 %v16724_v39 }
0x2c12   :  { %v16729_v47 = vpop.xlane.xlu0 %16728 }
0x2c13   :  { %v16731_v30 = vmul.f32 0.03125, %v16729_v47 }
0x2c14   :  { %v16726_v50 = vpop.xlane.xlu1 %16725 }
0x2c15   :  { %v16733_v1 = vadd.f32 1e-05, %v16731_v30  ;;  %v16730_v61 = vmul.f32 0.03125, %v16726_v50 }
0x2c17   :  { %22778 = vrsqrt.f32 %v16733_v1  ;;  %v16732_v41 = vadd.f32 1e-05, %v16730_v61 }
0x2c19   :  { %22780 = vrsqrt.f32 %v16732_v41 }
0x2c24   :  { %v22779_v44 = vpop.eup %22778 }
0x2c25   :  { %v16737_v52 = vmul.f32 %v22779_v44, %v16721_v36 }
0x2c26   :  { %v22781_v26 = vpop.eup %22780 }
0x2c27   :  { %v16736_v59 = vmul.f32 %v22781_v26, %v16720_v45  ;;  %v16743_v43 = vmul.f32 %v19700_v25, %v16737_v52  ;;  %v27531_v45 = vld [vmem:[%s27933_s1 + $0x30] sm:$0xff] }
0x2c29   :  { %v16742_v56 = vmul.f32 %v19700_v25, %v16736_v59  ;;  %v27384_v4 = vadd.f32 %v19701_v18, %v16743_v43 }
0x2c2b   :  { %v27382_v0 = vadd.f32 %v19701_v18, %v16742_v56 }
0x2c2d   :  { %22241 = vmatprep.mubr.msk.f32.mxu1 %vm6868_vm9, %v27382_v0 }
0x2c2e   :  { %22242 = vmatmul.mubr.msk.f32.vlgmr.msra.gmra.mxu1 %vm6868_vm9, %v27384_v4 }
0x2c2f   :  { %22256 = vmatpush3.xpose.msk.msra.mxu1 %vm6868_vm9, %v27358_v2 }
0x2c30   :  { %22257 = vmatprep.subr.msk.mxu1 %vm6868_vm9, %v27360_v14 }
0x2c33   :  { %22258 = vmatpush3.xpose.msk.msra.mxu1 %vm6868_vm9, %v27360_v14 }
0x2c34   :  { %22269 = vmatprep.subr.msk.mxu1 %vm6868_vm9, %v27358_v2 }
0x2cee   :  { %v22243_v33 = vpop.f32.mrf.mxu1 }
0x2cef   :  { %v16837_v23 = vadd.f32 %v22243_v33, %v19702_v24 }
0x2cf0   :  { %v16831_v34 = vpop.f32.mrf.mxu1 }
0x2cf1   :  { %v16832_v6 = vadd.f32 %v19702_v24, %v16831_v34  ;;  %v16930_v13 = vmul.f32 %v27404_v40, %v16837_v23  ;;  %v16932_v15 = vmul.f32 %v27410_v20, %v16837_v23  ;;  %v16934_v7 = vmul.f32 %v27422_v19, %v16837_v23 }
0x2cf2   :  { %v16936_v48 = vmul.f32 %v27432_v12, %v16837_v23  ;;  %v16938_v57 = vmul.f32 %v27454_v35, %v16837_v23  ;;  %v16940_v3 = vmul.f32 %v27462_v62, %v16837_v23  ;;  %v16942_v58 = vmul.f32 %v27489_v29, %v16837_v23 }
0x2cf3   :  { %v16929_v54 = vmul.f32 %v27404_v40, %v16832_v6  ;;  %v16931_v5 = vmul.f32 %v27410_v20, %v16832_v6  ;;  %v16933_v21 = vmul.f32 %v27422_v19, %v16832_v6  ;;  %v16935_v38 = vmul.f32 %v27432_v12, %v16832_v6 }
0x2cf4   :  { %v16937_v31 = vmul.f32 %v27454_v35, %v16832_v6  ;;  %v16939_v10 = vmul.f32 %v27462_v62, %v16832_v6  ;;  %v16941_v49 = vmul.f32 %v27489_v29, %v16832_v6  ;;  %v16943_v37 = vmul.f32 %v27498_v8, %v16832_v6 }
0x2cf5   :  { %22259 = vmatprep.mubr.msk.f32.mxu1 %vm6868_vm9, %v16929_v54  ;;  %22266 = vmatprep.mubr.msk.f32.mxu0 %vm6868_vm9, %v16931_v5  ;;  %v16944_v11 = vmul.f32 %v27498_v8, %v16837_v23 }
0x2cf6   :  { %22260 = vmatmul.mubr.msk.f32.vlgmr.msra.gmra.mxu1 %vm6868_vm9, %v16930_v13  ;;  %22267 = vmatmul.mubr.msk.f32.vlgmr.msra.gmra.mxu0 %vm6868_vm9, %v16932_v15 }
0x2cf7   :  { %22270 = vmatpush3.xpose.msk.msra.mxu1 %vm6868_vm9, %v27358_v2  ;;  %22277 = vmatpush3.xpose.msk.msra.mxu0 %vm6868_vm9, %v27358_v2 }
0x2cf8   :  { %22271 = vmatprep.subr.msk.mxu1 %vm6868_vm9, %v27360_v14  ;;  %22273 = vmatprep.mubr.msk.f32.mxu1 %vm6868_vm9, %v16933_v21 }
0x2cf9   :  { %22278 = vmatprep.subr.msk.mxu0 %vm6868_vm9, %v27360_v14  ;;  %22280 = vmatprep.mubr.msk.f32.mxu0 %vm6868_vm9, %v16935_v38 }
0x2cfb   :  { %22272 = vmatpush3.xpose.msk.msra.mxu1 %vm6868_vm9, %v27360_v14  ;;  %22279 = vmatpush3.xpose.msk.msra.mxu0 %vm6868_vm9, %v27360_v14 }
0x2cfc   :  { %22283 = vmatprep.subr.msk.mxu1 %vm6868_vm9, %v27358_v2  ;;  %22290 = vmatprep.subr.msk.mxu0 %vm6868_vm9, %v27358_v2 }
0x2cfe   :  { %22274 = vmatmul.mubr.msk.f32.vlgmr.msra.gmra.mxu1 %vm6868_vm9, %v16934_v7  ;;  %22281 = vmatmul.mubr.msk.f32.vlgmr.msra.gmra.mxu0 %vm6868_vm9, %v16936_v48 }
0x2cff   :  { %22284 = vmatpush3.xpose.msk.msra.mxu1 %vm6868_vm9, %v27358_v2  ;;  %22287 = vmatprep.mubr.msk.f32.mxu1 %vm6868_vm9, %v16937_v31 }
0x2d00   :  { %22291 = vmatpush3.xpose.msk.msra.mxu0 %vm6868_vm9, %v27358_v2  ;;  %22294 = vmatprep.mubr.msk.f32.mxu0 %vm6868_vm9, %v16939_v10 }
0x2d01   :  { %22285 = vmatprep.subr.msk.mxu1 %vm6868_vm9, %v27360_v14  ;;  %22292 = vmatprep.subr.msk.mxu0 %vm6868_vm9, %v27360_v14 }
0x2d03   :  { %22286 = vmatpush3.xpose.msk.msra.mxu1 %vm6868_vm9, %v27360_v14 }
0x2d04   :  { %22293 = vmatpush3.xpose.msk.msra.mxu0 %vm6868_vm9, %v27360_v14  ;;  %22297 = vmatprep.subr.msk.mxu1 %vm6868_vm9, %v27358_v2 }
0x2d05   :  { %22304 = vmatprep.subr.msk.mxu0 %vm6868_vm9, %v27358_v2 }
0x2d06   :  { %22288 = vmatmul.mubr.msk.f32.vlgmr.msra.gmra.mxu1 %vm6868_vm9, %v16938_v57 }
0x2d07   :  { %22295 = vmatmul.mubr.msk.f32.vlgmr.msra.gmra.mxu0 %vm6868_vm9, %v16940_v3  ;;  %22298 = vmatpush3.xpose.msk.msra.mxu1 %vm6868_vm9, %v27358_v2 }
0x2d08   :  { %22301 = vmatprep.mubr.msk.f32.mxu1 %vm6868_vm9, %v16941_v49  ;;  %22305 = vmatpush3.xpose.msk.msra.mxu0 %vm6868_vm9, %v27358_v2 }
0x2d09   :  { %22308 = vmatprep.mubr.msk.f32.mxu0 %vm6868_vm9, %v16943_v37  ;;  %22299 = vmatprep.subr.msk.mxu1 %vm6868_vm9, %v27360_v14 }
0x2d0a   :  { %22306 = vmatprep.subr.msk.mxu0 %vm6868_vm9, %v27360_v14 }
0x2d0b   :  { %22300 = vmatpush3.xpose.msk.msra.mxu1 %vm6868_vm9, %v27360_v14 }
0x2d0c   :  { %22307 = vmatpush3.xpose.msk.msra.mxu0 %vm6868_vm9, %v27360_v14 }
0x2d0e   :  { %22302 = vmatmul.mubr.msk.f32.vlgmr.msra.gmra.mxu1 %vm6868_vm9, %v16942_v58 }
0x2d0f   :  { %22309 = vmatmul.mubr.msk.f32.vlgmr.msra.gmra.mxu0 %vm6868_vm9, %v16944_v11 }
0x2db6   :  { %v22261_v28 = vpop.f32.mrf.mxu1  ;;  %v22268_v16 = vpop.f32.mrf.mxu0 }
0x2db7   :  { %v17600_v27 = vmul.f32 0.5, %v22261_v28  ;;  %v17602_v42 = vmul.f32 0.5, %v22268_v16 }
0x2db8   :  { %v17023_v9 = vpop.f32.mrf.mxu1  ;;  %v17104_v63 = vpop.f32.mrf.mxu0 }
0x2db9   :  { %v27523_v60 = vadd.f32 %v27520_v46, %v17600_v27  ;;  %v17599_v55 = vmul.f32 0.5, %v17023_v9  ;;  %v17601_v36 = vmul.f32 0.5, %v17104_v63  ;;  %v27526_v51 = vadd.f32 %v27520_v46, %v17602_v42 }
0x2dbb   :  { %v27534_v17 = vadd.f32 %v27531_v45, %v17599_v55  ;;  %v17634_v22 = vsel %vm7721_vm10, %v27523_v60, -inf  ;;  %v27539_v53 = vadd.f32 %v27531_v45, %v17601_v36  ;;  %v17640_v61 = vsel %vm7721_vm10, %v27526_v51, -inf }
0x2dbc   :  { %17635 = vmax.xlane.f32.xlu0 %v17634_v22 }
0x2dbd   :  { %v17631_v39 = vsel %vm7717_vm11, %v27534_v17, -inf  ;;  %v17637_v59 = vsel %vm7717_vm11, %v27539_v53, -inf }
0x2dbe   :  { %v22275_v47 = vpop.f32.mrf.mxu1  ;;  %v22282_v30 = vpop.f32.mrf.mxu0  ;;  %17632 = vmax.xlane.f32.xlu1 %v17631_v39 }
0x2dbf   :  { %v17604_v50 = vmul.f32 0.5, %v22275_v47  ;;  %v17606_v1 = vmul.f32 0.5, %v22282_v30 }
0x2dc0   :  { %v17185_v41 = vpop.f32.mrf.mxu1  ;;  %v17266_v44 = vpop.f32.mrf.mxu0  ;;  %17641 = vmax.xlane.f32.xlu0 %v17640_v61 }
0x2dc1   :  { %v27546_v25 = vadd.f32 %v27520_v46, %v17604_v50  ;;  %v17603_v52 = vmul.f32 0.5, %v17185_v41  ;;  %v17605_v26 = vmul.f32 0.5, %v17266_v44  ;;  %v27551_v43 = vadd.f32 %v27520_v46, %v17606_v1 }
0x2dc2   :  { %17638 = vmax.xlane.f32.xlu1 %v17637_v59 }
0x2dc3   :  { %v27554_v18 = vadd.f32 %v27531_v45, %v17603_v52  ;;  %v17646_v56 = vsel %vm7721_vm10, %v27546_v25, -inf  ;;  %v27559_v24 = vadd.f32 %v27531_v45, %v17605_v26  ;;  %v17652_v54 = vsel %vm7721_vm10, %v27551_v43, -inf }
0x2dc4   :  { %17647 = vmax.xlane.f32.xlu0 %v17646_v56 }
0x2dc5   :  { %v17643_v33 = vsel %vm7717_vm11, %v27554_v18, -inf  ;;  %v17649_v7 = vsel %vm7717_vm11, %v27559_v24, -inf }
0x2dc6   :  { %v22289_v23 = vpop.f32.mrf.mxu1  ;;  %17644 = vmax.xlane.f32.xlu1 %v17643_v33 }
0x2dc7   :  { %v17608_v34 = vmul.f32 0.5, %v22289_v23  ;;  %v22296_v6 = vpop.f32.mrf.mxu0 }
0x2dc8   :  { %v17610_v5 = vmul.f32 0.5, %v22296_v6  ;;  %v17347_v13 = vpop.f32.mrf.mxu1  ;;  %17653 = vmax.xlane.f32.xlu0 %v17652_v54 }
0x2dc9   :  { %v27566_v15 = vadd.f32 %v27520_v46, %v17608_v34  ;;  %v17607_v21 = vmul.f32 0.5, %v17347_v13  ;;  %v17428_v38 = vpop.f32.mrf.mxu0 }
0x2dca   :  { %v17609_v48 = vmul.f32 0.5, %v17428_v38  ;;  %17650 = vmax.xlane.f32.xlu1 %v17649_v7  ;;  %v27571_v31 = vadd.f32 %v27520_v46, %v17610_v5 }
0x2dcb   :  { %v27574_v10 = vadd.f32 %v27531_v45, %v17607_v21  ;;  %v17658_v57 = vsel %vm7721_vm10, %v27566_v15, -inf }
0x2dcc   :  { %17659 = vmax.xlane.f32.xlu0 %v17658_v57  ;;  %v27579_v3 = vadd.f32 %v27531_v45, %v17609_v48  ;;  %v17664_v28 = vsel %vm7721_vm10, %v27571_v31, -inf }
0x2dcd   :  { %v17655_v49 = vsel %vm7717_vm11, %v27574_v10, -inf }
0x2dce   :  { %v22303_v37 = vpop.f32.mrf.mxu1  ;;  %17656 = vmax.xlane.f32.xlu1 %v17655_v49  ;;  %v17661_v55 = vsel %vm7717_vm11, %v27579_v3, -inf }
0x2dcf   :  { %v17612_v58 = vmul.f32 0.5, %v22303_v37  ;;  %v22310_v11 = vpop.f32.mrf.mxu0 }
0x2dd0   :  { %v17614_v16 = vmul.f32 0.5, %v22310_v11  ;;  %v17509_v27 = vpop.f32.mrf.mxu1  ;;  %17665 = vmax.xlane.f32.xlu0 %v17664_v28 }
0x2dd1   :  { %v27586_v42 = vadd.f32 %v27520_v46, %v17612_v58  ;;  %v17611_v9 = vmul.f32 0.5, %v17509_v27  ;;  %v17590_v63 = vpop.f32.mrf.mxu0 }
0x2dd2   :  { %v17613_v36 = vmul.f32 0.5, %v17590_v63  ;;  %17662 = vmax.xlane.f32.xlu1 %v17661_v55  ;;  %v27591_v22 = vadd.f32 %v27520_v46, %v17614_v16 }
0x2dd3   :  { %v27594_v39 = vadd.f32 %v27531_v45, %v17611_v9  ;;  %v17670_v47 = vsel %vm7721_vm10, %v27586_v42, -inf }
0x2dd4   :  { %17671 = vmax.xlane.f32.xlu0 %v17670_v47  ;;  %v27599_v30 = vadd.f32 %v27531_v45, %v17613_v36  ;;  %v17676_v1 = vsel %vm7721_vm10, %v27591_v22, -inf }
0x2dd5   :  { %v17667_v50 = vsel %vm7717_vm11, %v27594_v39, -inf }
0x2dd6   :  { %17668 = vmax.xlane.f32.xlu1 %v17667_v50  ;;  %v17673_v46 = vsel %vm7717_vm11, %v27599_v30, -inf }
0x2dd8   :  { %17677 = vmax.xlane.f32.xlu0 %v17676_v1 }
0x2dda   :  { %17674 = vmax.xlane.f32.xlu1 %v17673_v46 }
0x2e45   :  { %v17636_v61 = vpop.xlane.xlu0 %17635 }
0x2e46   :  { %v17680_v41 = vsub.f32 %v27523_v60, %v17636_v61 }
0x2e47   :  { %v17633_v44 = vpop.xlane.xlu1 %17632 }
0x2e48   :  { %v17697_v52 = vmul.f32 1.442695, %v17680_v41  ;;  %v17679_v45 = vsub.f32 %v27534_v17, %v17633_v44 }
0x2e49   :  { %v17642_v26 = vpop.xlane.xlu0 %17641 }
0x2e4a   :  { %22782 = vpow2.f32 %v17697_v52  ;;  %v17695_v59 = vmul.f32 1.442695, %v17679_v45  ;;  %v17682_v56 = vsub.f32 %v27526_v51, %v17642_v26 }
0x2e4b   :  { %v17639_v33 = vpop.xlane.xlu1 %17638 }
0x2e4c   :  { %22784 = vpow2.f32 %v17695_v59  ;;  %v17701_v23 = vmul.f32 1.442695, %v17682_v56  ;;  %v17681_v34 = vsub.f32 %v27539_v53, %v17639_v33 }
0x2e4d   :  { %v17648_v6 = vpop.xlane.xlu0 %17647 }
0x2e4e   :  { %22786 = vpow2.f32 %v17701_v23  ;;  %v17699_v54 = vmul.f32 1.442695, %v17681_v34  ;;  %v17684_v5 = vsub.f32 %v27546_v25, %v17648_v6 }
0x2e4f   :  { %v17645_v60 = vpop.xlane.xlu1 %17644 }
0x2e50   :  { %22788 = vpow2.f32 %v17699_v54  ;;  %v17705_v13 = vmul.f32 1.442695, %v17684_v5  ;;  %v17683_v17 = vsub.f32 %v27554_v18, %v17645_v60 }
0x2e51   :  { %v17654_v21 = vpop.xlane.xlu0 %17653 }
0x2e52   :  { %22790 = vpow2.f32 %v17705_v13  ;;  %v17703_v38 = vmul.f32 1.442695, %v17683_v17  ;;  %v17686_v51 = vsub.f32 %v27551_v43, %v17654_v21 }
0x2e53   :  { %v17651_v7 = vpop.xlane.xlu1 %17650 }
0x2e54   :  { %22792 = vpow2.f32 %v17703_v38  ;;  %v17709_v48 = vmul.f32 1.442695, %v17686_v51  ;;  %v17685_v53 = vsub.f32 %v27559_v24, %v17651_v7 }
0x2e55   :  { %v17660_v57 = vpop.xlane.xlu0 %17659 }
0x2e56   :  { %22794 = vpow2.f32 %v17709_v48  ;;  %v17707_v49 = vmul.f32 1.442695, %v17685_v53  ;;  %v17688_v25 = vsub.f32 %v27566_v15, %v17660_v57 }
0x2e57   :  { %v27616_v37 = vpop.eup %22782  ;;  %v17657_v58 = vpop.xlane.xlu1 %17656 }
0x2e58   :  { %22796 = vpow2.f32 %v17707_v49  ;;  %v17713_v18 = vmul.f32 1.442695, %v17688_v25  ;;  %v17687_v11 = vsub.f32 %v27574_v10, %v17657_v58  ;;  %v17730_v43 = vsel %vm7721_vm10, %v27616_v37, 0.0 }
0x2e59   :  { %v27621_v28 = vpop.eup %22784  ;;  %v17666_v16 = vpop.xlane.xlu0 %17665  ;;  %17731 = vadd.xlane.f32.xlu0 %v17730_v43 }
0x2e5a   :  { %22798 = vpow2.f32 %v17713_v18  ;;  %v17711_v24 = vmul.f32 1.442695, %v17687_v11  ;;  %v17690_v27 = vsub.f32 %v27571_v31, %v17666_v16  ;;  %v17727_v15 = vsel %vm7717_vm11, %v27621_v28, 0.0 }
0x2e5b   :  { %v27626_v9 = vpop.eup %22786  ;;  %v17663_v63 = vpop.xlane.xlu1 %17662  ;;  %17728 = vadd.xlane.f32.xlu1 %v17727_v15 }
0x2e5c   :  { %22800 = vpow2.f32 %v17711_v24  ;;  %v17717_v10 = vmul.f32 1.442695, %v17690_v27  ;;  %v17689_v55 = vsub.f32 %v27579_v3, %v17663_v63  ;;  %v17736_v36 = vsel %vm7721_vm10, %v27626_v9, 0.0 }
0x2e5d   :  { %v27631_v47 = vpop.eup %22788  ;;  %17737 = vadd.xlane.f32.xlu0 %v17736_v36  ;;  %v17672_v50 = vpop.xlane.xlu0 %17671 }
0x2e5e   :  { %22802 = vpow2.f32 %v17717_v10  ;;  %v17715_v31 = vmul.f32 1.442695, %v17689_v55  ;;  %v17692_v1 = vsub.f32 %v27586_v42, %v17672_v50  ;;  %v17733_v46 = vsel %vm7717_vm11, %v27631_v47, 0.0 }
0x2e5f   :  { %v27636_v61 = vpop.eup %22790  ;;  %17734 = vadd.xlane.f32.xlu1 %v17733_v46  ;;  %v17669_v41 = vpop.xlane.xlu1 %17668 }
0x2e60   :  { %22804 = vpow2.f32 %v17715_v31  ;;  %v17721_v3 = vmul.f32 1.442695, %v17692_v1  ;;  %v17691_v44 = vsub.f32 %v27594_v39, %v17669_v41  ;;  %v17742_v52 = vsel %vm7721_vm10, %v27636_v61, 0.0 }
0x2e61   :  { %v27641_v45 = vpop.eup %22792  ;;  %17743 = vadd.xlane.f32.xlu0 %v17742_v52  ;;  %v17678_v26 = vpop.xlane.xlu0 %17677 }
0x2e62   :  { %22806 = vpow2.f32 %v17721_v3  ;;  %v17719_v42 = vmul.f32 1.442695, %v17691_v44  ;;  %v17694_v59 = vsub.f32 %v27591_v22, %v17678_v26  ;;  %v17739_v56 = vsel %vm7717_vm11, %v27641_v45, 0.0 }
0x2e63   :  { %v27646_v33 = vpop.eup %22794  ;;  %17740 = vadd.xlane.f32.xlu1 %v17739_v56  ;;  %v17675_v23 = vpop.xlane.xlu1 %17674 }
0x2e64   :  { %22808 = vpow2.f32 %v17719_v42  ;;  %v17725_v39 = vmul.f32 1.442695, %v17694_v59  ;;  %v17693_v34 = vsub.f32 %v27599_v30, %v17675_v23  ;;  %v17748_v6 = vsel %vm7721_vm10, %v27646_v33, 0.0 }
0x2e65   :  { %v27651_v54 = vpop.eup %22796  ;;  %17749 = vadd.xlane.f32.xlu0 %v17748_v6 }
0x2e66   :  { %22810 = vpow2.f32 %v17725_v39  ;;  %v17723_v5 = vmul.f32 1.442695, %v17693_v34  ;;  %v17745_v22 = vsel %vm7717_vm11, %v27651_v54, 0.0 }
0x2e67   :  { %v27655_v60 = vpop.eup %22798  ;;  %17746 = vadd.xlane.f32.xlu1 %v17745_v22 }
0x2e68   :  { %22812 = vpow2.f32 %v17723_v5  ;;  %v17754_v13 = vsel %vm7721_vm10, %v27655_v60, 0.0 }
0x2e69   :  { %v27659_v17 = vpop.eup %22800  ;;  %17755 = vadd.xlane.f32.xlu0 %v17754_v13 }
0x2e6a   :  { %v17751_v30 = vsel %vm7717_vm11, %v27659_v17, 0.0 }
0x2e6b   :  { %v27663_v21 = vpop.eup %22802  ;;  %17752 = vadd.xlane.f32.xlu1 %v17751_v30 }
0x2e6c   :  { %v17760_v38 = vsel %vm7721_vm10, %v27663_v21, 0.0 }
0x2e6d   :  { %v27667_v51 = vpop.eup %22804  ;;  %17761 = vadd.xlane.f32.xlu0 %v17760_v38 }
0x2e6e   :  { %v17757_v7 = vsel %vm7717_vm11, %v27667_v51, 0.0 }
0x2e6f   :  { %v27671_v48 = vpop.eup %22806  ;;  %17758 = vadd.xlane.f32.xlu1 %v17757_v7 }
0x2e70   :  { %v17766_v53 = vsel %vm7721_vm10, %v27671_v48, 0.0 }
0x2e71   :  { %v27675_v57 = vpop.eup %22808  ;;  %17767 = vadd.xlane.f32.xlu0 %v17766_v53 }
0x2e72   :  { %v17763_v49 = vsel %vm7717_vm11, %v27675_v57, 0.0 }
0x2e73   :  { %v27679_v25 = vpop.eup %22810  ;;  %17764 = vadd.xlane.f32.xlu1 %v17763_v49 }
0x2e74   :  { %v17772_v58 = vsel %vm7721_vm10, %v27679_v25, 0.0 }
0x2e75   :  { %v27683_v18 = vpop.eup %22812  ;;  %17773 = vadd.xlane.f32.xlu0 %v17772_v58 }
0x2e76   :  { %v17769_v11 = vsel %vm7717_vm11, %v27683_v18, 0.0 }
0x2e77   :  { %17770 = vadd.xlane.f32.xlu1 %v17769_v11 }
0x2e88   :  { %17809 = vrot.lane.b32.xlu1 %v27358_v2, %s22934_s21 }
0x2e8b   :  { %17807 = vrot.lane.b32.xlu0 %v27360_v14, %s22934_s21 }
0x2ee2   :  { %v17732_v43 = vpop.xlane.xlu0 %17731 }
0x2ee4   :  { %v17729_v16 = vpop.xlane.xlu1 %17728 }
0x2ee5   :  { %22814 = vrcp.f32 %v17729_v16 }
0x2ee6   :  { %v17738_v24 = vpop.xlane.xlu0 %17737 }
0x2ee8   :  { %v17735_v27 = vpop.xlane.xlu1 %17734 }
0x2eea   :  { %v17744_v15 = vpop.xlane.xlu0 %17743 }
0x2eec   :  { %v17741_v63 = vpop.xlane.xlu1 %17740 }
0x2eed   :  { %22816 = vrcp.f32 %v17741_v63 }
0x2eee   :  { %v17750_v10 = vpop.xlane.xlu0 %17749  ;;  %22818 = vrcp.f32 %v17732_v43  ;;  %v16924_v43 = vld [vmem:[%s27932_s0 + $0x770] sm:$0xff] }
0x2eef   :  { %22820 = vrcp.f32 %v17744_v15 }
0x2ef0   :  { %v17747_v55 = vpop.xlane.xlu1 %17746  ;;  %22822 = vrcp.f32 %v17735_v27 }
0x2ef2   :  { %v22815_v36 = vpop.eup %22814  ;;  %v17756_v50 = vpop.xlane.xlu0 %17755 }
0x2ef3   :  { %v17776_v31 = vmul.f32 %v22815_v36, %v27621_v28 }
0x2ef4   :  { %v17753_v1 = vpop.xlane.xlu1 %17752 }
0x2ef5   :  { %22315 = vmatprep.mubr.msk.f32.mxu1 %vm7717_vm11, %v17776_v31  ;;  %22824 = vrcp.f32 %v17753_v1 }
0x2ef6   :  { %v17762_v2 = vpop.xlane.xlu0 %17761  ;;  %22826 = vrcp.f32 %v17738_v24 }
0x2ef7   :  { %22828 = vrcp.f32 %v17756_v50 }
0x2ef8   :  { %v17759_v14 = vpop.xlane.xlu1 %17758 }
0x2efa   :  { %v22817_v46 = vpop.eup %22816  ;;  %v17768_v41 = vpop.xlane.xlu0 %17767 }
0x2efb   :  { %v17784_v3 = vmul.f32 %v22817_v46, %v27641_v45  ;;  %v22819_v26 = vpop.eup %22818 }
0x2efc   :  { %v17765_v44 = vpop.xlane.xlu1 %17764  ;;  %v22821_v59 = vpop.eup %22820  ;;  %v17778_v39 = vmul.f32 %v22819_v26, %v27616_v37 }
0x2efd   :  { %22329 = vmatprep.mubr.msk.f32.mxu0 %vm7717_vm11, %v17784_v3  ;;  %22830 = vrcp.f32 %v17765_v44  ;;  %v22823_v45 = vpop.eup %22822  ;;  %v17786_v34 = vmul.f32 %v22821_v59, %v27636_v61 }
0x2efe   :  { %22832 = vrcp.f32 %v17747_v55  ;;  %v17774_v28 = vpop.xlane.xlu0 %17773  ;;  %v17780_v37 = vmul.f32 %v22823_v45, %v27631_v47 }
0x2eff   :  { %22834 = vrcp.f32 %v17750_v10 }
0x2f00   :  { %v17771_v52 = vpop.xlane.xlu1 %17770  ;;  %22836 = vrcp.f32 %v17768_v41 }
0x2f01   :  { %22838 = vrcp.f32 %v17759_v14 }
0x2f02   :  { %v27701_v56 = vpop.permute.xlu0 %17807  ;;  %v22825_v23 = vpop.eup %22824  ;;  %22840 = vrcp.f32 %v17762_v2 }
0x2f03   :  { %22842 = vrcp.f32 %v17771_v52  ;;  %v22827_v6 = vpop.eup %22826  ;;  %v17792_v61 = vmul.f32 %v22825_v23, %v27659_v17 }
0x2f04   :  { %v27695_v42 = vpop.permute.xlu1 %17809  ;;  %v22829_v5 = vpop.eup %22828  ;;  %22844 = vrcp.f32 %v17774_v28  ;;  %v17782_v47 = vmul.f32 %v22827_v6, %v27626_v9 }
0x2f05   :  { %22311 = vmatprep.subr.msk.mxu1 %vm4149_vm7, %v27695_v42  ;;  %22325 = vmatprep.subr.msk.mxu0 %vm4149_vm7, %v27695_v42  ;;  %v17794_v17 = vmul.f32 %v22829_v5, %v27655_v60 }
0x2f06   :  { %22312 = vmatpush3.msk.msra.mxu1 %vm4149_vm7, %v27695_v42  ;;  %22326 = vmatpush3.msk.msra.mxu0 %vm4149_vm7, %v27695_v42 }
0x2f07   :  { %22313 = vmatprep.subr.mxu1 %v27701_v56  ;;  %22327 = vmatprep.subr.mxu0 %v27701_v56 }
0x2f08   :  { %22314 = vmatpush3.msra.mxu1 %v27701_v56  ;;  %22328 = vmatpush3.msra.mxu0 %v27701_v56 }
0x2f09   :  { %22316 = vmatmul.mubr.msk.f32.vlgmr.msra.gmra.mxu1 %vm7717_vm11, %v17778_v39  ;;  %22318 = vmatprep.subr.msk.mxu1 %vm4149_vm7, %v27695_v42 }
0x2f0a   :  { %22330 = vmatmul.mubr.msk.f32.vlgmr.msra.gmra.mxu0 %vm7717_vm11, %v17786_v34  ;;  %22339 = vmatprep.subr.msk.mxu0 %vm4149_vm7, %v27695_v42  ;;  %v22831_v22 = vpop.eup %22830 }
0x2f0b   :  { %22319 = vmatpush3.msk.msra.mxu1 %vm4149_vm7, %v27695_v42  ;;  %22322 = vmatprep.mubr.msk.f32.mxu1 %vm7717_vm11, %v17780_v37  ;;  %v22833_v13 = vpop.eup %22832  ;;  %v17800_v30 = vmul.f32 %v22831_v22, %v27675_v57 }
0x2f0c   :  { %22340 = vmatpush3.msk.msra.mxu0 %vm4149_vm7, %v27695_v42  ;;  %22343 = vmatprep.mubr.msk.f32.mxu0 %vm7717_vm11, %v17792_v61  ;;  %v17788_v38 = vmul.f32 %v22833_v13, %v27651_v54  ;;  %v22835_v9 = vpop.eup %22834 }
0x2f0d   :  { %22320 = vmatprep.subr.mxu1 %v27701_v56  ;;  %22341 = vmatprep.subr.mxu0 %v27701_v56  ;;  %v22837_v60 = vpop.eup %22836  ;;  %v17790_v54 = vmul.f32 %v22835_v9, %v27646_v33 }
0x2f0e   :  { %22321 = vmatpush3.msra.mxu1 %v27701_v56  ;;  %22342 = vmatpush3.msra.mxu0 %v27701_v56  ;;  %v22839_v7 = vpop.eup %22838  ;;  %v17802_v57 = vmul.f32 %v22837_v60, %v27671_v48 }
0x2f0f   :  { %22323 = vmatmul.mubr.msk.f32.vlgmr.msra.gmra.mxu1 %vm7717_vm11, %v17782_v47  ;;  %22332 = vmatprep.subr.msk.mxu1 %vm4149_vm7, %v27695_v42  ;;  %v22841_v53 = vpop.eup %22840  ;;  %v17796_v58 = vmul.f32 %v22839_v7, %v27667_v51  ;;  %v16927_v51 = vld [vmem:[%s27932_s0 + $0x788] sm:$0xff] }
0x2f10   :  { %22344 = vmatmul.mubr.msk.f32.vlgmr.msra.gmra.mxu0 %vm7717_vm11, %v17794_v17  ;;  %22353 = vmatprep.subr.msk.mxu0 %vm4149_vm7, %v27695_v42  ;;  %v22843_v49 = vpop.eup %22842  ;;  %v17798_v33 = vmul.f32 %v22841_v53, %v27663_v21 }
0x2f11   :  { %22333 = vmatpush3.msk.msra.mxu1 %vm4149_vm7, %v27695_v42  ;;  %22336 = vmatprep.mubr.msk.f32.mxu1 %vm7717_vm11, %v17788_v38  ;;  %v22845_v48 = vpop.eup %22844  ;;  %v17804_v11 = vmul.f32 %v22843_v49, %v27683_v18  ;;  %v16926_v18 = vld [vmem:[%s27932_s0 + $0x780] sm:$0xff] }
0x2f12   :  { %22354 = vmatpush3.msk.msra.mxu0 %vm4149_vm7, %v27695_v42  ;;  %22357 = vmatprep.mubr.msk.f32.mxu0 %vm7717_vm11, %v17800_v30  ;;  %v17806_v21 = vmul.f32 %v22845_v48, %v27679_v25  ;;  %v16925_v25 = vld [vmem:[%s27932_s0 + $0x778] sm:$0xff] }
0x2f13   :  { %22334 = vmatprep.subr.mxu1 %v27701_v56  ;;  %22355 = vmatprep.subr.mxu0 %v27701_v56 }
0x2f14   :  { %22335 = vmatpush3.msra.mxu1 %v27701_v56  ;;  %22356 = vmatpush3.msra.mxu0 %v27701_v56 }
0x2f15   :  { %22337 = vmatmul.mubr.msk.f32.vlgmr.msra.gmra.mxu1 %vm7717_vm11, %v17790_v54  ;;  %22346 = vmatprep.subr.msk.mxu1 %vm4149_vm7, %v27695_v42 }
0x2f16   :  { %22358 = vmatmul.mubr.msk.f32.vlgmr.msra.gmra.mxu0 %vm7717_vm11, %v17802_v57  ;;  %22347 = vmatpush3.msk.msra.mxu1 %vm4149_vm7, %v27695_v42 }
0x2f17   :  { %22350 = vmatprep.mubr.msk.f32.mxu1 %vm7717_vm11, %v17796_v58  ;;  %22348 = vmatprep.subr.mxu1 %v27701_v56 }
0x2f18   :  { %22349 = vmatpush3.msra.mxu1 %v27701_v56  ;;  %22367 = vmatprep.subr.mxu0 %v16927_v51 }
0x2f19   :  { %22351 = vmatmul.mubr.msk.f32.vlgmr.msra.gmra.mxu1 %vm7717_vm11, %v17798_v33  ;;  %22360 = vmatprep.subr.msk.mxu1 %vm4149_vm7, %v27695_v42 }
0x2f1a   :  { %22361 = vmatpush3.msk.msra.mxu1 %vm4149_vm7, %v27695_v42  ;;  %22364 = vmatprep.mubr.msk.f32.mxu1 %vm7717_vm11, %v17804_v11 }
0x2f1b   :  { %22362 = vmatprep.subr.mxu1 %v27701_v56  ;;  %22368 = vmatpush3.msra.mxu0 %v16927_v51 }
0x2f1c   :  { %22363 = vmatpush3.msra.mxu1 %v27701_v56  ;;  %22369 = vmatprep.subr.mxu0 %v16926_v18 }
0x2f1d   :  { %22365 = vmatmul.mubr.msk.f32.vlgmr.msra.gmra.mxu1 %vm7717_vm11, %v17806_v21  ;;  %22370 = vmatpush3.msra.mxu0 %v16926_v18 }
0x2f1e   :  { %22371 = vmatprep.subr.mxu0 %v16925_v25 }
0x2f1f   :  { %22372 = vmatpush3.msra.mxu0 %v16925_v25 }
0x2f20   :  { %22373 = vmatprep.subr.mxu0 %v16924_v43 }
0x2f21   :  { %22374 = vmatpush3.msra.mxu0 %v16924_v43 }
0x2fc9   :  { %v22317_v16 = vpop.f32.mrf.mxu1 }
0x2fca   :  { %v22331_v24 = vpop.f32.mrf.mxu0  ;;  %v18463_v63 = vmul.f32 %v27404_v40, %v22317_v16 }
0x2fcb   :  { %v17886_v27 = vpop.f32.mrf.mxu1  ;;  %v18467_v55 = vmul.f32 %v27422_v19, %v22331_v24 }
0x2fcc   :  { %v18048_v15 = vpop.f32.mrf.mxu0  ;;  %v18462_v36 = vmul.f32 %v27404_v40, %v17886_v27  ;;  %v18493_v2 = vsel %vm8581_vm12, %v18463_v63, 0.0  ;;  %v19764_v27 = vld [vmem:[%s27932_s0 + $0x790] ss:$0 sm:$0xff] }
0x2fcd   :  { %v18466_v14 = vmul.f32 %v27422_v19, %v18048_v15  ;;  %v18496_v28 = vsel %vm8581_vm12, %v18467_v55, 0.0 }
0x2fce   :  { %v18478_v52 = vsel %vm6868_vm9, %v18462_v36, 0.0 }
0x2fcf   :  { %v22324_v10 = vpop.f32.mrf.mxu1  ;;  %v18481_v45 = vsel %vm6868_vm9, %v18466_v14, 0.0 }
0x2fd0   :  { %v18465_v50 = vmul.f32 %v27410_v20, %v22324_v10  ;;  %v22345_v31 = vpop.f32.mrf.mxu0 }
0x2fd1   :  { %v17967_v1 = vpop.f32.mrf.mxu1  ;;  %v18471_v56 = vmul.f32 %v27454_v35, %v22345_v31 }
0x2fd2   :  { %v18494_v46 = vsel %vm8581_vm12, %v18465_v50, 0.0  ;;  %v18464_v41 = vmul.f32 %v27410_v20, %v17967_v1  ;;  %v18210_v3 = vpop.f32.mrf.mxu0 }
0x2fd3   :  { %v18495_v44 = vadd.f32 %v18494_v46, %v18493_v2  ;;  %v18470_v34 = vmul.f32 %v27454_v35, %v18210_v3  ;;  %v18500_v13 = vsel %vm8581_vm12, %v18471_v56, 0.0  ;;  %v18732_v56 = vld [vmem:[%s27932_s0 + $0x7f8] sm:$0xff] }
0x2fd4   :  { %v18479_v40 = vsel %vm6868_vm9, %v18464_v41, 0.0 }
0x2fd5   :  { %v18480_v26 = vadd.f32 %v18479_v40, %v18478_v52  ;;  %v22338_v42 = vpop.f32.mrf.mxu1  ;;  %v18497_v59 = vadd.f32 %v18496_v28, %v18495_v44  ;;  %v18485_v35 = vsel %vm6868_vm9, %v18470_v34, 0.0  ;;  %v18637_v40 = vld [vmem:[%s27932_s0 + $0x7b8] sm:$0xff] }
0x2fd6   :  { %v18469_v19 = vmul.f32 %v27432_v12, %v22338_v42  ;;  %v22359_v23 = vpop.f32.mrf.mxu0  ;;  %v18635_v42 = vld [vmem:[%s27932_s0 + $0x7a8] sm:$0xff] }
0x2fd7   :  { %v18129_v39 = vpop.f32.mrf.mxu1  ;;  %v18482_v20 = vadd.f32 %v18481_v45, %v18480_v26  ;;  %v18475_v30 = vmul.f32 %v27489_v29, %v22359_v23  ;;  %v18636_v26 = vld [vmem:[%s27932_s0 + $0x7b0] sm:$0xff]  ;;  %v18733_v45 = vld [vmem:[%s27932_s0 + $0x800] sm:$0xff] }
0x2fd8   :  { %v18498_v6 = vsel %vm8581_vm12, %v18469_v19, 0.0  ;;  %v18468_v37 = vmul.f32 %v27432_v12, %v18129_v39  ;;  %v18372_v61 = vpop.f32.mrf.mxu0  ;;  %v18731_v19 = vld [vmem:[%s27932_s0 + $0x7f0] sm:$0xff] }
0x2fd9   :  { %v18499_v5 = vadd.f32 %v18498_v6, %v18497_v59  ;;  %v22352_v22 = vpop.f32.mrf.mxu1  ;;  %v18474_v7 = vmul.f32 %v27489_v29, %v18372_v61  ;;  %v18504_v48 = vsel %vm8581_vm12, %v18475_v30, 0.0  ;;  %v18734_v59 = vld [vmem:[%s27932_s0 + $0x808] sm:$0xff]  ;;  %v19767_v61 = vld [vmem:[%s27932_s0 + $0x798] ss:$0 sm:$0xff]  ;;  %v19768_v30 = vld [vmem:[%s27932_s0 + $0x7a0] ss:$0 sm:$0xff] }
0x2fda   :  { %v18483_v47 = vsel %vm6868_vm9, %v18468_v37, 0.0  ;;  %v18473_v17 = vmul.f32 %v27462_v62, %v22352_v22  ;;  %22389 = vmatprep.subr.mxu0 %v18734_v59 }
0x2fdb   :  { %v18484_v38 = vadd.f32 %v18483_v47, %v18482_v20  ;;  %v18501_v9 = vadd.f32 %v18500_v13, %v18499_v5  ;;  %v18291_v60 = vpop.f32.mrf.mxu1  ;;  %v18489_v51 = vsel %vm6868_vm9, %v18474_v7, 0.0  ;;  %v18729_v7 = vld [vmem:[%s27932_s0 + $0x7e0] sm:$0xff] }
0x2fdc   :  { %v18502_v12 = vsel %vm8581_vm12, %v18473_v17, 0.0  ;;  %v18472_v54 = vmul.f32 %v27462_v62, %v18291_v60 }
0x2fdd   :  { %v18503_v53 = vadd.f32 %v18502_v12, %v18501_v9  ;;  %v18486_v57 = vadd.f32 %v18485_v35, %v18484_v38  ;;  %v22366_v49 = vpop.f32.mrf.mxu1  ;;  %v18730_v35 = vld [vmem:[%s27932_s0 + $0x7e8] sm:$0xff]  ;;  %v18728_v12 = vld [vmem:[%s27932_s0 + $0x7d8] sm:$0xff] }
0x2fde   :  { %v18487_v58 = vsel %vm6868_vm9, %v18472_v54, 0.0  ;;  %v18477_v33 = vmul.f32 %v27498_v8, %v22366_v49  ;;  %v18727_v54 = vld [vmem:[%s27932_s0 + $0x7d0] sm:$0xff] }
0x2fdf   :  { %v18488_v11 = vadd.f32 %v18487_v58, %v18486_v57  ;;  %v18453_v21 = vpop.f32.mrf.mxu1  ;;  %v18505_v18 = vadd.f32 %v18504_v48, %v18503_v53  ;;  %v19769_v53 = vld [vmem:[%s27932_s0 + $0x7c8] ss:$0 sm:$0xff] }
0x2fe0   :  { %v18476_v29 = vmul.f32 %v27498_v8, %v18453_v21  ;;  %v18506_v25 = vsel %vm8581_vm12, %v18477_v33, 0.0  ;;  %v19772_v21 = vld [vmem:[%s27932_s0 + $0x810] ss:$0 sm:$0xff] }
0x2fe1   :  { %v18490_v43 = vadd.f32 %v18489_v51, %v18488_v11  ;;  %v18507_v24 = vadd.f32 %v18506_v25, %v18505_v18 }
0x2fe2   :  { %v18491_v62 = vsel %vm6868_vm9, %v18476_v29, 0.0 }
0x2fe3   :  { %v18492_v16 = vadd.f32 %v18491_v62, %v18490_v43 }
0x2fe5   :  { %22375 = vmatprep.mubr.msk.f32.mxu0 %vm6868_vm9, %v18492_v16 }
0x2fe6   :  { %22376 = vmatmul.mubr.msk.f32.vlgmr.msra.gmra.mxu0 %vm6868_vm9, %v18507_v24 }
0x2fe7   :  { %22390 = vmatpush3.msra.mxu0 %v18734_v59 }
0x2fe8   :  { %22391 = vmatprep.subr.mxu0 %v18733_v45 }
0x2fe9   :  { %22392 = vmatpush3.msra.mxu0 %v18733_v45 }
0x2fea   :  { %22393 = vmatprep.subr.mxu0 %v18732_v56 }
0x2feb   :  { %22394 = vmatpush3.msra.mxu0 %v18732_v56 }
0x2fec   :  { %22395 = vmatprep.subr.mxu0 %v18731_v19 }
0x2fed   :  { %22396 = vmatpush3.msra.mxu0 %v18731_v19 }
0x2fee   :  { %22397 = vmatprep.subr.mxu0 %v18730_v35 }
0x2fef   :  { %22398 = vmatpush3.msra.mxu0 %v18730_v35 }
0x2ff0   :  { %22399 = vmatprep.subr.mxu0 %v18729_v7 }
0x2ff1   :  { %22400 = vmatpush3.msra.mxu0 %v18729_v7 }
0x2ff2   :  { %22401 = vmatprep.subr.mxu0 %v18728_v12 }
0x2ff3   :  { %22402 = vmatpush3.msra.mxu0 %v18728_v12 }
0x2ff4   :  { %22403 = vmatprep.subr.mxu0 %v18727_v54 }
0x2ff5   :  { %22404 = vmatpush3.msra.mxu0 %v18727_v54 }
0x30a6   :  { %v22377_v15 = vpop.f32.mrf.mxu0 }
0x30a7   :  { %v18590_v63 = vadd.f32 %v22377_v15, %v19764_v27 }
0x30a8   :  { %v18584_v10 = vpop.f32.mrf.mxu0 }
0x30a9   :  { %v18594_v8 = vadd.f32 %v18590_v63, %v27384_v4  ;;  %v18585_v55 = vadd.f32 %v19764_v27, %v18584_v10 }
0x30ab   :  { %v18593_v36 = vadd.f32 %v18585_v55, %v27382_v0  ;;  %v18600_v50 = vsel %vm8581_vm12, %v18594_v8, 0.0  ;;  %v18638_v0 = vld [vmem:[%s27932_s0 + $0x7c0] sm:$0xff] }
0x30ac   :  { %18601 = vadd.xlane.f32.xlu0 %v18600_v50  ;;  %22378 = vmatprep.subr.mxu1 %v18638_v0 }
0x30ad   :  { %v18597_v31 = vsel %vm6868_vm9, %v18593_v36, 0.0  ;;  %22379 = vmatpush3.msra.mxu1 %v18638_v0 }
0x30ae   :  { %18598 = vadd.xlane.f32.xlu1 %v18597_v31  ;;  %22380 = vmatprep.subr.mxu1 %v18637_v40 }
0x30af   :  { %22381 = vmatpush3.msra.mxu1 %v18637_v40  ;;  %v19776_v40 = vld [vmem:[%s27932_s0 + $0x820] ss:$0 sm:$0xff] }
0x30b0   :  { %22382 = vmatprep.subr.mxu1 %v18636_v26 }
0x30b1   :  { %22383 = vmatpush3.msra.mxu1 %v18636_v26 }
0x30b2   :  { %22384 = vmatprep.subr.mxu1 %v18635_v42 }
0x30b3   :  { %22385 = vmatpush3.msra.mxu1 %v18635_v42 }
0x30b4   :  { %22408 = vmatprep.subr.mxu1 %v22932_v32 }
0x3135   :  { %v18602_v1 = vpop.xlane.xlu0 %18601 }
0x3136   :  { %v18604_v2 = vmul.f32 0.03125, %v18602_v1 }
0x3137   :  { %v18599_v14 = vpop.xlane.xlu1 %18598 }
0x3138   :  { %v18606_v46 = vsub.f32 %v18594_v8, %v18604_v2  ;;  %v18603_v41 = vmul.f32 0.03125, %v18599_v14 }
0x313a   :  { %v18605_v3 = vsub.f32 %v18593_v36, %v18603_v41  ;;  %v18608_v44 = vmul.f32 %v18606_v46, %v18606_v46 }
0x313c   :  { %v18612_v28 = vsel %vm8581_vm12, %v18608_v44, 0.0  ;;  %v18607_v52 = vmul.f32 %v18605_v3, %v18605_v3 }
0x313d   :  { %18613 = vadd.xlane.f32.xlu0 %v18612_v28 }
0x313e   :  { %v18609_v4 = vsel %vm6868_vm9, %v18607_v52, 0.0  ;;  %v19775_v52 = vld [vmem:[%s27932_s0 + $0x818] ss:$0 sm:$0xff] }
0x313f   :  { %18610 = vadd.xlane.f32.xlu1 %v18609_v4 }
0x31c6   :  { %v18614_v23 = vpop.xlane.xlu0 %18613 }
0x31c7   :  { %v18616_v39 = vmul.f32 0.03125, %v18614_v23 }
0x31c8   :  { %v18611_v20 = vpop.xlane.xlu1 %18610 }
0x31c9   :  { %v18618_v34 = vadd.f32 1e-05, %v18616_v39  ;;  %v18615_v6 = vmul.f32 0.03125, %v18611_v20 }
0x31cb   :  { %22846 = vrsqrt.f32 %v18618_v34  ;;  %v18617_v37 = vadd.f32 1e-05, %v18615_v6 }
0x31cd   :  { %22848 = vrsqrt.f32 %v18617_v37 }
0x31d8   :  { %v22847_v5 = vpop.eup %22846 }
0x31d9   :  { %v18622_v22 = vmul.f32 %v22847_v5, %v18606_v46 }
0x31da   :  { %v22849_v13 = vpop.eup %22848 }
0x31db   :  { %v18621_v47 = vmul.f32 %v22849_v13, %v18605_v3  ;;  %v18628_v17 = vmul.f32 %v19767_v61, %v18622_v22 }
0x31dd   :  { %v18627_v38 = vmul.f32 %v19767_v61, %v18621_v47  ;;  %v18634_v60 = vadd.f32 %v19768_v30, %v18628_v17  ;;  %v18925_v17 = vld [vmem:[%s27932_s0 + $0x850] sm:$0xff] }
0x31df   :  { %v18633_v9 = vadd.f32 %v19768_v30, %v18627_v38  ;;  %v18924_v30 = vld [vmem:[%s27932_s0 + $0x848] sm:$0xff]  ;;  %v18923_v38 = vld [vmem:[%s27932_s0 + $0x840] sm:$0xff] }
0x31e1   :  { %22386 = vmatprep.mubr.msk.f32.mxu1 %vm6868_vm9, %v18633_v9 }
0x31e2   :  { %22387 = vmatmul.mubr.msk.f32.vlgmr.msra.gmra.mxu1 %vm6868_vm9, %v18634_v60 }
0x31e3   :  { %22416 = vmatprep.mubr.msk.f32.mxu1 %vm22933_vm6, %v22932_v32  ;;  %22409 = vmatpush3.msra.mxu1 %v18925_v17 }
0x31e4   :  { %22410 = vmatprep.subr.mxu1 %v22932_v32 }
0x31e5   :  { %22411 = vmatpush3.msra.mxu1 %v18924_v30 }
0x31e6   :  { %22412 = vmatprep.subr.mxu1 %v22932_v32 }
0x31e7   :  { %22413 = vmatpush3.msra.mxu1 %v18923_v38 }
0x31e8   :  { %22414 = vmatprep.subr.mxu1 %v22932_v32  ;;  %v19778_v32 = vld [vmem:[%s27932_s0 + $0x830] ss:$0 sm:$0xff] }
0x32a2   :  { %v22388_v57 = vpop.f32.mrf.mxu1 }
0x32a3   :  { %v18722_v49 = vadd.f32 %v22388_v57, %v19769_v53 }
0x32a4   :  { %v18716_v58 = vpop.f32.mrf.mxu1 }
0x32a5   :  { %v18717_v33 = vadd.f32 %v19769_v53, %v18716_v58  ;;  %v18726_v11 = vmax.f32 %v18722_v49, 0.0  ;;  %v19777_v49 = vld [vmem:[%s27932_s0 + $0x828] ss:$0 sm:$0xff] }
0x32a7   :  { %v18725_v48 = vmax.f32 %v18717_v33, 0.0 }
0x32a9   :  { %22405 = vmatprep.mubr.msk.f32.mxu0 %vm8830_vm13, %v18725_v48 }
0x32aa   :  { %22406 = vmatmul.mubr.msk.f32.vlgmr.msra.gmra.mxu0 %vm8830_vm13, %v18726_v11 }
0x336a   :  { %v22407_v51 = vpop.f32.mrf.mxu0 }
0x336b   :  { %v18818_v18 = vadd.f32 %v22407_v51, %v19772_v21 }
0x336c   :  { %v18812_v29 = vpop.f32.mrf.mxu0 }
0x336d   :  { %v18822_v25 = vadd.f32 %v18818_v18, %v18634_v60  ;;  %v18813_v43 = vadd.f32 %v19772_v21, %v18812_v29 }
0x336f   :  { %v18821_v62 = vadd.f32 %v18813_v43, %v18633_v9  ;;  %v18828_v16 = vsel %vm8581_vm12, %v18822_v25, 0.0  ;;  %v18922_v9 = vld [vmem:[%s27932_s0 + $0x838] sm:$0xff] }
0x3370   :  { %18829 = vadd.xlane.f32.xlu0 %v18828_v16  ;;  %22415 = vmatpush3.msra.mxu1 %v18922_v9 }
0x3371   :  { %v18825_v24 = vsel %vm6868_vm9, %v18821_v62, 0.0 }
0x3372   :  { %18826 = vadd.xlane.f32.xlu1 %v18825_v24 }
0x33f9   :  { %v18830_v27 = vpop.xlane.xlu0 %18829 }
0x33fa   :  { %v18832_v15 = vmul.f32 0.03125, %v18830_v27 }
0x33fb   :  { %v18827_v63 = vpop.xlane.xlu1 %18826 }
0x33fc   :  { %v18834_v10 = vsub.f32 %v18822_v25, %v18832_v15  ;;  %v18831_v8 = vmul.f32 0.03125, %v18827_v63 }
0x33fe   :  { %v18833_v55 = vsub.f32 %v18821_v62, %v18831_v8  ;;  %v18836_v36 = vmul.f32 %v18834_v10, %v18834_v10 }
0x3400   :  { %v18840_v50 = vsel %vm8581_vm12, %v18836_v36, 0.0  ;;  %v18835_v31 = vmul.f32 %v18833_v55, %v18833_v55 }
0x3401   :  { %18841 = vadd.xlane.f32.xlu0 %v18840_v50 }
0x3402   :  { %v18837_v1 = vsel %vm6868_vm9, %v18835_v31, 0.0 }
0x3403   :  { %18838 = vadd.xlane.f32.xlu1 %v18837_v1 }
0x348a   :  { %v18842_v2 = vpop.xlane.xlu0 %18841 }
0x348b   :  { %v18844_v14 = vmul.f32 0.03125, %v18842_v2 }
0x348c   :  { %v18839_v46 = vpop.xlane.xlu1 %18838 }
0x348d   :  { %v18846_v41 = vadd.f32 1e-05, %v18844_v14  ;;  %v18843_v3 = vmul.f32 0.03125, %v18839_v46  ;;  %v19779_v14 = vld [vmem:[%s27932_s0 + $0x858] ss:$0 sm:$0xff]  ;;  %s19024_s0 = sshll.u32 %s22936_s28, 4  ;;  %s19025_s0 = int_to_ptr.vmem [resolvable:$true] %s19024_s0 }
0x348e   :  { %s22910_s29 = scalar_lea.vmem %s19025_s0, 32  ;;  %p22915_p1 = scmp.lt.s32.totalorder %s19025_s0, %s19025_s0 }
0x348f   :  { %22850 = vrsqrt.f32 %v18846_v41  ;;  %v18845_v44 = vadd.f32 1e-05, %v18843_v3  ;;  %p22911_p0 = scmp.ne.s32.totalorder %s19025_s0, %s22910_s29  ;;  %p22916_p2 = scmp.lt.s32.totalorder %s22910_s29, %s22910_s29 }
0x3491   :  { %22852 = vrsqrt.f32 %v18845_v44  ;;  %p22917_p3 = por %p22916_p2, %p22915_p1 }
0x3493   :  { %p22918_p4 = pnand %p22917_p3, %p22911_p0 }
0x349c   :  { %v22851_v28 = vpop.eup %22850 }
0x349d   :  { %v18850_v4 = vmul.f32 %v22851_v28, %v18834_v10 }
0x349e   :  { %v22853_v0 = vpop.eup %22852 }
0x349f   :  { %v18856_v26 = vmul.f32 %v19775_v52, %v18850_v4  ;;  %v18849_v42 = vmul.f32 %v22853_v0, %v18833_v55 }
0x34a1   :  { %v18862_v59 = vadd.f32 %v19776_v40, %v18856_v26  ;;  %v18855_v45 = vmul.f32 %v19775_v52, %v18849_v42 }
0x34a3   :  { %v18868_v56 = vsel %vm8581_vm12, %v18862_v59, 0.0  ;;  %v18861_v19 = vadd.f32 %v19776_v40, %v18855_v45 }
0x34a4   :  { %18869 = vadd.xlane.f32.xlu0 %v18868_v56 }
0x34a5   :  { %v18865_v23 = vsel %vm6868_vm9, %v18861_v19, 0.0 }
0x34a6   :  { %18866 = vadd.xlane.f32.xlu1 %v18865_v23 }
0x352d   :  { %v18870_v39 = vpop.xlane.xlu0 %18869 }
0x352e   :  { %v18872_v20 = vmul.f32 0.03125, %v18870_v39 }
0x352f   :  { %v18867_v34 = vpop.xlane.xlu1 %18866 }
0x3530   :  { %v18874_v6 = vsub.f32 %v18862_v59, %v18872_v20  ;;  %v18871_v37 = vmul.f32 0.03125, %v18867_v34 }
0x3532   :  { %v18873_v5 = vsub.f32 %v18861_v19, %v18871_v37  ;;  %v18876_v61 = vmul.f32 %v18874_v6, %v18874_v6 }
0x3534   :  { %v18880_v22 = vsel %vm8581_vm12, %v18876_v61, 0.0  ;;  %v18875_v13 = vmul.f32 %v18873_v5, %v18873_v5 }
0x3535   :  { %18881 = vadd.xlane.f32.xlu0 %v18880_v22 }
0x3536   :  { %v18877_v47 = vsel %vm6868_vm9, %v18875_v13, 0.0 }
0x3537   :  { %18878 = vadd.xlane.f32.xlu1 %v18877_v47 }
0x35be   :  { %v18882_v60 = vpop.xlane.xlu0 %18881 }
0x35bf   :  { %v18884_v35 = vmul.f32 0.03125, %v18882_v60 }
0x35c0   :  { %v18879_v7 = vpop.xlane.xlu1 %18878 }
0x35c1   :  { %v18886_v12 = vadd.f32 1e-05, %v18884_v35  ;;  %v18883_v54 = vmul.f32 0.03125, %v18879_v7 }
0x35c3   :  { %22854 = vrsqrt.f32 %v18886_v12  ;;  %v18885_v53 = vadd.f32 1e-05, %v18883_v54 }
0x35c5   :  { %22856 = vrsqrt.f32 %v18885_v53 }
0x35d0   :  { %v22855_v57 = vpop.eup %22854 }
0x35d1   :  { %v18890_v58 = vmul.f32 %v22855_v57, %v18874_v6 }
0x35d2   :  { %v22857_v33 = vpop.eup %22856 }
0x35d3   :  { %v18896_v48 = vmul.f32 %v19777_v49, %v18890_v58  ;;  %v18889_v11 = vmul.f32 %v22857_v33, %v18873_v5 }
0x35d5   :  { %v18902_v21 = vadd.f32 %v19778_v32, %v18896_v48  ;;  %v18895_v51 = vmul.f32 %v19777_v49, %v18889_v11 }
0x35d7   :  { %v18901_v18 = vadd.f32 %v19778_v32, %v18895_v51  ;;  %v18913_v43 = vsel %vm8581_vm12, %v18902_v21, -inf }
0x35d9   :  { %v18904_v29 = vsel %vm18903_vm14, %v18901_v18, -inf  ;;  %v18912_v25 = vsel %vm18911_vm15, %v18901_v18, -inf }
0x35da   :  { %v18905_v62 = vrot.slane %v18904_v29, 4  ;;  %v18914_v16 = vmax.f32 %v18912_v25, %v18913_v43 }
0x35dc   :  { %v18906_v24 = vmax.f32 %v18904_v29, %v18905_v62  ;;  %v18915_v27 = vrot.slane %v18914_v16, 4 }
0x35de   :  { %v18907_v15 = vrot.slane %v18906_v24, 2  ;;  %v18916_v63 = vmax.f32 %v18914_v16, %v18915_v27 }
0x35e0   :  { %v18908_v10 = vmax.f32 %v18906_v24, %v18907_v15  ;;  %v18917_v8 = vrot.slane %v18916_v63, 2 }
0x35e2   :  { %v18909_v55 = vrot.slane %v18908_v10, 1  ;;  %v18918_v36 = vmax.f32 %v18916_v63, %v18917_v8 }
0x35e4   :  { %v18919_v50 = vrot.slane %v18918_v36, 1  ;;  %v18910_v31 = vmax.f32 %v18908_v10, %v18909_v55 }
0x35e6   :  { %v18920_v1 = vmax.f32 %v18918_v36, %v18919_v50 }
0x35e8   :  { %v18921_v2 = vsel %vm341_vm5, %v18910_v31, %v18920_v1 }
0x35e9   :  { %22417 = vmatmul.mubr.msk.f32.vlgmr.msra.gmra.mxu1 %vm6868_vm9, %v18921_v2 }
0x36a9   :  { %v19000_v46 = vpop.f32.mrf.mxu1 }
0x36aa   :  { %v19001_v41 = vadd.f32 %v19779_v14, %v19000_v46 }
0x36ab   :  { %v22418_v3 = vpop.f32.mrf.mxu1 }
0x36ac   :  { %v19005_v44 = vsel %vm19004_vm0, %v19001_v41, -inf }
0x36ad   :  { %19006 = vmax.xlane.f32.xlu1 %v19005_v44 }
0x3736   :  { %v19007_v28 = vpop.xlane.xlu1 %19006 }
0x3737   :  { %v19008_v52 = vsub.f32 %v19001_v41, %v19007_v28 }
0x3739   :  { %v19009_v4 = vmul.f32 1.442695, %v19008_v52 }
0x373b   :  { %22858 = vpow2.f32 %v19009_v4 }
0x3748   :  { %v22859_v0 = vpop.eup %22858 }
0x3749   :  { %v19011_v40 = vsel %vm19004_vm0, %v22859_v0, 0.0 }
0x374a   :  { %19012 = vadd.xlane.f32.xlu0 %v19011_v40 }
0x37d3   :  { %v19013_v26 = vpop.xlane.xlu0 %19012 }
0x37d4   :  { %22860 = vlog2.f32 %v19013_v26 }
0x37e1   :  { %v22861_v42 = vpop.eup %22860 }
0x37e2   :  { %v19015_v59 = vmul.f32 0.6931472, %v22861_v42 }
0x37e4   :  { %v19016_v45 = vsub.f32 %v19008_v52, %v19015_v59 }
0x37e6   :  { %19017 = vst.msk [vmem:[#allocation2] sm:$0x3] %vm19004_vm0, %v19016_v45 }
0x37e7   :  { %22921 = shalt.err (!%p22918_p4)
}
0x37e8   :  { %19027 = dma.vmem_to_hbm [thread:$0]  %s19025_s0, 32, %s27938_s6, [#allocation3]  }
0x37e9   :  { %22930 = dma.done.wait [#allocation3], 32  }
0x37ea   :  { %22931 = vsyncadd [#allocation3], 4294967264 }
0x37eb   :  { %19031 = vsyncpa [#allocation3], 1 }

</bundles_post_ra>
